<compile_context>
chip_gen: v7x
topology: tpu7x:2x2x1
jax: 0.10.0
libtpu: 0.0.40
codegen_flags: <defaults>
</compile_context>

<pallas_src>
import functools
import math
import numpy as np
import jax
import jax.numpy as jnp
from jax.experimental import pallas as pl
from jax.experimental.pallas import tpu as pltpu

# ----- model hyper-parameters (small, consistent with the module's args) -----
VOCAB = 64          # len(vocab)
H     = 32          # enc_hidden_size == dec_hidden_size
FF    = 64          # *_ff_size
NH    = 4           # *_heads
DH    = H // NH     # head dim
ENC_LAYERS  = 2
HIER_LAYERS = 2
DEC_LAYERS  = 2
PAD_TOKEN   = 0     # vocab['[PAD]']
START_TOKEN = 1     # vocab['[unused1]']
LN_EPS      = 1e-6
NEG_INF     = -1e9
ATTN_SCALE  = 1.0 / math.sqrt(DH)


# ========================== in-kernel helper functions ========================

def _ln(x, g, b):
    mu = jnp.mean(x, axis=-1, keepdims=True)
    xc = x - mu
    var = jnp.mean(xc * xc, axis=-1, keepdims=True)
    return xc * jax.lax.rsqrt(var + LN_EPS) * g + b


def _gelu(x):
    # GELU (tanh approximation) -> EUP
    return 0.5 * x * (1.0 + jnp.tanh(0.7978845608028654 * (x + 0.044715 * x * x * x)))


def _mha(q_proj, k_proj, v_proj, wo, bias):
    """Multi-head attention for all batches & heads at once.

    q_proj: [Mq, H]; k_proj, v_proj: [Mk, H]; wo: [H, H]; bias: [Mq, Mk]
    additive mask that already encodes block-diagonal batch structure,
    key padding and (decoder) causality. The output projection is folded
    into the head loop via row slices of wo, so no head concat/transpose.
    """
    out = None
    for h in range(NH):
        sl = slice(h * DH, (h + 1) * DH)
        q = q_proj[:, sl]
        k = k_proj[:, sl]
        v = v_proj[:, sl]
        s = jax.lax.dot_general(q, k, (((1,), (1,)), ((), ())),
                                preferred_element_type=jnp.float32)
        s = s * ATTN_SCALE + bias
        s = s - jnp.max(s, axis=-1, keepdims=True)
        p = jnp.exp(s)
        p = p * pl.reciprocal(jnp.sum(p, axis=-1, keepdims=True), approx=True)
        ctx = jnp.dot(p, v, preferred_element_type=jnp.float32)        # [Mq, DH]
        oh = jnp.dot(ctx, wo[sl, :], preferred_element_type=jnp.float32)  # [Mq, H]
        out = oh if out is None else out + oh
    return out


def _ffn(x, g, b, w1, b1, w2, b2):
    # PositionwiseFeedForward: w2(gelu(w1(LayerNorm(x)))) + x
    xn = _ln(x, g, b)
    h1 = _gelu(jnp.dot(xn, w1, preferred_element_type=jnp.float32) + b1)
    return jnp.dot(h1, w2, preferred_element_type=jnp.float32) + b2 + x


# ============================ fused Pallas kernels ============================

def _make_encoder_kernel(n_layers):
    def kernel(x_ref, bcol_ref, brow_ref, kpad_ref,
               ln_g, ln_b, wqkv, bqkv, wo, bo,
               fln_g, fln_b, w1, b1, w2, b2,
               final_g, final_b, o_ref):
        x = x_ref[...]                                                  # [M, H]
        masked = (bcol_ref[...] != brow_ref[...]) | (kpad_ref[...] > 0.5)
        bias = jnp.where(masked, NEG_INF, 0.0)                          # [M, M]
        for li in range(n_layers):
            xn = x if li == 0 else _ln(x, ln_g[li], ln_b[li])
            qkv = jnp.dot(xn, wqkv[li], preferred_element_type=jnp.float32) + bqkv[li]
            ctx = _mha(qkv[:, :H], qkv[:, H:2 * H], qkv[:, 2 * H:], wo[li], bias)
            out = ctx + bo[li] + x                   # dropout omitted
            x = _ffn(out, fln_g[li], fln_b[li], w1[li], b1[li], w2[li], b2[li])
        o_ref[...] = _ln(x, final_g[...], final_b[...])
    return kernel


def _make_decoder_kernel(n_layers):
    def kernel(x_ref, mem_ref,
               qb_col, qb_row, qpos_col, qpos_row, tpad_row,
               mb_row, mpad_row,
               ln1_g, ln1_b, wqkv_s, bqkv_s, wo_s, bo_s,
               ln2_g, ln2_b, wq_c, bq_c, wkv_c, bkv_c, wo_c, bo_c,
               fln_g, fln_b, w1, b1, w2, b2,
               final_g, final_b, o_ref):
        x = x_ref[...]                                                  # [Mq, H]
        mem = mem_ref[...]                                              # [Mk, H]
        self_masked = ((qb_col[...] != qb_row[...])                     # cross batch
                       | (qpos_row[...] > qpos_col[...])                # causal (future key)
                       | (tpad_row[...] > 0.5))                         # padded key
        self_bias = jnp.where(self_masked, NEG_INF, 0.0)                # [Mq, Mq]
        mem_masked = (qb_col[...] != mb_row[...]) | (mpad_row[...] > 0.5)
        mem_bias = jnp.where(mem_masked, NEG_INF, 0.0)                  # [Mq, Mk]
        for li in range(n_layers):
            xn = _ln(x, ln1_g[li], ln1_b[li])
            qkv = jnp.dot(xn, wqkv_s[li], preferred_element_type=jnp.float32) + bqkv_s[li]
            sa = _mha(qkv[:, :H], qkv[:, H:2 * H], qkv[:, 2 * H:], wo_s[li], self_bias)
            q_res = sa + bo_s[li] + x
            qn = _ln(q_res, ln2_g[li], ln2_b[li])
            qc = jnp.dot(qn, wq_c[li], preferred_element_type=jnp.float32) + bq_c[li]
            kv = jnp.dot(mem, wkv_c[li], preferred_element_type=jnp.float32) + bkv_c[li]
            ca = _mha(qc, kv[:, :H], kv[:, H:], wo_c[li], mem_bias)
            mid = ca + bo_c[li] + q_res
            x = _ffn(mid, fln_g[li], fln_b[li], w1[li], b1[li], w2[li], b2[li])
        o_ref[...] = _ln(x, final_g[...], final_b[...])
    return kernel


def _vspec(shape):
    nd = len(shape)
    return pl.BlockSpec(shape, lambda i, nd=nd: (0,) * nd)


# ============================ transformer wrappers ============================

def positional_encoding(length, dim):
    pos = np.arange(length)[:, None].astype(np.float64)
    div = np.exp(np.arange(0, dim, 2).astype(np.float64) * -(np.log(10000.0) / dim))
    pe = np.zeros((length, dim), dtype=np.float32)
    pe[:, 0::2] = np.sin(pos * div)
    pe[:, 1::2] = np.cos(pos * div)
    return jnp.asarray(pe)


def transformer_encoder(p, x, pad_mask):
    # x: [B, S, H]; pad_mask: [B, S] f32, 1.0 where position is padding
    B, S, _ = x.shape
    M = B * S
    n_layers = p['wqkv'].shape[0]
    x = x * (1.0 - pad_mask)[:, :, None] + positional_encoding(S, H)[None]
    bidx = jnp.repeat(jnp.arange(B, dtype=jnp.float32), S)
    args = (x.reshape(M, H),
            bidx.reshape(M, 1), bidx.reshape(1, M), pad_mask.reshape(1, M),
            p['ln_g'], p['ln_b'], p['wqkv'], p['bqkv'], p['wo'], p['bo'],
            p['fln_g'], p['fln_b'], p['w1'], p['b1'], p['w2'], p['b2'],
            p['final_g'], p['final_b'])
    out = pl.pallas_call(
        _make_encoder_kernel(n_layers),
        out_shape=jax.ShapeDtypeStruct((M, H), jnp.float32),
        grid=(1,),
        in_specs=[_vspec(a.shape) for a in args],
        out_specs=_vspec((M, H)),
        compiler_params=pltpu.CompilerParams(dimension_semantics=("arbitrary",)),
    )(*args)
    return out.reshape(B, S, H)


def transformer_decoder(p, emb_table, tgt, memory, mem_pad_mask):
    # tgt: [B, T] int32; memory: [B, Sm, H]; mem_pad_mask: [B, Sm] f32 (1 = pad)
    B, T = tgt.shape
    Sm = memory.shape[1]
    Mq, Mk = B * T, B * Sm
    n_layers = p['wqkv_s'].shape[0]
    x = emb_table[tgt] * jnp.sqrt(jnp.float32(H)) + positional_encoding(T, H)[None]
    tgt_pad = (tgt == PAD_TOKEN).astype(jnp.float32)
    qb = jnp.repeat(jnp.arange(B, dtype=jnp.float32), T)
    qpos = jnp.tile(jnp.arange(T, dtype=jnp.float32), B)
    mb = jnp.repeat(jnp.arange(B, dtype=jnp.float32), Sm)
    args = (x.reshape(Mq, H), memory.reshape(Mk, H),
            qb.reshape(Mq, 1), qb.reshape(1, Mq),
            qpos.reshape(Mq, 1), qpos.reshape(1, Mq),
            tgt_pad.reshape(1, Mq),
            mb.reshape(1, Mk), mem_pad_mask.reshape(1, Mk),
            p['ln1_g'], p['ln1_b'], p['wqkv_s'], p['bqkv_s'], p['wo_s'], p['bo_s'],
            p['ln2_g'], p['ln2_b'], p['wq_c'], p['bq_c'], p['wkv_c'], p['bkv_c'],
            p['wo_c'], p['bo_c'],
            p['fln_g'], p['fln_b'], p['w1'], p['b1'], p['w2'], p['b2'],
            p['final_g'], p['final_b'])
    out = pl.pallas_call(
        _make_decoder_kernel(n_layers),
        out_shape=jax.ShapeDtypeStruct((Mq, H), jnp.float32),
        grid=(1,),
        in_specs=[_vspec(a.shape) for a in args],
        out_specs=_vspec((Mq, H)),
        compiler_params=pltpu.CompilerParams(dimension_semantics=("arbitrary",)),
    )(*args)
    return out.reshape(B, T, H)


# ================================ full forward ================================

def model_forward(params, src, mask_src, dec_tgt, ex_segs):
    # src: [N_sent, S] int32; mask_src: [N_sent, S] bool (True = real token)
    # dec_tgt: [B, T+1] int32; ex_segs: static python list, sum == N_sent
    src_emb = params['embeddings'][src]                   # nn.Embedding(padding_idx=0)
    src_pad = 1.0 - mask_src.astype(jnp.float32)          # ~mask_src: 1 = pad
    enc_hid = transformer_encoder(params['encoder'], src_emb, src_pad)
    clss = enc_hid[:, 0, :]                               # [N_sent, H]

    # pad_sequence(torch.split(clss, ex_segs), batch_first=True)
    B = len(ex_segs)
    max_segs = max(ex_segs)
    hier_rows, mask_rows = [], []
    off = 0
    for n in ex_segs:
        seg = clss[off:off + n]
        off += n
        pad = max_segs - n
        hier_rows.append(jnp.pad(seg, ((0, pad), (0, 0))))
        mask_rows.append(jnp.concatenate([jnp.zeros((n,), jnp.float32),
                                          jnp.ones((pad,), jnp.float32)]))
    hier_input = jnp.stack(hier_rows)                     # [B, max_segs, H]
    hier_mask = jnp.stack(mask_rows)                      # [B, max_segs], 1 = pad

    hier_output = transformer_encoder(params['hier'], hier_input, hier_mask)

    # training branch: doc_decoder(dec_tgt[:, :-1], hier_output, memory_masks=hier_mask)
    tgt = dec_tgt[:, :-1]
    doc_decode_output = transformer_decoder(
        params['doc_decoder'], params['tgt_embeddings'], tgt, hier_output, hier_mask)
    return doc_decode_output


# ============================== parameter init ================================

def init_params(key):
    keys = iter(jax.random.split(key, 512))

    def nrm(shape):   # _set_parameter_tf: normal(mean=0, std=0.02)
        return 0.02 * jax.random.normal(next(keys), shape, jnp.float32)

    def zeros(shape): return jnp.zeros(shape, jnp.float32)
    def ones(shape):  return jnp.ones(shape, jnp.float32)

    def encoder(L):
        return {'ln_g': ones((L, 1, H)), 'ln_b': zeros((L, 1, H)),
                'wqkv': nrm((L, H, 3 * H)), 'bqkv': zeros((L, 1, 3 * H)),
                'wo': nrm((L, H, H)), 'bo': zeros((L, 1, H)),
                'fln_g': ones((L, 1, H)), 'fln_b': zeros((L, 1, H)),
                'w1': nrm((L, H, FF)), 'b1': zeros((L, 1, FF)),
                'w2': nrm((L, FF, H)), 'b2': zeros((L, 1, H)),
                'final_g': ones((1, H)), 'final_b': zeros((1, H))}

    def decoder(L):
        return {'ln1_g': ones((L, 1, H)), 'ln1_b': zeros((L, 1, H)),
                'wqkv_s': nrm((L, H, 3 * H)), 'bqkv_s': zeros((L, 1, 3 * H)),
                'wo_s': nrm((L, H, H)), 'bo_s': zeros((L, 1, H)),
                'ln2_g': ones((L, 1, H)), 'ln2_b': zeros((L, 1, H)),
                'wq_c': nrm((L, H, H)), 'bq_c': zeros((L, 1, H)),
                'wkv_c': nrm((L, H, 2 * H)), 'bkv_c': zeros((L, 1, 2 * H)),
                'wo_c': nrm((L, H, H)), 'bo_c': zeros((L, 1, H)),
                'fln_g': ones((L, 1, H)), 'fln_b': zeros((L, 1, H)),
                'w1': nrm((L, H, FF)), 'b1': zeros((L, 1, FF)),
                'w2': nrm((L, FF, H)), 'b2': zeros((L, 1, H)),
                'final_g': ones((1, H)), 'final_b': zeros((1, H))}

    emb = nrm((VOCAB, H)).at[PAD_TOKEN].set(0.0)       # padding_idx=0
    tgt_emb = nrm((VOCAB, H)).at[PAD_TOKEN].set(0.0)   # shared by sent/doc decoders
    return {'embeddings': emb,
            'tgt_embeddings': tgt_emb,
            'encoder': encoder(ENC_LAYERS),
            'hier': encoder(HIER_LAYERS),
            'doc_decoder': decoder(DEC_LAYERS)}


# =================================== main =====================================

if __name__ == "__main__":
    root = jax.random.PRNGKey(0)
    params = init_params(root)

    ex_segs = [2, 4]          # 2 documents with 2 and 4 sentences
    N = sum(ex_segs)          # 6 sentences total
    S = 8                     # tokens per sentence
    T1 = 9                    # dec_tgt length (decoder consumes T1-1 = 8 tokens)

    k1, k2 = jax.random.split(jax.random.PRNGKey(0), 2)
    src = jax.random.randint(k1, (N, S), 4, VOCAB, dtype=jnp.int32)
    lengths = jnp.array([8, 6, 8, 7, 5, 8], dtype=jnp.int32)
    mask_src = jnp.arange(S)[None, :] < lengths[:, None]   # True = real token
    src = jnp.where(mask_src, src, PAD_TOKEN)
    src = src.at[:, 0].set(2)                               # leading [CLS]-like token

    dec_tgt = jax.random.randint(k2, (len(ex_segs), T1), 4, VOCAB, dtype=jnp.int32)
    dec_tgt = dec_tgt.at[:, 0].set(START_TOKEN)

    fwd = jax.jit(functools.partial(model_forward, ex_segs=ex_segs))
    out = fwd(params, src, mask_src, dec_tgt)
    jax.block_until_ready(out)
    assert out.shape == (len(ex_segs), T1 - 1, H)
    assert jnp.all(jnp.isfinite(out))
    print("KERNEL_OK")
</pallas_src>

<mosaic_0001>
module attributes {stable_mosaic.version = 11 : i64} {
  func.func @kernel(%arg0: i32, %arg1: memref<48x32xf32, #tpu.memory_space<vmem>>, %arg2: memref<48x1xf32, #tpu.memory_space<vmem>>, %arg3: memref<1x48xf32, #tpu.memory_space<vmem>>, %arg4: memref<1x48xf32, #tpu.memory_space<vmem>>, %arg5: memref<2x1x32xf32, #tpu.memory_space<vmem>>, %arg6: memref<2x1x32xf32, #tpu.memory_space<vmem>>, %arg7: memref<2x32x96xf32, #tpu.memory_space<vmem>>, %arg8: memref<2x1x96xf32, #tpu.memory_space<vmem>>, %arg9: memref<2x32x32xf32, #tpu.memory_space<vmem>>, %arg10: memref<2x1x32xf32, #tpu.memory_space<vmem>>, %arg11: memref<2x1x32xf32, #tpu.memory_space<vmem>>, %arg12: memref<2x1x32xf32, #tpu.memory_space<vmem>>, %arg13: memref<2x32x64xf32, #tpu.memory_space<vmem>>, %arg14: memref<2x1x64xf32, #tpu.memory_space<vmem>>, %arg15: memref<2x64x32xf32, #tpu.memory_space<vmem>>, %arg16: memref<2x1x32xf32, #tpu.memory_space<vmem>>, %arg17: memref<1x32xf32, #tpu.memory_space<vmem>>, %arg18: memref<1x32xf32, #tpu.memory_space<vmem>>, %arg19: memref<48x32xf32, #tpu.memory_space<vmem>>) attributes {dimension_semantics = [#tpu.dimension_semantics<arbitrary>], iteration_bounds = array<i64: 1>, scalar_prefetch = 0 : i64, scratch_operands = 0 : i64, tpu.core_type = #tpu.core_type<tc>, window_params = [{pipeline_mode = #tpu.pipeline_mode<synchronous>, transform_indices = @transform_0, window_bounds = array<i64: 48, 32>}, {pipeline_mode = #tpu.pipeline_mode<synchronous>, transform_indices = @transform_1, window_bounds = array<i64: 48, 1>}, {pipeline_mode = #tpu.pipeline_mode<synchronous>, transform_indices = @transform_2, window_bounds = array<i64: 1, 48>}, {pipeline_mode = #tpu.pipeline_mode<synchronous>, transform_indices = @transform_3, window_bounds = array<i64: 1, 48>}, {pipeline_mode = #tpu.pipeline_mode<synchronous>, transform_indices = @transform_4, window_bounds = array<i64: 2, 1, 32>}, {pipeline_mode = #tpu.pipeline_mode<synchronous>, transform_indices = @transform_5, window_bounds = array<i64: 2, 1, 32>}, {pipeline_mode = #tpu.pipeline_mode<synchronous>, transform_indices = @transform_6, window_bounds = array<i64: 2, 32, 96>}, {pipeline_mode = #tpu.pipeline_mode<synchronous>, transform_indices = @transform_7, window_bounds = array<i64: 2, 1, 96>}, {pipeline_mode = #tpu.pipeline_mode<synchronous>, transform_indices = @transform_8, window_bounds = array<i64: 2, 32, 32>}, {pipeline_mode = #tpu.pipeline_mode<synchronous>, transform_indices = @transform_9, window_bounds = array<i64: 2, 1, 32>}, {pipeline_mode = #tpu.pipeline_mode<synchronous>, transform_indices = @transform_10, window_bounds = array<i64: 2, 1, 32>}, {pipeline_mode = #tpu.pipeline_mode<synchronous>, transform_indices = @transform_11, window_bounds = array<i64: 2, 1, 32>}, {pipeline_mode = #tpu.pipeline_mode<synchronous>, transform_indices = @transform_12, window_bounds = array<i64: 2, 32, 64>}, {pipeline_mode = #tpu.pipeline_mode<synchronous>, transform_indices = @transform_13, window_bounds = array<i64: 2, 1, 64>}, {pipeline_mode = #tpu.pipeline_mode<synchronous>, transform_indices = @transform_14, window_bounds = array<i64: 2, 64, 32>}, {pipeline_mode = #tpu.pipeline_mode<synchronous>, transform_indices = @transform_15, window_bounds = array<i64: 2, 1, 32>}, {pipeline_mode = #tpu.pipeline_mode<synchronous>, transform_indices = @transform_16, window_bounds = array<i64: 1, 32>}, {pipeline_mode = #tpu.pipeline_mode<synchronous>, transform_indices = @transform_17, window_bounds = array<i64: 1, 32>}, {pipeline_mode = #tpu.pipeline_mode<synchronous>, transform_indices = @transform_18, window_bounds = array<i64: 48, 32>}]} {
    %c0 = arith.constant 0 : index
    %c0_0 = arith.constant 0 : index
    %0 = vector.load %arg1[%c0, %c0_0] : memref<48x32xf32, #tpu.memory_space<vmem>>, vector<48x32xf32>
    %c0_1 = arith.constant 0 : index
    %c0_2 = arith.constant 0 : index
    %1 = vector.load %arg2[%c0_1, %c0_2] : memref<48x1xf32, #tpu.memory_space<vmem>>, vector<48x1xf32>
    %c0_3 = arith.constant 0 : index
    %c0_4 = arith.constant 0 : index
    %2 = vector.load %arg3[%c0_3, %c0_4] : memref<1x48xf32, #tpu.memory_space<vmem>>, vector<1x48xf32>
    %3 = vector.broadcast %1 : vector<48x1xf32> to vector<48x48xf32>
    %4 = vector.broadcast %2 : vector<1x48xf32> to vector<48x48xf32>
    %5 = arith.cmpf one, %3, %4 : vector<48x48xf32>
    %c0_5 = arith.constant 0 : index
    %c0_6 = arith.constant 0 : index
    %6 = vector.load %arg4[%c0_5, %c0_6] : memref<1x48xf32, #tpu.memory_space<vmem>>, vector<1x48xf32>
    %cst = arith.constant 5.000000e-01 : f32
    %7 = vector.broadcast %cst : f32 to vector<1x48xf32>
    %8 = arith.cmpf ogt, %6, %7 : vector<1x48xf32>
    %9 = vector.broadcast %8 : vector<1x48xi1> to vector<48x48xi1>
    %10 = arith.ori %5, %9 : vector<48x48xi1>
    %cst_7 = arith.constant -1.000000e+09 : f32
    %cst_8 = arith.constant 0.000000e+00 : f32
    %11 = vector.broadcast %cst_7 : f32 to vector<48x48xf32>
    %12 = vector.broadcast %cst_8 : f32 to vector<48x48xf32>
    %13 = arith.select %10, %11, %12 : vector<48x48xi1>, vector<48x48xf32>
    %c0_9 = arith.constant 0 : index
    %c0_10 = arith.constant 0 : index
    %c0_11 = arith.constant 0 : index
    %14 = vector.load %arg7[%c0_9, %c0_10, %c0_11] : memref<2x32x96xf32, #tpu.memory_space<vmem>>, vector<1x32x96xf32>
    %15 = vector.shape_cast %14 : vector<1x32x96xf32> to vector<32x96xf32>
    %cst_12 = arith.constant dense<0.000000e+00> : vector<48x96xf32>
    %16 = tpu.matmul %0, %15, %cst_12 {dimension_numbers = #tpu.dot_dimension_numbers<[1], [0], [0], [1], [0, 0, 1, 1], [], []>} : vector<48x32xf32>, vector<32x96xf32>, vector<48x96xf32> -> vector<48x96xf32>
    %c0_13 = arith.constant 0 : index
    %c0_14 = arith.constant 0 : index
    %c0_15 = arith.constant 0 : index
    %17 = vector.load %arg8[%c0_13, %c0_14, %c0_15] : memref<2x1x96xf32, #tpu.memory_space<vmem>>, vector<1x1x96xf32>
    %18 = vector.shape_cast %17 : vector<1x1x96xf32> to vector<1x96xf32>
    %19 = vector.broadcast %18 : vector<1x96xf32> to vector<48x96xf32>
    %20 = arith.addf %16, %19 : vector<48x96xf32>
    %21 = vector.extract_strided_slice %20 {offsets = [0, 0], sizes = [48, 32], strides = [1, 1]} : vector<48x96xf32> to vector<48x32xf32>
    %22 = vector.extract_strided_slice %20 {offsets = [0, 32], sizes = [48, 32], strides = [1, 1]} : vector<48x96xf32> to vector<48x32xf32>
    %23 = vector.extract_strided_slice %20 {offsets = [0, 64], sizes = [48, 32], strides = [1, 1]} : vector<48x96xf32> to vector<48x32xf32>
    %c0_16 = arith.constant 0 : index
    %c0_17 = arith.constant 0 : index
    %c0_18 = arith.constant 0 : index
    %24 = vector.load %arg9[%c0_16, %c0_17, %c0_18] : memref<2x32x32xf32, #tpu.memory_space<vmem>>, vector<1x32x32xf32>
    %25 = vector.shape_cast %24 : vector<1x32x32xf32> to vector<32x32xf32>
    %26 = vector.extract_strided_slice %21 {offsets = [0, 0], sizes = [48, 8], strides = [1, 1]} : vector<48x32xf32> to vector<48x8xf32>
    %27 = vector.extract_strided_slice %22 {offsets = [0, 0], sizes = [48, 8], strides = [1, 1]} : vector<48x32xf32> to vector<48x8xf32>
    %28 = vector.extract_strided_slice %23 {offsets = [0, 0], sizes = [48, 8], strides = [1, 1]} : vector<48x32xf32> to vector<48x8xf32>
    %cst_19 = arith.constant dense<0.000000e+00> : vector<48x48xf32>
    %29 = tpu.matmul %26, %27, %cst_19 {dimension_numbers = #tpu.dot_dimension_numbers<[1], [1], [0], [0], [0, 0, 1, 0], [], []>} : vector<48x8xf32>, vector<48x8xf32>, vector<48x48xf32> -> vector<48x48xf32>
    %cst_20 = arith.constant 0.353553385 : f32
    %30 = vector.broadcast %cst_20 : f32 to vector<48x48xf32>
    %31 = arith.mulf %29, %30 : vector<48x48xf32>
    %32 = arith.addf %31, %13 : vector<48x48xf32>
    %cst_21 = arith.constant dense<0xFF800000> : vector<48xf32>
    %33 = vector.multi_reduction <maximumf>, %32, %cst_21 [1] : vector<48x48xf32> to vector<48xf32>
    %34 = vector.shape_cast %33 : vector<48xf32> to vector<48x1xf32>
    %35 = vector.broadcast %34 : vector<48x1xf32> to vector<48x48xf32>
    %36 = arith.subf %32, %35 : vector<48x48xf32>
    %37 = math.exp %36 : vector<48x48xf32>
    %cst_22 = arith.constant dense<0.000000e+00> : vector<48xf32>
    %38 = vector.multi_reduction <add>, %37, %cst_22 [1] : vector<48x48xf32> to vector<48xf32>
    %39 = vector.shape_cast %38 : vector<48xf32> to vector<48x1xf32>
    %40 = tpu.reciprocal %39 {approx = true} : vector<48x1xf32> -> vector<48x1xf32>
    %41 = vector.broadcast %40 : vector<48x1xf32> to vector<48x48xf32>
    %42 = arith.mulf %37, %41 : vector<48x48xf32>
    %cst_23 = arith.constant dense<0.000000e+00> : vector<48x8xf32>
    %43 = tpu.matmul %42, %28, %cst_23 {dimension_numbers = #tpu.dot_dimension_numbers<[1], [0], [0], [1], [0, 0, 1, 1], [], []>} : vector<48x48xf32>, vector<48x8xf32>, vector<48x8xf32> -> vector<48x8xf32>
    %44 = vector.extract_strided_slice %25 {offsets = [0, 0], sizes = [8, 32], strides = [1, 1]} : vector<32x32xf32> to vector<8x32xf32>
    %cst_24 = arith.constant dense<0.000000e+00> : vector<48x32xf32>
    %45 = tpu.matmul %43, %44, %cst_24 {dimension_numbers = #tpu.dot_dimension_numbers<[1], [0], [0], [1], [0, 0, 1, 1], [], []>} : vector<48x8xf32>, vector<8x32xf32>, vector<48x32xf32> -> vector<48x32xf32>
    %46 = vector.extract_strided_slice %21 {offsets = [0, 8], sizes = [48, 8], strides = [1, 1]} : vector<48x32xf32> to vector<48x8xf32>
    %47 = vector.extract_strided_slice %22 {offsets = [0, 8], sizes = [48, 8], strides = [1, 1]} : vector<48x32xf32> to vector<48x8xf32>
    %48 = vector.extract_strided_slice %23 {offsets = [0, 8], sizes = [48, 8], strides = [1, 1]} : vector<48x32xf32> to vector<48x8xf32>
    %cst_25 = arith.constant dense<0.000000e+00> : vector<48x48xf32>
    %49 = tpu.matmul %46, %47, %cst_25 {dimension_numbers = #tpu.dot_dimension_numbers<[1], [1], [0], [0], [0, 0, 1, 0], [], []>} : vector<48x8xf32>, vector<48x8xf32>, vector<48x48xf32> -> vector<48x48xf32>
    %cst_26 = arith.constant 0.353553385 : f32
    %50 = vector.broadcast %cst_26 : f32 to vector<48x48xf32>
    %51 = arith.mulf %49, %50 : vector<48x48xf32>
    %52 = arith.addf %51, %13 : vector<48x48xf32>
    %cst_27 = arith.constant dense<0xFF800000> : vector<48xf32>
    %53 = vector.multi_reduction <maximumf>, %52, %cst_27 [1] : vector<48x48xf32> to vector<48xf32>
    %54 = vector.shape_cast %53 : vector<48xf32> to vector<48x1xf32>
    %55 = vector.broadcast %54 : vector<48x1xf32> to vector<48x48xf32>
    %56 = arith.subf %52, %55 : vector<48x48xf32>
    %57 = math.exp %56 : vector<48x48xf32>
    %cst_28 = arith.constant dense<0.000000e+00> : vector<48xf32>
    %58 = vector.multi_reduction <add>, %57, %cst_28 [1] : vector<48x48xf32> to vector<48xf32>
    %59 = vector.shape_cast %58 : vector<48xf32> to vector<48x1xf32>
    %60 = tpu.reciprocal %59 {approx = true} : vector<48x1xf32> -> vector<48x1xf32>
    %61 = vector.broadcast %60 : vector<48x1xf32> to vector<48x48xf32>
    %62 = arith.mulf %57, %61 : vector<48x48xf32>
    %cst_29 = arith.constant dense<0.000000e+00> : vector<48x8xf32>
    %63 = tpu.matmul %62, %48, %cst_29 {dimension_numbers = #tpu.dot_dimension_numbers<[1], [0], [0], [1], [0, 0, 1, 1], [], []>} : vector<48x48xf32>, vector<48x8xf32>, vector<48x8xf32> -> vector<48x8xf32>
    %64 = vector.extract_strided_slice %25 {offsets = [8, 0], sizes = [8, 32], strides = [1, 1]} : vector<32x32xf32> to vector<8x32xf32>
    %cst_30 = arith.constant dense<0.000000e+00> : vector<48x32xf32>
    %65 = tpu.matmul %63, %64, %cst_30 {dimension_numbers = #tpu.dot_dimension_numbers<[1], [0], [0], [1], [0, 0, 1, 1], [], []>} : vector<48x8xf32>, vector<8x32xf32>, vector<48x32xf32> -> vector<48x32xf32>
    %66 = arith.addf %45, %65 : vector<48x32xf32>
    %67 = vector.extract_strided_slice %21 {offsets = [0, 16], sizes = [48, 8], strides = [1, 1]} : vector<48x32xf32> to vector<48x8xf32>
    %68 = vector.extract_strided_slice %22 {offsets = [0, 16], sizes = [48, 8], strides = [1, 1]} : vector<48x32xf32> to vector<48x8xf32>
    %69 = vector.extract_strided_slice %23 {offsets = [0, 16], sizes = [48, 8], strides = [1, 1]} : vector<48x32xf32> to vector<48x8xf32>
    %cst_31 = arith.constant dense<0.000000e+00> : vector<48x48xf32>
    %70 = tpu.matmul %67, %68, %cst_31 {dimension_numbers = #tpu.dot_dimension_numbers<[1], [1], [0], [0], [0, 0, 1, 0], [], []>} : vector<48x8xf32>, vector<48x8xf32>, vector<48x48xf32> -> vector<48x48xf32>
    %cst_32 = arith.constant 0.353553385 : f32
    %71 = vector.broadcast %cst_32 : f32 to vector<48x48xf32>
    %72 = arith.mulf %70, %71 : vector<48x48xf32>
    %73 = arith.addf %72, %13 : vector<48x48xf32>
    %cst_33 = arith.constant dense<0xFF800000> : vector<48xf32>
    %74 = vector.multi_reduction <maximumf>, %73, %cst_33 [1] : vector<48x48xf32> to vector<48xf32>
    %75 = vector.shape_cast %74 : vector<48xf32> to vector<48x1xf32>
    %76 = vector.broadcast %75 : vector<48x1xf32> to vector<48x48xf32>
    %77 = arith.subf %73, %76 : vector<48x48xf32>
    %78 = math.exp %77 : vector<48x48xf32>
    %cst_34 = arith.constant dense<0.000000e+00> : vector<48xf32>
    %79 = vector.multi_reduction <add>, %78, %cst_34 [1] : vector<48x48xf32> to vector<48xf32>
    %80 = vector.shape_cast %79 : vector<48xf32> to vector<48x1xf32>
    %81 = tpu.reciprocal %80 {approx = true} : vector<48x1xf32> -> vector<48x1xf32>
    %82 = vector.broadcast %81 : vector<48x1xf32> to vector<48x48xf32>
    %83 = arith.mulf %78, %82 : vector<48x48xf32>
    %cst_35 = arith.constant dense<0.000000e+00> : vector<48x8xf32>
    %84 = tpu.matmul %83, %69, %cst_35 {dimension_numbers = #tpu.dot_dimension_numbers<[1], [0], [0], [1], [0, 0, 1, 1], [], []>} : vector<48x48xf32>, vector<48x8xf32>, vector<48x8xf32> -> vector<48x8xf32>
    %85 = vector.extract_strided_slice %25 {offsets = [16, 0], sizes = [8, 32], strides = [1, 1]} : vector<32x32xf32> to vector<8x32xf32>
    %cst_36 = arith.constant dense<0.000000e+00> : vector<48x32xf32>
    %86 = tpu.matmul %84, %85, %cst_36 {dimension_numbers = #tpu.dot_dimension_numbers<[1], [0], [0], [1], [0, 0, 1, 1], [], []>} : vector<48x8xf32>, vector<8x32xf32>, vector<48x32xf32> -> vector<48x32xf32>
    %87 = arith.addf %66, %86 : vector<48x32xf32>
    %88 = vector.extract_strided_slice %21 {offsets = [0, 24], sizes = [48, 8], strides = [1, 1]} : vector<48x32xf32> to vector<48x8xf32>
    %89 = vector.extract_strided_slice %22 {offsets = [0, 24], sizes = [48, 8], strides = [1, 1]} : vector<48x32xf32> to vector<48x8xf32>
    %90 = vector.extract_strided_slice %23 {offsets = [0, 24], sizes = [48, 8], strides = [1, 1]} : vector<48x32xf32> to vector<48x8xf32>
    %cst_37 = arith.constant dense<0.000000e+00> : vector<48x48xf32>
    %91 = tpu.matmul %88, %89, %cst_37 {dimension_numbers = #tpu.dot_dimension_numbers<[1], [1], [0], [0], [0, 0, 1, 0], [], []>} : vector<48x8xf32>, vector<48x8xf32>, vector<48x48xf32> -> vector<48x48xf32>
    %cst_38 = arith.constant 0.353553385 : f32
    %92 = vector.broadcast %cst_38 : f32 to vector<48x48xf32>
    %93 = arith.mulf %91, %92 : vector<48x48xf32>
    %94 = arith.addf %93, %13 : vector<48x48xf32>
    %cst_39 = arith.constant dense<0xFF800000> : vector<48xf32>
    %95 = vector.multi_reduction <maximumf>, %94, %cst_39 [1] : vector<48x48xf32> to vector<48xf32>
    %96 = vector.shape_cast %95 : vector<48xf32> to vector<48x1xf32>
    %97 = vector.broadcast %96 : vector<48x1xf32> to vector<48x48xf32>
    %98 = arith.subf %94, %97 : vector<48x48xf32>
    %99 = math.exp %98 : vector<48x48xf32>
    %cst_40 = arith.constant dense<0.000000e+00> : vector<48xf32>
    %100 = vector.multi_reduction <add>, %99, %cst_40 [1] : vector<48x48xf32> to vector<48xf32>
    %101 = vector.shape_cast %100 : vector<48xf32> to vector<48x1xf32>
    %102 = tpu.reciprocal %101 {approx = true} : vector<48x1xf32> -> vector<48x1xf32>
    %103 = vector.broadcast %102 : vector<48x1xf32> to vector<48x48xf32>
    %104 = arith.mulf %99, %103 : vector<48x48xf32>
    %cst_41 = arith.constant dense<0.000000e+00> : vector<48x8xf32>
    %105 = tpu.matmul %104, %90, %cst_41 {dimension_numbers = #tpu.dot_dimension_numbers<[1], [0], [0], [1], [0, 0, 1, 1], [], []>} : vector<48x48xf32>, vector<48x8xf32>, vector<48x8xf32> -> vector<48x8xf32>
    %106 = vector.extract_strided_slice %25 {offsets = [24, 0], sizes = [8, 32], strides = [1, 1]} : vector<32x32xf32> to vector<8x32xf32>
    %cst_42 = arith.constant dense<0.000000e+00> : vector<48x32xf32>
    %107 = tpu.matmul %105, %106, %cst_42 {dimension_numbers = #tpu.dot_dimension_numbers<[1], [0], [0], [1], [0, 0, 1, 1], [], []>} : vector<48x8xf32>, vector<8x32xf32>, vector<48x32xf32> -> vector<48x32xf32>
    %108 = arith.addf %87, %107 : vector<48x32xf32>
    %c0_43 = arith.constant 0 : index
    %c0_44 = arith.constant 0 : index
    %c0_45 = arith.constant 0 : index
    %109 = vector.load %arg10[%c0_43, %c0_44, %c0_45] : memref<2x1x32xf32, #tpu.memory_space<vmem>>, vector<1x1x32xf32>
    %110 = vector.shape_cast %109 : vector<1x1x32xf32> to vector<1x32xf32>
    %111 = vector.broadcast %110 : vector<1x32xf32> to vector<48x32xf32>
    %112 = arith.addf %108, %111 : vector<48x32xf32>
    %113 = arith.addf %112, %0 : vector<48x32xf32>
    %c0_46 = arith.constant 0 : index
    %c0_47 = arith.constant 0 : index
    %c0_48 = arith.constant 0 : index
    %114 = vector.load %arg11[%c0_46, %c0_47, %c0_48] : memref<2x1x32xf32, #tpu.memory_space<vmem>>, vector<1x1x32xf32>
    %115 = vector.shape_cast %114 : vector<1x1x32xf32> to vector<1x32xf32>
    %c0_49 = arith.constant 0 : index
    %c0_50 = arith.constant 0 : index
    %c0_51 = arith.constant 0 : index
    %116 = vector.load %arg12[%c0_49, %c0_50, %c0_51] : memref<2x1x32xf32, #tpu.memory_space<vmem>>, vector<1x1x32xf32>
    %117 = vector.shape_cast %116 : vector<1x1x32xf32> to vector<1x32xf32>
    %c0_52 = arith.constant 0 : index
    %c0_53 = arith.constant 0 : index
    %c0_54 = arith.constant 0 : index
    %118 = vector.load %arg13[%c0_52, %c0_53, %c0_54] : memref<2x32x64xf32, #tpu.memory_space<vmem>>, vector<1x32x64xf32>
    %119 = vector.shape_cast %118 : vector<1x32x64xf32> to vector<32x64xf32>
    %c0_55 = arith.constant 0 : index
    %c0_56 = arith.constant 0 : index
    %c0_57 = arith.constant 0 : index
    %120 = vector.load %arg14[%c0_55, %c0_56, %c0_57] : memref<2x1x64xf32, #tpu.memory_space<vmem>>, vector<1x1x64xf32>
    %121 = vector.shape_cast %120 : vector<1x1x64xf32> to vector<1x64xf32>
    %c0_58 = arith.constant 0 : index
    %c0_59 = arith.constant 0 : index
    %c0_60 = arith.constant 0 : index
    %122 = vector.load %arg15[%c0_58, %c0_59, %c0_60] : memref<2x64x32xf32, #tpu.memory_space<vmem>>, vector<1x64x32xf32>
    %123 = vector.shape_cast %122 : vector<1x64x32xf32> to vector<64x32xf32>
    %c0_61 = arith.constant 0 : index
    %c0_62 = arith.constant 0 : index
    %c0_63 = arith.constant 0 : index
    %124 = vector.load %arg16[%c0_61, %c0_62, %c0_63] : memref<2x1x32xf32, #tpu.memory_space<vmem>>, vector<1x1x32xf32>
    %125 = vector.shape_cast %124 : vector<1x1x32xf32> to vector<1x32xf32>
    %cst_64 = arith.constant dense<0.000000e+00> : vector<48xf32>
    %126 = vector.multi_reduction <add>, %113, %cst_64 [1] : vector<48x32xf32> to vector<48xf32>
    %127 = vector.shape_cast %126 : vector<48xf32> to vector<48x1xf32>
    %cst_65 = arith.constant 3.200000e+01 : f32
    %128 = vector.broadcast %cst_65 : f32 to vector<48x1xf32>
    %129 = arith.divf %127, %128 : vector<48x1xf32>
    %130 = vector.broadcast %129 : vector<48x1xf32> to vector<48x32xf32>
    %131 = arith.subf %113, %130 : vector<48x32xf32>
    %132 = arith.mulf %131, %131 : vector<48x32xf32>
    %cst_66 = arith.constant dense<0.000000e+00> : vector<48xf32>
    %133 = vector.multi_reduction <add>, %132, %cst_66 [1] : vector<48x32xf32> to vector<48xf32>
    %134 = vector.shape_cast %133 : vector<48xf32> to vector<48x1xf32>
    %cst_67 = arith.constant 3.200000e+01 : f32
    %135 = vector.broadcast %cst_67 : f32 to vector<48x1xf32>
    %136 = arith.divf %134, %135 : vector<48x1xf32>
    %cst_68 = arith.constant 9.99999997E-7 : f32
    %137 = vector.broadcast %cst_68 : f32 to vector<48x1xf32>
    %138 = arith.addf %136, %137 : vector<48x1xf32>
    %139 = math.rsqrt %138 : vector<48x1xf32>
    %140 = vector.broadcast %139 : vector<48x1xf32> to vector<48x32xf32>
    %141 = arith.mulf %131, %140 : vector<48x32xf32>
    %142 = vector.broadcast %115 : vector<1x32xf32> to vector<48x32xf32>
    %143 = arith.mulf %141, %142 : vector<48x32xf32>
    %144 = vector.broadcast %117 : vector<1x32xf32> to vector<48x32xf32>
    %145 = arith.addf %143, %144 : vector<48x32xf32>
    %cst_69 = arith.constant dense<0.000000e+00> : vector<48x64xf32>
    %146 = tpu.matmul %145, %119, %cst_69 {dimension_numbers = #tpu.dot_dimension_numbers<[1], [0], [0], [1], [0, 0, 1, 1], [], []>} : vector<48x32xf32>, vector<32x64xf32>, vector<48x64xf32> -> vector<48x64xf32>
    %147 = vector.broadcast %121 : vector<1x64xf32> to vector<48x64xf32>
    %148 = arith.addf %146, %147 : vector<48x64xf32>
    %cst_70 = arith.constant 5.000000e-01 : f32
    %149 = vector.broadcast %cst_70 : f32 to vector<48x64xf32>
    %150 = arith.mulf %149, %148 : vector<48x64xf32>
    %cst_71 = arith.constant 4.471500e-02 : f32
    %151 = vector.broadcast %cst_71 : f32 to vector<48x64xf32>
    %152 = arith.mulf %151, %148 : vector<48x64xf32>
    %153 = arith.mulf %152, %148 : vector<48x64xf32>
    %154 = arith.mulf %153, %148 : vector<48x64xf32>
    %155 = arith.addf %148, %154 : vector<48x64xf32>
    %cst_72 = arith.constant 0.797884583 : f32
    %156 = vector.broadcast %cst_72 : f32 to vector<48x64xf32>
    %157 = arith.mulf %156, %155 : vector<48x64xf32>
    %158 = math.tanh %157 : vector<48x64xf32>
    %cst_73 = arith.constant 1.000000e+00 : f32
    %159 = vector.broadcast %cst_73 : f32 to vector<48x64xf32>
    %160 = arith.addf %159, %158 : vector<48x64xf32>
    %161 = arith.mulf %150, %160 : vector<48x64xf32>
    %cst_74 = arith.constant dense<0.000000e+00> : vector<48x32xf32>
    %162 = tpu.matmul %161, %123, %cst_74 {dimension_numbers = #tpu.dot_dimension_numbers<[1], [0], [0], [1], [0, 0, 1, 1], [], []>} : vector<48x64xf32>, vector<64x32xf32>, vector<48x32xf32> -> vector<48x32xf32>
    %163 = vector.broadcast %125 : vector<1x32xf32> to vector<48x32xf32>
    %164 = arith.addf %162, %163 : vector<48x32xf32>
    %165 = arith.addf %164, %113 : vector<48x32xf32>
    %c1 = arith.constant 1 : index
    %c0_75 = arith.constant 0 : index
    %c0_76 = arith.constant 0 : index
    %166 = vector.load %arg5[%c1, %c0_75, %c0_76] : memref<2x1x32xf32, #tpu.memory_space<vmem>>, vector<1x1x32xf32>
    %167 = vector.shape_cast %166 : vector<1x1x32xf32> to vector<1x32xf32>
    %c1_77 = arith.constant 1 : index
    %c0_78 = arith.constant 0 : index
    %c0_79 = arith.constant 0 : index
    %168 = vector.load %arg6[%c1_77, %c0_78, %c0_79] : memref<2x1x32xf32, #tpu.memory_space<vmem>>, vector<1x1x32xf32>
    %169 = vector.shape_cast %168 : vector<1x1x32xf32> to vector<1x32xf32>
    %cst_80 = arith.constant dense<0.000000e+00> : vector<48xf32>
    %170 = vector.multi_reduction <add>, %165, %cst_80 [1] : vector<48x32xf32> to vector<48xf32>
    %171 = vector.shape_cast %170 : vector<48xf32> to vector<48x1xf32>
    %cst_81 = arith.constant 3.200000e+01 : f32
    %172 = vector.broadcast %cst_81 : f32 to vector<48x1xf32>
    %173 = arith.divf %171, %172 : vector<48x1xf32>
    %174 = vector.broadcast %173 : vector<48x1xf32> to vector<48x32xf32>
    %175 = arith.subf %165, %174 : vector<48x32xf32>
    %176 = arith.mulf %175, %175 : vector<48x32xf32>
    %cst_82 = arith.constant dense<0.000000e+00> : vector<48xf32>
    %177 = vector.multi_reduction <add>, %176, %cst_82 [1] : vector<48x32xf32> to vector<48xf32>
    %178 = vector.shape_cast %177 : vector<48xf32> to vector<48x1xf32>
    %cst_83 = arith.constant 3.200000e+01 : f32
    %179 = vector.broadcast %cst_83 : f32 to vector<48x1xf32>
    %180 = arith.divf %178, %179 : vector<48x1xf32>
    %cst_84 = arith.constant 9.99999997E-7 : f32
    %181 = vector.broadcast %cst_84 : f32 to vector<48x1xf32>
    %182 = arith.addf %180, %181 : vector<48x1xf32>
    %183 = math.rsqrt %182 : vector<48x1xf32>
    %184 = vector.broadcast %183 : vector<48x1xf32> to vector<48x32xf32>
    %185 = arith.mulf %175, %184 : vector<48x32xf32>
    %186 = vector.broadcast %167 : vector<1x32xf32> to vector<48x32xf32>
    %187 = arith.mulf %185, %186 : vector<48x32xf32>
    %188 = vector.broadcast %169 : vector<1x32xf32> to vector<48x32xf32>
    %189 = arith.addf %187, %188 : vector<48x32xf32>
    %c1_85 = arith.constant 1 : index
    %c0_86 = arith.constant 0 : index
    %c0_87 = arith.constant 0 : index
    %190 = vector.load %arg7[%c1_85, %c0_86, %c0_87] : memref<2x32x96xf32, #tpu.memory_space<vmem>>, vector<1x32x96xf32>
    %191 = vector.shape_cast %190 : vector<1x32x96xf32> to vector<32x96xf32>
    %cst_88 = arith.constant dense<0.000000e+00> : vector<48x96xf32>
    %192 = tpu.matmul %189, %191, %cst_88 {dimension_numbers = #tpu.dot_dimension_numbers<[1], [0], [0], [1], [0, 0, 1, 1], [], []>} : vector<48x32xf32>, vector<32x96xf32>, vector<48x96xf32> -> vector<48x96xf32>
    %c1_89 = arith.constant 1 : index
    %c0_90 = arith.constant 0 : index
    %c0_91 = arith.constant 0 : index
    %193 = vector.load %arg8[%c1_89, %c0_90, %c0_91] : memref<2x1x96xf32, #tpu.memory_space<vmem>>, vector<1x1x96xf32>
    %194 = vector.shape_cast %193 : vector<1x1x96xf32> to vector<1x96xf32>
    %195 = vector.broadcast %194 : vector<1x96xf32> to vector<48x96xf32>
    %196 = arith.addf %192, %195 : vector<48x96xf32>
    %197 = vector.extract_strided_slice %196 {offsets = [0, 0], sizes = [48, 32], strides = [1, 1]} : vector<48x96xf32> to vector<48x32xf32>
    %198 = vector.extract_strided_slice %196 {offsets = [0, 32], sizes = [48, 32], strides = [1, 1]} : vector<48x96xf32> to vector<48x32xf32>
    %199 = vector.extract_strided_slice %196 {offsets = [0, 64], sizes = [48, 32], strides = [1, 1]} : vector<48x96xf32> to vector<48x32xf32>
    %c1_92 = arith.constant 1 : index
    %c0_93 = arith.constant 0 : index
    %c0_94 = arith.constant 0 : index
    %200 = vector.load %arg9[%c1_92, %c0_93, %c0_94] : memref<2x32x32xf32, #tpu.memory_space<vmem>>, vector<1x32x32xf32>
    %201 = vector.shape_cast %200 : vector<1x32x32xf32> to vector<32x32xf32>
    %202 = vector.extract_strided_slice %197 {offsets = [0, 0], sizes = [48, 8], strides = [1, 1]} : vector<48x32xf32> to vector<48x8xf32>
    %203 = vector.extract_strided_slice %198 {offsets = [0, 0], sizes = [48, 8], strides = [1, 1]} : vector<48x32xf32> to vector<48x8xf32>
    %204 = vector.extract_strided_slice %199 {offsets = [0, 0], sizes = [48, 8], strides = [1, 1]} : vector<48x32xf32> to vector<48x8xf32>
    %cst_95 = arith.constant dense<0.000000e+00> : vector<48x48xf32>
    %205 = tpu.matmul %202, %203, %cst_95 {dimension_numbers = #tpu.dot_dimension_numbers<[1], [1], [0], [0], [0, 0, 1, 0], [], []>} : vector<48x8xf32>, vector<48x8xf32>, vector<48x48xf32> -> vector<48x48xf32>
    %cst_96 = arith.constant 0.353553385 : f32
    %206 = vector.broadcast %cst_96 : f32 to vector<48x48xf32>
    %207 = arith.mulf %205, %206 : vector<48x48xf32>
    %208 = arith.addf %207, %13 : vector<48x48xf32>
    %cst_97 = arith.constant dense<0xFF800000> : vector<48xf32>
    %209 = vector.multi_reduction <maximumf>, %208, %cst_97 [1] : vector<48x48xf32> to vector<48xf32>
    %210 = vector.shape_cast %209 : vector<48xf32> to vector<48x1xf32>
    %211 = vector.broadcast %210 : vector<48x1xf32> to vector<48x48xf32>
    %212 = arith.subf %208, %211 : vector<48x48xf32>
    %213 = math.exp %212 : vector<48x48xf32>
    %cst_98 = arith.constant dense<0.000000e+00> : vector<48xf32>
    %214 = vector.multi_reduction <add>, %213, %cst_98 [1] : vector<48x48xf32> to vector<48xf32>
    %215 = vector.shape_cast %214 : vector<48xf32> to vector<48x1xf32>
    %216 = tpu.reciprocal %215 {approx = true} : vector<48x1xf32> -> vector<48x1xf32>
    %217 = vector.broadcast %216 : vector<48x1xf32> to vector<48x48xf32>
    %218 = arith.mulf %213, %217 : vector<48x48xf32>
    %cst_99 = arith.constant dense<0.000000e+00> : vector<48x8xf32>
    %219 = tpu.matmul %218, %204, %cst_99 {dimension_numbers = #tpu.dot_dimension_numbers<[1], [0], [0], [1], [0, 0, 1, 1], [], []>} : vector<48x48xf32>, vector<48x8xf32>, vector<48x8xf32> -> vector<48x8xf32>
    %220 = vector.extract_strided_slice %201 {offsets = [0, 0], sizes = [8, 32], strides = [1, 1]} : vector<32x32xf32> to vector<8x32xf32>
    %cst_100 = arith.constant dense<0.000000e+00> : vector<48x32xf32>
    %221 = tpu.matmul %219, %220, %cst_100 {dimension_numbers = #tpu.dot_dimension_numbers<[1], [0], [0], [1], [0, 0, 1, 1], [], []>} : vector<48x8xf32>, vector<8x32xf32>, vector<48x32xf32> -> vector<48x32xf32>
    %222 = vector.extract_strided_slice %197 {offsets = [0, 8], sizes = [48, 8], strides = [1, 1]} : vector<48x32xf32> to vector<48x8xf32>
    %223 = vector.extract_strided_slice %198 {offsets = [0, 8], sizes = [48, 8], strides = [1, 1]} : vector<48x32xf32> to vector<48x8xf32>
    %224 = vector.extract_strided_slice %199 {offsets = [0, 8], sizes = [48, 8], strides = [1, 1]} : vector<48x32xf32> to vector<48x8xf32>
    %cst_101 = arith.constant dense<0.000000e+00> : vector<48x48xf32>
    %225 = tpu.matmul %222, %223, %cst_101 {dimension_numbers = #tpu.dot_dimension_numbers<[1], [1], [0], [0], [0, 0, 1, 0], [], []>} : vector<48x8xf32>, vector<48x8xf32>, vector<48x48xf32> -> vector<48x48xf32>
    %cst_102 = arith.constant 0.353553385 : f32
    %226 = vector.broadcast %cst_102 : f32 to vector<48x48xf32>
    %227 = arith.mulf %225, %226 : vector<48x48xf32>
    %228 = arith.addf %227, %13 : vector<48x48xf32>
    %cst_103 = arith.constant dense<0xFF800000> : vector<48xf32>
    %229 = vector.multi_reduction <maximumf>, %228, %cst_103 [1] : vector<48x48xf32> to vector<48xf32>
    %230 = vector.shape_cast %229 : vector<48xf32> to vector<48x1xf32>
    %231 = vector.broadcast %230 : vector<48x1xf32> to vector<48x48xf32>
    %232 = arith.subf %228, %231 : vector<48x48xf32>
    %233 = math.exp %232 : vector<48x48xf32>
    %cst_104 = arith.constant dense<0.000000e+00> : vector<48xf32>
    %234 = vector.multi_reduction <add>, %233, %cst_104 [1] : vector<48x48xf32> to vector<48xf32>
    %235 = vector.shape_cast %234 : vector<48xf32> to vector<48x1xf32>
    %236 = tpu.reciprocal %235 {approx = true} : vector<48x1xf32> -> vector<48x1xf32>
    %237 = vector.broadcast %236 : vector<48x1xf32> to vector<48x48xf32>
    %238 = arith.mulf %233, %237 : vector<48x48xf32>
    %cst_105 = arith.constant dense<0.000000e+00> : vector<48x8xf32>
    %239 = tpu.matmul %238, %224, %cst_105 {dimension_numbers = #tpu.dot_dimension_numbers<[1], [0], [0], [1], [0, 0, 1, 1], [], []>} : vector<48x48xf32>, vector<48x8xf32>, vector<48x8xf32> -> vector<48x8xf32>
    %240 = vector.extract_strided_slice %201 {offsets = [8, 0], sizes = [8, 32], strides = [1, 1]} : vector<32x32xf32> to vector<8x32xf32>
    %cst_106 = arith.constant dense<0.000000e+00> : vector<48x32xf32>
    %241 = tpu.matmul %239, %240, %cst_106 {dimension_numbers = #tpu.dot_dimension_numbers<[1], [0], [0], [1], [0, 0, 1, 1], [], []>} : vector<48x8xf32>, vector<8x32xf32>, vector<48x32xf32> -> vector<48x32xf32>
    %242 = arith.addf %221, %241 : vector<48x32xf32>
    %243 = vector.extract_strided_slice %197 {offsets = [0, 16], sizes = [48, 8], strides = [1, 1]} : vector<48x32xf32> to vector<48x8xf32>
    %244 = vector.extract_strided_slice %198 {offsets = [0, 16], sizes = [48, 8], strides = [1, 1]} : vector<48x32xf32> to vector<48x8xf32>
    %245 = vector.extract_strided_slice %199 {offsets = [0, 16], sizes = [48, 8], strides = [1, 1]} : vector<48x32xf32> to vector<48x8xf32>
    %cst_107 = arith.constant dense<0.000000e+00> : vector<48x48xf32>
    %246 = tpu.matmul %243, %244, %cst_107 {dimension_numbers = #tpu.dot_dimension_numbers<[1], [1], [0], [0], [0, 0, 1, 0], [], []>} : vector<48x8xf32>, vector<48x8xf32>, vector<48x48xf32> -> vector<48x48xf32>
    %cst_108 = arith.constant 0.353553385 : f32
    %247 = vector.broadcast %cst_108 : f32 to vector<48x48xf32>
    %248 = arith.mulf %246, %247 : vector<48x48xf32>
    %249 = arith.addf %248, %13 : vector<48x48xf32>
    %cst_109 = arith.constant dense<0xFF800000> : vector<48xf32>
    %250 = vector.multi_reduction <maximumf>, %249, %cst_109 [1] : vector<48x48xf32> to vector<48xf32>
    %251 = vector.shape_cast %250 : vector<48xf32> to vector<48x1xf32>
    %252 = vector.broadcast %251 : vector<48x1xf32> to vector<48x48xf32>
    %253 = arith.subf %249, %252 : vector<48x48xf32>
    %254 = math.exp %253 : vector<48x48xf32>
    %cst_110 = arith.constant dense<0.000000e+00> : vector<48xf32>
    %255 = vector.multi_reduction <add>, %254, %cst_110 [1] : vector<48x48xf32> to vector<48xf32>
    %256 = vector.shape_cast %255 : vector<48xf32> to vector<48x1xf32>
    %257 = tpu.reciprocal %256 {approx = true} : vector<48x1xf32> -> vector<48x1xf32>
    %258 = vector.broadcast %257 : vector<48x1xf32> to vector<48x48xf32>
    %259 = arith.mulf %254, %258 : vector<48x48xf32>
    %cst_111 = arith.constant dense<0.000000e+00> : vector<48x8xf32>
    %260 = tpu.matmul %259, %245, %cst_111 {dimension_numbers = #tpu.dot_dimension_numbers<[1], [0], [0], [1], [0, 0, 1, 1], [], []>} : vector<48x48xf32>, vector<48x8xf32>, vector<48x8xf32> -> vector<48x8xf32>
    %261 = vector.extract_strided_slice %201 {offsets = [16, 0], sizes = [8, 32], strides = [1, 1]} : vector<32x32xf32> to vector<8x32xf32>
    %cst_112 = arith.constant dense<0.000000e+00> : vector<48x32xf32>
    %262 = tpu.matmul %260, %261, %cst_112 {dimension_numbers = #tpu.dot_dimension_numbers<[1], [0], [0], [1], [0, 0, 1, 1], [], []>} : vector<48x8xf32>, vector<8x32xf32>, vector<48x32xf32> -> vector<48x32xf32>
    %263 = arith.addf %242, %262 : vector<48x32xf32>
    %264 = vector.extract_strided_slice %197 {offsets = [0, 24], sizes = [48, 8], strides = [1, 1]} : vector<48x32xf32> to vector<48x8xf32>
    %265 = vector.extract_strided_slice %198 {offsets = [0, 24], sizes = [48, 8], strides = [1, 1]} : vector<48x32xf32> to vector<48x8xf32>
    %266 = vector.extract_strided_slice %199 {offsets = [0, 24], sizes = [48, 8], strides = [1, 1]} : vector<48x32xf32> to vector<48x8xf32>
    %cst_113 = arith.constant dense<0.000000e+00> : vector<48x48xf32>
    %267 = tpu.matmul %264, %265, %cst_113 {dimension_numbers = #tpu.dot_dimension_numbers<[1], [1], [0], [0], [0, 0, 1, 0], [], []>} : vector<48x8xf32>, vector<48x8xf32>, vector<48x48xf32> -> vector<48x48xf32>
    %cst_114 = arith.constant 0.353553385 : f32
    %268 = vector.broadcast %cst_114 : f32 to vector<48x48xf32>
    %269 = arith.mulf %267, %268 : vector<48x48xf32>
    %270 = arith.addf %269, %13 : vector<48x48xf32>
    %cst_115 = arith.constant dense<0xFF800000> : vector<48xf32>
    %271 = vector.multi_reduction <maximumf>, %270, %cst_115 [1] : vector<48x48xf32> to vector<48xf32>
    %272 = vector.shape_cast %271 : vector<48xf32> to vector<48x1xf32>
    %273 = vector.broadcast %272 : vector<48x1xf32> to vector<48x48xf32>
    %274 = arith.subf %270, %273 : vector<48x48xf32>
    %275 = math.exp %274 : vector<48x48xf32>
    %cst_116 = arith.constant dense<0.000000e+00> : vector<48xf32>
    %276 = vector.multi_reduction <add>, %275, %cst_116 [1] : vector<48x48xf32> to vector<48xf32>
    %277 = vector.shape_cast %276 : vector<48xf32> to vector<48x1xf32>
    %278 = tpu.reciprocal %277 {approx = true} : vector<48x1xf32> -> vector<48x1xf32>
    %279 = vector.broadcast %278 : vector<48x1xf32> to vector<48x48xf32>
    %280 = arith.mulf %275, %279 : vector<48x48xf32>
    %cst_117 = arith.constant dense<0.000000e+00> : vector<48x8xf32>
    %281 = tpu.matmul %280, %266, %cst_117 {dimension_numbers = #tpu.dot_dimension_numbers<[1], [0], [0], [1], [0, 0, 1, 1], [], []>} : vector<48x48xf32>, vector<48x8xf32>, vector<48x8xf32> -> vector<48x8xf32>
    %282 = vector.extract_strided_slice %201 {offsets = [24, 0], sizes = [8, 32], strides = [1, 1]} : vector<32x32xf32> to vector<8x32xf32>
    %cst_118 = arith.constant dense<0.000000e+00> : vector<48x32xf32>
    %283 = tpu.matmul %281, %282, %cst_118 {dimension_numbers = #tpu.dot_dimension_numbers<[1], [0], [0], [1], [0, 0, 1, 1], [], []>} : vector<48x8xf32>, vector<8x32xf32>, vector<48x32xf32> -> vector<48x32xf32>
    %284 = arith.addf %263, %283 : vector<48x32xf32>
    %c1_119 = arith.constant 1 : index
    %c0_120 = arith.constant 0 : index
    %c0_121 = arith.constant 0 : index
    %285 = vector.load %arg10[%c1_119, %c0_120, %c0_121] : memref<2x1x32xf32, #tpu.memory_space<vmem>>, vector<1x1x32xf32>
    %286 = vector.shape_cast %285 : vector<1x1x32xf32> to vector<1x32xf32>
    %287 = vector.broadcast %286 : vector<1x32xf32> to vector<48x32xf32>
    %288 = arith.addf %284, %287 : vector<48x32xf32>
    %289 = arith.addf %288, %165 : vector<48x32xf32>
    %c1_122 = arith.constant 1 : index
    %c0_123 = arith.constant 0 : index
    %c0_124 = arith.constant 0 : index
    %290 = vector.load %arg11[%c1_122, %c0_123, %c0_124] : memref<2x1x32xf32, #tpu.memory_space<vmem>>, vector<1x1x32xf32>
    %291 = vector.shape_cast %290 : vector<1x1x32xf32> to vector<1x32xf32>
    %c1_125 = arith.constant 1 : index
    %c0_126 = arith.constant 0 : index
    %c0_127 = arith.constant 0 : index
    %292 = vector.load %arg12[%c1_125, %c0_126, %c0_127] : memref<2x1x32xf32, #tpu.memory_space<vmem>>, vector<1x1x32xf32>
    %293 = vector.shape_cast %292 : vector<1x1x32xf32> to vector<1x32xf32>
    %c1_128 = arith.constant 1 : index
    %c0_129 = arith.constant 0 : index
    %c0_130 = arith.constant 0 : index
    %294 = vector.load %arg13[%c1_128, %c0_129, %c0_130] : memref<2x32x64xf32, #tpu.memory_space<vmem>>, vector<1x32x64xf32>
    %295 = vector.shape_cast %294 : vector<1x32x64xf32> to vector<32x64xf32>
    %c1_131 = arith.constant 1 : index
    %c0_132 = arith.constant 0 : index
    %c0_133 = arith.constant 0 : index
    %296 = vector.load %arg14[%c1_131, %c0_132, %c0_133] : memref<2x1x64xf32, #tpu.memory_space<vmem>>, vector<1x1x64xf32>
    %297 = vector.shape_cast %296 : vector<1x1x64xf32> to vector<1x64xf32>
    %c1_134 = arith.constant 1 : index
    %c0_135 = arith.constant 0 : index
    %c0_136 = arith.constant 0 : index
    %298 = vector.load %arg15[%c1_134, %c0_135, %c0_136] : memref<2x64x32xf32, #tpu.memory_space<vmem>>, vector<1x64x32xf32>
    %299 = vector.shape_cast %298 : vector<1x64x32xf32> to vector<64x32xf32>
    %c1_137 = arith.constant 1 : index
    %c0_138 = arith.constant 0 : index
    %c0_139 = arith.constant 0 : index
    %300 = vector.load %arg16[%c1_137, %c0_138, %c0_139] : memref<2x1x32xf32, #tpu.memory_space<vmem>>, vector<1x1x32xf32>
    %301 = vector.shape_cast %300 : vector<1x1x32xf32> to vector<1x32xf32>
    %cst_140 = arith.constant dense<0.000000e+00> : vector<48xf32>
    %302 = vector.multi_reduction <add>, %289, %cst_140 [1] : vector<48x32xf32> to vector<48xf32>
    %303 = vector.shape_cast %302 : vector<48xf32> to vector<48x1xf32>
    %cst_141 = arith.constant 3.200000e+01 : f32
    %304 = vector.broadcast %cst_141 : f32 to vector<48x1xf32>
    %305 = arith.divf %303, %304 : vector<48x1xf32>
    %306 = vector.broadcast %305 : vector<48x1xf32> to vector<48x32xf32>
    %307 = arith.subf %289, %306 : vector<48x32xf32>
    %308 = arith.mulf %307, %307 : vector<48x32xf32>
    %cst_142 = arith.constant dense<0.000000e+00> : vector<48xf32>
    %309 = vector.multi_reduction <add>, %308, %cst_142 [1] : vector<48x32xf32> to vector<48xf32>
    %310 = vector.shape_cast %309 : vector<48xf32> to vector<48x1xf32>
    %cst_143 = arith.constant 3.200000e+01 : f32
    %311 = vector.broadcast %cst_143 : f32 to vector<48x1xf32>
    %312 = arith.divf %310, %311 : vector<48x1xf32>
    %cst_144 = arith.constant 9.99999997E-7 : f32
    %313 = vector.broadcast %cst_144 : f32 to vector<48x1xf32>
    %314 = arith.addf %312, %313 : vector<48x1xf32>
    %315 = math.rsqrt %314 : vector<48x1xf32>
    %316 = vector.broadcast %315 : vector<48x1xf32> to vector<48x32xf32>
    %317 = arith.mulf %307, %316 : vector<48x32xf32>
    %318 = vector.broadcast %291 : vector<1x32xf32> to vector<48x32xf32>
    %319 = arith.mulf %317, %318 : vector<48x32xf32>
    %320 = vector.broadcast %293 : vector<1x32xf32> to vector<48x32xf32>
    %321 = arith.addf %319, %320 : vector<48x32xf32>
    %cst_145 = arith.constant dense<0.000000e+00> : vector<48x64xf32>
    %322 = tpu.matmul %321, %295, %cst_145 {dimension_numbers = #tpu.dot_dimension_numbers<[1], [0], [0], [1], [0, 0, 1, 1], [], []>} : vector<48x32xf32>, vector<32x64xf32>, vector<48x64xf32> -> vector<48x64xf32>
    %323 = vector.broadcast %297 : vector<1x64xf32> to vector<48x64xf32>
    %324 = arith.addf %322, %323 : vector<48x64xf32>
    %cst_146 = arith.constant 5.000000e-01 : f32
    %325 = vector.broadcast %cst_146 : f32 to vector<48x64xf32>
    %326 = arith.mulf %325, %324 : vector<48x64xf32>
    %cst_147 = arith.constant 4.471500e-02 : f32
    %327 = vector.broadcast %cst_147 : f32 to vector<48x64xf32>
    %328 = arith.mulf %327, %324 : vector<48x64xf32>
    %329 = arith.mulf %328, %324 : vector<48x64xf32>
    %330 = arith.mulf %329, %324 : vector<48x64xf32>
    %331 = arith.addf %324, %330 : vector<48x64xf32>
    %cst_148 = arith.constant 0.797884583 : f32
    %332 = vector.broadcast %cst_148 : f32 to vector<48x64xf32>
    %333 = arith.mulf %332, %331 : vector<48x64xf32>
    %334 = math.tanh %333 : vector<48x64xf32>
    %cst_149 = arith.constant 1.000000e+00 : f32
    %335 = vector.broadcast %cst_149 : f32 to vector<48x64xf32>
    %336 = arith.addf %335, %334 : vector<48x64xf32>
    %337 = arith.mulf %326, %336 : vector<48x64xf32>
    %cst_150 = arith.constant dense<0.000000e+00> : vector<48x32xf32>
    %338 = tpu.matmul %337, %299, %cst_150 {dimension_numbers = #tpu.dot_dimension_numbers<[1], [0], [0], [1], [0, 0, 1, 1], [], []>} : vector<48x64xf32>, vector<64x32xf32>, vector<48x32xf32> -> vector<48x32xf32>
    %339 = vector.broadcast %301 : vector<1x32xf32> to vector<48x32xf32>
    %340 = arith.addf %338, %339 : vector<48x32xf32>
    %341 = arith.addf %340, %289 : vector<48x32xf32>
    %c0_151 = arith.constant 0 : index
    %c0_152 = arith.constant 0 : index
    %342 = vector.load %arg17[%c0_151, %c0_152] : memref<1x32xf32, #tpu.memory_space<vmem>>, vector<1x32xf32>
    %c0_153 = arith.constant 0 : index
    %c0_154 = arith.constant 0 : index
    %343 = vector.load %arg18[%c0_153, %c0_154] : memref<1x32xf32, #tpu.memory_space<vmem>>, vector<1x32xf32>
    %cst_155 = arith.constant dense<0.000000e+00> : vector<48xf32>
    %344 = vector.multi_reduction <add>, %341, %cst_155 [1] : vector<48x32xf32> to vector<48xf32>
    %345 = vector.shape_cast %344 : vector<48xf32> to vector<48x1xf32>
    %cst_156 = arith.constant 3.200000e+01 : f32
    %346 = vector.broadcast %cst_156 : f32 to vector<48x1xf32>
    %347 = arith.divf %345, %346 : vector<48x1xf32>
    %348 = vector.broadcast %347 : vector<48x1xf32> to vector<48x32xf32>
    %349 = arith.subf %341, %348 : vector<48x32xf32>
    %350 = arith.mulf %349, %349 : vector<48x32xf32>
    %cst_157 = arith.constant dense<0.000000e+00> : vector<48xf32>
    %351 = vector.multi_reduction <add>, %350, %cst_157 [1] : vector<48x32xf32> to vector<48xf32>
    %352 = vector.shape_cast %351 : vector<48xf32> to vector<48x1xf32>
    %cst_158 = arith.constant 3.200000e+01 : f32
    %353 = vector.broadcast %cst_158 : f32 to vector<48x1xf32>
    %354 = arith.divf %352, %353 : vector<48x1xf32>
    %cst_159 = arith.constant 9.99999997E-7 : f32
    %355 = vector.broadcast %cst_159 : f32 to vector<48x1xf32>
    %356 = arith.addf %354, %355 : vector<48x1xf32>
    %357 = math.rsqrt %356 : vector<48x1xf32>
    %358 = vector.broadcast %357 : vector<48x1xf32> to vector<48x32xf32>
    %359 = arith.mulf %349, %358 : vector<48x32xf32>
    %360 = vector.broadcast %342 : vector<1x32xf32> to vector<48x32xf32>
    %361 = arith.mulf %359, %360 : vector<48x32xf32>
    %362 = vector.broadcast %343 : vector<1x32xf32> to vector<48x32xf32>
    %363 = arith.addf %361, %362 : vector<48x32xf32>
    %c0_160 = arith.constant 0 : index
    %c0_161 = arith.constant 0 : index
    %364 = vector.load %arg19[%c0_160, %c0_161] : memref<48x32xf32, #tpu.memory_space<vmem>>, vector<48x32xf32>
    tpu.vector_store %arg19[%c0_160, %c0_161], %363 {strides = array<i32>} : memref<48x32xf32, #tpu.memory_space<vmem>>, vector<48x32xf32>,
    return
  }
  func.func @transform_0(%arg0: i32) -> (i32, i32) {
    %c0_i32 = arith.constant 0 : i32
    %c0_i32_0 = arith.constant 0 : i32
    %c0_i32_1 = arith.constant 0 : i32
    return %c0_i32, %c0_i32_0 : i32, i32
  }
  func.func @transform_1(%arg0: i32) -> (i32, i32) {
    %c0_i32 = arith.constant 0 : i32
    %c0_i32_0 = arith.constant 0 : i32
    %c0_i32_1 = arith.constant 0 : i32
    return %c0_i32, %c0_i32_0 : i32, i32
  }
  func.func @transform_2(%arg0: i32) -> (i32, i32) {
    %c0_i32 = arith.constant 0 : i32
    %c0_i32_0 = arith.constant 0 : i32
    %c0_i32_1 = arith.constant 0 : i32
    return %c0_i32, %c0_i32_0 : i32, i32
  }
  func.func @transform_3(%arg0: i32) -> (i32, i32) {
    %c0_i32 = arith.constant 0 : i32
    %c0_i32_0 = arith.constant 0 : i32
    %c0_i32_1 = arith.constant 0 : i32
    return %c0_i32, %c0_i32_0 : i32, i32
  }
  func.func @transform_4(%arg0: i32) -> (i32, i32, i32) {
    %c0_i32 = arith.constant 0 : i32
    %c0_i32_0 = arith.constant 0 : i32
    %c0_i32_1 = arith.constant 0 : i32
    %c0_i32_2 = arith.constant 0 : i32
    return %c0_i32, %c0_i32_0, %c0_i32_1 : i32, i32, i32
  }
  func.func @transform_5(%arg0: i32) -> (i32, i32, i32) {
    %c0_i32 = arith.constant 0 : i32
    %c0_i32_0 = arith.constant 0 : i32
    %c0_i32_1 = arith.constant 0 : i32
    %c0_i32_2 = arith.constant 0 : i32
    return %c0_i32, %c0_i32_0, %c0_i32_1 : i32, i32, i32
  }
  func.func @transform_6(%arg0: i32) -> (i32, i32, i32) {
    %c0_i32 = arith.constant 0 : i32
    %c0_i32_0 = arith.constant 0 : i32
    %c0_i32_1 = arith.constant 0 : i32
    %c0_i32_2 = arith.constant 0 : i32
    return %c0_i32, %c0_i32_0, %c0_i32_1 : i32, i32, i32
  }
  func.func @transform_7(%arg0: i32) -> (i32, i32, i32) {
    %c0_i32 = arith.constant 0 : i32
    %c0_i32_0 = arith.constant 0 : i32
    %c0_i32_1 = arith.constant 0 : i32
    %c0_i32_2 = arith.constant 0 : i32
    return %c0_i32, %c0_i32_0, %c0_i32_1 : i32, i32, i32
  }
  func.func @transform_8(%arg0: i32) -> (i32, i32, i32) {
    %c0_i32 = arith.constant 0 : i32
    %c0_i32_0 = arith.constant 0 : i32
    %c0_i32_1 = arith.constant 0 : i32
    %c0_i32_2 = arith.constant 0 : i32
    return %c0_i32, %c0_i32_0, %c0_i32_1 : i32, i32, i32
  }
  func.func @transform_9(%arg0: i32) -> (i32, i32, i32) {
    %c0_i32 = arith.constant 0 : i32
    %c0_i32_0 = arith.constant 0 : i32
    %c0_i32_1 = arith.constant 0 : i32
    %c0_i32_2 = arith.constant 0 : i32
    return %c0_i32, %c0_i32_0, %c0_i32_1 : i32, i32, i32
  }
  func.func @transform_10(%arg0: i32) -> (i32, i32, i32) {
    %c0_i32 = arith.constant 0 : i32
    %c0_i32_0 = arith.constant 0 : i32
    %c0_i32_1 = arith.constant 0 : i32
    %c0_i32_2 = arith.constant 0 : i32
    return %c0_i32, %c0_i32_0, %c0_i32_1 : i32, i32, i32
  }
  func.func @transform_11(%arg0: i32) -> (i32, i32, i32) {
    %c0_i32 = arith.constant 0 : i32
    %c0_i32_0 = arith.constant 0 : i32
    %c0_i32_1 = arith.constant 0 : i32
    %c0_i32_2 = arith.constant 0 : i32
    return %c0_i32, %c0_i32_0, %c0_i32_1 : i32, i32, i32
  }
  func.func @transform_12(%arg0: i32) -> (i32, i32, i32) {
    %c0_i32 = arith.constant 0 : i32
    %c0_i32_0 = arith.constant 0 : i32
    %c0_i32_1 = arith.constant 0 : i32
    %c0_i32_2 = arith.constant 0 : i32
    return %c0_i32, %c0_i32_0, %c0_i32_1 : i32, i32, i32
  }
  func.func @transform_13(%arg0: i32) -> (i32, i32, i32) {
    %c0_i32 = arith.constant 0 : i32
    %c0_i32_0 = arith.constant 0 : i32
    %c0_i32_1 = arith.constant 0 : i32
    %c0_i32_2 = arith.constant 0 : i32
    return %c0_i32, %c0_i32_0, %c0_i32_1 : i32, i32, i32
  }
  func.func @transform_14(%arg0: i32) -> (i32, i32, i32) {
    %c0_i32 = arith.constant 0 : i32
    %c0_i32_0 = arith.constant 0 : i32
    %c0_i32_1 = arith.constant 0 : i32
    %c0_i32_2 = arith.constant 0 : i32
    return %c0_i32, %c0_i32_0, %c0_i32_1 : i32, i32, i32
  }
  func.func @transform_15(%arg0: i32) -> (i32, i32, i32) {
    %c0_i32 = arith.constant 0 : i32
    %c0_i32_0 = arith.constant 0 : i32
    %c0_i32_1 = arith.constant 0 : i32
    %c0_i32_2 = arith.constant 0 : i32
    return %c0_i32, %c0_i32_0, %c0_i32_1 : i32, i32, i32
  }
  func.func @transform_16(%arg0: i32) -> (i32, i32) {
    %c0_i32 = arith.constant 0 : i32
    %c0_i32_0 = arith.constant 0 : i32
    %c0_i32_1 = arith.constant 0 : i32
    return %c0_i32, %c0_i32_0 : i32, i32
  }
  func.func @transform_17(%arg0: i32) -> (i32, i32) {
    %c0_i32 = arith.constant 0 : i32
    %c0_i32_0 = arith.constant 0 : i32
    %c0_i32_1 = arith.constant 0 : i32
    return %c0_i32, %c0_i32_0 : i32, i32
  }
  func.func @transform_18(%arg0: i32) -> (i32, i32) {
    %c0_i32 = arith.constant 0 : i32
    %c0_i32_0 = arith.constant 0 : i32
    %c0_i32_1 = arith.constant 0 : i32
    return %c0_i32, %c0_i32_0 : i32, i32
  }
}

module attributes {stable_mosaic.version = 11 : i64} {
  func.func @kernel(%arg0: i32, %arg1: memref<8x32xf32, #tpu.memory_space<vmem>>, %arg2: memref<8x1xf32, #tpu.memory_space<vmem>>, %arg3: memref<1x8xf32, #tpu.memory_space<vmem>>, %arg4: memref<1x8xf32, #tpu.memory_space<vmem>>, %arg5: memref<2x1x32xf32, #tpu.memory_space<vmem>>, %arg6: memref<2x1x32xf32, #tpu.memory_space<vmem>>, %arg7: memref<2x32x96xf32, #tpu.memory_space<vmem>>, %arg8: memref<2x1x96xf32, #tpu.memory_space<vmem>>, %arg9: memref<2x32x32xf32, #tpu.memory_space<vmem>>, %arg10: memref<2x1x32xf32, #tpu.memory_space<vmem>>, %arg11: memref<2x1x32xf32, #tpu.memory_space<vmem>>, %arg12: memref<2x1x32xf32, #tpu.memory_space<vmem>>, %arg13: memref<2x32x64xf32, #tpu.memory_space<vmem>>, %arg14: memref<2x1x64xf32, #tpu.memory_space<vmem>>, %arg15: memref<2x64x32xf32, #tpu.memory_space<vmem>>, %arg16: memref<2x1x32xf32, #tpu.memory_space<vmem>>, %arg17: memref<1x32xf32, #tpu.memory_space<vmem>>, %arg18: memref<1x32xf32, #tpu.memory_space<vmem>>, %arg19: memref<8x32xf32, #tpu.memory_space<vmem>>) attributes {dimension_semantics = [#tpu.dimension_semantics<arbitrary>], iteration_bounds = array<i64: 1>, scalar_prefetch = 0 : i64, scratch_operands = 0 : i64, tpu.core_type = #tpu.core_type<tc>, window_params = [{pipeline_mode = #tpu.pipeline_mode<synchronous>, transform_indices = @transform_0, window_bounds = array<i64: 8, 32>}, {pipeline_mode = #tpu.pipeline_mode<synchronous>, transform_indices = @transform_1, window_bounds = array<i64: 8, 1>}, {pipeline_mode = #tpu.pipeline_mode<synchronous>, transform_indices = @transform_2, window_bounds = array<i64: 1, 8>}, {pipeline_mode = #tpu.pipeline_mode<synchronous>, transform_indices = @transform_3, window_bounds = array<i64: 1, 8>}, {pipeline_mode = #tpu.pipeline_mode<synchronous>, transform_indices = @transform_4, window_bounds = array<i64: 2, 1, 32>}, {pipeline_mode = #tpu.pipeline_mode<synchronous>, transform_indices = @transform_5, window_bounds = array<i64: 2, 1, 32>}, {pipeline_mode = #tpu.pipeline_mode<synchronous>, transform_indices = @transform_6, window_bounds = array<i64: 2, 32, 96>}, {pipeline_mode = #tpu.pipeline_mode<synchronous>, transform_indices = @transform_7, window_bounds = array<i64: 2, 1, 96>}, {pipeline_mode = #tpu.pipeline_mode<synchronous>, transform_indices = @transform_8, window_bounds = array<i64: 2, 32, 32>}, {pipeline_mode = #tpu.pipeline_mode<synchronous>, transform_indices = @transform_9, window_bounds = array<i64: 2, 1, 32>}, {pipeline_mode = #tpu.pipeline_mode<synchronous>, transform_indices = @transform_10, window_bounds = array<i64: 2, 1, 32>}, {pipeline_mode = #tpu.pipeline_mode<synchronous>, transform_indices = @transform_11, window_bounds = array<i64: 2, 1, 32>}, {pipeline_mode = #tpu.pipeline_mode<synchronous>, transform_indices = @transform_12, window_bounds = array<i64: 2, 32, 64>}, {pipeline_mode = #tpu.pipeline_mode<synchronous>, transform_indices = @transform_13, window_bounds = array<i64: 2, 1, 64>}, {pipeline_mode = #tpu.pipeline_mode<synchronous>, transform_indices = @transform_14, window_bounds = array<i64: 2, 64, 32>}, {pipeline_mode = #tpu.pipeline_mode<synchronous>, transform_indices = @transform_15, window_bounds = array<i64: 2, 1, 32>}, {pipeline_mode = #tpu.pipeline_mode<synchronous>, transform_indices = @transform_16, window_bounds = array<i64: 1, 32>}, {pipeline_mode = #tpu.pipeline_mode<synchronous>, transform_indices = @transform_17, window_bounds = array<i64: 1, 32>}, {pipeline_mode = #tpu.pipeline_mode<synchronous>, transform_indices = @transform_18, window_bounds = array<i64: 8, 32>}]} {
    %c0 = arith.constant 0 : index
    %c0_0 = arith.constant 0 : index
    %0 = vector.load %arg1[%c0, %c0_0] : memref<8x32xf32, #tpu.memory_space<vmem>>, vector<8x32xf32>
    %c0_1 = arith.constant 0 : index
    %c0_2 = arith.constant 0 : index
    %1 = vector.load %arg2[%c0_1, %c0_2] : memref<8x1xf32, #tpu.memory_space<vmem>>, vector<8x1xf32>
    %c0_3 = arith.constant 0 : index
    %c0_4 = arith.constant 0 : index
    %2 = vector.load %arg3[%c0_3, %c0_4] : memref<1x8xf32, #tpu.memory_space<vmem>>, vector<1x8xf32>
    %3 = vector.broadcast %1 : vector<8x1xf32> to vector<8x8xf32>
    %4 = vector.broadcast %2 : vector<1x8xf32> to vector<8x8xf32>
    %5 = arith.cmpf one, %3, %4 : vector<8x8xf32>
    %c0_5 = arith.constant 0 : index
    %c0_6 = arith.constant 0 : index
    %6 = vector.load %arg4[%c0_5, %c0_6] : memref<1x8xf32, #tpu.memory_space<vmem>>, vector<1x8xf32>
    %cst = arith.constant 5.000000e-01 : f32
    %7 = vector.broadcast %cst : f32 to vector<1x8xf32>
    %8 = arith.cmpf ogt, %6, %7 : vector<1x8xf32>
    %9 = vector.broadcast %8 : vector<1x8xi1> to vector<8x8xi1>
    %10 = arith.ori %5, %9 : vector<8x8xi1>
    %cst_7 = arith.constant -1.000000e+09 : f32
    %cst_8 = arith.constant 0.000000e+00 : f32
    %11 = vector.broadcast %cst_7 : f32 to vector<8x8xf32>
    %12 = vector.broadcast %cst_8 : f32 to vector<8x8xf32>
    %13 = arith.select %10, %11, %12 : vector<8x8xi1>, vector<8x8xf32>
    %c0_9 = arith.constant 0 : index
    %c0_10 = arith.constant 0 : index
    %c0_11 = arith.constant 0 : index
    %14 = vector.load %arg7[%c0_9, %c0_10, %c0_11] : memref<2x32x96xf32, #tpu.memory_space<vmem>>, vector<1x32x96xf32>
    %15 = vector.shape_cast %14 : vector<1x32x96xf32> to vector<32x96xf32>
    %cst_12 = arith.constant dense<0.000000e+00> : vector<8x96xf32>
    %16 = tpu.matmul %0, %15, %cst_12 {dimension_numbers = #tpu.dot_dimension_numbers<[1], [0], [0], [1], [0, 0, 1, 1], [], []>} : vector<8x32xf32>, vector<32x96xf32>, vector<8x96xf32> -> vector<8x96xf32>
    %c0_13 = arith.constant 0 : index
    %c0_14 = arith.constant 0 : index
    %c0_15 = arith.constant 0 : index
    %17 = vector.load %arg8[%c0_13, %c0_14, %c0_15] : memref<2x1x96xf32, #tpu.memory_space<vmem>>, vector<1x1x96xf32>
    %18 = vector.shape_cast %17 : vector<1x1x96xf32> to vector<1x96xf32>
    %19 = vector.broadcast %18 : vector<1x96xf32> to vector<8x96xf32>
    %20 = arith.addf %16, %19 : vector<8x96xf32>
    %21 = vector.extract_strided_slice %20 {offsets = [0, 0], sizes = [8, 32], strides = [1, 1]} : vector<8x96xf32> to vector<8x32xf32>
    %22 = vector.extract_strided_slice %20 {offsets = [0, 32], sizes = [8, 32], strides = [1, 1]} : vector<8x96xf32> to vector<8x32xf32>
    %23 = vector.extract_strided_slice %20 {offsets = [0, 64], sizes = [8, 32], strides = [1, 1]} : vector<8x96xf32> to vector<8x32xf32>
    %c0_16 = arith.constant 0 : index
    %c0_17 = arith.constant 0 : index
    %c0_18 = arith.constant 0 : index
    %24 = vector.load %arg9[%c0_16, %c0_17, %c0_18] : memref<2x32x32xf32, #tpu.memory_space<vmem>>, vector<1x32x32xf32>
    %25 = vector.shape_cast %24 : vector<1x32x32xf32> to vector<32x32xf32>
    %26 = vector.extract_strided_slice %21 {offsets = [0, 0], sizes = [8, 8], strides = [1, 1]} : vector<8x32xf32> to vector<8x8xf32>
    %27 = vector.extract_strided_slice %22 {offsets = [0, 0], sizes = [8, 8], strides = [1, 1]} : vector<8x32xf32> to vector<8x8xf32>
    %28 = vector.extract_strided_slice %23 {offsets = [0, 0], sizes = [8, 8], strides = [1, 1]} : vector<8x32xf32> to vector<8x8xf32>
    %cst_19 = arith.constant dense<0.000000e+00> : vector<8x8xf32>
    %29 = tpu.matmul %26, %27, %cst_19 {dimension_numbers = #tpu.dot_dimension_numbers<[1], [1], [0], [0], [0, 0, 1, 0], [], []>} : vector<8x8xf32>, vector<8x8xf32>, vector<8x8xf32> -> vector<8x8xf32>
    %cst_20 = arith.constant 0.353553385 : f32
    %30 = vector.broadcast %cst_20 : f32 to vector<8x8xf32>
    %31 = arith.mulf %29, %30 : vector<8x8xf32>
    %32 = arith.addf %31, %13 : vector<8x8xf32>
    %cst_21 = arith.constant dense<0xFF800000> : vector<8xf32>
    %33 = vector.multi_reduction <maximumf>, %32, %cst_21 [1] : vector<8x8xf32> to vector<8xf32>
    %34 = vector.shape_cast %33 : vector<8xf32> to vector<8x1xf32>
    %35 = vector.broadcast %34 : vector<8x1xf32> to vector<8x8xf32>
    %36 = arith.subf %32, %35 : vector<8x8xf32>
    %37 = math.exp %36 : vector<8x8xf32>
    %cst_22 = arith.constant dense<0.000000e+00> : vector<8xf32>
    %38 = vector.multi_reduction <add>, %37, %cst_22 [1] : vector<8x8xf32> to vector<8xf32>
    %39 = vector.shape_cast %38 : vector<8xf32> to vector<8x1xf32>
    %40 = tpu.reciprocal %39 {approx = true} : vector<8x1xf32> -> vector<8x1xf32>
    %41 = vector.broadcast %40 : vector<8x1xf32> to vector<8x8xf32>
    %42 = arith.mulf %37, %41 : vector<8x8xf32>
    %cst_23 = arith.constant dense<0.000000e+00> : vector<8x8xf32>
    %43 = tpu.matmul %42, %28, %cst_23 {dimension_numbers = #tpu.dot_dimension_numbers<[1], [0], [0], [1], [0, 0, 1, 1], [], []>} : vector<8x8xf32>, vector<8x8xf32>, vector<8x8xf32> -> vector<8x8xf32>
    %44 = vector.extract_strided_slice %25 {offsets = [0, 0], sizes = [8, 32], strides = [1, 1]} : vector<32x32xf32> to vector<8x32xf32>
    %cst_24 = arith.constant dense<0.000000e+00> : vector<8x32xf32>
    %45 = tpu.matmul %43, %44, %cst_24 {dimension_numbers = #tpu.dot_dimension_numbers<[1], [0], [0], [1], [0, 0, 1, 1], [], []>} : vector<8x8xf32>, vector<8x32xf32>, vector<8x32xf32> -> vector<8x32xf32>
    %46 = vector.extract_strided_slice %21 {offsets = [0, 8], sizes = [8, 8], strides = [1, 1]} : vector<8x32xf32> to vector<8x8xf32>
    %47 = vector.extract_strided_slice %22 {offsets = [0, 8], sizes = [8, 8], strides = [1, 1]} : vector<8x32xf32> to vector<8x8xf32>
    %48 = vector.extract_strided_slice %23 {offsets = [0, 8], sizes = [8, 8], strides = [1, 1]} : vector<8x32xf32> to vector<8x8xf32>
    %cst_25 = arith.constant dense<0.000000e+00> : vector<8x8xf32>
    %49 = tpu.matmul %46, %47, %cst_25 {dimension_numbers = #tpu.dot_dimension_numbers<[1], [1], [0], [0], [0, 0, 1, 0], [], []>} : vector<8x8xf32>, vector<8x8xf32>, vector<8x8xf32> -> vector<8x8xf32>
    %cst_26 = arith.constant 0.353553385 : f32
    %50 = vector.broadcast %cst_26 : f32 to vector<8x8xf32>
    %51 = arith.mulf %49, %50 : vector<8x8xf32>
    %52 = arith.addf %51, %13 : vector<8x8xf32>
    %cst_27 = arith.constant dense<0xFF800000> : vector<8xf32>
    %53 = vector.multi_reduction <maximumf>, %52, %cst_27 [1] : vector<8x8xf32> to vector<8xf32>
    %54 = vector.shape_cast %53 : vector<8xf32> to vector<8x1xf32>
    %55 = vector.broadcast %54 : vector<8x1xf32> to vector<8x8xf32>
    %56 = arith.subf %52, %55 : vector<8x8xf32>
    %57 = math.exp %56 : vector<8x8xf32>
    %cst_28 = arith.constant dense<0.000000e+00> : vector<8xf32>
    %58 = vector.multi_reduction <add>, %57, %cst_28 [1] : vector<8x8xf32> to vector<8xf32>
    %59 = vector.shape_cast %58 : vector<8xf32> to vector<8x1xf32>
    %60 = tpu.reciprocal %59 {approx = true} : vector<8x1xf32> -> vector<8x1xf32>
    %61 = vector.broadcast %60 : vector<8x1xf32> to vector<8x8xf32>
    %62 = arith.mulf %57, %61 : vector<8x8xf32>
    %cst_29 = arith.constant dense<0.000000e+00> : vector<8x8xf32>
    %63 = tpu.matmul %62, %48, %cst_29 {dimension_numbers = #tpu.dot_dimension_numbers<[1], [0], [0], [1], [0, 0, 1, 1], [], []>} : vector<8x8xf32>, vector<8x8xf32>, vector<8x8xf32> -> vector<8x8xf32>
    %64 = vector.extract_strided_slice %25 {offsets = [8, 0], sizes = [8, 32], strides = [1, 1]} : vector<32x32xf32> to vector<8x32xf32>
    %cst_30 = arith.constant dense<0.000000e+00> : vector<8x32xf32>
    %65 = tpu.matmul %63, %64, %cst_30 {dimension_numbers = #tpu.dot_dimension_numbers<[1], [0], [0], [1], [0, 0, 1, 1], [], []>} : vector<8x8xf32>, vector<8x32xf32>, vector<8x32xf32> -> vector<8x32xf32>
    %66 = arith.addf %45, %65 : vector<8x32xf32>
    %67 = vector.extract_strided_slice %21 {offsets = [0, 16], sizes = [8, 8], strides = [1, 1]} : vector<8x32xf32> to vector<8x8xf32>
    %68 = vector.extract_strided_slice %22 {offsets = [0, 16], sizes = [8, 8], strides = [1, 1]} : vector<8x32xf32> to vector<8x8xf32>
    %69 = vector.extract_strided_slice %23 {offsets = [0, 16], sizes = [8, 8], strides = [1, 1]} : vector<8x32xf32> to vector<8x8xf32>
    %cst_31 = arith.constant dense<0.000000e+00> : vector<8x8xf32>
    %70 = tpu.matmul %67, %68, %cst_31 {dimension_numbers = #tpu.dot_dimension_numbers<[1], [1], [0], [0], [0, 0, 1, 0], [], []>} : vector<8x8xf32>, vector<8x8xf32>, vector<8x8xf32> -> vector<8x8xf32>
    %cst_32 = arith.constant 0.353553385 : f32
    %71 = vector.broadcast %cst_32 : f32 to vector<8x8xf32>
    %72 = arith.mulf %70, %71 : vector<8x8xf32>
    %73 = arith.addf %72, %13 : vector<8x8xf32>
    %cst_33 = arith.constant dense<0xFF800000> : vector<8xf32>
    %74 = vector.multi_reduction <maximumf>, %73, %cst_33 [1] : vector<8x8xf32> to vector<8xf32>
    %75 = vector.shape_cast %74 : vector<8xf32> to vector<8x1xf32>
    %76 = vector.broadcast %75 : vector<8x1xf32> to vector<8x8xf32>
    %77 = arith.subf %73, %76 : vector<8x8xf32>
    %78 = math.exp %77 : vector<8x8xf32>
    %cst_34 = arith.constant dense<0.000000e+00> : vector<8xf32>
    %79 = vector.multi_reduction <add>, %78, %cst_34 [1] : vector<8x8xf32> to vector<8xf32>
    %80 = vector.shape_cast %79 : vector<8xf32> to vector<8x1xf32>
    %81 = tpu.reciprocal %80 {approx = true} : vector<8x1xf32> -> vector<8x1xf32>
    %82 = vector.broadcast %81 : vector<8x1xf32> to vector<8x8xf32>
    %83 = arith.mulf %78, %82 : vector<8x8xf32>
    %cst_35 = arith.constant dense<0.000000e+00> : vector<8x8xf32>
    %84 = tpu.matmul %83, %69, %cst_35 {dimension_numbers = #tpu.dot_dimension_numbers<[1], [0], [0], [1], [0, 0, 1, 1], [], []>} : vector<8x8xf32>, vector<8x8xf32>, vector<8x8xf32> -> vector<8x8xf32>
    %85 = vector.extract_strided_slice %25 {offsets = [16, 0], sizes = [8, 32], strides = [1, 1]} : vector<32x32xf32> to vector<8x32xf32>
    %cst_36 = arith.constant dense<0.000000e+00> : vector<8x32xf32>
    %86 = tpu.matmul %84, %85, %cst_36 {dimension_numbers = #tpu.dot_dimension_numbers<[1], [0], [0], [1], [0, 0, 1, 1], [], []>} : vector<8x8xf32>, vector<8x32xf32>, vector<8x32xf32> -> vector<8x32xf32>
    %87 = arith.addf %66, %86 : vector<8x32xf32>
    %88 = vector.extract_strided_slice %21 {offsets = [0, 24], sizes = [8, 8], strides = [1, 1]} : vector<8x32xf32> to vector<8x8xf32>
    %89 = vector.extract_strided_slice %22 {offsets = [0, 24], sizes = [8, 8], strides = [1, 1]} : vector<8x32xf32> to vector<8x8xf32>
    %90 = vector.extract_strided_slice %23 {offsets = [0, 24], sizes = [8, 8], strides = [1, 1]} : vector<8x32xf32> to vector<8x8xf32>
    %cst_37 = arith.constant dense<0.000000e+00> : vector<8x8xf32>
    %91 = tpu.matmul %88, %89, %cst_37 {dimension_numbers = #tpu.dot_dimension_numbers<[1], [1], [0], [0], [0, 0, 1, 0], [], []>} : vector<8x8xf32>, vector<8x8xf32>, vector<8x8xf32> -> vector<8x8xf32>
    %cst_38 = arith.constant 0.353553385 : f32
    %92 = vector.broadcast %cst_38 : f32 to vector<8x8xf32>
    %93 = arith.mulf %91, %92 : vector<8x8xf32>
    %94 = arith.addf %93, %13 : vector<8x8xf32>
    %cst_39 = arith.constant dense<0xFF800000> : vector<8xf32>
    %95 = vector.multi_reduction <maximumf>, %94, %cst_39 [1] : vector<8x8xf32> to vector<8xf32>
    %96 = vector.shape_cast %95 : vector<8xf32> to vector<8x1xf32>
    %97 = vector.broadcast %96 : vector<8x1xf32> to vector<8x8xf32>
    %98 = arith.subf %94, %97 : vector<8x8xf32>
    %99 = math.exp %98 : vector<8x8xf32>
    %cst_40 = arith.constant dense<0.000000e+00> : vector<8xf32>
    %100 = vector.multi_reduction <add>, %99, %cst_40 [1] : vector<8x8xf32> to vector<8xf32>
    %101 = vector.shape_cast %100 : vector<8xf32> to vector<8x1xf32>
    %102 = tpu.reciprocal %101 {approx = true} : vector<8x1xf32> -> vector<8x1xf32>
    %103 = vector.broadcast %102 : vector<8x1xf32> to vector<8x8xf32>
    %104 = arith.mulf %99, %103 : vector<8x8xf32>
    %cst_41 = arith.constant dense<0.000000e+00> : vector<8x8xf32>
    %105 = tpu.matmul %104, %90, %cst_41 {dimension_numbers = #tpu.dot_dimension_numbers<[1], [0], [0], [1], [0, 0, 1, 1], [], []>} : vector<8x8xf32>, vector<8x8xf32>, vector<8x8xf32> -> vector<8x8xf32>
    %106 = vector.extract_strided_slice %25 {offsets = [24, 0], sizes = [8, 32], strides = [1, 1]} : vector<32x32xf32> to vector<8x32xf32>
    %cst_42 = arith.constant dense<0.000000e+00> : vector<8x32xf32>
    %107 = tpu.matmul %105, %106, %cst_42 {dimension_numbers = #tpu.dot_dimension_numbers<[1], [0], [0], [1], [0, 0, 1, 1], [], []>} : vector<8x8xf32>, vector<8x32xf32>, vector<8x32xf32> -> vector<8x32xf32>
    %108 = arith.addf %87, %107 : vector<8x32xf32>
    %c0_43 = arith.constant 0 : index
    %c0_44 = arith.constant 0 : index
    %c0_45 = arith.constant 0 : index
    %109 = vector.load %arg10[%c0_43, %c0_44, %c0_45] : memref<2x1x32xf32, #tpu.memory_space<vmem>>, vector<1x1x32xf32>
    %110 = vector.shape_cast %109 : vector<1x1x32xf32> to vector<1x32xf32>
    %111 = vector.broadcast %110 : vector<1x32xf32> to vector<8x32xf32>
    %112 = arith.addf %108, %111 : vector<8x32xf32>
    %113 = arith.addf %112, %0 : vector<8x32xf32>
    %c0_46 = arith.constant 0 : index
    %c0_47 = arith.constant 0 : index
    %c0_48 = arith.constant 0 : index
    %114 = vector.load %arg11[%c0_46, %c0_47, %c0_48] : memref<2x1x32xf32, #tpu.memory_space<vmem>>, vector<1x1x32xf32>
    %115 = vector.shape_cast %114 : vector<1x1x32xf32> to vector<1x32xf32>
    %c0_49 = arith.constant 0 : index
    %c0_50 = arith.constant 0 : index
    %c0_51 = arith.constant 0 : index
    %116 = vector.load %arg12[%c0_49, %c0_50, %c0_51] : memref<2x1x32xf32, #tpu.memory_space<vmem>>, vector<1x1x32xf32>
    %117 = vector.shape_cast %116 : vector<1x1x32xf32> to vector<1x32xf32>
    %c0_52 = arith.constant 0 : index
    %c0_53 = arith.constant 0 : index
    %c0_54 = arith.constant 0 : index
    %118 = vector.load %arg13[%c0_52, %c0_53, %c0_54] : memref<2x32x64xf32, #tpu.memory_space<vmem>>, vector<1x32x64xf32>
    %119 = vector.shape_cast %118 : vector<1x32x64xf32> to vector<32x64xf32>
    %c0_55 = arith.constant 0 : index
    %c0_56 = arith.constant 0 : index
    %c0_57 = arith.constant 0 : index
    %120 = vector.load %arg14[%c0_55, %c0_56, %c0_57] : memref<2x1x64xf32, #tpu.memory_space<vmem>>, vector<1x1x64xf32>
    %121 = vector.shape_cast %120 : vector<1x1x64xf32> to vector<1x64xf32>
    %c0_58 = arith.constant 0 : index
    %c0_59 = arith.constant 0 : index
    %c0_60 = arith.constant 0 : index
    %122 = vector.load %arg15[%c0_58, %c0_59, %c0_60] : memref<2x64x32xf32, #tpu.memory_space<vmem>>, vector<1x64x32xf32>
    %123 = vector.shape_cast %122 : vector<1x64x32xf32> to vector<64x32xf32>
    %c0_61 = arith.constant 0 : index
    %c0_62 = arith.constant 0 : index
    %c0_63 = arith.constant 0 : index
    %124 = vector.load %arg16[%c0_61, %c0_62, %c0_63] : memref<2x1x32xf32, #tpu.memory_space<vmem>>, vector<1x1x32xf32>
    %125 = vector.shape_cast %124 : vector<1x1x32xf32> to vector<1x32xf32>
    %cst_64 = arith.constant dense<0.000000e+00> : vector<8xf32>
    %126 = vector.multi_reduction <add>, %113, %cst_64 [1] : vector<8x32xf32> to vector<8xf32>
    %127 = vector.shape_cast %126 : vector<8xf32> to vector<8x1xf32>
    %cst_65 = arith.constant 3.200000e+01 : f32
    %128 = vector.broadcast %cst_65 : f32 to vector<8x1xf32>
    %129 = arith.divf %127, %128 : vector<8x1xf32>
    %130 = vector.broadcast %129 : vector<8x1xf32> to vector<8x32xf32>
    %131 = arith.subf %113, %130 : vector<8x32xf32>
    %132 = arith.mulf %131, %131 : vector<8x32xf32>
    %cst_66 = arith.constant dense<0.000000e+00> : vector<8xf32>
    %133 = vector.multi_reduction <add>, %132, %cst_66 [1] : vector<8x32xf32> to vector<8xf32>
    %134 = vector.shape_cast %133 : vector<8xf32> to vector<8x1xf32>
    %cst_67 = arith.constant 3.200000e+01 : f32
    %135 = vector.broadcast %cst_67 : f32 to vector<8x1xf32>
    %136 = arith.divf %134, %135 : vector<8x1xf32>
    %cst_68 = arith.constant 9.99999997E-7 : f32
    %137 = vector.broadcast %cst_68 : f32 to vector<8x1xf32>
    %138 = arith.addf %136, %137 : vector<8x1xf32>
    %139 = math.rsqrt %138 : vector<8x1xf32>
    %140 = vector.broadcast %139 : vector<8x1xf32> to vector<8x32xf32>
    %141 = arith.mulf %131, %140 : vector<8x32xf32>
    %142 = vector.broadcast %115 : vector<1x32xf32> to vector<8x32xf32>
    %143 = arith.mulf %141, %142 : vector<8x32xf32>
    %144 = vector.broadcast %117 : vector<1x32xf32> to vector<8x32xf32>
    %145 = arith.addf %143, %144 : vector<8x32xf32>
    %cst_69 = arith.constant dense<0.000000e+00> : vector<8x64xf32>
    %146 = tpu.matmul %145, %119, %cst_69 {dimension_numbers = #tpu.dot_dimension_numbers<[1], [0], [0], [1], [0, 0, 1, 1], [], []>} : vector<8x32xf32>, vector<32x64xf32>, vector<8x64xf32> -> vector<8x64xf32>
    %147 = vector.broadcast %121 : vector<1x64xf32> to vector<8x64xf32>
    %148 = arith.addf %146, %147 : vector<8x64xf32>
    %cst_70 = arith.constant 5.000000e-01 : f32
    %149 = vector.broadcast %cst_70 : f32 to vector<8x64xf32>
    %150 = arith.mulf %149, %148 : vector<8x64xf32>
    %cst_71 = arith.constant 4.471500e-02 : f32
    %151 = vector.broadcast %cst_71 : f32 to vector<8x64xf32>
    %152 = arith.mulf %151, %148 : vector<8x64xf32>
    %153 = arith.mulf %152, %148 : vector<8x64xf32>
    %154 = arith.mulf %153, %148 : vector<8x64xf32>
    %155 = arith.addf %148, %154 : vector<8x64xf32>
    %cst_72 = arith.constant 0.797884583 : f32
    %156 = vector.broadcast %cst_72 : f32 to vector<8x64xf32>
    %157 = arith.mulf %156, %155 : vector<8x64xf32>
    %158 = math.tanh %157 : vector<8x64xf32>
    %cst_73 = arith.constant 1.000000e+00 : f32
    %159 = vector.broadcast %cst_73 : f32 to vector<8x64xf32>
    %160 = arith.addf %159, %158 : vector<8x64xf32>
    %161 = arith.mulf %150, %160 : vector<8x64xf32>
    %cst_74 = arith.constant dense<0.000000e+00> : vector<8x32xf32>
    %162 = tpu.matmul %161, %123, %cst_74 {dimension_numbers = #tpu.dot_dimension_numbers<[1], [0], [0], [1], [0, 0, 1, 1], [], []>} : vector<8x64xf32>, vector<64x32xf32>, vector<8x32xf32> -> vector<8x32xf32>
    %163 = vector.broadcast %125 : vector<1x32xf32> to vector<8x32xf32>
    %164 = arith.addf %162, %163 : vector<8x32xf32>
    %165 = arith.addf %164, %113 : vector<8x32xf32>
    %c1 = arith.constant 1 : index
    %c0_75 = arith.constant 0 : index
    %c0_76 = arith.constant 0 : index
    %166 = vector.load %arg5[%c1, %c0_75, %c0_76] : memref<2x1x32xf32, #tpu.memory_space<vmem>>, vector<1x1x32xf32>
    %167 = vector.shape_cast %166 : vector<1x1x32xf32> to vector<1x32xf32>
    %c1_77 = arith.constant 1 : index
    %c0_78 = arith.constant 0 : index
    %c0_79 = arith.constant 0 : index
    %168 = vector.load %arg6[%c1_77, %c0_78, %c0_79] : memref<2x1x32xf32, #tpu.memory_space<vmem>>, vector<1x1x32xf32>
    %169 = vector.shape_cast %168 : vector<1x1x32xf32> to vector<1x32xf32>
    %cst_80 = arith.constant dense<0.000000e+00> : vector<8xf32>
    %170 = vector.multi_reduction <add>, %165, %cst_80 [1] : vector<8x32xf32> to vector<8xf32>
    %171 = vector.shape_cast %170 : vector<8xf32> to vector<8x1xf32>
    %cst_81 = arith.constant 3.200000e+01 : f32
    %172 = vector.broadcast %cst_81 : f32 to vector<8x1xf32>
    %173 = arith.divf %171, %172 : vector<8x1xf32>
    %174 = vector.broadcast %173 : vector<8x1xf32> to vector<8x32xf32>
    %175 = arith.subf %165, %174 : vector<8x32xf32>
    %176 = arith.mulf %175, %175 : vector<8x32xf32>
    %cst_82 = arith.constant dense<0.000000e+00> : vector<8xf32>
    %177 = vector.multi_reduction <add>, %176, %cst_82 [1] : vector<8x32xf32> to vector<8xf32>
    %178 = vector.shape_cast %177 : vector<8xf32> to vector<8x1xf32>
    %cst_83 = arith.constant 3.200000e+01 : f32
    %179 = vector.broadcast %cst_83 : f32 to vector<8x1xf32>
    %180 = arith.divf %178, %179 : vector<8x1xf32>
    %cst_84 = arith.constant 9.99999997E-7 : f32
    %181 = vector.broadcast %cst_84 : f32 to vector<8x1xf32>
    %182 = arith.addf %180, %181 : vector<8x1xf32>
    %183 = math.rsqrt %182 : vector<8x1xf32>
    %184 = vector.broadcast %183 : vector<8x1xf32> to vector<8x32xf32>
    %185 = arith.mulf %175, %184 : vector<8x32xf32>
    %186 = vector.broadcast %167 : vector<1x32xf32> to vector<8x32xf32>
    %187 = arith.mulf %185, %186 : vector<8x32xf32>
    %188 = vector.broadcast %169 : vector<1x32xf32> to vector<8x32xf32>
    %189 = arith.addf %187, %188 : vector<8x32xf32>
    %c1_85 = arith.constant 1 : index
    %c0_86 = arith.constant 0 : index
    %c0_87 = arith.constant 0 : index
    %190 = vector.load %arg7[%c1_85, %c0_86, %c0_87] : memref<2x32x96xf32, #tpu.memory_space<vmem>>, vector<1x32x96xf32>
    %191 = vector.shape_cast %190 : vector<1x32x96xf32> to vector<32x96xf32>
    %cst_88 = arith.constant dense<0.000000e+00> : vector<8x96xf32>
    %192 = tpu.matmul %189, %191, %cst_88 {dimension_numbers = #tpu.dot_dimension_numbers<[1], [0], [0], [1], [0, 0, 1, 1], [], []>} : vector<8x32xf32>, vector<32x96xf32>, vector<8x96xf32> -> vector<8x96xf32>
    %c1_89 = arith.constant 1 : index
    %c0_90 = arith.constant 0 : index
    %c0_91 = arith.constant 0 : index
    %193 = vector.load %arg8[%c1_89, %c0_90, %c0_91] : memref<2x1x96xf32, #tpu.memory_space<vmem>>, vector<1x1x96xf32>
    %194 = vector.shape_cast %193 : vector<1x1x96xf32> to vector<1x96xf32>
    %195 = vector.broadcast %194 : vector<1x96xf32> to vector<8x96xf32>
    %196 = arith.addf %192, %195 : vector<8x96xf32>
    %197 = vector.extract_strided_slice %196 {offsets = [0, 0], sizes = [8, 32], strides = [1, 1]} : vector<8x96xf32> to vector<8x32xf32>
    %198 = vector.extract_strided_slice %196 {offsets = [0, 32], sizes = [8, 32], strides = [1, 1]} : vector<8x96xf32> to vector<8x32xf32>
    %199 = vector.extract_strided_slice %196 {offsets = [0, 64], sizes = [8, 32], strides = [1, 1]} : vector<8x96xf32> to vector<8x32xf32>
    %c1_92 = arith.constant 1 : index
    %c0_93 = arith.constant 0 : index
    %c0_94 = arith.constant 0 : index
    %200 = vector.load %arg9[%c1_92, %c0_93, %c0_94] : memref<2x32x32xf32, #tpu.memory_space<vmem>>, vector<1x32x32xf32>
    %201 = vector.shape_cast %200 : vector<1x32x32xf32> to vector<32x32xf32>
    %202 = vector.extract_strided_slice %197 {offsets = [0, 0], sizes = [8, 8], strides = [1, 1]} : vector<8x32xf32> to vector<8x8xf32>
    %203 = vector.extract_strided_slice %198 {offsets = [0, 0], sizes = [8, 8], strides = [1, 1]} : vector<8x32xf32> to vector<8x8xf32>
    %204 = vector.extract_strided_slice %199 {offsets = [0, 0], sizes = [8, 8], strides = [1, 1]} : vector<8x32xf32> to vector<8x8xf32>
    %cst_95 = arith.constant dense<0.000000e+00> : vector<8x8xf32>
    %205 = tpu.matmul %202, %203, %cst_95 {dimension_numbers = #tpu.dot_dimension_numbers<[1], [1], [0], [0], [0, 0, 1, 0], [], []>} : vector<8x8xf32>, vector<8x8xf32>, vector<8x8xf32> -> vector<8x8xf32>
    %cst_96 = arith.constant 0.353553385 : f32
    %206 = vector.broadcast %cst_96 : f32 to vector<8x8xf32>
    %207 = arith.mulf %205, %206 : vector<8x8xf32>
    %208 = arith.addf %207, %13 : vector<8x8xf32>
    %cst_97 = arith.constant dense<0xFF800000> : vector<8xf32>
    %209 = vector.multi_reduction <maximumf>, %208, %cst_97 [1] : vector<8x8xf32> to vector<8xf32>
    %210 = vector.shape_cast %209 : vector<8xf32> to vector<8x1xf32>
    %211 = vector.broadcast %210 : vector<8x1xf32> to vector<8x8xf32>
    %212 = arith.subf %208, %211 : vector<8x8xf32>
    %213 = math.exp %212 : vector<8x8xf32>
    %cst_98 = arith.constant dense<0.000000e+00> : vector<8xf32>
    %214 = vector.multi_reduction <add>, %213, %cst_98 [1] : vector<8x8xf32> to vector<8xf32>
    %215 = vector.shape_cast %214 : vector<8xf32> to vector<8x1xf32>
    %216 = tpu.reciprocal %215 {approx = true} : vector<8x1xf32> -> vector<8x1xf32>
    %217 = vector.broadcast %216 : vector<8x1xf32> to vector<8x8xf32>
    %218 = arith.mulf %213, %217 : vector<8x8xf32>
    %cst_99 = arith.constant dense<0.000000e+00> : vector<8x8xf32>
    %219 = tpu.matmul %218, %204, %cst_99 {dimension_numbers = #tpu.dot_dimension_numbers<[1], [0], [0], [1], [0, 0, 1, 1], [], []>} : vector<8x8xf32>, vector<8x8xf32>, vector<8x8xf32> -> vector<8x8xf32>
    %220 = vector.extract_strided_slice %201 {offsets = [0, 0], sizes = [8, 32], strides = [1, 1]} : vector<32x32xf32> to vector<8x32xf32>
    %cst_100 = arith.constant dense<0.000000e+00> : vector<8x32xf32>
    %221 = tpu.matmul %219, %220, %cst_100 {dimension_numbers = #tpu.dot_dimension_numbers<[1], [0], [0], [1], [0, 0, 1, 1], [], []>} : vector<8x8xf32>, vector<8x32xf32>, vector<8x32xf32> -> vector<8x32xf32>
    %222 = vector.extract_strided_slice %197 {offsets = [0, 8], sizes = [8, 8], strides = [1, 1]} : vector<8x32xf32> to vector<8x8xf32>
    %223 = vector.extract_strided_slice %198 {offsets = [0, 8], sizes = [8, 8], strides = [1, 1]} : vector<8x32xf32> to vector<8x8xf32>
    %224 = vector.extract_strided_slice %199 {offsets = [0, 8], sizes = [8, 8], strides = [1, 1]} : vector<8x32xf32> to vector<8x8xf32>
    %cst_101 = arith.constant dense<0.000000e+00> : vector<8x8xf32>
    %225 = tpu.matmul %222, %223, %cst_101 {dimension_numbers = #tpu.dot_dimension_numbers<[1], [1], [0], [0], [0, 0, 1, 0], [], []>} : vector<8x8xf32>, vector<8x8xf32>, vector<8x8xf32> -> vector<8x8xf32>
    %cst_102 = arith.constant 0.353553385 : f32
    %226 = vector.broadcast %cst_102 : f32 to vector<8x8xf32>
    %227 = arith.mulf %225, %226 : vector<8x8xf32>
    %228 = arith.addf %227, %13 : vector<8x8xf32>
    %cst_103 = arith.constant dense<0xFF800000> : vector<8xf32>
    %229 = vector.multi_reduction <maximumf>, %228, %cst_103 [1] : vector<8x8xf32> to vector<8xf32>
    %230 = vector.shape_cast %229 : vector<8xf32> to vector<8x1xf32>
    %231 = vector.broadcast %230 : vector<8x1xf32> to vector<8x8xf32>
    %232 = arith.subf %228, %231 : vector<8x8xf32>
    %233 = math.exp %232 : vector<8x8xf32>
    %cst_104 = arith.constant dense<0.000000e+00> : vector<8xf32>
    %234 = vector.multi_reduction <add>, %233, %cst_104 [1] : vector<8x8xf32> to vector<8xf32>
    %235 = vector.shape_cast %234 : vector<8xf32> to vector<8x1xf32>
    %236 = tpu.reciprocal %235 {approx = true} : vector<8x1xf32> -> vector<8x1xf32>
    %237 = vector.broadcast %236 : vector<8x1xf32> to vector<8x8xf32>
    %238 = arith.mulf %233, %237 : vector<8x8xf32>
    %cst_105 = arith.constant dense<0.000000e+00> : vector<8x8xf32>
    %239 = tpu.matmul %238, %224, %cst_105 {dimension_numbers = #tpu.dot_dimension_numbers<[1], [0], [0], [1], [0, 0, 1, 1], [], []>} : vector<8x8xf32>, vector<8x8xf32>, vector<8x8xf32> -> vector<8x8xf32>
    %240 = vector.extract_strided_slice %201 {offsets = [8, 0], sizes = [8, 32], strides = [1, 1]} : vector<32x32xf32> to vector<8x32xf32>
    %cst_106 = arith.constant dense<0.000000e+00> : vector<8x32xf32>
    %241 = tpu.matmul %239, %240, %cst_106 {dimension_numbers = #tpu.dot_dimension_numbers<[1], [0], [0], [1], [0, 0, 1, 1], [], []>} : vector<8x8xf32>, vector<8x32xf32>, vector<8x32xf32> -> vector<8x32xf32>
    %242 = arith.addf %221, %241 : vector<8x32xf32>
    %243 = vector.extract_strided_slice %197 {offsets = [0, 16], sizes = [8, 8], strides = [1, 1]} : vector<8x32xf32> to vector<8x8xf32>
    %244 = vector.extract_strided_slice %198 {offsets = [0, 16], sizes = [8, 8], strides = [1, 1]} : vector<8x32xf32> to vector<8x8xf32>
    %245 = vector.extract_strided_slice %199 {offsets = [0, 16], sizes = [8, 8], strides = [1, 1]} : vector<8x32xf32> to vector<8x8xf32>
    %cst_107 = arith.constant dense<0.000000e+00> : vector<8x8xf32>
    %246 = tpu.matmul %243, %244, %cst_107 {dimension_numbers = #tpu.dot_dimension_numbers<[1], [1], [0], [0], [0, 0, 1, 0], [], []>} : vector<8x8xf32>, vector<8x8xf32>, vector<8x8xf32> -> vector<8x8xf32>
    %cst_108 = arith.constant 0.353553385 : f32
    %247 = vector.broadcast %cst_108 : f32 to vector<8x8xf32>
    %248 = arith.mulf %246, %247 : vector<8x8xf32>
    %249 = arith.addf %248, %13 : vector<8x8xf32>
    %cst_109 = arith.constant dense<0xFF800000> : vector<8xf32>
    %250 = vector.multi_reduction <maximumf>, %249, %cst_109 [1] : vector<8x8xf32> to vector<8xf32>
    %251 = vector.shape_cast %250 : vector<8xf32> to vector<8x1xf32>
    %252 = vector.broadcast %251 : vector<8x1xf32> to vector<8x8xf32>
    %253 = arith.subf %249, %252 : vector<8x8xf32>
    %254 = math.exp %253 : vector<8x8xf32>
    %cst_110 = arith.constant dense<0.000000e+00> : vector<8xf32>
    %255 = vector.multi_reduction <add>, %254, %cst_110 [1] : vector<8x8xf32> to vector<8xf32>
    %256 = vector.shape_cast %255 : vector<8xf32> to vector<8x1xf32>
    %257 = tpu.reciprocal %256 {approx = true} : vector<8x1xf32> -> vector<8x1xf32>
    %258 = vector.broadcast %257 : vector<8x1xf32> to vector<8x8xf32>
    %259 = arith.mulf %254, %258 : vector<8x8xf32>
    %cst_111 = arith.constant dense<0.000000e+00> : vector<8x8xf32>
    %260 = tpu.matmul %259, %245, %cst_111 {dimension_numbers = #tpu.dot_dimension_numbers<[1], [0], [0], [1], [0, 0, 1, 1], [], []>} : vector<8x8xf32>, vector<8x8xf32>, vector<8x8xf32> -> vector<8x8xf32>
    %261 = vector.extract_strided_slice %201 {offsets = [16, 0], sizes = [8, 32], strides = [1, 1]} : vector<32x32xf32> to vector<8x32xf32>
    %cst_112 = arith.constant dense<0.000000e+00> : vector<8x32xf32>
    %262 = tpu.matmul %260, %261, %cst_112 {dimension_numbers = #tpu.dot_dimension_numbers<[1], [0], [0], [1], [0, 0, 1, 1], [], []>} : vector<8x8xf32>, vector<8x32xf32>, vector<8x32xf32> -> vector<8x32xf32>
    %263 = arith.addf %242, %262 : vector<8x32xf32>
    %264 = vector.extract_strided_slice %197 {offsets = [0, 24], sizes = [8, 8], strides = [1, 1]} : vector<8x32xf32> to vector<8x8xf32>
    %265 = vector.extract_strided_slice %198 {offsets = [0, 24], sizes = [8, 8], strides = [1, 1]} : vector<8x32xf32> to vector<8x8xf32>
    %266 = vector.extract_strided_slice %199 {offsets = [0, 24], sizes = [8, 8], strides = [1, 1]} : vector<8x32xf32> to vector<8x8xf32>
    %cst_113 = arith.constant dense<0.000000e+00> : vector<8x8xf32>
    %267 = tpu.matmul %264, %265, %cst_113 {dimension_numbers = #tpu.dot_dimension_numbers<[1], [1], [0], [0], [0, 0, 1, 0], [], []>} : vector<8x8xf32>, vector<8x8xf32>, vector<8x8xf32> -> vector<8x8xf32>
    %cst_114 = arith.constant 0.353553385 : f32
    %268 = vector.broadcast %cst_114 : f32 to vector<8x8xf32>
    %269 = arith.mulf %267, %268 : vector<8x8xf32>
    %270 = arith.addf %269, %13 : vector<8x8xf32>
    %cst_115 = arith.constant dense<0xFF800000> : vector<8xf32>
    %271 = vector.multi_reduction <maximumf>, %270, %cst_115 [1] : vector<8x8xf32> to vector<8xf32>
    %272 = vector.shape_cast %271 : vector<8xf32> to vector<8x1xf32>
    %273 = vector.broadcast %272 : vector<8x1xf32> to vector<8x8xf32>
    %274 = arith.subf %270, %273 : vector<8x8xf32>
    %275 = math.exp %274 : vector<8x8xf32>
    %cst_116 = arith.constant dense<0.000000e+00> : vector<8xf32>
    %276 = vector.multi_reduction <add>, %275, %cst_116 [1] : vector<8x8xf32> to vector<8xf32>
    %277 = vector.shape_cast %276 : vector<8xf32> to vector<8x1xf32>
    %278 = tpu.reciprocal %277 {approx = true} : vector<8x1xf32> -> vector<8x1xf32>
    %279 = vector.broadcast %278 : vector<8x1xf32> to vector<8x8xf32>
    %280 = arith.mulf %275, %279 : vector<8x8xf32>
    %cst_117 = arith.constant dense<0.000000e+00> : vector<8x8xf32>
    %281 = tpu.matmul %280, %266, %cst_117 {dimension_numbers = #tpu.dot_dimension_numbers<[1], [0], [0], [1], [0, 0, 1, 1], [], []>} : vector<8x8xf32>, vector<8x8xf32>, vector<8x8xf32> -> vector<8x8xf32>
    %282 = vector.extract_strided_slice %201 {offsets = [24, 0], sizes = [8, 32], strides = [1, 1]} : vector<32x32xf32> to vector<8x32xf32>
    %cst_118 = arith.constant dense<0.000000e+00> : vector<8x32xf32>
    %283 = tpu.matmul %281, %282, %cst_118 {dimension_numbers = #tpu.dot_dimension_numbers<[1], [0], [0], [1], [0, 0, 1, 1], [], []>} : vector<8x8xf32>, vector<8x32xf32>, vector<8x32xf32> -> vector<8x32xf32>
    %284 = arith.addf %263, %283 : vector<8x32xf32>
    %c1_119 = arith.constant 1 : index
    %c0_120 = arith.constant 0 : index
    %c0_121 = arith.constant 0 : index
    %285 = vector.load %arg10[%c1_119, %c0_120, %c0_121] : memref<2x1x32xf32, #tpu.memory_space<vmem>>, vector<1x1x32xf32>
    %286 = vector.shape_cast %285 : vector<1x1x32xf32> to vector<1x32xf32>
    %287 = vector.broadcast %286 : vector<1x32xf32> to vector<8x32xf32>
    %288 = arith.addf %284, %287 : vector<8x32xf32>
    %289 = arith.addf %288, %165 : vector<8x32xf32>
    %c1_122 = arith.constant 1 : index
    %c0_123 = arith.constant 0 : index
    %c0_124 = arith.constant 0 : index
    %290 = vector.load %arg11[%c1_122, %c0_123, %c0_124] : memref<2x1x32xf32, #tpu.memory_space<vmem>>, vector<1x1x32xf32>
    %291 = vector.shape_cast %290 : vector<1x1x32xf32> to vector<1x32xf32>
    %c1_125 = arith.constant 1 : index
    %c0_126 = arith.constant 0 : index
    %c0_127 = arith.constant 0 : index
    %292 = vector.load %arg12[%c1_125, %c0_126, %c0_127] : memref<2x1x32xf32, #tpu.memory_space<vmem>>, vector<1x1x32xf32>
    %293 = vector.shape_cast %292 : vector<1x1x32xf32> to vector<1x32xf32>
    %c1_128 = arith.constant 1 : index
    %c0_129 = arith.constant 0 : index
    %c0_130 = arith.constant 0 : index
    %294 = vector.load %arg13[%c1_128, %c0_129, %c0_130] : memref<2x32x64xf32, #tpu.memory_space<vmem>>, vector<1x32x64xf32>
    %295 = vector.shape_cast %294 : vector<1x32x64xf32> to vector<32x64xf32>
    %c1_131 = arith.constant 1 : index
    %c0_132 = arith.constant 0 : index
    %c0_133 = arith.constant 0 : index
    %296 = vector.load %arg14[%c1_131, %c0_132, %c0_133] : memref<2x1x64xf32, #tpu.memory_space<vmem>>, vector<1x1x64xf32>
    %297 = vector.shape_cast %296 : vector<1x1x64xf32> to vector<1x64xf32>
    %c1_134 = arith.constant 1 : index
    %c0_135 = arith.constant 0 : index
    %c0_136 = arith.constant 0 : index
    %298 = vector.load %arg15[%c1_134, %c0_135, %c0_136] : memref<2x64x32xf32, #tpu.memory_space<vmem>>, vector<1x64x32xf32>
    %299 = vector.shape_cast %298 : vector<1x64x32xf32> to vector<64x32xf32>
    %c1_137 = arith.constant 1 : index
    %c0_138 = arith.constant 0 : index
    %c0_139 = arith.constant 0 : index
    %300 = vector.load %arg16[%c1_137, %c0_138, %c0_139] : memref<2x1x32xf32, #tpu.memory_space<vmem>>, vector<1x1x32xf32>
    %301 = vector.shape_cast %300 : vector<1x1x32xf32> to vector<1x32xf32>
    %cst_140 = arith.constant dense<0.000000e+00> : vector<8xf32>
    %302 = vector.multi_reduction <add>, %289, %cst_140 [1] : vector<8x32xf32> to vector<8xf32>
    %303 = vector.shape_cast %302 : vector<8xf32> to vector<8x1xf32>
    %cst_141 = arith.constant 3.200000e+01 : f32
    %304 = vector.broadcast %cst_141 : f32 to vector<8x1xf32>
    %305 = arith.divf %303, %304 : vector<8x1xf32>
    %306 = vector.broadcast %305 : vector<8x1xf32> to vector<8x32xf32>
    %307 = arith.subf %289, %306 : vector<8x32xf32>
    %308 = arith.mulf %307, %307 : vector<8x32xf32>
    %cst_142 = arith.constant dense<0.000000e+00> : vector<8xf32>
    %309 = vector.multi_reduction <add>, %308, %cst_142 [1] : vector<8x32xf32> to vector<8xf32>
    %310 = vector.shape_cast %309 : vector<8xf32> to vector<8x1xf32>
    %cst_143 = arith.constant 3.200000e+01 : f32
    %311 = vector.broadcast %cst_143 : f32 to vector<8x1xf32>
    %312 = arith.divf %310, %311 : vector<8x1xf32>
    %cst_144 = arith.constant 9.99999997E-7 : f32
    %313 = vector.broadcast %cst_144 : f32 to vector<8x1xf32>
    %314 = arith.addf %312, %313 : vector<8x1xf32>
    %315 = math.rsqrt %314 : vector<8x1xf32>
    %316 = vector.broadcast %315 : vector<8x1xf32> to vector<8x32xf32>
    %317 = arith.mulf %307, %316 : vector<8x32xf32>
    %318 = vector.broadcast %291 : vector<1x32xf32> to vector<8x32xf32>
    %319 = arith.mulf %317, %318 : vector<8x32xf32>
    %320 = vector.broadcast %293 : vector<1x32xf32> to vector<8x32xf32>
    %321 = arith.addf %319, %320 : vector<8x32xf32>
    %cst_145 = arith.constant dense<0.000000e+00> : vector<8x64xf32>
    %322 = tpu.matmul %321, %295, %cst_145 {dimension_numbers = #tpu.dot_dimension_numbers<[1], [0], [0], [1], [0, 0, 1, 1], [], []>} : vector<8x32xf32>, vector<32x64xf32>, vector<8x64xf32> -> vector<8x64xf32>
    %323 = vector.broadcast %297 : vector<1x64xf32> to vector<8x64xf32>
    %324 = arith.addf %322, %323 : vector<8x64xf32>
    %cst_146 = arith.constant 5.000000e-01 : f32
    %325 = vector.broadcast %cst_146 : f32 to vector<8x64xf32>
    %326 = arith.mulf %325, %324 : vector<8x64xf32>
    %cst_147 = arith.constant 4.471500e-02 : f32
    %327 = vector.broadcast %cst_147 : f32 to vector<8x64xf32>
    %328 = arith.mulf %327, %324 : vector<8x64xf32>
    %329 = arith.mulf %328, %324 : vector<8x64xf32>
    %330 = arith.mulf %329, %324 : vector<8x64xf32>
    %331 = arith.addf %324, %330 : vector<8x64xf32>
    %cst_148 = arith.constant 0.797884583 : f32
    %332 = vector.broadcast %cst_148 : f32 to vector<8x64xf32>
    %333 = arith.mulf %332, %331 : vector<8x64xf32>
    %334 = math.tanh %333 : vector<8x64xf32>
    %cst_149 = arith.constant 1.000000e+00 : f32
    %335 = vector.broadcast %cst_149 : f32 to vector<8x64xf32>
    %336 = arith.addf %335, %334 : vector<8x64xf32>
    %337 = arith.mulf %326, %336 : vector<8x64xf32>
    %cst_150 = arith.constant dense<0.000000e+00> : vector<8x32xf32>
    %338 = tpu.matmul %337, %299, %cst_150 {dimension_numbers = #tpu.dot_dimension_numbers<[1], [0], [0], [1], [0, 0, 1, 1], [], []>} : vector<8x64xf32>, vector<64x32xf32>, vector<8x32xf32> -> vector<8x32xf32>
    %339 = vector.broadcast %301 : vector<1x32xf32> to vector<8x32xf32>
    %340 = arith.addf %338, %339 : vector<8x32xf32>
    %341 = arith.addf %340, %289 : vector<8x32xf32>
    %c0_151 = arith.constant 0 : index
    %c0_152 = arith.constant 0 : index
    %342 = vector.load %arg17[%c0_151, %c0_152] : memref<1x32xf32, #tpu.memory_space<vmem>>, vector<1x32xf32>
    %c0_153 = arith.constant 0 : index
    %c0_154 = arith.constant 0 : index
    %343 = vector.load %arg18[%c0_153, %c0_154] : memref<1x32xf32, #tpu.memory_space<vmem>>, vector<1x32xf32>
    %cst_155 = arith.constant dense<0.000000e+00> : vector<8xf32>
    %344 = vector.multi_reduction <add>, %341, %cst_155 [1] : vector<8x32xf32> to vector<8xf32>
    %345 = vector.shape_cast %344 : vector<8xf32> to vector<8x1xf32>
    %cst_156 = arith.constant 3.200000e+01 : f32
    %346 = vector.broadcast %cst_156 : f32 to vector<8x1xf32>
    %347 = arith.divf %345, %346 : vector<8x1xf32>
    %348 = vector.broadcast %347 : vector<8x1xf32> to vector<8x32xf32>
    %349 = arith.subf %341, %348 : vector<8x32xf32>
    %350 = arith.mulf %349, %349 : vector<8x32xf32>
    %cst_157 = arith.constant dense<0.000000e+00> : vector<8xf32>
    %351 = vector.multi_reduction <add>, %350, %cst_157 [1] : vector<8x32xf32> to vector<8xf32>
    %352 = vector.shape_cast %351 : vector<8xf32> to vector<8x1xf32>
    %cst_158 = arith.constant 3.200000e+01 : f32
    %353 = vector.broadcast %cst_158 : f32 to vector<8x1xf32>
    %354 = arith.divf %352, %353 : vector<8x1xf32>
    %cst_159 = arith.constant 9.99999997E-7 : f32
    %355 = vector.broadcast %cst_159 : f32 to vector<8x1xf32>
    %356 = arith.addf %354, %355 : vector<8x1xf32>
    %357 = math.rsqrt %356 : vector<8x1xf32>
    %358 = vector.broadcast %357 : vector<8x1xf32> to vector<8x32xf32>
    %359 = arith.mulf %349, %358 : vector<8x32xf32>
    %360 = vector.broadcast %342 : vector<1x32xf32> to vector<8x32xf32>
    %361 = arith.mulf %359, %360 : vector<8x32xf32>
    %362 = vector.broadcast %343 : vector<1x32xf32> to vector<8x32xf32>
    %363 = arith.addf %361, %362 : vector<8x32xf32>
    %c0_160 = arith.constant 0 : index
    %c0_161 = arith.constant 0 : index
    %364 = vector.load %arg19[%c0_160, %c0_161] : memref<8x32xf32, #tpu.memory_space<vmem>>, vector<8x32xf32>
    tpu.vector_store %arg19[%c0_160, %c0_161], %363 {strides = array<i32>} : memref<8x32xf32, #tpu.memory_space<vmem>>, vector<8x32xf32>,
    return
  }
  func.func @transform_0(%arg0: i32) -> (i32, i32) {
    %c0_i32 = arith.constant 0 : i32
    %c0_i32_0 = arith.constant 0 : i32
    %c0_i32_1 = arith.constant 0 : i32
    return %c0_i32, %c0_i32_0 : i32, i32
  }
  func.func @transform_1(%arg0: i32) -> (i32, i32) {
    %c0_i32 = arith.constant 0 : i32
    %c0_i32_0 = arith.constant 0 : i32
    %c0_i32_1 = arith.constant 0 : i32
    return %c0_i32, %c0_i32_0 : i32, i32
  }
  func.func @transform_2(%arg0: i32) -> (i32, i32) {
    %c0_i32 = arith.constant 0 : i32
    %c0_i32_0 = arith.constant 0 : i32
    %c0_i32_1 = arith.constant 0 : i32
    return %c0_i32, %c0_i32_0 : i32, i32
  }
  func.func @transform_3(%arg0: i32) -> (i32, i32) {
    %c0_i32 = arith.constant 0 : i32
    %c0_i32_0 = arith.constant 0 : i32
    %c0_i32_1 = arith.constant 0 : i32
    return %c0_i32, %c0_i32_0 : i32, i32
  }
  func.func @transform_4(%arg0: i32) -> (i32, i32, i32) {
    %c0_i32 = arith.constant 0 : i32
    %c0_i32_0 = arith.constant 0 : i32
    %c0_i32_1 = arith.constant 0 : i32
    %c0_i32_2 = arith.constant 0 : i32
    return %c0_i32, %c0_i32_0, %c0_i32_1 : i32, i32, i32
  }
  func.func @transform_5(%arg0: i32) -> (i32, i32, i32) {
    %c0_i32 = arith.constant 0 : i32
    %c0_i32_0 = arith.constant 0 : i32
    %c0_i32_1 = arith.constant 0 : i32
    %c0_i32_2 = arith.constant 0 : i32
    return %c0_i32, %c0_i32_0, %c0_i32_1 : i32, i32, i32
  }
  func.func @transform_6(%arg0: i32) -> (i32, i32, i32) {
    %c0_i32 = arith.constant 0 : i32
    %c0_i32_0 = arith.constant 0 : i32
    %c0_i32_1 = arith.constant 0 : i32
    %c0_i32_2 = arith.constant 0 : i32
    return %c0_i32, %c0_i32_0, %c0_i32_1 : i32, i32, i32
  }
  func.func @transform_7(%arg0: i32) -> (i32, i32, i32) {
    %c0_i32 = arith.constant 0 : i32
    %c0_i32_0 = arith.constant 0 : i32
    %c0_i32_1 = arith.constant 0 : i32
    %c0_i32_2 = arith.constant 0 : i32
    return %c0_i32, %c0_i32_0, %c0_i32_1 : i32, i32, i32
  }
  func.func @transform_8(%arg0: i32) -> (i32, i32, i32) {
    %c0_i32 = arith.constant 0 : i32
    %c0_i32_0 = arith.constant 0 : i32
    %c0_i32_1 = arith.constant 0 : i32
    %c0_i32_2 = arith.constant 0 : i32
    return %c0_i32, %c0_i32_0, %c0_i32_1 : i32, i32, i32
  }
  func.func @transform_9(%arg0: i32) -> (i32, i32, i32) {
    %c0_i32 = arith.constant 0 : i32
    %c0_i32_0 = arith.constant 0 : i32
    %c0_i32_1 = arith.constant 0 : i32
    %c0_i32_2 = arith.constant 0 : i32
    return %c0_i32, %c0_i32_0, %c0_i32_1 : i32, i32, i32
  }
  func.func @transform_10(%arg0: i32) -> (i32, i32, i32) {
    %c0_i32 = arith.constant 0 : i32
    %c0_i32_0 = arith.constant 0 : i32
    %c0_i32_1 = arith.constant 0 : i32
    %c0_i32_2 = arith.constant 0 : i32
    return %c0_i32, %c0_i32_0, %c0_i32_1 : i32, i32, i32
  }
  func.func @transform_11(%arg0: i32) -> (i32, i32, i32) {
    %c0_i32 = arith.constant 0 : i32
    %c0_i32_0 = arith.constant 0 : i32
    %c0_i32_1 = arith.constant 0 : i32
    %c0_i32_2 = arith.constant 0 : i32
    return %c0_i32, %c0_i32_0, %c0_i32_1 : i32, i32, i32
  }
  func.func @transform_12(%arg0: i32) -> (i32, i32, i32) {
    %c0_i32 = arith.constant 0 : i32
    %c0_i32_0 = arith.constant 0 : i32
    %c0_i32_1 = arith.constant 0 : i32
    %c0_i32_2 = arith.constant 0 : i32
    return %c0_i32, %c0_i32_0, %c0_i32_1 : i32, i32, i32
  }
  func.func @transform_13(%arg0: i32) -> (i32, i32, i32) {
    %c0_i32 = arith.constant 0 : i32
    %c0_i32_0 = arith.constant 0 : i32
    %c0_i32_1 = arith.constant 0 : i32
    %c0_i32_2 = arith.constant 0 : i32
    return %c0_i32, %c0_i32_0, %c0_i32_1 : i32, i32, i32
  }
  func.func @transform_14(%arg0: i32) -> (i32, i32, i32) {
    %c0_i32 = arith.constant 0 : i32
    %c0_i32_0 = arith.constant 0 : i32
    %c0_i32_1 = arith.constant 0 : i32
    %c0_i32_2 = arith.constant 0 : i32
    return %c0_i32, %c0_i32_0, %c0_i32_1 : i32, i32, i32
  }
  func.func @transform_15(%arg0: i32) -> (i32, i32, i32) {
    %c0_i32 = arith.constant 0 : i32
    %c0_i32_0 = arith.constant 0 : i32
    %c0_i32_1 = arith.constant 0 : i32
    %c0_i32_2 = arith.constant 0 : i32
    return %c0_i32, %c0_i32_0, %c0_i32_1 : i32, i32, i32
  }
  func.func @transform_16(%arg0: i32) -> (i32, i32) {
    %c0_i32 = arith.constant 0 : i32
    %c0_i32_0 = arith.constant 0 : i32
    %c0_i32_1 = arith.constant 0 : i32
    return %c0_i32, %c0_i32_0 : i32, i32
  }
  func.func @transform_17(%arg0: i32) -> (i32, i32) {
    %c0_i32 = arith.constant 0 : i32
    %c0_i32_0 = arith.constant 0 : i32
    %c0_i32_1 = arith.constant 0 : i32
    return %c0_i32, %c0_i32_0 : i32, i32
  }
  func.func @transform_18(%arg0: i32) -> (i32, i32) {
    %c0_i32 = arith.constant 0 : i32
    %c0_i32_0 = arith.constant 0 : i32
    %c0_i32_1 = arith.constant 0 : i32
    return %c0_i32, %c0_i32_0 : i32, i32
  }
}

module attributes {stable_mosaic.version = 11 : i64} {
  func.func @kernel(%arg0: i32, %arg1: memref<16x32xf32, #tpu.memory_space<vmem>>, %arg2: memref<8x32xf32, #tpu.memory_space<vmem>>, %arg3: memref<16x1xf32, #tpu.memory_space<vmem>>, %arg4: memref<1x16xf32, #tpu.memory_space<vmem>>, %arg5: memref<16x1xf32, #tpu.memory_space<vmem>>, %arg6: memref<1x16xf32, #tpu.memory_space<vmem>>, %arg7: memref<1x16xf32, #tpu.memory_space<vmem>>, %arg8: memref<1x8xf32, #tpu.memory_space<vmem>>, %arg9: memref<1x8xf32, #tpu.memory_space<vmem>>, %arg10: memref<2x1x32xf32, #tpu.memory_space<vmem>>, %arg11: memref<2x1x32xf32, #tpu.memory_space<vmem>>, %arg12: memref<2x32x96xf32, #tpu.memory_space<vmem>>, %arg13: memref<2x1x96xf32, #tpu.memory_space<vmem>>, %arg14: memref<2x32x32xf32, #tpu.memory_space<vmem>>, %arg15: memref<2x1x32xf32, #tpu.memory_space<vmem>>, %arg16: memref<2x1x32xf32, #tpu.memory_space<vmem>>, %arg17: memref<2x1x32xf32, #tpu.memory_space<vmem>>, %arg18: memref<2x32x32xf32, #tpu.memory_space<vmem>>, %arg19: memref<2x1x32xf32, #tpu.memory_space<vmem>>, %arg20: memref<2x32x64xf32, #tpu.memory_space<vmem>>, %arg21: memref<2x1x64xf32, #tpu.memory_space<vmem>>, %arg22: memref<2x32x32xf32, #tpu.memory_space<vmem>>, %arg23: memref<2x1x32xf32, #tpu.memory_space<vmem>>, %arg24: memref<2x1x32xf32, #tpu.memory_space<vmem>>, %arg25: memref<2x1x32xf32, #tpu.memory_space<vmem>>, %arg26: memref<2x32x64xf32, #tpu.memory_space<vmem>>, %arg27: memref<2x1x64xf32, #tpu.memory_space<vmem>>, %arg28: memref<2x64x32xf32, #tpu.memory_space<vmem>>, %arg29: memref<2x1x32xf32, #tpu.memory_space<vmem>>, %arg30: memref<1x32xf32, #tpu.memory_space<vmem>>, %arg31: memref<1x32xf32, #tpu.memory_space<vmem>>, %arg32: memref<16x32xf32, #tpu.memory_space<vmem>>) attributes {dimension_semantics = [#tpu.dimension_semantics<arbitrary>], iteration_bounds = array<i64: 1>, scalar_prefetch = 0 : i64, scratch_operands = 0 : i64, tpu.core_type = #tpu.core_type<tc>, window_params = [{pipeline_mode = #tpu.pipeline_mode<synchronous>, transform_indices = @transform_0, window_bounds = array<i64: 16, 32>}, {pipeline_mode = #tpu.pipeline_mode<synchronous>, transform_indices = @transform_1, window_bounds = array<i64: 8, 32>}, {pipeline_mode = #tpu.pipeline_mode<synchronous>, transform_indices = @transform_2, window_bounds = array<i64: 16, 1>}, {pipeline_mode = #tpu.pipeline_mode<synchronous>, transform_indices = @transform_3, window_bounds = array<i64: 1, 16>}, {pipeline_mode = #tpu.pipeline_mode<synchronous>, transform_indices = @transform_4, window_bounds = array<i64: 16, 1>}, {pipeline_mode = #tpu.pipeline_mode<synchronous>, transform_indices = @transform_5, window_bounds = array<i64: 1, 16>}, {pipeline_mode = #tpu.pipeline_mode<synchronous>, transform_indices = @transform_6, window_bounds = array<i64: 1, 16>}, {pipeline_mode = #tpu.pipeline_mode<synchronous>, transform_indices = @transform_7, window_bounds = array<i64: 1, 8>}, {pipeline_mode = #tpu.pipeline_mode<synchronous>, transform_indices = @transform_8, window_bounds = array<i64: 1, 8>}, {pipeline_mode = #tpu.pipeline_mode<synchronous>, transform_indices = @transform_9, window_bounds = array<i64: 2, 1, 32>}, {pipeline_mode = #tpu.pipeline_mode<synchronous>, transform_indices = @transform_10, window_bounds = array<i64: 2, 1, 32>}, {pipeline_mode = #tpu.pipeline_mode<synchronous>, transform_indices = @transform_11, window_bounds = array<i64: 2, 32, 96>}, {pipeline_mode = #tpu.pipeline_mode<synchronous>, transform_indices = @transform_12, window_bounds = array<i64: 2, 1, 96>}, {pipeline_mode = #tpu.pipeline_mode<synchronous>, transform_indices = @transform_13, window_bounds = array<i64: 2, 32, 32>}, {pipeline_mode = #tpu.pipeline_mode<synchronous>, transform_indices = @transform_14, window_bounds = array<i64: 2, 1, 32>}, {pipeline_mode = #tpu.pipeline_mode<synchronous>, transform_indices = @transform_15, window_bounds = array<i64: 2, 1, 32>}, {pipeline_mode = #tpu.pipeline_mode<synchronous>, transform_indices = @transform_16, window_bounds = array<i64: 2, 1, 32>}, {pipeline_mode = #tpu.pipeline_mode<synchronous>, transform_indices = @transform_17, window_bounds = array<i64: 2, 32, 32>}, {pipeline_mode = #tpu.pipeline_mode<synchronous>, transform_indices = @transform_18, window_bounds = array<i64: 2, 1, 32>}, {pipeline_mode = #tpu.pipeline_mode<synchronous>, transform_indices = @transform_19, window_bounds = array<i64: 2, 32, 64>}, {pipeline_mode = #tpu.pipeline_mode<synchronous>, transform_indices = @transform_20, window_bounds = array<i64: 2, 1, 64>}, {pipeline_mode = #tpu.pipeline_mode<synchronous>, transform_indices = @transform_21, window_bounds = array<i64: 2, 32, 32>}, {pipeline_mode = #tpu.pipeline_mode<synchronous>, transform_indices = @transform_22, window_bounds = array<i64: 2, 1, 32>}, {pipeline_mode = #tpu.pipeline_mode<synchronous>, transform_indices = @transform_23, window_bounds = array<i64: 2, 1, 32>}, {pipeline_mode = #tpu.pipeline_mode<synchronous>, transform_indices = @transform_24, window_bounds = array<i64: 2, 1, 32>}, {pipeline_mode = #tpu.pipeline_mode<synchronous>, transform_indices = @transform_25, window_bounds = array<i64: 2, 32, 64>}, {pipeline_mode = #tpu.pipeline_mode<synchronous>, transform_indices = @transform_26, window_bounds = array<i64: 2, 1, 64>}, {pipeline_mode = #tpu.pipeline_mode<synchronous>, transform_indices = @transform_27, window_bounds = array<i64: 2, 64, 32>}, {pipeline_mode = #tpu.pipeline_mode<synchronous>, transform_indices = @transform_28, window_bounds = array<i64: 2, 1, 32>}, {pipeline_mode = #tpu.pipeline_mode<synchronous>, transform_indices = @transform_29, window_bounds = array<i64: 1, 32>}, {pipeline_mode = #tpu.pipeline_mode<synchronous>, transform_indices = @transform_30, window_bounds = array<i64: 1, 32>}, {pipeline_mode = #tpu.pipeline_mode<synchronous>, transform_indices = @transform_31, window_bounds = array<i64: 16, 32>}]} {
    %c0 = arith.constant 0 : index
    %c0_0 = arith.constant 0 : index
    %0 = vector.load %arg1[%c0, %c0_0] : memref<16x32xf32, #tpu.memory_space<vmem>>, vector<16x32xf32>
    %c0_1 = arith.constant 0 : index
    %c0_2 = arith.constant 0 : index
    %1 = vector.load %arg2[%c0_1, %c0_2] : memref<8x32xf32, #tpu.memory_space<vmem>>, vector<8x32xf32>
    %c0_3 = arith.constant 0 : index
    %c0_4 = arith.constant 0 : index
    %2 = vector.load %arg3[%c0_3, %c0_4] : memref<16x1xf32, #tpu.memory_space<vmem>>, vector<16x1xf32>
    %c0_5 = arith.constant 0 : index
    %c0_6 = arith.constant 0 : index
    %3 = vector.load %arg4[%c0_5, %c0_6] : memref<1x16xf32, #tpu.memory_space<vmem>>, vector<1x16xf32>
    %4 = vector.broadcast %2 : vector<16x1xf32> to vector<16x16xf32>
    %5 = vector.broadcast %3 : vector<1x16xf32> to vector<16x16xf32>
    %6 = arith.cmpf one, %4, %5 : vector<16x16xf32>
    %c0_7 = arith.constant 0 : index
    %c0_8 = arith.constant 0 : index
    %7 = vector.load %arg6[%c0_7, %c0_8] : memref<1x16xf32, #tpu.memory_space<vmem>>, vector<1x16xf32>
    %c0_9 = arith.constant 0 : index
    %c0_10 = arith.constant 0 : index
    %8 = vector.load %arg5[%c0_9, %c0_10] : memref<16x1xf32, #tpu.memory_space<vmem>>, vector<16x1xf32>
    %9 = vector.broadcast %7 : vector<1x16xf32> to vector<16x16xf32>
    %10 = vector.broadcast %8 : vector<16x1xf32> to vector<16x16xf32>
    %11 = arith.cmpf ogt, %9, %10 : vector<16x16xf32>
    %12 = arith.ori %6, %11 : vector<16x16xi1>
    %c0_11 = arith.constant 0 : index
    %c0_12 = arith.constant 0 : index
    %13 = vector.load %arg7[%c0_11, %c0_12] : memref<1x16xf32, #tpu.memory_space<vmem>>, vector<1x16xf32>
    %cst = arith.constant 5.000000e-01 : f32
    %14 = vector.broadcast %cst : f32 to vector<1x16xf32>
    %15 = arith.cmpf ogt, %13, %14 : vector<1x16xf32>
    %16 = vector.broadcast %15 : vector<1x16xi1> to vector<16x16xi1>
    %17 = arith.ori %12, %16 : vector<16x16xi1>
    %cst_13 = arith.constant -1.000000e+09 : f32
    %cst_14 = arith.constant 0.000000e+00 : f32
    %18 = vector.broadcast %cst_13 : f32 to vector<16x16xf32>
    %19 = vector.broadcast %cst_14 : f32 to vector<16x16xf32>
    %20 = arith.select %17, %18, %19 : vector<16x16xi1>, vector<16x16xf32>
    %c0_15 = arith.constant 0 : index
    %c0_16 = arith.constant 0 : index
    %21 = vector.load %arg3[%c0_15, %c0_16] : memref<16x1xf32, #tpu.memory_space<vmem>>, vector<16x1xf32>
    %c0_17 = arith.constant 0 : index
    %c0_18 = arith.constant 0 : index
    %22 = vector.load %arg8[%c0_17, %c0_18] : memref<1x8xf32, #tpu.memory_space<vmem>>, vector<1x8xf32>
    %23 = vector.broadcast %21 : vector<16x1xf32> to vector<16x8xf32>
    %24 = vector.broadcast %22 : vector<1x8xf32> to vector<16x8xf32>
    %25 = arith.cmpf one, %23, %24 : vector<16x8xf32>
    %c0_19 = arith.constant 0 : index
    %c0_20 = arith.constant 0 : index
    %26 = vector.load %arg9[%c0_19, %c0_20] : memref<1x8xf32, #tpu.memory_space<vmem>>, vector<1x8xf32>
    %cst_21 = arith.constant 5.000000e-01 : f32
    %27 = vector.broadcast %cst_21 : f32 to vector<1x8xf32>
    %28 = arith.cmpf ogt, %26, %27 : vector<1x8xf32>
    %29 = vector.broadcast %28 : vector<1x8xi1> to vector<16x8xi1>
    %30 = arith.ori %25, %29 : vector<16x8xi1>
    %cst_22 = arith.constant -1.000000e+09 : f32
    %cst_23 = arith.constant 0.000000e+00 : f32
    %31 = vector.broadcast %cst_22 : f32 to vector<16x8xf32>
    %32 = vector.broadcast %cst_23 : f32 to vector<16x8xf32>
    %33 = arith.select %30, %31, %32 : vector<16x8xi1>, vector<16x8xf32>
    %c0_24 = arith.constant 0 : index
    %c0_25 = arith.constant 0 : index
    %c0_26 = arith.constant 0 : index
    %34 = vector.load %arg10[%c0_24, %c0_25, %c0_26] : memref<2x1x32xf32, #tpu.memory_space<vmem>>, vector<1x1x32xf32>
    %35 = vector.shape_cast %34 : vector<1x1x32xf32> to vector<1x32xf32>
    %c0_27 = arith.constant 0 : index
    %c0_28 = arith.constant 0 : index
    %c0_29 = arith.constant 0 : index
    %36 = vector.load %arg11[%c0_27, %c0_28, %c0_29] : memref<2x1x32xf32, #tpu.memory_space<vmem>>, vector<1x1x32xf32>
    %37 = vector.shape_cast %36 : vector<1x1x32xf32> to vector<1x32xf32>
    %cst_30 = arith.constant dense<0.000000e+00> : vector<16xf32>
    %38 = vector.multi_reduction <add>, %0, %cst_30 [1] : vector<16x32xf32> to vector<16xf32>
    %39 = vector.shape_cast %38 : vector<16xf32> to vector<16x1xf32>
    %cst_31 = arith.constant 3.200000e+01 : f32
    %40 = vector.broadcast %cst_31 : f32 to vector<16x1xf32>
    %41 = arith.divf %39, %40 : vector<16x1xf32>
    %42 = vector.broadcast %41 : vector<16x1xf32> to vector<16x32xf32>
    %43 = arith.subf %0, %42 : vector<16x32xf32>
    %44 = arith.mulf %43, %43 : vector<16x32xf32>
    %cst_32 = arith.constant dense<0.000000e+00> : vector<16xf32>
    %45 = vector.multi_reduction <add>, %44, %cst_32 [1] : vector<16x32xf32> to vector<16xf32>
    %46 = vector.shape_cast %45 : vector<16xf32> to vector<16x1xf32>
    %cst_33 = arith.constant 3.200000e+01 : f32
    %47 = vector.broadcast %cst_33 : f32 to vector<16x1xf32>
    %48 = arith.divf %46, %47 : vector<16x1xf32>
    %cst_34 = arith.constant 9.99999997E-7 : f32
    %49 = vector.broadcast %cst_34 : f32 to vector<16x1xf32>
    %50 = arith.addf %48, %49 : vector<16x1xf32>
    %51 = math.rsqrt %50 : vector<16x1xf32>
    %52 = vector.broadcast %51 : vector<16x1xf32> to vector<16x32xf32>
    %53 = arith.mulf %43, %52 : vector<16x32xf32>
    %54 = vector.broadcast %35 : vector<1x32xf32> to vector<16x32xf32>
    %55 = arith.mulf %53, %54 : vector<16x32xf32>
    %56 = vector.broadcast %37 : vector<1x32xf32> to vector<16x32xf32>
    %57 = arith.addf %55, %56 : vector<16x32xf32>
    %c0_35 = arith.constant 0 : index
    %c0_36 = arith.constant 0 : index
    %c0_37 = arith.constant 0 : index
    %58 = vector.load %arg12[%c0_35, %c0_36, %c0_37] : memref<2x32x96xf32, #tpu.memory_space<vmem>>, vector<1x32x96xf32>
    %59 = vector.shape_cast %58 : vector<1x32x96xf32> to vector<32x96xf32>
    %cst_38 = arith.constant dense<0.000000e+00> : vector<16x96xf32>
    %60 = tpu.matmul %57, %59, %cst_38 {dimension_numbers = #tpu.dot_dimension_numbers<[1], [0], [0], [1], [0, 0, 1, 1], [], []>} : vector<16x32xf32>, vector<32x96xf32>, vector<16x96xf32> -> vector<16x96xf32>
    %c0_39 = arith.constant 0 : index
    %c0_40 = arith.constant 0 : index
    %c0_41 = arith.constant 0 : index
    %61 = vector.load %arg13[%c0_39, %c0_40, %c0_41] : memref<2x1x96xf32, #tpu.memory_space<vmem>>, vector<1x1x96xf32>
    %62 = vector.shape_cast %61 : vector<1x1x96xf32> to vector<1x96xf32>
    %63 = vector.broadcast %62 : vector<1x96xf32> to vector<16x96xf32>
    %64 = arith.addf %60, %63 : vector<16x96xf32>
    %65 = vector.extract_strided_slice %64 {offsets = [0, 0], sizes = [16, 32], strides = [1, 1]} : vector<16x96xf32> to vector<16x32xf32>
    %66 = vector.extract_strided_slice %64 {offsets = [0, 32], sizes = [16, 32], strides = [1, 1]} : vector<16x96xf32> to vector<16x32xf32>
    %67 = vector.extract_strided_slice %64 {offsets = [0, 64], sizes = [16, 32], strides = [1, 1]} : vector<16x96xf32> to vector<16x32xf32>
    %c0_42 = arith.constant 0 : index
    %c0_43 = arith.constant 0 : index
    %c0_44 = arith.constant 0 : index
    %68 = vector.load %arg14[%c0_42, %c0_43, %c0_44] : memref<2x32x32xf32, #tpu.memory_space<vmem>>, vector<1x32x32xf32>
    %69 = vector.shape_cast %68 : vector<1x32x32xf32> to vector<32x32xf32>
    %70 = vector.extract_strided_slice %65 {offsets = [0, 0], sizes = [16, 8], strides = [1, 1]} : vector<16x32xf32> to vector<16x8xf32>
    %71 = vector.extract_strided_slice %66 {offsets = [0, 0], sizes = [16, 8], strides = [1, 1]} : vector<16x32xf32> to vector<16x8xf32>
    %72 = vector.extract_strided_slice %67 {offsets = [0, 0], sizes = [16, 8], strides = [1, 1]} : vector<16x32xf32> to vector<16x8xf32>
    %cst_45 = arith.constant dense<0.000000e+00> : vector<16x16xf32>
    %73 = tpu.matmul %70, %71, %cst_45 {dimension_numbers = #tpu.dot_dimension_numbers<[1], [1], [0], [0], [0, 0, 1, 0], [], []>} : vector<16x8xf32>, vector<16x8xf32>, vector<16x16xf32> -> vector<16x16xf32>
    %cst_46 = arith.constant 0.353553385 : f32
    %74 = vector.broadcast %cst_46 : f32 to vector<16x16xf32>
    %75 = arith.mulf %73, %74 : vector<16x16xf32>
    %76 = arith.addf %75, %20 : vector<16x16xf32>
    %cst_47 = arith.constant dense<0xFF800000> : vector<16xf32>
    %77 = vector.multi_reduction <maximumf>, %76, %cst_47 [1] : vector<16x16xf32> to vector<16xf32>
    %78 = vector.shape_cast %77 : vector<16xf32> to vector<16x1xf32>
    %79 = vector.broadcast %78 : vector<16x1xf32> to vector<16x16xf32>
    %80 = arith.subf %76, %79 : vector<16x16xf32>
    %81 = math.exp %80 : vector<16x16xf32>
    %cst_48 = arith.constant dense<0.000000e+00> : vector<16xf32>
    %82 = vector.multi_reduction <add>, %81, %cst_48 [1] : vector<16x16xf32> to vector<16xf32>
    %83 = vector.shape_cast %82 : vector<16xf32> to vector<16x1xf32>
    %84 = tpu.reciprocal %83 {approx = true} : vector<16x1xf32> -> vector<16x1xf32>
    %85 = vector.broadcast %84 : vector<16x1xf32> to vector<16x16xf32>
    %86 = arith.mulf %81, %85 : vector<16x16xf32>
    %cst_49 = arith.constant dense<0.000000e+00> : vector<16x8xf32>
    %87 = tpu.matmul %86, %72, %cst_49 {dimension_numbers = #tpu.dot_dimension_numbers<[1], [0], [0], [1], [0, 0, 1, 1], [], []>} : vector<16x16xf32>, vector<16x8xf32>, vector<16x8xf32> -> vector<16x8xf32>
    %88 = vector.extract_strided_slice %69 {offsets = [0, 0], sizes = [8, 32], strides = [1, 1]} : vector<32x32xf32> to vector<8x32xf32>
    %cst_50 = arith.constant dense<0.000000e+00> : vector<16x32xf32>
    %89 = tpu.matmul %87, %88, %cst_50 {dimension_numbers = #tpu.dot_dimension_numbers<[1], [0], [0], [1], [0, 0, 1, 1], [], []>} : vector<16x8xf32>, vector<8x32xf32>, vector<16x32xf32> -> vector<16x32xf32>
    %90 = vector.extract_strided_slice %65 {offsets = [0, 8], sizes = [16, 8], strides = [1, 1]} : vector<16x32xf32> to vector<16x8xf32>
    %91 = vector.extract_strided_slice %66 {offsets = [0, 8], sizes = [16, 8], strides = [1, 1]} : vector<16x32xf32> to vector<16x8xf32>
    %92 = vector.extract_strided_slice %67 {offsets = [0, 8], sizes = [16, 8], strides = [1, 1]} : vector<16x32xf32> to vector<16x8xf32>
    %cst_51 = arith.constant dense<0.000000e+00> : vector<16x16xf32>
    %93 = tpu.matmul %90, %91, %cst_51 {dimension_numbers = #tpu.dot_dimension_numbers<[1], [1], [0], [0], [0, 0, 1, 0], [], []>} : vector<16x8xf32>, vector<16x8xf32>, vector<16x16xf32> -> vector<16x16xf32>
    %cst_52 = arith.constant 0.353553385 : f32
    %94 = vector.broadcast %cst_52 : f32 to vector<16x16xf32>
    %95 = arith.mulf %93, %94 : vector<16x16xf32>
    %96 = arith.addf %95, %20 : vector<16x16xf32>
    %cst_53 = arith.constant dense<0xFF800000> : vector<16xf32>
    %97 = vector.multi_reduction <maximumf>, %96, %cst_53 [1] : vector<16x16xf32> to vector<16xf32>
    %98 = vector.shape_cast %97 : vector<16xf32> to vector<16x1xf32>
    %99 = vector.broadcast %98 : vector<16x1xf32> to vector<16x16xf32>
    %100 = arith.subf %96, %99 : vector<16x16xf32>
    %101 = math.exp %100 : vector<16x16xf32>
    %cst_54 = arith.constant dense<0.000000e+00> : vector<16xf32>
    %102 = vector.multi_reduction <add>, %101, %cst_54 [1] : vector<16x16xf32> to vector<16xf32>
    %103 = vector.shape_cast %102 : vector<16xf32> to vector<16x1xf32>
    %104 = tpu.reciprocal %103 {approx = true} : vector<16x1xf32> -> vector<16x1xf32>
    %105 = vector.broadcast %104 : vector<16x1xf32> to vector<16x16xf32>
    %106 = arith.mulf %101, %105 : vector<16x16xf32>
    %cst_55 = arith.constant dense<0.000000e+00> : vector<16x8xf32>
    %107 = tpu.matmul %106, %92, %cst_55 {dimension_numbers = #tpu.dot_dimension_numbers<[1], [0], [0], [1], [0, 0, 1, 1], [], []>} : vector<16x16xf32>, vector<16x8xf32>, vector<16x8xf32> -> vector<16x8xf32>
    %108 = vector.extract_strided_slice %69 {offsets = [8, 0], sizes = [8, 32], strides = [1, 1]} : vector<32x32xf32> to vector<8x32xf32>
    %cst_56 = arith.constant dense<0.000000e+00> : vector<16x32xf32>
    %109 = tpu.matmul %107, %108, %cst_56 {dimension_numbers = #tpu.dot_dimension_numbers<[1], [0], [0], [1], [0, 0, 1, 1], [], []>} : vector<16x8xf32>, vector<8x32xf32>, vector<16x32xf32> -> vector<16x32xf32>
    %110 = arith.addf %89, %109 : vector<16x32xf32>
    %111 = vector.extract_strided_slice %65 {offsets = [0, 16], sizes = [16, 8], strides = [1, 1]} : vector<16x32xf32> to vector<16x8xf32>
    %112 = vector.extract_strided_slice %66 {offsets = [0, 16], sizes = [16, 8], strides = [1, 1]} : vector<16x32xf32> to vector<16x8xf32>
    %113 = vector.extract_strided_slice %67 {offsets = [0, 16], sizes = [16, 8], strides = [1, 1]} : vector<16x32xf32> to vector<16x8xf32>
    %cst_57 = arith.constant dense<0.000000e+00> : vector<16x16xf32>
    %114 = tpu.matmul %111, %112, %cst_57 {dimension_numbers = #tpu.dot_dimension_numbers<[1], [1], [0], [0], [0, 0, 1, 0], [], []>} : vector<16x8xf32>, vector<16x8xf32>, vector<16x16xf32> -> vector<16x16xf32>
    %cst_58 = arith.constant 0.353553385 : f32
    %115 = vector.broadcast %cst_58 : f32 to vector<16x16xf32>
    %116 = arith.mulf %114, %115 : vector<16x16xf32>
    %117 = arith.addf %116, %20 : vector<16x16xf32>
    %cst_59 = arith.constant dense<0xFF800000> : vector<16xf32>
    %118 = vector.multi_reduction <maximumf>, %117, %cst_59 [1] : vector<16x16xf32> to vector<16xf32>
    %119 = vector.shape_cast %118 : vector<16xf32> to vector<16x1xf32>
    %120 = vector.broadcast %119 : vector<16x1xf32> to vector<16x16xf32>
    %121 = arith.subf %117, %120 : vector<16x16xf32>
    %122 = math.exp %121 : vector<16x16xf32>
    %cst_60 = arith.constant dense<0.000000e+00> : vector<16xf32>
    %123 = vector.multi_reduction <add>, %122, %cst_60 [1] : vector<16x16xf32> to vector<16xf32>
    %124 = vector.shape_cast %123 : vector<16xf32> to vector<16x1xf32>
    %125 = tpu.reciprocal %124 {approx = true} : vector<16x1xf32> -> vector<16x1xf32>
    %126 = vector.broadcast %125 : vector<16x1xf32> to vector<16x16xf32>
    %127 = arith.mulf %122, %126 : vector<16x16xf32>
    %cst_61 = arith.constant dense<0.000000e+00> : vector<16x8xf32>
    %128 = tpu.matmul %127, %113, %cst_61 {dimension_numbers = #tpu.dot_dimension_numbers<[1], [0], [0], [1], [0, 0, 1, 1], [], []>} : vector<16x16xf32>, vector<16x8xf32>, vector<16x8xf32> -> vector<16x8xf32>
    %129 = vector.extract_strided_slice %69 {offsets = [16, 0], sizes = [8, 32], strides = [1, 1]} : vector<32x32xf32> to vector<8x32xf32>
    %cst_62 = arith.constant dense<0.000000e+00> : vector<16x32xf32>
    %130 = tpu.matmul %128, %129, %cst_62 {dimension_numbers = #tpu.dot_dimension_numbers<[1], [0], [0], [1], [0, 0, 1, 1], [], []>} : vector<16x8xf32>, vector<8x32xf32>, vector<16x32xf32> -> vector<16x32xf32>
    %131 = arith.addf %110, %130 : vector<16x32xf32>
    %132 = vector.extract_strided_slice %65 {offsets = [0, 24], sizes = [16, 8], strides = [1, 1]} : vector<16x32xf32> to vector<16x8xf32>
    %133 = vector.extract_strided_slice %66 {offsets = [0, 24], sizes = [16, 8], strides = [1, 1]} : vector<16x32xf32> to vector<16x8xf32>
    %134 = vector.extract_strided_slice %67 {offsets = [0, 24], sizes = [16, 8], strides = [1, 1]} : vector<16x32xf32> to vector<16x8xf32>
    %cst_63 = arith.constant dense<0.000000e+00> : vector<16x16xf32>
    %135 = tpu.matmul %132, %133, %cst_63 {dimension_numbers = #tpu.dot_dimension_numbers<[1], [1], [0], [0], [0, 0, 1, 0], [], []>} : vector<16x8xf32>, vector<16x8xf32>, vector<16x16xf32> -> vector<16x16xf32>
    %cst_64 = arith.constant 0.353553385 : f32
    %136 = vector.broadcast %cst_64 : f32 to vector<16x16xf32>
    %137 = arith.mulf %135, %136 : vector<16x16xf32>
    %138 = arith.addf %137, %20 : vector<16x16xf32>
    %cst_65 = arith.constant dense<0xFF800000> : vector<16xf32>
    %139 = vector.multi_reduction <maximumf>, %138, %cst_65 [1] : vector<16x16xf32> to vector<16xf32>
    %140 = vector.shape_cast %139 : vector<16xf32> to vector<16x1xf32>
    %141 = vector.broadcast %140 : vector<16x1xf32> to vector<16x16xf32>
    %142 = arith.subf %138, %141 : vector<16x16xf32>
    %143 = math.exp %142 : vector<16x16xf32>
    %cst_66 = arith.constant dense<0.000000e+00> : vector<16xf32>
    %144 = vector.multi_reduction <add>, %143, %cst_66 [1] : vector<16x16xf32> to vector<16xf32>
    %145 = vector.shape_cast %144 : vector<16xf32> to vector<16x1xf32>
    %146 = tpu.reciprocal %145 {approx = true} : vector<16x1xf32> -> vector<16x1xf32>
    %147 = vector.broadcast %146 : vector<16x1xf32> to vector<16x16xf32>
    %148 = arith.mulf %143, %147 : vector<16x16xf32>
    %cst_67 = arith.constant dense<0.000000e+00> : vector<16x8xf32>
    %149 = tpu.matmul %148, %134, %cst_67 {dimension_numbers = #tpu.dot_dimension_numbers<[1], [0], [0], [1], [0, 0, 1, 1], [], []>} : vector<16x16xf32>, vector<16x8xf32>, vector<16x8xf32> -> vector<16x8xf32>
    %150 = vector.extract_strided_slice %69 {offsets = [24, 0], sizes = [8, 32], strides = [1, 1]} : vector<32x32xf32> to vector<8x32xf32>
    %cst_68 = arith.constant dense<0.000000e+00> : vector<16x32xf32>
    %151 = tpu.matmul %149, %150, %cst_68 {dimension_numbers = #tpu.dot_dimension_numbers<[1], [0], [0], [1], [0, 0, 1, 1], [], []>} : vector<16x8xf32>, vector<8x32xf32>, vector<16x32xf32> -> vector<16x32xf32>
    %152 = arith.addf %131, %151 : vector<16x32xf32>
    %c0_69 = arith.constant 0 : index
    %c0_70 = arith.constant 0 : index
    %c0_71 = arith.constant 0 : index
    %153 = vector.load %arg15[%c0_69, %c0_70, %c0_71] : memref<2x1x32xf32, #tpu.memory_space<vmem>>, vector<1x1x32xf32>
    %154 = vector.shape_cast %153 : vector<1x1x32xf32> to vector<1x32xf32>
    %155 = vector.broadcast %154 : vector<1x32xf32> to vector<16x32xf32>
    %156 = arith.addf %152, %155 : vector<16x32xf32>
    %157 = arith.addf %156, %0 : vector<16x32xf32>
    %c0_72 = arith.constant 0 : index
    %c0_73 = arith.constant 0 : index
    %c0_74 = arith.constant 0 : index
    %158 = vector.load %arg16[%c0_72, %c0_73, %c0_74] : memref<2x1x32xf32, #tpu.memory_space<vmem>>, vector<1x1x32xf32>
    %159 = vector.shape_cast %158 : vector<1x1x32xf32> to vector<1x32xf32>
    %c0_75 = arith.constant 0 : index
    %c0_76 = arith.constant 0 : index
    %c0_77 = arith.constant 0 : index
    %160 = vector.load %arg17[%c0_75, %c0_76, %c0_77] : memref<2x1x32xf32, #tpu.memory_space<vmem>>, vector<1x1x32xf32>
    %161 = vector.shape_cast %160 : vector<1x1x32xf32> to vector<1x32xf32>
    %cst_78 = arith.constant dense<0.000000e+00> : vector<16xf32>
    %162 = vector.multi_reduction <add>, %157, %cst_78 [1] : vector<16x32xf32> to vector<16xf32>
    %163 = vector.shape_cast %162 : vector<16xf32> to vector<16x1xf32>
    %cst_79 = arith.constant 3.200000e+01 : f32
    %164 = vector.broadcast %cst_79 : f32 to vector<16x1xf32>
    %165 = arith.divf %163, %164 : vector<16x1xf32>
    %166 = vector.broadcast %165 : vector<16x1xf32> to vector<16x32xf32>
    %167 = arith.subf %157, %166 : vector<16x32xf32>
    %168 = arith.mulf %167, %167 : vector<16x32xf32>
    %cst_80 = arith.constant dense<0.000000e+00> : vector<16xf32>
    %169 = vector.multi_reduction <add>, %168, %cst_80 [1] : vector<16x32xf32> to vector<16xf32>
    %170 = vector.shape_cast %169 : vector<16xf32> to vector<16x1xf32>
    %cst_81 = arith.constant 3.200000e+01 : f32
    %171 = vector.broadcast %cst_81 : f32 to vector<16x1xf32>
    %172 = arith.divf %170, %171 : vector<16x1xf32>
    %cst_82 = arith.constant 9.99999997E-7 : f32
    %173 = vector.broadcast %cst_82 : f32 to vector<16x1xf32>
    %174 = arith.addf %172, %173 : vector<16x1xf32>
    %175 = math.rsqrt %174 : vector<16x1xf32>
    %176 = vector.broadcast %175 : vector<16x1xf32> to vector<16x32xf32>
    %177 = arith.mulf %167, %176 : vector<16x32xf32>
    %178 = vector.broadcast %159 : vector<1x32xf32> to vector<16x32xf32>
    %179 = arith.mulf %177, %178 : vector<16x32xf32>
    %180 = vector.broadcast %161 : vector<1x32xf32> to vector<16x32xf32>
    %181 = arith.addf %179, %180 : vector<16x32xf32>
    %c0_83 = arith.constant 0 : index
    %c0_84 = arith.constant 0 : index
    %c0_85 = arith.constant 0 : index
    %182 = vector.load %arg18[%c0_83, %c0_84, %c0_85] : memref<2x32x32xf32, #tpu.memory_space<vmem>>, vector<1x32x32xf32>
    %183 = vector.shape_cast %182 : vector<1x32x32xf32> to vector<32x32xf32>
    %cst_86 = arith.constant dense<0.000000e+00> : vector<16x32xf32>
    %184 = tpu.matmul %181, %183, %cst_86 {dimension_numbers = #tpu.dot_dimension_numbers<[1], [0], [0], [1], [0, 0, 1, 1], [], []>} : vector<16x32xf32>, vector<32x32xf32>, vector<16x32xf32> -> vector<16x32xf32>
    %c0_87 = arith.constant 0 : index
    %c0_88 = arith.constant 0 : index
    %c0_89 = arith.constant 0 : index
    %185 = vector.load %arg19[%c0_87, %c0_88, %c0_89] : memref<2x1x32xf32, #tpu.memory_space<vmem>>, vector<1x1x32xf32>
    %186 = vector.shape_cast %185 : vector<1x1x32xf32> to vector<1x32xf32>
    %187 = vector.broadcast %186 : vector<1x32xf32> to vector<16x32xf32>
    %188 = arith.addf %184, %187 : vector<16x32xf32>
    %c0_90 = arith.constant 0 : index
    %c0_91 = arith.constant 0 : index
    %c0_92 = arith.constant 0 : index
    %189 = vector.load %arg20[%c0_90, %c0_91, %c0_92] : memref<2x32x64xf32, #tpu.memory_space<vmem>>, vector<1x32x64xf32>
    %190 = vector.shape_cast %189 : vector<1x32x64xf32> to vector<32x64xf32>
    %cst_93 = arith.constant dense<0.000000e+00> : vector<8x64xf32>
    %191 = tpu.matmul %1, %190, %cst_93 {dimension_numbers = #tpu.dot_dimension_numbers<[1], [0], [0], [1], [0, 0, 1, 1], [], []>} : vector<8x32xf32>, vector<32x64xf32>, vector<8x64xf32> -> vector<8x64xf32>
    %c0_94 = arith.constant 0 : index
    %c0_95 = arith.constant 0 : index
    %c0_96 = arith.constant 0 : index
    %192 = vector.load %arg21[%c0_94, %c0_95, %c0_96] : memref<2x1x64xf32, #tpu.memory_space<vmem>>, vector<1x1x64xf32>
    %193 = vector.shape_cast %192 : vector<1x1x64xf32> to vector<1x64xf32>
    %194 = vector.broadcast %193 : vector<1x64xf32> to vector<8x64xf32>
    %195 = arith.addf %191, %194 : vector<8x64xf32>
    %196 = vector.extract_strided_slice %195 {offsets = [0, 0], sizes = [8, 32], strides = [1, 1]} : vector<8x64xf32> to vector<8x32xf32>
    %197 = vector.extract_strided_slice %195 {offsets = [0, 32], sizes = [8, 32], strides = [1, 1]} : vector<8x64xf32> to vector<8x32xf32>
    %c0_97 = arith.constant 0 : index
    %c0_98 = arith.constant 0 : index
    %c0_99 = arith.constant 0 : index
    %198 = vector.load %arg22[%c0_97, %c0_98, %c0_99] : memref<2x32x32xf32, #tpu.memory_space<vmem>>, vector<1x32x32xf32>
    %199 = vector.shape_cast %198 : vector<1x32x32xf32> to vector<32x32xf32>
    %200 = vector.extract_strided_slice %188 {offsets = [0, 0], sizes = [16, 8], strides = [1, 1]} : vector<16x32xf32> to vector<16x8xf32>
    %201 = vector.extract_strided_slice %196 {offsets = [0, 0], sizes = [8, 8], strides = [1, 1]} : vector<8x32xf32> to vector<8x8xf32>
    %202 = vector.extract_strided_slice %197 {offsets = [0, 0], sizes = [8, 8], strides = [1, 1]} : vector<8x32xf32> to vector<8x8xf32>
    %cst_100 = arith.constant dense<0.000000e+00> : vector<16x8xf32>
    %203 = tpu.matmul %200, %201, %cst_100 {dimension_numbers = #tpu.dot_dimension_numbers<[1], [1], [0], [0], [0, 0, 1, 0], [], []>} : vector<16x8xf32>, vector<8x8xf32>, vector<16x8xf32> -> vector<16x8xf32>
    %cst_101 = arith.constant 0.353553385 : f32
    %204 = vector.broadcast %cst_101 : f32 to vector<16x8xf32>
    %205 = arith.mulf %203, %204 : vector<16x8xf32>
    %206 = arith.addf %205, %33 : vector<16x8xf32>
    %cst_102 = arith.constant dense<0xFF800000> : vector<16xf32>
    %207 = vector.multi_reduction <maximumf>, %206, %cst_102 [1] : vector<16x8xf32> to vector<16xf32>
    %208 = vector.shape_cast %207 : vector<16xf32> to vector<16x1xf32>
    %209 = vector.broadcast %208 : vector<16x1xf32> to vector<16x8xf32>
    %210 = arith.subf %206, %209 : vector<16x8xf32>
    %211 = math.exp %210 : vector<16x8xf32>
    %cst_103 = arith.constant dense<0.000000e+00> : vector<16xf32>
    %212 = vector.multi_reduction <add>, %211, %cst_103 [1] : vector<16x8xf32> to vector<16xf32>
    %213 = vector.shape_cast %212 : vector<16xf32> to vector<16x1xf32>
    %214 = tpu.reciprocal %213 {approx = true} : vector<16x1xf32> -> vector<16x1xf32>
    %215 = vector.broadcast %214 : vector<16x1xf32> to vector<16x8xf32>
    %216 = arith.mulf %211, %215 : vector<16x8xf32>
    %cst_104 = arith.constant dense<0.000000e+00> : vector<16x8xf32>
    %217 = tpu.matmul %216, %202, %cst_104 {dimension_numbers = #tpu.dot_dimension_numbers<[1], [0], [0], [1], [0, 0, 1, 1], [], []>} : vector<16x8xf32>, vector<8x8xf32>, vector<16x8xf32> -> vector<16x8xf32>
    %218 = vector.extract_strided_slice %199 {offsets = [0, 0], sizes = [8, 32], strides = [1, 1]} : vector<32x32xf32> to vector<8x32xf32>
    %cst_105 = arith.constant dense<0.000000e+00> : vector<16x32xf32>
    %219 = tpu.matmul %217, %218, %cst_105 {dimension_numbers = #tpu.dot_dimension_numbers<[1], [0], [0], [1], [0, 0, 1, 1], [], []>} : vector<16x8xf32>, vector<8x32xf32>, vector<16x32xf32> -> vector<16x32xf32>
    %220 = vector.extract_strided_slice %188 {offsets = [0, 8], sizes = [16, 8], strides = [1, 1]} : vector<16x32xf32> to vector<16x8xf32>
    %221 = vector.extract_strided_slice %196 {offsets = [0, 8], sizes = [8, 8], strides = [1, 1]} : vector<8x32xf32> to vector<8x8xf32>
    %222 = vector.extract_strided_slice %197 {offsets = [0, 8], sizes = [8, 8], strides = [1, 1]} : vector<8x32xf32> to vector<8x8xf32>
    %cst_106 = arith.constant dense<0.000000e+00> : vector<16x8xf32>
    %223 = tpu.matmul %220, %221, %cst_106 {dimension_numbers = #tpu.dot_dimension_numbers<[1], [1], [0], [0], [0, 0, 1, 0], [], []>} : vector<16x8xf32>, vector<8x8xf32>, vector<16x8xf32> -> vector<16x8xf32>
    %cst_107 = arith.constant 0.353553385 : f32
    %224 = vector.broadcast %cst_107 : f32 to vector<16x8xf32>
    %225 = arith.mulf %223, %224 : vector<16x8xf32>
    %226 = arith.addf %225, %33 : vector<16x8xf32>
    %cst_108 = arith.constant dense<0xFF800000> : vector<16xf32>
    %227 = vector.multi_reduction <maximumf>, %226, %cst_108 [1] : vector<16x8xf32> to vector<16xf32>
    %228 = vector.shape_cast %227 : vector<16xf32> to vector<16x1xf32>
    %229 = vector.broadcast %228 : vector<16x1xf32> to vector<16x8xf32>
    %230 = arith.subf %226, %229 : vector<16x8xf32>
    %231 = math.exp %230 : vector<16x8xf32>
    %cst_109 = arith.constant dense<0.000000e+00> : vector<16xf32>
    %232 = vector.multi_reduction <add>, %231, %cst_109 [1] : vector<16x8xf32> to vector<16xf32>
    %233 = vector.shape_cast %232 : vector<16xf32> to vector<16x1xf32>
    %234 = tpu.reciprocal %233 {approx = true} : vector<16x1xf32> -> vector<16x1xf32>
    %235 = vector.broadcast %234 : vector<16x1xf32> to vector<16x8xf32>
    %236 = arith.mulf %231, %235 : vector<16x8xf32>
    %cst_110 = arith.constant dense<0.000000e+00> : vector<16x8xf32>
    %237 = tpu.matmul %236, %222, %cst_110 {dimension_numbers = #tpu.dot_dimension_numbers<[1], [0], [0], [1], [0, 0, 1, 1], [], []>} : vector<16x8xf32>, vector<8x8xf32>, vector<16x8xf32> -> vector<16x8xf32>
    %238 = vector.extract_strided_slice %199 {offsets = [8, 0], sizes = [8, 32], strides = [1, 1]} : vector<32x32xf32> to vector<8x32xf32>
    %cst_111 = arith.constant dense<0.000000e+00> : vector<16x32xf32>
    %239 = tpu.matmul %237, %238, %cst_111 {dimension_numbers = #tpu.dot_dimension_numbers<[1], [0], [0], [1], [0, 0, 1, 1], [], []>} : vector<16x8xf32>, vector<8x32xf32>, vector<16x32xf32> -> vector<16x32xf32>
    %240 = arith.addf %219, %239 : vector<16x32xf32>
    %241 = vector.extract_strided_slice %188 {offsets = [0, 16], sizes = [16, 8], strides = [1, 1]} : vector<16x32xf32> to vector<16x8xf32>
    %242 = vector.extract_strided_slice %196 {offsets = [0, 16], sizes = [8, 8], strides = [1, 1]} : vector<8x32xf32> to vector<8x8xf32>
    %243 = vector.extract_strided_slice %197 {offsets = [0, 16], sizes = [8, 8], strides = [1, 1]} : vector<8x32xf32> to vector<8x8xf32>
    %cst_112 = arith.constant dense<0.000000e+00> : vector<16x8xf32>
    %244 = tpu.matmul %241, %242, %cst_112 {dimension_numbers = #tpu.dot_dimension_numbers<[1], [1], [0], [0], [0, 0, 1, 0], [], []>} : vector<16x8xf32>, vector<8x8xf32>, vector<16x8xf32> -> vector<16x8xf32>
    %cst_113 = arith.constant 0.353553385 : f32
    %245 = vector.broadcast %cst_113 : f32 to vector<16x8xf32>
    %246 = arith.mulf %244, %245 : vector<16x8xf32>
    %247 = arith.addf %246, %33 : vector<16x8xf32>
    %cst_114 = arith.constant dense<0xFF800000> : vector<16xf32>
    %248 = vector.multi_reduction <maximumf>, %247, %cst_114 [1] : vector<16x8xf32> to vector<16xf32>
    %249 = vector.shape_cast %248 : vector<16xf32> to vector<16x1xf32>
    %250 = vector.broadcast %249 : vector<16x1xf32> to vector<16x8xf32>
    %251 = arith.subf %247, %250 : vector<16x8xf32>
    %252 = math.exp %251 : vector<16x8xf32>
    %cst_115 = arith.constant dense<0.000000e+00> : vector<16xf32>
    %253 = vector.multi_reduction <add>, %252, %cst_115 [1] : vector<16x8xf32> to vector<16xf32>
    %254 = vector.shape_cast %253 : vector<16xf32> to vector<16x1xf32>
    %255 = tpu.reciprocal %254 {approx = true} : vector<16x1xf32> -> vector<16x1xf32>
    %256 = vector.broadcast %255 : vector<16x1xf32> to vector<16x8xf32>
    %257 = arith.mulf %252, %256 : vector<16x8xf32>
    %cst_116 = arith.constant dense<0.000000e+00> : vector<16x8xf32>
    %258 = tpu.matmul %257, %243, %cst_116 {dimension_numbers = #tpu.dot_dimension_numbers<[1], [0], [0], [1], [0, 0, 1, 1], [], []>} : vector<16x8xf32>, vector<8x8xf32>, vector<16x8xf32> -> vector<16x8xf32>
    %259 = vector.extract_strided_slice %199 {offsets = [16, 0], sizes = [8, 32], strides = [1, 1]} : vector<32x32xf32> to vector<8x32xf32>
    %cst_117 = arith.constant dense<0.000000e+00> : vector<16x32xf32>
    %260 = tpu.matmul %258, %259, %cst_117 {dimension_numbers = #tpu.dot_dimension_numbers<[1], [0], [0], [1], [0, 0, 1, 1], [], []>} : vector<16x8xf32>, vector<8x32xf32>, vector<16x32xf32> -> vector<16x32xf32>
    %261 = arith.addf %240, %260 : vector<16x32xf32>
    %262 = vector.extract_strided_slice %188 {offsets = [0, 24], sizes = [16, 8], strides = [1, 1]} : vector<16x32xf32> to vector<16x8xf32>
    %263 = vector.extract_strided_slice %196 {offsets = [0, 24], sizes = [8, 8], strides = [1, 1]} : vector<8x32xf32> to vector<8x8xf32>
    %264 = vector.extract_strided_slice %197 {offsets = [0, 24], sizes = [8, 8], strides = [1, 1]} : vector<8x32xf32> to vector<8x8xf32>
    %cst_118 = arith.constant dense<0.000000e+00> : vector<16x8xf32>
    %265 = tpu.matmul %262, %263, %cst_118 {dimension_numbers = #tpu.dot_dimension_numbers<[1], [1], [0], [0], [0, 0, 1, 0], [], []>} : vector<16x8xf32>, vector<8x8xf32>, vector<16x8xf32> -> vector<16x8xf32>
    %cst_119 = arith.constant 0.353553385 : f32
    %266 = vector.broadcast %cst_119 : f32 to vector<16x8xf32>
    %267 = arith.mulf %265, %266 : vector<16x8xf32>
    %268 = arith.addf %267, %33 : vector<16x8xf32>
    %cst_120 = arith.constant dense<0xFF800000> : vector<16xf32>
    %269 = vector.multi_reduction <maximumf>, %268, %cst_120 [1] : vector<16x8xf32> to vector<16xf32>
    %270 = vector.shape_cast %269 : vector<16xf32> to vector<16x1xf32>
    %271 = vector.broadcast %270 : vector<16x1xf32> to vector<16x8xf32>
    %272 = arith.subf %268, %271 : vector<16x8xf32>
    %273 = math.exp %272 : vector<16x8xf32>
    %cst_121 = arith.constant dense<0.000000e+00> : vector<16xf32>
    %274 = vector.multi_reduction <add>, %273, %cst_121 [1] : vector<16x8xf32> to vector<16xf32>
    %275 = vector.shape_cast %274 : vector<16xf32> to vector<16x1xf32>
    %276 = tpu.reciprocal %275 {approx = true} : vector<16x1xf32> -> vector<16x1xf32>
    %277 = vector.broadcast %276 : vector<16x1xf32> to vector<16x8xf32>
    %278 = arith.mulf %273, %277 : vector<16x8xf32>
    %cst_122 = arith.constant dense<0.000000e+00> : vector<16x8xf32>
    %279 = tpu.matmul %278, %264, %cst_122 {dimension_numbers = #tpu.dot_dimension_numbers<[1], [0], [0], [1], [0, 0, 1, 1], [], []>} : vector<16x8xf32>, vector<8x8xf32>, vector<16x8xf32> -> vector<16x8xf32>
    %280 = vector.extract_strided_slice %199 {offsets = [24, 0], sizes = [8, 32], strides = [1, 1]} : vector<32x32xf32> to vector<8x32xf32>
    %cst_123 = arith.constant dense<0.000000e+00> : vector<16x32xf32>
    %281 = tpu.matmul %279, %280, %cst_123 {dimension_numbers = #tpu.dot_dimension_numbers<[1], [0], [0], [1], [0, 0, 1, 1], [], []>} : vector<16x8xf32>, vector<8x32xf32>, vector<16x32xf32> -> vector<16x32xf32>
    %282 = arith.addf %261, %281 : vector<16x32xf32>
    %c0_124 = arith.constant 0 : index
    %c0_125 = arith.constant 0 : index
    %c0_126 = arith.constant 0 : index
    %283 = vector.load %arg23[%c0_124, %c0_125, %c0_126] : memref<2x1x32xf32, #tpu.memory_space<vmem>>, vector<1x1x32xf32>
    %284 = vector.shape_cast %283 : vector<1x1x32xf32> to vector<1x32xf32>
    %285 = vector.broadcast %284 : vector<1x32xf32> to vector<16x32xf32>
    %286 = arith.addf %282, %285 : vector<16x32xf32>
    %287 = arith.addf %286, %157 : vector<16x32xf32>
    %c0_127 = arith.constant 0 : index
    %c0_128 = arith.constant 0 : index
    %c0_129 = arith.constant 0 : index
    %288 = vector.load %arg24[%c0_127, %c0_128, %c0_129] : memref<2x1x32xf32, #tpu.memory_space<vmem>>, vector<1x1x32xf32>
    %289 = vector.shape_cast %288 : vector<1x1x32xf32> to vector<1x32xf32>
    %c0_130 = arith.constant 0 : index
    %c0_131 = arith.constant 0 : index
    %c0_132 = arith.constant 0 : index
    %290 = vector.load %arg25[%c0_130, %c0_131, %c0_132] : memref<2x1x32xf32, #tpu.memory_space<vmem>>, vector<1x1x32xf32>
    %291 = vector.shape_cast %290 : vector<1x1x32xf32> to vector<1x32xf32>
    %c0_133 = arith.constant 0 : index
    %c0_134 = arith.constant 0 : index
    %c0_135 = arith.constant 0 : index
    %292 = vector.load %arg26[%c0_133, %c0_134, %c0_135] : memref<2x32x64xf32, #tpu.memory_space<vmem>>, vector<1x32x64xf32>
    %293 = vector.shape_cast %292 : vector<1x32x64xf32> to vector<32x64xf32>
    %c0_136 = arith.constant 0 : index
    %c0_137 = arith.constant 0 : index
    %c0_138 = arith.constant 0 : index
    %294 = vector.load %arg27[%c0_136, %c0_137, %c0_138] : memref<2x1x64xf32, #tpu.memory_space<vmem>>, vector<1x1x64xf32>
    %295 = vector.shape_cast %294 : vector<1x1x64xf32> to vector<1x64xf32>
    %c0_139 = arith.constant 0 : index
    %c0_140 = arith.constant 0 : index
    %c0_141 = arith.constant 0 : index
    %296 = vector.load %arg28[%c0_139, %c0_140, %c0_141] : memref<2x64x32xf32, #tpu.memory_space<vmem>>, vector<1x64x32xf32>
    %297 = vector.shape_cast %296 : vector<1x64x32xf32> to vector<64x32xf32>
    %c0_142 = arith.constant 0 : index
    %c0_143 = arith.constant 0 : index
    %c0_144 = arith.constant 0 : index
    %298 = vector.load %arg29[%c0_142, %c0_143, %c0_144] : memref<2x1x32xf32, #tpu.memory_space<vmem>>, vector<1x1x32xf32>
    %299 = vector.shape_cast %298 : vector<1x1x32xf32> to vector<1x32xf32>
    %cst_145 = arith.constant dense<0.000000e+00> : vector<16xf32>
    %300 = vector.multi_reduction <add>, %287, %cst_145 [1] : vector<16x32xf32> to vector<16xf32>
    %301 = vector.shape_cast %300 : vector<16xf32> to vector<16x1xf32>
    %cst_146 = arith.constant 3.200000e+01 : f32
    %302 = vector.broadcast %cst_146 : f32 to vector<16x1xf32>
    %303 = arith.divf %301, %302 : vector<16x1xf32>
    %304 = vector.broadcast %303 : vector<16x1xf32> to vector<16x32xf32>
    %305 = arith.subf %287, %304 : vector<16x32xf32>
    %306 = arith.mulf %305, %305 : vector<16x32xf32>
    %cst_147 = arith.constant dense<0.000000e+00> : vector<16xf32>
    %307 = vector.multi_reduction <add>, %306, %cst_147 [1] : vector<16x32xf32> to vector<16xf32>
    %308 = vector.shape_cast %307 : vector<16xf32> to vector<16x1xf32>
    %cst_148 = arith.constant 3.200000e+01 : f32
    %309 = vector.broadcast %cst_148 : f32 to vector<16x1xf32>
    %310 = arith.divf %308, %309 : vector<16x1xf32>
    %cst_149 = arith.constant 9.99999997E-7 : f32
    %311 = vector.broadcast %cst_149 : f32 to vector<16x1xf32>
    %312 = arith.addf %310, %311 : vector<16x1xf32>
    %313 = math.rsqrt %312 : vector<16x1xf32>
    %314 = vector.broadcast %313 : vector<16x1xf32> to vector<16x32xf32>
    %315 = arith.mulf %305, %314 : vector<16x32xf32>
    %316 = vector.broadcast %289 : vector<1x32xf32> to vector<16x32xf32>
    %317 = arith.mulf %315, %316 : vector<16x32xf32>
    %318 = vector.broadcast %291 : vector<1x32xf32> to vector<16x32xf32>
    %319 = arith.addf %317, %318 : vector<16x32xf32>
    %cst_150 = arith.constant dense<0.000000e+00> : vector<16x64xf32>
    %320 = tpu.matmul %319, %293, %cst_150 {dimension_numbers = #tpu.dot_dimension_numbers<[1], [0], [0], [1], [0, 0, 1, 1], [], []>} : vector<16x32xf32>, vector<32x64xf32>, vector<16x64xf32> -> vector<16x64xf32>
    %321 = vector.broadcast %295 : vector<1x64xf32> to vector<16x64xf32>
    %322 = arith.addf %320, %321 : vector<16x64xf32>
    %cst_151 = arith.constant 5.000000e-01 : f32
    %323 = vector.broadcast %cst_151 : f32 to vector<16x64xf32>
    %324 = arith.mulf %323, %322 : vector<16x64xf32>
    %cst_152 = arith.constant 4.471500e-02 : f32
    %325 = vector.broadcast %cst_152 : f32 to vector<16x64xf32>
    %326 = arith.mulf %325, %322 : vector<16x64xf32>
    %327 = arith.mulf %326, %322 : vector<16x64xf32>
    %328 = arith.mulf %327, %322 : vector<16x64xf32>
    %329 = arith.addf %322, %328 : vector<16x64xf32>
    %cst_153 = arith.constant 0.797884583 : f32
    %330 = vector.broadcast %cst_153 : f32 to vector<16x64xf32>
    %331 = arith.mulf %330, %329 : vector<16x64xf32>
    %332 = math.tanh %331 : vector<16x64xf32>
    %cst_154 = arith.constant 1.000000e+00 : f32
    %333 = vector.broadcast %cst_154 : f32 to vector<16x64xf32>
    %334 = arith.addf %333, %332 : vector<16x64xf32>
    %335 = arith.mulf %324, %334 : vector<16x64xf32>
    %cst_155 = arith.constant dense<0.000000e+00> : vector<16x32xf32>
    %336 = tpu.matmul %335, %297, %cst_155 {dimension_numbers = #tpu.dot_dimension_numbers<[1], [0], [0], [1], [0, 0, 1, 1], [], []>} : vector<16x64xf32>, vector<64x32xf32>, vector<16x32xf32> -> vector<16x32xf32>
    %337 = vector.broadcast %299 : vector<1x32xf32> to vector<16x32xf32>
    %338 = arith.addf %336, %337 : vector<16x32xf32>
    %339 = arith.addf %338, %287 : vector<16x32xf32>
    %c1 = arith.constant 1 : index
    %c0_156 = arith.constant 0 : index
    %c0_157 = arith.constant 0 : index
    %340 = vector.load %arg10[%c1, %c0_156, %c0_157] : memref<2x1x32xf32, #tpu.memory_space<vmem>>, vector<1x1x32xf32>
    %341 = vector.shape_cast %340 : vector<1x1x32xf32> to vector<1x32xf32>
    %c1_158 = arith.constant 1 : index
    %c0_159 = arith.constant 0 : index
    %c0_160 = arith.constant 0 : index
    %342 = vector.load %arg11[%c1_158, %c0_159, %c0_160] : memref<2x1x32xf32, #tpu.memory_space<vmem>>, vector<1x1x32xf32>
    %343 = vector.shape_cast %342 : vector<1x1x32xf32> to vector<1x32xf32>
    %cst_161 = arith.constant dense<0.000000e+00> : vector<16xf32>
    %344 = vector.multi_reduction <add>, %339, %cst_161 [1] : vector<16x32xf32> to vector<16xf32>
    %345 = vector.shape_cast %344 : vector<16xf32> to vector<16x1xf32>
    %cst_162 = arith.constant 3.200000e+01 : f32
    %346 = vector.broadcast %cst_162 : f32 to vector<16x1xf32>
    %347 = arith.divf %345, %346 : vector<16x1xf32>
    %348 = vector.broadcast %347 : vector<16x1xf32> to vector<16x32xf32>
    %349 = arith.subf %339, %348 : vector<16x32xf32>
    %350 = arith.mulf %349, %349 : vector<16x32xf32>
    %cst_163 = arith.constant dense<0.000000e+00> : vector<16xf32>
    %351 = vector.multi_reduction <add>, %350, %cst_163 [1] : vector<16x32xf32> to vector<16xf32>
    %352 = vector.shape_cast %351 : vector<16xf32> to vector<16x1xf32>
    %cst_164 = arith.constant 3.200000e+01 : f32
    %353 = vector.broadcast %cst_164 : f32 to vector<16x1xf32>
    %354 = arith.divf %352, %353 : vector<16x1xf32>
    %cst_165 = arith.constant 9.99999997E-7 : f32
    %355 = vector.broadcast %cst_165 : f32 to vector<16x1xf32>
    %356 = arith.addf %354, %355 : vector<16x1xf32>
    %357 = math.rsqrt %356 : vector<16x1xf32>
    %358 = vector.broadcast %357 : vector<16x1xf32> to vector<16x32xf32>
    %359 = arith.mulf %349, %358 : vector<16x32xf32>
    %360 = vector.broadcast %341 : vector<1x32xf32> to vector<16x32xf32>
    %361 = arith.mulf %359, %360 : vector<16x32xf32>
    %362 = vector.broadcast %343 : vector<1x32xf32> to vector<16x32xf32>
    %363 = arith.addf %361, %362 : vector<16x32xf32>
    %c1_166 = arith.constant 1 : index
    %c0_167 = arith.constant 0 : index
    %c0_168 = arith.constant 0 : index
    %364 = vector.load %arg12[%c1_166, %c0_167, %c0_168] : memref<2x32x96xf32, #tpu.memory_space<vmem>>, vector<1x32x96xf32>
    %365 = vector.shape_cast %364 : vector<1x32x96xf32> to vector<32x96xf32>
    %cst_169 = arith.constant dense<0.000000e+00> : vector<16x96xf32>
    %366 = tpu.matmul %363, %365, %cst_169 {dimension_numbers = #tpu.dot_dimension_numbers<[1], [0], [0], [1], [0, 0, 1, 1], [], []>} : vector<16x32xf32>, vector<32x96xf32>, vector<16x96xf32> -> vector<16x96xf32>
    %c1_170 = arith.constant 1 : index
    %c0_171 = arith.constant 0 : index
    %c0_172 = arith.constant 0 : index
    %367 = vector.load %arg13[%c1_170, %c0_171, %c0_172] : memref<2x1x96xf32, #tpu.memory_space<vmem>>, vector<1x1x96xf32>
    %368 = vector.shape_cast %367 : vector<1x1x96xf32> to vector<1x96xf32>
    %369 = vector.broadcast %368 : vector<1x96xf32> to vector<16x96xf32>
    %370 = arith.addf %366, %369 : vector<16x96xf32>
    %371 = vector.extract_strided_slice %370 {offsets = [0, 0], sizes = [16, 32], strides = [1, 1]} : vector<16x96xf32> to vector<16x32xf32>
    %372 = vector.extract_strided_slice %370 {offsets = [0, 32], sizes = [16, 32], strides = [1, 1]} : vector<16x96xf32> to vector<16x32xf32>
    %373 = vector.extract_strided_slice %370 {offsets = [0, 64], sizes = [16, 32], strides = [1, 1]} : vector<16x96xf32> to vector<16x32xf32>
    %c1_173 = arith.constant 1 : index
    %c0_174 = arith.constant 0 : index
    %c0_175 = arith.constant 0 : index
    %374 = vector.load %arg14[%c1_173, %c0_174, %c0_175] : memref<2x32x32xf32, #tpu.memory_space<vmem>>, vector<1x32x32xf32>
    %375 = vector.shape_cast %374 : vector<1x32x32xf32> to vector<32x32xf32>
    %376 = vector.extract_strided_slice %371 {offsets = [0, 0], sizes = [16, 8], strides = [1, 1]} : vector<16x32xf32> to vector<16x8xf32>
    %377 = vector.extract_strided_slice %372 {offsets = [0, 0], sizes = [16, 8], strides = [1, 1]} : vector<16x32xf32> to vector<16x8xf32>
    %378 = vector.extract_strided_slice %373 {offsets = [0, 0], sizes = [16, 8], strides = [1, 1]} : vector<16x32xf32> to vector<16x8xf32>
    %cst_176 = arith.constant dense<0.000000e+00> : vector<16x16xf32>
    %379 = tpu.matmul %376, %377, %cst_176 {dimension_numbers = #tpu.dot_dimension_numbers<[1], [1], [0], [0], [0, 0, 1, 0], [], []>} : vector<16x8xf32>, vector<16x8xf32>, vector<16x16xf32> -> vector<16x16xf32>
    %cst_177 = arith.constant 0.353553385 : f32
    %380 = vector.broadcast %cst_177 : f32 to vector<16x16xf32>
    %381 = arith.mulf %379, %380 : vector<16x16xf32>
    %382 = arith.addf %381, %20 : vector<16x16xf32>
    %cst_178 = arith.constant dense<0xFF800000> : vector<16xf32>
    %383 = vector.multi_reduction <maximumf>, %382, %cst_178 [1] : vector<16x16xf32> to vector<16xf32>
    %384 = vector.shape_cast %383 : vector<16xf32> to vector<16x1xf32>
    %385 = vector.broadcast %384 : vector<16x1xf32> to vector<16x16xf32>
    %386 = arith.subf %382, %385 : vector<16x16xf32>
    %387 = math.exp %386 : vector<16x16xf32>
    %cst_179 = arith.constant dense<0.000000e+00> : vector<16xf32>
    %388 = vector.multi_reduction <add>, %387, %cst_179 [1] : vector<16x16xf32> to vector<16xf32>
    %389 = vector.shape_cast %388 : vector<16xf32> to vector<16x1xf32>
    %390 = tpu.reciprocal %389 {approx = true} : vector<16x1xf32> -> vector<16x1xf32>
    %391 = vector.broadcast %390 : vector<16x1xf32> to vector<16x16xf32>
    %392 = arith.mulf %387, %391 : vector<16x16xf32>
    %cst_180 = arith.constant dense<0.000000e+00> : vector<16x8xf32>
    %393 = tpu.matmul %392, %378, %cst_180 {dimension_numbers = #tpu.dot_dimension_numbers<[1], [0], [0], [1], [0, 0, 1, 1], [], []>} : vector<16x16xf32>, vector<16x8xf32>, vector<16x8xf32> -> vector<16x8xf32>
    %394 = vector.extract_strided_slice %375 {offsets = [0, 0], sizes = [8, 32], strides = [1, 1]} : vector<32x32xf32> to vector<8x32xf32>
    %cst_181 = arith.constant dense<0.000000e+00> : vector<16x32xf32>
    %395 = tpu.matmul %393, %394, %cst_181 {dimension_numbers = #tpu.dot_dimension_numbers<[1], [0], [0], [1], [0, 0, 1, 1], [], []>} : vector<16x8xf32>, vector<8x32xf32>, vector<16x32xf32> -> vector<16x32xf32>
    %396 = vector.extract_strided_slice %371 {offsets = [0, 8], sizes = [16, 8], strides = [1, 1]} : vector<16x32xf32> to vector<16x8xf32>
    %397 = vector.extract_strided_slice %372 {offsets = [0, 8], sizes = [16, 8], strides = [1, 1]} : vector<16x32xf32> to vector<16x8xf32>
    %398 = vector.extract_strided_slice %373 {offsets = [0, 8], sizes = [16, 8], strides = [1, 1]} : vector<16x32xf32> to vector<16x8xf32>
    %cst_182 = arith.constant dense<0.000000e+00> : vector<16x16xf32>
    %399 = tpu.matmul %396, %397, %cst_182 {dimension_numbers = #tpu.dot_dimension_numbers<[1], [1], [0], [0], [0, 0, 1, 0], [], []>} : vector<16x8xf32>, vector<16x8xf32>, vector<16x16xf32> -> vector<16x16xf32>
    %cst_183 = arith.constant 0.353553385 : f32
    %400 = vector.broadcast %cst_183 : f32 to vector<16x16xf32>
    %401 = arith.mulf %399, %400 : vector<16x16xf32>
    %402 = arith.addf %401, %20 : vector<16x16xf32>
    %cst_184 = arith.constant dense<0xFF800000> : vector<16xf32>
    %403 = vector.multi_reduction <maximumf>, %402, %cst_184 [1] : vector<16x16xf32> to vector<16xf32>
    %404 = vector.shape_cast %403 : vector<16xf32> to vector<16x1xf32>
    %405 = vector.broadcast %404 : vector<16x1xf32> to vector<16x16xf32>
    %406 = arith.subf %402, %405 : vector<16x16xf32>
    %407 = math.exp %406 : vector<16x16xf32>
    %cst_185 = arith.constant dense<0.000000e+00> : vector<16xf32>
    %408 = vector.multi_reduction <add>, %407, %cst_185 [1] : vector<16x16xf32> to vector<16xf32>
    %409 = vector.shape_cast %408 : vector<16xf32> to vector<16x1xf32>
    %410 = tpu.reciprocal %409 {approx = true} : vector<16x1xf32> -> vector<16x1xf32>
    %411 = vector.broadcast %410 : vector<16x1xf32> to vector<16x16xf32>
    %412 = arith.mulf %407, %411 : vector<16x16xf32>
    %cst_186 = arith.constant dense<0.000000e+00> : vector<16x8xf32>
    %413 = tpu.matmul %412, %398, %cst_186 {dimension_numbers = #tpu.dot_dimension_numbers<[1], [0], [0], [1], [0, 0, 1, 1], [], []>} : vector<16x16xf32>, vector<16x8xf32>, vector<16x8xf32> -> vector<16x8xf32>
    %414 = vector.extract_strided_slice %375 {offsets = [8, 0], sizes = [8, 32], strides = [1, 1]} : vector<32x32xf32> to vector<8x32xf32>
    %cst_187 = arith.constant dense<0.000000e+00> : vector<16x32xf32>
    %415 = tpu.matmul %413, %414, %cst_187 {dimension_numbers = #tpu.dot_dimension_numbers<[1], [0], [0], [1], [0, 0, 1, 1], [], []>} : vector<16x8xf32>, vector<8x32xf32>, vector<16x32xf32> -> vector<16x32xf32>
    %416 = arith.addf %395, %415 : vector<16x32xf32>
    %417 = vector.extract_strided_slice %371 {offsets = [0, 16], sizes = [16, 8], strides = [1, 1]} : vector<16x32xf32> to vector<16x8xf32>
    %418 = vector.extract_strided_slice %372 {offsets = [0, 16], sizes = [16, 8], strides = [1, 1]} : vector<16x32xf32> to vector<16x8xf32>
    %419 = vector.extract_strided_slice %373 {offsets = [0, 16], sizes = [16, 8], strides = [1, 1]} : vector<16x32xf32> to vector<16x8xf32>
    %cst_188 = arith.constant dense<0.000000e+00> : vector<16x16xf32>
    %420 = tpu.matmul %417, %418, %cst_188 {dimension_numbers = #tpu.dot_dimension_numbers<[1], [1], [0], [0], [0, 0, 1, 0], [], []>} : vector<16x8xf32>, vector<16x8xf32>, vector<16x16xf32> -> vector<16x16xf32>
    %cst_189 = arith.constant 0.353553385 : f32
    %421 = vector.broadcast %cst_189 : f32 to vector<16x16xf32>
    %422 = arith.mulf %420, %421 : vector<16x16xf32>
    %423 = arith.addf %422, %20 : vector<16x16xf32>
    %cst_190 = arith.constant dense<0xFF800000> : vector<16xf32>
    %424 = vector.multi_reduction <maximumf>, %423, %cst_190 [1] : vector<16x16xf32> to vector<16xf32>
    %425 = vector.shape_cast %424 : vector<16xf32> to vector<16x1xf32>
    %426 = vector.broadcast %425 : vector<16x1xf32> to vector<16x16xf32>
    %427 = arith.subf %423, %426 : vector<16x16xf32>
    %428 = math.exp %427 : vector<16x16xf32>
    %cst_191 = arith.constant dense<0.000000e+00> : vector<16xf32>
    %429 = vector.multi_reduction <add>, %428, %cst_191 [1] : vector<16x16xf32> to vector<16xf32>
    %430 = vector.shape_cast %429 : vector<16xf32> to vector<16x1xf32>
    %431 = tpu.reciprocal %430 {approx = true} : vector<16x1xf32> -> vector<16x1xf32>
    %432 = vector.broadcast %431 : vector<16x1xf32> to vector<16x16xf32>
    %433 = arith.mulf %428, %432 : vector<16x16xf32>
    %cst_192 = arith.constant dense<0.000000e+00> : vector<16x8xf32>
    %434 = tpu.matmul %433, %419, %cst_192 {dimension_numbers = #tpu.dot_dimension_numbers<[1], [0], [0], [1], [0, 0, 1, 1], [], []>} : vector<16x16xf32>, vector<16x8xf32>, vector<16x8xf32> -> vector<16x8xf32>
    %435 = vector.extract_strided_slice %375 {offsets = [16, 0], sizes = [8, 32], strides = [1, 1]} : vector<32x32xf32> to vector<8x32xf32>
    %cst_193 = arith.constant dense<0.000000e+00> : vector<16x32xf32>
    %436 = tpu.matmul %434, %435, %cst_193 {dimension_numbers = #tpu.dot_dimension_numbers<[1], [0], [0], [1], [0, 0, 1, 1], [], []>} : vector<16x8xf32>, vector<8x32xf32>, vector<16x32xf32> -> vector<16x32xf32>
    %437 = arith.addf %416, %436 : vector<16x32xf32>
    %438 = vector.extract_strided_slice %371 {offsets = [0, 24], sizes = [16, 8], strides = [1, 1]} : vector<16x32xf32> to vector<16x8xf32>
    %439 = vector.extract_strided_slice %372 {offsets = [0, 24], sizes = [16, 8], strides = [1, 1]} : vector<16x32xf32> to vector<16x8xf32>
    %440 = vector.extract_strided_slice %373 {offsets = [0, 24], sizes = [16, 8], strides = [1, 1]} : vector<16x32xf32> to vector<16x8xf32>
    %cst_194 = arith.constant dense<0.000000e+00> : vector<16x16xf32>
    %441 = tpu.matmul %438, %439, %cst_194 {dimension_numbers = #tpu.dot_dimension_numbers<[1], [1], [0], [0], [0, 0, 1, 0], [], []>} : vector<16x8xf32>, vector<16x8xf32>, vector<16x16xf32> -> vector<16x16xf32>
    %cst_195 = arith.constant 0.353553385 : f32
    %442 = vector.broadcast %cst_195 : f32 to vector<16x16xf32>
    %443 = arith.mulf %441, %442 : vector<16x16xf32>
    %444 = arith.addf %443, %20 : vector<16x16xf32>
    %cst_196 = arith.constant dense<0xFF800000> : vector<16xf32>
    %445 = vector.multi_reduction <maximumf>, %444, %cst_196 [1] : vector<16x16xf32> to vector<16xf32>
    %446 = vector.shape_cast %445 : vector<16xf32> to vector<16x1xf32>
    %447 = vector.broadcast %446 : vector<16x1xf32> to vector<16x16xf32>
    %448 = arith.subf %444, %447 : vector<16x16xf32>
    %449 = math.exp %448 : vector<16x16xf32>
    %cst_197 = arith.constant dense<0.000000e+00> : vector<16xf32>
    %450 = vector.multi_reduction <add>, %449, %cst_197 [1] : vector<16x16xf32> to vector<16xf32>
    %451 = vector.shape_cast %450 : vector<16xf32> to vector<16x1xf32>
    %452 = tpu.reciprocal %451 {approx = true} : vector<16x1xf32> -> vector<16x1xf32>
    %453 = vector.broadcast %452 : vector<16x1xf32> to vector<16x16xf32>
    %454 = arith.mulf %449, %453 : vector<16x16xf32>
    %cst_198 = arith.constant dense<0.000000e+00> : vector<16x8xf32>
    %455 = tpu.matmul %454, %440, %cst_198 {dimension_numbers = #tpu.dot_dimension_numbers<[1], [0], [0], [1], [0, 0, 1, 1], [], []>} : vector<16x16xf32>, vector<16x8xf32>, vector<16x8xf32> -> vector<16x8xf32>
    %456 = vector.extract_strided_slice %375 {offsets = [24, 0], sizes = [8, 32], strides = [1, 1]} : vector<32x32xf32> to vector<8x32xf32>
    %cst_199 = arith.constant dense<0.000000e+00> : vector<16x32xf32>
    %457 = tpu.matmul %455, %456, %cst_199 {dimension_numbers = #tpu.dot_dimension_numbers<[1], [0], [0], [1], [0, 0, 1, 1], [], []>} : vector<16x8xf32>, vector<8x32xf32>, vector<16x32xf32> -> vector<16x32xf32>
    %458 = arith.addf %437, %457 : vector<16x32xf32>
    %c1_200 = arith.constant 1 : index
    %c0_201 = arith.constant 0 : index
    %c0_202 = arith.constant 0 : index
    %459 = vector.load %arg15[%c1_200, %c0_201, %c0_202] : memref<2x1x32xf32, #tpu.memory_space<vmem>>, vector<1x1x32xf32>
    %460 = vector.shape_cast %459 : vector<1x1x32xf32> to vector<1x32xf32>
    %461 = vector.broadcast %460 : vector<1x32xf32> to vector<16x32xf32>
    %462 = arith.addf %458, %461 : vector<16x32xf32>
    %463 = arith.addf %462, %339 : vector<16x32xf32>
    %c1_203 = arith.constant 1 : index
    %c0_204 = arith.constant 0 : index
    %c0_205 = arith.constant 0 : index
    %464 = vector.load %arg16[%c1_203, %c0_204, %c0_205] : memref<2x1x32xf32, #tpu.memory_space<vmem>>, vector<1x1x32xf32>
    %465 = vector.shape_cast %464 : vector<1x1x32xf32> to vector<1x32xf32>
    %c1_206 = arith.constant 1 : index
    %c0_207 = arith.constant 0 : index
    %c0_208 = arith.constant 0 : index
    %466 = vector.load %arg17[%c1_206, %c0_207, %c0_208] : memref<2x1x32xf32, #tpu.memory_space<vmem>>, vector<1x1x32xf32>
    %467 = vector.shape_cast %466 : vector<1x1x32xf32> to vector<1x32xf32>
    %cst_209 = arith.constant dense<0.000000e+00> : vector<16xf32>
    %468 = vector.multi_reduction <add>, %463, %cst_209 [1] : vector<16x32xf32> to vector<16xf32>
    %469 = vector.shape_cast %468 : vector<16xf32> to vector<16x1xf32>
    %cst_210 = arith.constant 3.200000e+01 : f32
    %470 = vector.broadcast %cst_210 : f32 to vector<16x1xf32>
    %471 = arith.divf %469, %470 : vector<16x1xf32>
    %472 = vector.broadcast %471 : vector<16x1xf32> to vector<16x32xf32>
    %473 = arith.subf %463, %472 : vector<16x32xf32>
    %474 = arith.mulf %473, %473 : vector<16x32xf32>
    %cst_211 = arith.constant dense<0.000000e+00> : vector<16xf32>
    %475 = vector.multi_reduction <add>, %474, %cst_211 [1] : vector<16x32xf32> to vector<16xf32>
    %476 = vector.shape_cast %475 : vector<16xf32> to vector<16x1xf32>
    %cst_212 = arith.constant 3.200000e+01 : f32
    %477 = vector.broadcast %cst_212 : f32 to vector<16x1xf32>
    %478 = arith.divf %476, %477 : vector<16x1xf32>
    %cst_213 = arith.constant 9.99999997E-7 : f32
    %479 = vector.broadcast %cst_213 : f32 to vector<16x1xf32>
    %480 = arith.addf %478, %479 : vector<16x1xf32>
    %481 = math.rsqrt %480 : vector<16x1xf32>
    %482 = vector.broadcast %481 : vector<16x1xf32> to vector<16x32xf32>
    %483 = arith.mulf %473, %482 : vector<16x32xf32>
    %484 = vector.broadcast %465 : vector<1x32xf32> to vector<16x32xf32>
    %485 = arith.mulf %483, %484 : vector<16x32xf32>
    %486 = vector.broadcast %467 : vector<1x32xf32> to vector<16x32xf32>
    %487 = arith.addf %485, %486 : vector<16x32xf32>
    %c1_214 = arith.constant 1 : index
    %c0_215 = arith.constant 0 : index
    %c0_216 = arith.constant 0 : index
    %488 = vector.load %arg18[%c1_214, %c0_215, %c0_216] : memref<2x32x32xf32, #tpu.memory_space<vmem>>, vector<1x32x32xf32>
    %489 = vector.shape_cast %488 : vector<1x32x32xf32> to vector<32x32xf32>
    %cst_217 = arith.constant dense<0.000000e+00> : vector<16x32xf32>
    %490 = tpu.matmul %487, %489, %cst_217 {dimension_numbers = #tpu.dot_dimension_numbers<[1], [0], [0], [1], [0, 0, 1, 1], [], []>} : vector<16x32xf32>, vector<32x32xf32>, vector<16x32xf32> -> vector<16x32xf32>
    %c1_218 = arith.constant 1 : index
    %c0_219 = arith.constant 0 : index
    %c0_220 = arith.constant 0 : index
    %491 = vector.load %arg19[%c1_218, %c0_219, %c0_220] : memref<2x1x32xf32, #tpu.memory_space<vmem>>, vector<1x1x32xf32>
    %492 = vector.shape_cast %491 : vector<1x1x32xf32> to vector<1x32xf32>
    %493 = vector.broadcast %492 : vector<1x32xf32> to vector<16x32xf32>
    %494 = arith.addf %490, %493 : vector<16x32xf32>
    %c1_221 = arith.constant 1 : index
    %c0_222 = arith.constant 0 : index
    %c0_223 = arith.constant 0 : index
    %495 = vector.load %arg20[%c1_221, %c0_222, %c0_223] : memref<2x32x64xf32, #tpu.memory_space<vmem>>, vector<1x32x64xf32>
    %496 = vector.shape_cast %495 : vector<1x32x64xf32> to vector<32x64xf32>
    %cst_224 = arith.constant dense<0.000000e+00> : vector<8x64xf32>
    %497 = tpu.matmul %1, %496, %cst_224 {dimension_numbers = #tpu.dot_dimension_numbers<[1], [0], [0], [1], [0, 0, 1, 1], [], []>} : vector<8x32xf32>, vector<32x64xf32>, vector<8x64xf32> -> vector<8x64xf32>
    %c1_225 = arith.constant 1 : index
    %c0_226 = arith.constant 0 : index
    %c0_227 = arith.constant 0 : index
    %498 = vector.load %arg21[%c1_225, %c0_226, %c0_227] : memref<2x1x64xf32, #tpu.memory_space<vmem>>, vector<1x1x64xf32>
    %499 = vector.shape_cast %498 : vector<1x1x64xf32> to vector<1x64xf32>
    %500 = vector.broadcast %499 : vector<1x64xf32> to vector<8x64xf32>
    %501 = arith.addf %497, %500 : vector<8x64xf32>
    %502 = vector.extract_strided_slice %501 {offsets = [0, 0], sizes = [8, 32], strides = [1, 1]} : vector<8x64xf32> to vector<8x32xf32>
    %503 = vector.extract_strided_slice %501 {offsets = [0, 32], sizes = [8, 32], strides = [1, 1]} : vector<8x64xf32> to vector<8x32xf32>
    %c1_228 = arith.constant 1 : index
    %c0_229 = arith.constant 0 : index
    %c0_230 = arith.constant 0 : index
    %504 = vector.load %arg22[%c1_228, %c0_229, %c0_230] : memref<2x32x32xf32, #tpu.memory_space<vmem>>, vector<1x32x32xf32>
    %505 = vector.shape_cast %504 : vector<1x32x32xf32> to vector<32x32xf32>
    %506 = vector.extract_strided_slice %494 {offsets = [0, 0], sizes = [16, 8], strides = [1, 1]} : vector<16x32xf32> to vector<16x8xf32>
    %507 = vector.extract_strided_slice %502 {offsets = [0, 0], sizes = [8, 8], strides = [1, 1]} : vector<8x32xf32> to vector<8x8xf32>
    %508 = vector.extract_strided_slice %503 {offsets = [0, 0], sizes = [8, 8], strides = [1, 1]} : vector<8x32xf32> to vector<8x8xf32>
    %cst_231 = arith.constant dense<0.000000e+00> : vector<16x8xf32>
    %509 = tpu.matmul %506, %507, %cst_231 {dimension_numbers = #tpu.dot_dimension_numbers<[1], [1], [0], [0], [0, 0, 1, 0], [], []>} : vector<16x8xf32>, vector<8x8xf32>, vector<16x8xf32> -> vector<16x8xf32>
    %cst_232 = arith.constant 0.353553385 : f32
    %510 = vector.broadcast %cst_232 : f32 to vector<16x8xf32>
    %511 = arith.mulf %509, %510 : vector<16x8xf32>
    %512 = arith.addf %511, %33 : vector<16x8xf32>
    %cst_233 = arith.constant dense<0xFF800000> : vector<16xf32>
    %513 = vector.multi_reduction <maximumf>, %512, %cst_233 [1] : vector<16x8xf32> to vector<16xf32>
    %514 = vector.shape_cast %513 : vector<16xf32> to vector<16x1xf32>
    %515 = vector.broadcast %514 : vector<16x1xf32> to vector<16x8xf32>
    %516 = arith.subf %512, %515 : vector<16x8xf32>
    %517 = math.exp %516 : vector<16x8xf32>
    %cst_234 = arith.constant dense<0.000000e+00> : vector<16xf32>
    %518 = vector.multi_reduction <add>, %517, %cst_234 [1] : vector<16x8xf32> to vector<16xf32>
    %519 = vector.shape_cast %518 : vector<16xf32> to vector<16x1xf32>
    %520 = tpu.reciprocal %519 {approx = true} : vector<16x1xf32> -> vector<16x1xf32>
    %521 = vector.broadcast %520 : vector<16x1xf32> to vector<16x8xf32>
    %522 = arith.mulf %517, %521 : vector<16x8xf32>
    %cst_235 = arith.constant dense<0.000000e+00> : vector<16x8xf32>
    %523 = tpu.matmul %522, %508, %cst_235 {dimension_numbers = #tpu.dot_dimension_numbers<[1], [0], [0], [1], [0, 0, 1, 1], [], []>} : vector<16x8xf32>, vector<8x8xf32>, vector<16x8xf32> -> vector<16x8xf32>
    %524 = vector.extract_strided_slice %505 {offsets = [0, 0], sizes = [8, 32], strides = [1, 1]} : vector<32x32xf32> to vector<8x32xf32>
    %cst_236 = arith.constant dense<0.000000e+00> : vector<16x32xf32>
    %525 = tpu.matmul %523, %524, %cst_236 {dimension_numbers = #tpu.dot_dimension_numbers<[1], [0], [0], [1], [0, 0, 1, 1], [], []>} : vector<16x8xf32>, vector<8x32xf32>, vector<16x32xf32> -> vector<16x32xf32>
    %526 = vector.extract_strided_slice %494 {offsets = [0, 8], sizes = [16, 8], strides = [1, 1]} : vector<16x32xf32> to vector<16x8xf32>
    %527 = vector.extract_strided_slice %502 {offsets = [0, 8], sizes = [8, 8], strides = [1, 1]} : vector<8x32xf32> to vector<8x8xf32>
    %528 = vector.extract_strided_slice %503 {offsets = [0, 8], sizes = [8, 8], strides = [1, 1]} : vector<8x32xf32> to vector<8x8xf32>
    %cst_237 = arith.constant dense<0.000000e+00> : vector<16x8xf32>
    %529 = tpu.matmul %526, %527, %cst_237 {dimension_numbers = #tpu.dot_dimension_numbers<[1], [1], [0], [0], [0, 0, 1, 0], [], []>} : vector<16x8xf32>, vector<8x8xf32>, vector<16x8xf32> -> vector<16x8xf32>
    %cst_238 = arith.constant 0.353553385 : f32
    %530 = vector.broadcast %cst_238 : f32 to vector<16x8xf32>
    %531 = arith.mulf %529, %530 : vector<16x8xf32>
    %532 = arith.addf %531, %33 : vector<16x8xf32>
    %cst_239 = arith.constant dense<0xFF800000> : vector<16xf32>
    %533 = vector.multi_reduction <maximumf>, %532, %cst_239 [1] : vector<16x8xf32> to vector<16xf32>
    %534 = vector.shape_cast %533 : vector<16xf32> to vector<16x1xf32>
    %535 = vector.broadcast %534 : vector<16x1xf32> to vector<16x8xf32>
    %536 = arith.subf %532, %535 : vector<16x8xf32>
    %537 = math.exp %536 : vector<16x8xf32>
    %cst_240 = arith.constant dense<0.000000e+00> : vector<16xf32>
    %538 = vector.multi_reduction <add>, %537, %cst_240 [1] : vector<16x8xf32> to vector<16xf32>
    %539 = vector.shape_cast %538 : vector<16xf32> to vector<16x1xf32>
    %540 = tpu.reciprocal %539 {approx = true} : vector<16x1xf32> -> vector<16x1xf32>
    %541 = vector.broadcast %540 : vector<16x1xf32> to vector<16x8xf32>
    %542 = arith.mulf %537, %541 : vector<16x8xf32>
    %cst_241 = arith.constant dense<0.000000e+00> : vector<16x8xf32>
    %543 = tpu.matmul %542, %528, %cst_241 {dimension_numbers = #tpu.dot_dimension_numbers<[1], [0], [0], [1], [0, 0, 1, 1], [], []>} : vector<16x8xf32>, vector<8x8xf32>, vector<16x8xf32> -> vector<16x8xf32>
    %544 = vector.extract_strided_slice %505 {offsets = [8, 0], sizes = [8, 32], strides = [1, 1]} : vector<32x32xf32> to vector<8x32xf32>
    %cst_242 = arith.constant dense<0.000000e+00> : vector<16x32xf32>
    %545 = tpu.matmul %543, %544, %cst_242 {dimension_numbers = #tpu.dot_dimension_numbers<[1], [0], [0], [1], [0, 0, 1, 1], [], []>} : vector<16x8xf32>, vector<8x32xf32>, vector<16x32xf32> -> vector<16x32xf32>
    %546 = arith.addf %525, %545 : vector<16x32xf32>
    %547 = vector.extract_strided_slice %494 {offsets = [0, 16], sizes = [16, 8], strides = [1, 1]} : vector<16x32xf32> to vector<16x8xf32>
    %548 = vector.extract_strided_slice %502 {offsets = [0, 16], sizes = [8, 8], strides = [1, 1]} : vector<8x32xf32> to vector<8x8xf32>
    %549 = vector.extract_strided_slice %503 {offsets = [0, 16], sizes = [8, 8], strides = [1, 1]} : vector<8x32xf32> to vector<8x8xf32>
    %cst_243 = arith.constant dense<0.000000e+00> : vector<16x8xf32>
    %550 = tpu.matmul %547, %548, %cst_243 {dimension_numbers = #tpu.dot_dimension_numbers<[1], [1], [0], [0], [0, 0, 1, 0], [], []>} : vector<16x8xf32>, vector<8x8xf32>, vector<16x8xf32> -> vector<16x8xf32>
    %cst_244 = arith.constant 0.353553385 : f32
    %551 = vector.broadcast %cst_244 : f32 to vector<16x8xf32>
    %552 = arith.mulf %550, %551 : vector<16x8xf32>
    %553 = arith.addf %552, %33 : vector<16x8xf32>
    %cst_245 = arith.constant dense<0xFF800000> : vector<16xf32>
    %554 = vector.multi_reduction <maximumf>, %553, %cst_245 [1] : vector<16x8xf32> to vector<16xf32>
    %555 = vector.shape_cast %554 : vector<16xf32> to vector<16x1xf32>
    %556 = vector.broadcast %555 : vector<16x1xf32> to vector<16x8xf32>
    %557 = arith.subf %553, %556 : vector<16x8xf32>
    %558 = math.exp %557 : vector<16x8xf32>
    %cst_246 = arith.constant dense<0.000000e+00> : vector<16xf32>
    %559 = vector.multi_reduction <add>, %558, %cst_246 [1] : vector<16x8xf32> to vector<16xf32>
    %560 = vector.shape_cast %559 : vector<16xf32> to vector<16x1xf32>
    %561 = tpu.reciprocal %560 {approx = true} : vector<16x1xf32> -> vector<16x1xf32>
    %562 = vector.broadcast %561 : vector<16x1xf32> to vector<16x8xf32>
    %563 = arith.mulf %558, %562 : vector<16x8xf32>
    %cst_247 = arith.constant dense<0.000000e+00> : vector<16x8xf32>
    %564 = tpu.matmul %563, %549, %cst_247 {dimension_numbers = #tpu.dot_dimension_numbers<[1], [0], [0], [1], [0, 0, 1, 1], [], []>} : vector<16x8xf32>, vector<8x8xf32>, vector<16x8xf32> -> vector<16x8xf32>
    %565 = vector.extract_strided_slice %505 {offsets = [16, 0], sizes = [8, 32], strides = [1, 1]} : vector<32x32xf32> to vector<8x32xf32>
    %cst_248 = arith.constant dense<0.000000e+00> : vector<16x32xf32>
    %566 = tpu.matmul %564, %565, %cst_248 {dimension_numbers = #tpu.dot_dimension_numbers<[1], [0], [0], [1], [0, 0, 1, 1], [], []>} : vector<16x8xf32>, vector<8x32xf32>, vector<16x32xf32> -> vector<16x32xf32>
    %567 = arith.addf %546, %566 : vector<16x32xf32>
    %568 = vector.extract_strided_slice %494 {offsets = [0, 24], sizes = [16, 8], strides = [1, 1]} : vector<16x32xf32> to vector<16x8xf32>
    %569 = vector.extract_strided_slice %502 {offsets = [0, 24], sizes = [8, 8], strides = [1, 1]} : vector<8x32xf32> to vector<8x8xf32>
    %570 = vector.extract_strided_slice %503 {offsets = [0, 24], sizes = [8, 8], strides = [1, 1]} : vector<8x32xf32> to vector<8x8xf32>
    %cst_249 = arith.constant dense<0.000000e+00> : vector<16x8xf32>
    %571 = tpu.matmul %568, %569, %cst_249 {dimension_numbers = #tpu.dot_dimension_numbers<[1], [1], [0], [0], [0, 0, 1, 0], [], []>} : vector<16x8xf32>, vector<8x8xf32>, vector<16x8xf32> -> vector<16x8xf32>
    %cst_250 = arith.constant 0.353553385 : f32
    %572 = vector.broadcast %cst_250 : f32 to vector<16x8xf32>
    %573 = arith.mulf %571, %572 : vector<16x8xf32>
    %574 = arith.addf %573, %33 : vector<16x8xf32>
    %cst_251 = arith.constant dense<0xFF800000> : vector<16xf32>
    %575 = vector.multi_reduction <maximumf>, %574, %cst_251 [1] : vector<16x8xf32> to vector<16xf32>
    %576 = vector.shape_cast %575 : vector<16xf32> to vector<16x1xf32>
    %577 = vector.broadcast %576 : vector<16x1xf32> to vector<16x8xf32>
    %578 = arith.subf %574, %577 : vector<16x8xf32>
    %579 = math.exp %578 : vector<16x8xf32>
    %cst_252 = arith.constant dense<0.000000e+00> : vector<16xf32>
    %580 = vector.multi_reduction <add>, %579, %cst_252 [1] : vector<16x8xf32> to vector<16xf32>
    %581 = vector.shape_cast %580 : vector<16xf32> to vector<16x1xf32>
    %582 = tpu.reciprocal %581 {approx = true} : vector<16x1xf32> -> vector<16x1xf32>
    %583 = vector.broadcast %582 : vector<16x1xf32> to vector<16x8xf32>
    %584 = arith.mulf %579, %583 : vector<16x8xf32>
    %cst_253 = arith.constant dense<0.000000e+00> : vector<16x8xf32>
    %585 = tpu.matmul %584, %570, %cst_253 {dimension_numbers = #tpu.dot_dimension_numbers<[1], [0], [0], [1], [0, 0, 1, 1], [], []>} : vector<16x8xf32>, vector<8x8xf32>, vector<16x8xf32> -> vector<16x8xf32>
    %586 = vector.extract_strided_slice %505 {offsets = [24, 0], sizes = [8, 32], strides = [1, 1]} : vector<32x32xf32> to vector<8x32xf32>
    %cst_254 = arith.constant dense<0.000000e+00> : vector<16x32xf32>
    %587 = tpu.matmul %585, %586, %cst_254 {dimension_numbers = #tpu.dot_dimension_numbers<[1], [0], [0], [1], [0, 0, 1, 1], [], []>} : vector<16x8xf32>, vector<8x32xf32>, vector<16x32xf32> -> vector<16x32xf32>
    %588 = arith.addf %567, %587 : vector<16x32xf32>
    %c1_255 = arith.constant 1 : index
    %c0_256 = arith.constant 0 : index
    %c0_257 = arith.constant 0 : index
    %589 = vector.load %arg23[%c1_255, %c0_256, %c0_257] : memref<2x1x32xf32, #tpu.memory_space<vmem>>, vector<1x1x32xf32>
    %590 = vector.shape_cast %589 : vector<1x1x32xf32> to vector<1x32xf32>
    %591 = vector.broadcast %590 : vector<1x32xf32> to vector<16x32xf32>
    %592 = arith.addf %588, %591 : vector<16x32xf32>
    %593 = arith.addf %592, %463 : vector<16x32xf32>
    %c1_258 = arith.constant 1 : index
    %c0_259 = arith.constant 0 : index
    %c0_260 = arith.constant 0 : index
    %594 = vector.load %arg24[%c1_258, %c0_259, %c0_260] : memref<2x1x32xf32, #tpu.memory_space<vmem>>, vector<1x1x32xf32>
    %595 = vector.shape_cast %594 : vector<1x1x32xf32> to vector<1x32xf32>
    %c1_261 = arith.constant 1 : index
    %c0_262 = arith.constant 0 : index
    %c0_263 = arith.constant 0 : index
    %596 = vector.load %arg25[%c1_261, %c0_262, %c0_263] : memref<2x1x32xf32, #tpu.memory_space<vmem>>, vector<1x1x32xf32>
    %597 = vector.shape_cast %596 : vector<1x1x32xf32> to vector<1x32xf32>
    %c1_264 = arith.constant 1 : index
    %c0_265 = arith.constant 0 : index
    %c0_266 = arith.constant 0 : index
    %598 = vector.load %arg26[%c1_264, %c0_265, %c0_266] : memref<2x32x64xf32, #tpu.memory_space<vmem>>, vector<1x32x64xf32>
    %599 = vector.shape_cast %598 : vector<1x32x64xf32> to vector<32x64xf32>
    %c1_267 = arith.constant 1 : index
    %c0_268 = arith.constant 0 : index
    %c0_269 = arith.constant 0 : index
    %600 = vector.load %arg27[%c1_267, %c0_268, %c0_269] : memref<2x1x64xf32, #tpu.memory_space<vmem>>, vector<1x1x64xf32>
    %601 = vector.shape_cast %600 : vector<1x1x64xf32> to vector<1x64xf32>
    %c1_270 = arith.constant 1 : index
    %c0_271 = arith.constant 0 : index
    %c0_272 = arith.constant 0 : index
    %602 = vector.load %arg28[%c1_270, %c0_271, %c0_272] : memref<2x64x32xf32, #tpu.memory_space<vmem>>, vector<1x64x32xf32>
    %603 = vector.shape_cast %602 : vector<1x64x32xf32> to vector<64x32xf32>
    %c1_273 = arith.constant 1 : index
    %c0_274 = arith.constant 0 : index
    %c0_275 = arith.constant 0 : index
    %604 = vector.load %arg29[%c1_273, %c0_274, %c0_275] : memref<2x1x32xf32, #tpu.memory_space<vmem>>, vector<1x1x32xf32>
    %605 = vector.shape_cast %604 : vector<1x1x32xf32> to vector<1x32xf32>
    %cst_276 = arith.constant dense<0.000000e+00> : vector<16xf32>
    %606 = vector.multi_reduction <add>, %593, %cst_276 [1] : vector<16x32xf32> to vector<16xf32>
    %607 = vector.shape_cast %606 : vector<16xf32> to vector<16x1xf32>
    %cst_277 = arith.constant 3.200000e+01 : f32
    %608 = vector.broadcast %cst_277 : f32 to vector<16x1xf32>
    %609 = arith.divf %607, %608 : vector<16x1xf32>
    %610 = vector.broadcast %609 : vector<16x1xf32> to vector<16x32xf32>
    %611 = arith.subf %593, %610 : vector<16x32xf32>
    %612 = arith.mulf %611, %611 : vector<16x32xf32>
    %cst_278 = arith.constant dense<0.000000e+00> : vector<16xf32>
    %613 = vector.multi_reduction <add>, %612, %cst_278 [1] : vector<16x32xf32> to vector<16xf32>
    %614 = vector.shape_cast %613 : vector<16xf32> to vector<16x1xf32>
    %cst_279 = arith.constant 3.200000e+01 : f32
    %615 = vector.broadcast %cst_279 : f32 to vector<16x1xf32>
    %616 = arith.divf %614, %615 : vector<16x1xf32>
    %cst_280 = arith.constant 9.99999997E-7 : f32
    %617 = vector.broadcast %cst_280 : f32 to vector<16x1xf32>
    %618 = arith.addf %616, %617 : vector<16x1xf32>
    %619 = math.rsqrt %618 : vector<16x1xf32>
    %620 = vector.broadcast %619 : vector<16x1xf32> to vector<16x32xf32>
    %621 = arith.mulf %611, %620 : vector<16x32xf32>
    %622 = vector.broadcast %595 : vector<1x32xf32> to vector<16x32xf32>
    %623 = arith.mulf %621, %622 : vector<16x32xf32>
    %624 = vector.broadcast %597 : vector<1x32xf32> to vector<16x32xf32>
    %625 = arith.addf %623, %624 : vector<16x32xf32>
    %cst_281 = arith.constant dense<0.000000e+00> : vector<16x64xf32>
    %626 = tpu.matmul %625, %599, %cst_281 {dimension_numbers = #tpu.dot_dimension_numbers<[1], [0], [0], [1], [0, 0, 1, 1], [], []>} : vector<16x32xf32>, vector<32x64xf32>, vector<16x64xf32> -> vector<16x64xf32>
    %627 = vector.broadcast %601 : vector<1x64xf32> to vector<16x64xf32>
    %628 = arith.addf %626, %627 : vector<16x64xf32>
    %cst_282 = arith.constant 5.000000e-01 : f32
    %629 = vector.broadcast %cst_282 : f32 to vector<16x64xf32>
    %630 = arith.mulf %629, %628 : vector<16x64xf32>
    %cst_283 = arith.constant 4.471500e-02 : f32
    %631 = vector.broadcast %cst_283 : f32 to vector<16x64xf32>
    %632 = arith.mulf %631, %628 : vector<16x64xf32>
    %633 = arith.mulf %632, %628 : vector<16x64xf32>
    %634 = arith.mulf %633, %628 : vector<16x64xf32>
    %635 = arith.addf %628, %634 : vector<16x64xf32>
    %cst_284 = arith.constant 0.797884583 : f32
    %636 = vector.broadcast %cst_284 : f32 to vector<16x64xf32>
    %637 = arith.mulf %636, %635 : vector<16x64xf32>
    %638 = math.tanh %637 : vector<16x64xf32>
    %cst_285 = arith.constant 1.000000e+00 : f32
    %639 = vector.broadcast %cst_285 : f32 to vector<16x64xf32>
    %640 = arith.addf %639, %638 : vector<16x64xf32>
    %641 = arith.mulf %630, %640 : vector<16x64xf32>
    %cst_286 = arith.constant dense<0.000000e+00> : vector<16x32xf32>
    %642 = tpu.matmul %641, %603, %cst_286 {dimension_numbers = #tpu.dot_dimension_numbers<[1], [0], [0], [1], [0, 0, 1, 1], [], []>} : vector<16x64xf32>, vector<64x32xf32>, vector<16x32xf32> -> vector<16x32xf32>
    %643 = vector.broadcast %605 : vector<1x32xf32> to vector<16x32xf32>
    %644 = arith.addf %642, %643 : vector<16x32xf32>
    %645 = arith.addf %644, %593 : vector<16x32xf32>
    %c0_287 = arith.constant 0 : index
    %c0_288 = arith.constant 0 : index
    %646 = vector.load %arg30[%c0_287, %c0_288] : memref<1x32xf32, #tpu.memory_space<vmem>>, vector<1x32xf32>
    %c0_289 = arith.constant 0 : index
    %c0_290 = arith.constant 0 : index
    %647 = vector.load %arg31[%c0_289, %c0_290] : memref<1x32xf32, #tpu.memory_space<vmem>>, vector<1x32xf32>
    %cst_291 = arith.constant dense<0.000000e+00> : vector<16xf32>
    %648 = vector.multi_reduction <add>, %645, %cst_291 [1] : vector<16x32xf32> to vector<16xf32>
    %649 = vector.shape_cast %648 : vector<16xf32> to vector<16x1xf32>
    %cst_292 = arith.constant 3.200000e+01 : f32
    %650 = vector.broadcast %cst_292 : f32 to vector<16x1xf32>
    %651 = arith.divf %649, %650 : vector<16x1xf32>
    %652 = vector.broadcast %651 : vector<16x1xf32> to vector<16x32xf32>
    %653 = arith.subf %645, %652 : vector<16x32xf32>
    %654 = arith.mulf %653, %653 : vector<16x32xf32>
    %cst_293 = arith.constant dense<0.000000e+00> : vector<16xf32>
    %655 = vector.multi_reduction <add>, %654, %cst_293 [1] : vector<16x32xf32> to vector<16xf32>
    %656 = vector.shape_cast %655 : vector<16xf32> to vector<16x1xf32>
    %cst_294 = arith.constant 3.200000e+01 : f32
    %657 = vector.broadcast %cst_294 : f32 to vector<16x1xf32>
    %658 = arith.divf %656, %657 : vector<16x1xf32>
    %cst_295 = arith.constant 9.99999997E-7 : f32
    %659 = vector.broadcast %cst_295 : f32 to vector<16x1xf32>
    %660 = arith.addf %658, %659 : vector<16x1xf32>
    %661 = math.rsqrt %660 : vector<16x1xf32>
    %662 = vector.broadcast %661 : vector<16x1xf32> to vector<16x32xf32>
    %663 = arith.mulf %653, %662 : vector<16x32xf32>
    %664 = vector.broadcast %646 : vector<1x32xf32> to vector<16x32xf32>
    %665 = arith.mulf %663, %664 : vector<16x32xf32>
    %666 = vector.broadcast %647 : vector<1x32xf32> to vector<16x32xf32>
    %667 = arith.addf %665, %666 : vector<16x32xf32>
    %c0_296 = arith.constant 0 : index
    %c0_297 = arith.constant 0 : index
    %668 = vector.load %arg32[%c0_296, %c0_297] : memref<16x32xf32, #tpu.memory_space<vmem>>, vector<16x32xf32>
    tpu.vector_store %arg32[%c0_296, %c0_297], %667 {strides = array<i32>} : memref<16x32xf32, #tpu.memory_space<vmem>>, vector<16x32xf32>,
    return
  }
  func.func @transform_0(%arg0: i32) -> (i32, i32) {
    %c0_i32 = arith.constant 0 : i32
    %c0_i32_0 = arith.constant 0 : i32
    %c0_i32_1 = arith.constant 0 : i32
    return %c0_i32, %c0_i32_0 : i32, i32
  }
  func.func @transform_1(%arg0: i32) -> (i32, i32) {
    %c0_i32 = arith.constant 0 : i32
    %c0_i32_0 = arith.constant 0 : i32
    %c0_i32_1 = arith.constant 0 : i32
    return %c0_i32, %c0_i32_0 : i32, i32
  }
  func.func @transform_2(%arg0: i32) -> (i32, i32) {
    %c0_i32 = arith.constant 0 : i32
    %c0_i32_0 = arith.constant 0 : i32
    %c0_i32_1 = arith.constant 0 : i32
    return %c0_i32, %c0_i32_0 : i32, i32
  }
  func.func @transform_3(%arg0: i32) -> (i32, i32) {
    %c0_i32 = arith.constant 0 : i32
    %c0_i32_0 = arith.constant 0 : i32
    %c0_i32_1 = arith.constant 0 : i32
    return %c0_i32, %c0_i32_0 : i32, i32
  }
  func.func @transform_4(%arg0: i32) -> (i32, i32) {
    %c0_i32 = arith.constant 0 : i32
    %c0_i32_0 = arith.constant 0 : i32
    %c0_i32_1 = arith.constant 0 : i32
    return %c0_i32, %c0_i32_0 : i32, i32
  }
  func.func @transform_5(%arg0: i32) -> (i32, i32) {
    %c0_i32 = arith.constant 0 : i32
    %c0_i32_0 = arith.constant 0 : i32
    %c0_i32_1 = arith.constant 0 : i32
    return %c0_i32, %c0_i32_0 : i32, i32
  }
  func.func @transform_6(%arg0: i32) -> (i32, i32) {
    %c0_i32 = arith.constant 0 : i32
    %c0_i32_0 = arith.constant 0 : i32
    %c0_i32_1 = arith.constant 0 : i32
    return %c0_i32, %c0_i32_0 : i32, i32
  }
  func.func @transform_7(%arg0: i32) -> (i32, i32) {
    %c0_i32 = arith.constant 0 : i32
    %c0_i32_0 = arith.constant 0 : i32
    %c0_i32_1 = arith.constant 0 : i32
    return %c0_i32, %c0_i32_0 : i32, i32
  }
  func.func @transform_8(%arg0: i32) -> (i32, i32) {
    %c0_i32 = arith.constant 0 : i32
    %c0_i32_0 = arith.constant 0 : i32
    %c0_i32_1 = arith.constant 0 : i32
    return %c0_i32, %c0_i32_0 : i32, i32
  }
  func.func @transform_9(%arg0: i32) -> (i32, i32, i32) {
    %c0_i32 = arith.constant 0 : i32
    %c0_i32_0 = arith.constant 0 : i32
    %c0_i32_1 = arith.constant 0 : i32
    %c0_i32_2 = arith.constant 0 : i32
    return %c0_i32, %c0_i32_0, %c0_i32_1 : i32, i32, i32
  }
  func.func @transform_10(%arg0: i32) -> (i32, i32, i32) {
    %c0_i32 = arith.constant 0 : i32
    %c0_i32_0 = arith.constant 0 : i32
    %c0_i32_1 = arith.constant 0 : i32
    %c0_i32_2 = arith.constant 0 : i32
    return %c0_i32, %c0_i32_0, %c0_i32_1 : i32, i32, i32
  }
  func.func @transform_11(%arg0: i32) -> (i32, i32, i32) {
    %c0_i32 = arith.constant 0 : i32
    %c0_i32_0 = arith.constant 0 : i32
    %c0_i32_1 = arith.constant 0 : i32
    %c0_i32_2 = arith.constant 0 : i32
    return %c0_i32, %c0_i32_0, %c0_i32_1 : i32, i32, i32
  }
  func.func @transform_12(%arg0: i32) -> (i32, i32, i32) {
    %c0_i32 = arith.constant 0 : i32
    %c0_i32_0 = arith.constant 0 : i32
    %c0_i32_1 = arith.constant 0 : i32
    %c0_i32_2 = arith.constant 0 : i32
    return %c0_i32, %c0_i32_0, %c0_i32_1 : i32, i32, i32
  }
  func.func @transform_13(%arg0: i32) -> (i32, i32, i32) {
    %c0_i32 = arith.constant 0 : i32
    %c0_i32_0 = arith.constant 0 : i32
    %c0_i32_1 = arith.constant 0 : i32
    %c0_i32_2 = arith.constant 0 : i32
    return %c0_i32, %c0_i32_0, %c0_i32_1 : i32, i32, i32
  }
  func.func @transform_14(%arg0: i32) -> (i32, i32, i32) {
    %c0_i32 = arith.constant 0 : i32
    %c0_i32_0 = arith.constant 0 : i32
    %c0_i32_1 = arith.constant 0 : i32
    %c0_i32_2 = arith.constant 0 : i32
    return %c0_i32, %c0_i32_0, %c0_i32_1 : i32, i32, i32
  }
  func.func @transform_15(%arg0: i32) -> (i32, i32, i32) {
    %c0_i32 = arith.constant 0 : i32
    %c0_i32_0 = arith.constant 0 : i32
    %c0_i32_1 = arith.constant 0 : i32
    %c0_i32_2 = arith.constant 0 : i32
    return %c0_i32, %c0_i32_0, %c0_i32_1 : i32, i32, i32
  }
  func.func @transform_16(%arg0: i32) -> (i32, i32, i32) {
    %c0_i32 = arith.constant 0 : i32
    %c0_i32_0 = arith.constant 0 : i32
    %c0_i32_1 = arith.constant 0 : i32
    %c0_i32_2 = arith.constant 0 : i32
    return %c0_i32, %c0_i32_0, %c0_i32_1 : i32, i32, i32
  }
  func.func @transform_17(%arg0: i32) -> (i32, i32, i32) {
    %c0_i32 = arith.constant 0 : i32
    %c0_i32_0 = arith.constant 0 : i32
    %c0_i32_1 = arith.constant 0 : i32
    %c0_i32_2 = arith.constant 0 : i32
    return %c0_i32, %c0_i32_0, %c0_i32_1 : i32, i32, i32
  }
  func.func @transform_18(%arg0: i32) -> (i32, i32, i32) {
    %c0_i32 = arith.constant 0 : i32
    %c0_i32_0 = arith.constant 0 : i32
    %c0_i32_1 = arith.constant 0 : i32
    %c0_i32_2 = arith.constant 0 : i32
    return %c0_i32, %c0_i32_0, %c0_i32_1 : i32, i32, i32
  }
  func.func @transform_19(%arg0: i32) -> (i32, i32, i32) {
    %c0_i32 = arith.constant 0 : i32
    %c0_i32_0 = arith.constant 0 : i32
    %c0_i32_1 = arith.constant 0 : i32
    %c0_i32_2 = arith.constant 0 : i32
    return %c0_i32, %c0_i32_0, %c0_i32_1 : i32, i32, i32
  }
  func.func @transform_20(%arg0: i32) -> (i32, i32, i32) {
    %c0_i32 = arith.constant 0 : i32
    %c0_i32_0 = arith.constant 0 : i32
    %c0_i32_1 = arith.constant 0 : i32
    %c0_i32_2 = arith.constant 0 : i32
    return %c0_i32, %c0_i32_0, %c0_i32_1 : i32, i32, i32
  }
  func.func @transform_21(%arg0: i32) -> (i32, i32, i32) {
    %c0_i32 = arith.constant 0 : i32
    %c0_i32_0 = arith.constant 0 : i32
    %c0_i32_1 = arith.constant 0 : i32
    %c0_i32_2 = arith.constant 0 : i32
    return %c0_i32, %c0_i32_0, %c0_i32_1 : i32, i32, i32
  }
  func.func @transform_22(%arg0: i32) -> (i32, i32, i32) {
    %c0_i32 = arith.constant 0 : i32
    %c0_i32_0 = arith.constant 0 : i32
    %c0_i32_1 = arith.constant 0 : i32
    %c0_i32_2 = arith.constant 0 : i32
    return %c0_i32, %c0_i32_0, %c0_i32_1 : i32, i32, i32
  }
  func.func @transform_23(%arg0: i32) -> (i32, i32, i32) {
    %c0_i32 = arith.constant 0 : i32
    %c0_i32_0 = arith.constant 0 : i32
    %c0_i32_1 = arith.constant 0 : i32
    %c0_i32_2 = arith.constant 0 : i32
    return %c0_i32, %c0_i32_0, %c0_i32_1 : i32, i32, i32
  }
  func.func @transform_24(%arg0: i32) -> (i32, i32, i32) {
    %c0_i32 = arith.constant 0 : i32
    %c0_i32_0 = arith.constant 0 : i32
    %c0_i32_1 = arith.constant 0 : i32
    %c0_i32_2 = arith.constant 0 : i32
    return %c0_i32, %c0_i32_0, %c0_i32_1 : i32, i32, i32
  }
  func.func @transform_25(%arg0: i32) -> (i32, i32, i32) {
    %c0_i32 = arith.constant 0 : i32
    %c0_i32_0 = arith.constant 0 : i32
    %c0_i32_1 = arith.constant 0 : i32
    %c0_i32_2 = arith.constant 0 : i32
    return %c0_i32, %c0_i32_0, %c0_i32_1 : i32, i32, i32
  }
  func.func @transform_26(%arg0: i32) -> (i32, i32, i32) {
    %c0_i32 = arith.constant 0 : i32
    %c0_i32_0 = arith.constant 0 : i32
    %c0_i32_1 = arith.constant 0 : i32
    %c0_i32_2 = arith.constant 0 : i32
    return %c0_i32, %c0_i32_0, %c0_i32_1 : i32, i32, i32
  }
  func.func @transform_27(%arg0: i32) -> (i32, i32, i32) {
    %c0_i32 = arith.constant 0 : i32
    %c0_i32_0 = arith.constant 0 : i32
    %c0_i32_1 = arith.constant 0 : i32
    %c0_i32_2 = arith.constant 0 : i32
    return %c0_i32, %c0_i32_0, %c0_i32_1 : i32, i32, i32
  }
  func.func @transform_28(%arg0: i32) -> (i32, i32, i32) {
    %c0_i32 = arith.constant 0 : i32
    %c0_i32_0 = arith.constant 0 : i32
    %c0_i32_1 = arith.constant 0 : i32
    %c0_i32_2 = arith.constant 0 : i32
    return %c0_i32, %c0_i32_0, %c0_i32_1 : i32, i32, i32
  }
  func.func @transform_29(%arg0: i32) -> (i32, i32) {
    %c0_i32 = arith.constant 0 : i32
    %c0_i32_0 = arith.constant 0 : i32
    %c0_i32_1 = arith.constant 0 : i32
    return %c0_i32, %c0_i32_0 : i32, i32
  }
  func.func @transform_30(%arg0: i32) -> (i32, i32) {
    %c0_i32 = arith.constant 0 : i32
    %c0_i32_0 = arith.constant 0 : i32
    %c0_i32_1 = arith.constant 0 : i32
    return %c0_i32, %c0_i32_0 : i32, i32
  }
  func.func @transform_31(%arg0: i32) -> (i32, i32) {
    %c0_i32 = arith.constant 0 : i32
    %c0_i32_0 = arith.constant 0 : i32
    %c0_i32_1 = arith.constant 0 : i32
    return %c0_i32, %c0_i32_0 : i32, i32
  }
}

</mosaic_0001>

<bundles_post_ra>
// kernel: model_forward.4
= control target key start
LH: loop header
LB: loop body
LE: loop exit
PB: predicated region body
PF: predicated region fallthrough
CT: control target
= control target key end

     0   :  { %v3181_v0 = vmov 0.0|0.0   ;;  %vm3182_vm0 = vmmov 0   ;;  %v3183_v4 = vmov 0.0   ;;  %vm95_vm1 = vcmask 261120   ;;  %s3185_s27 = smov 120   ;;  %s3186_s28 = smov 96   ;;  %s3717_s6 = inlined_call_operand.vmem [shape: f32[2,32,96], index: 6, kind: input, shape index: {}]   ;;  %s3718_s0 = inlined_call_operand.vmem [shape: f32[8,32], index: 0, kind: input, shape index: {}]   ;;  %s3719_s7 = inlined_call_operand.vmem [shape: f32[2,1,96], index: 7, kind: input, shape index: {}]   ;;  %s3720_s1 = inlined_call_operand.vmem [shape: f32[8,1], index: 1, kind: input, shape index: {}]   ;;  %s3721_s3 = inlined_call_operand.vmem [shape: f32[1,8], index: 3, kind: input, shape index: {}]   ;;  %s3722_s2 = inlined_call_operand.vmem [shape: f32[1,8], index: 2, kind: input, shape index: {}]   ;;  %s3723_s8 = inlined_call_operand.vmem [shape: f32[2,32,32], index: 8, kind: input, shape index: {}]   ;;  %s3724_s9 = inlined_call_operand.vmem [shape: f32[2,1,32], index: 9, kind: input, shape index: {}]   ;;  %s3725_s12 = inlined_call_operand.vmem [shape: f32[2,32,64], index: 12, kind: input, shape index: {}]   ;;  %s3726_s10 = inlined_call_operand.vmem [shape: f32[2,1,32], index: 10, kind: input, shape index: {}]   ;;  %s3727_s11 = inlined_call_operand.vmem [shape: f32[2,1,32], index: 11, kind: input, shape index: {}]   ;;  %s3728_s14 = inlined_call_operand.vmem [shape: f32[2,64,32], index: 14, kind: input, shape index: {}]   ;;  %s3729_s13 = inlined_call_operand.vmem [shape: f32[2,1,64], index: 13, kind: input, shape index: {}]   ;;  %s3730_s15 = inlined_call_operand.vmem [shape: f32[2,1,32], index: 15, kind: input, shape index: {}]   ;;  %s3731_s4 = inlined_call_operand.vmem [shape: f32[2,1,32], index: 4, kind: input, shape index: {}]   ;;  %s3732_s5 = inlined_call_operand.vmem [shape: f32[2,1,32], index: 5, kind: input, shape index: {}]   ;;  %s3733_s16 = inlined_call_operand.vmem [shape: f32[1,32], index: 16, kind: input, shape index: {}]   ;;  %s3734_s17 = inlined_call_operand.vmem [shape: f32[1,32], index: 17, kind: input, shape index: {}]   ;;  %s3735_s18 = inlined_call_operand.vmem [shape: f32[8,32], index: 18, kind: output, shape index: {}]  }
   0x1   :  { %3742 = sst [smem:[#allocation2_spill]] %s3717_s6  ;;  %3072 = vmatprep.subr.bf16.mxu0 %v3181_v0  ;;  %2878 = vmatprep.mubr.msk.f32.mxu0 %vm3182_vm0, %v3183_v4  ;;  %v3184_v10 = vmov 0   ;;  %v60_v14 = vld [vmem:[%s3720_s1] sm:$0xff]  ;;  %s3187_s19 = smov 88   ;;  %vm176_vm2 = vcmask 64512   ;;  %v77_v18 = vlaneseq  ;;  %v170_v48 = vld [vmem:[%s3723_s8 + $0x8] sm:$0xff] }
   0x2   :  { %3743 = sst [smem:[#allocation3_spill]] %s3718_s0  ;;  %s3745_s29 = sld [smem:[#allocation2_spill]]  ;;  %2886 = vmatprep.subr.mxu1 %v3183_v4  ;;  %2888 = vmatprep.mubr.msk.f32.mxu1 %vm3182_vm0, %v3183_v4  ;;  %v74_v19 = vld [vmem:[%s3721_s3] sm:$0x1]  ;;  %vm1282_vm7 = vcmask 523264  }
   0x3   :  { %3744 = sst [smem:[#allocation4_spill]] %s3719_s7  ;;  %s3746_s23 = sld [smem:[#allocation3_spill]]  ;;  %3135 = vset.pattern.permute.xlu1 %v3184_v10  ;;  %3136 = vset.pattern.permute.xlu0 %v3184_v10  ;;  %v78_v20 = vshrl.u32 %v77_v18, 7  ;;  %vm75_vm3 = vcmp.gt.f32.partialorder %v74_v19, 0.5  ;;  %v2701_v24 = vld [vmem:[%s3722_s2] ss:$0 sm:$0xff] }
   0x4   :  { %s3747_s26 = sld [smem:[#allocation4_spill]]  ;;  %v76_v22 = vsel %vm75_vm3, 1, %v3184_v10  ;;  %s3188_s2 = smov 64   ;;  %v169_v56 = vld [vmem:[%s3723_s8] sm:$0xff] }
   0x5   :  { %v79_v21 = vsub.s32 0, %v78_v20  ;;  %s3189_s3 = smov 80   ;;  %s3190_s22 = smov 112  }
   0x6   :  { %s3191_s7 = smov 56   ;;  %s3739_s6 = smov 48  }
   0x7   :  { %v80_v23 = vrot.slane %v76_v22, %v79_v21  ;;  %s3740_s1 = smov 104   ;;  %s3741_s0 = smov 72  }
   0x8   :  { %v84_v1 = vld [vmem:[%s3745_s29] sm:$0xff]  ;;  %v85_v2 = vld [vmem:[%s3745_s29 + $0x8] sm:$0xff]  ;;  %v86_v3 = vld [vmem:[%s3745_s29 + $0x10] sm:$0xff] }
   0x9   :  { %v3073_v5 = vpack.c.bf16 %v85_v2, %v84_v1  ;;  %v87_v6 = vld [vmem:[%s3745_s29 + $0x18] sm:$0xff]  ;;  %v3313_v8 = vld [vmem:[%s3746_s23] sm:$0xff]  ;;  %vm81_vm4 = vcmp.eq.s32.totalorder %v80_v23, 1  ;;  %s3738_s23 = smov 40  }
   0xa   :  { %v3076_v7 = vpack.c.bf16 %v87_v6, %v86_v3  ;;  %v2702_v9 = vld [vmem:[%s3747_s26] ss:$0 sm:$0xff] }
   0xb   :  { %3074 = vmatpush3.bf16.msra.mxu0 %v3073_v5 }
   0xc   :  { %3075 = vmatprep.subr.bf16.mxu0 %v3181_v0 }
   0xf   :  { %3077 = vmatpush3.bf16.msra.mxu0 %v3076_v7 }
  0x10   :  { %2881 = vmatprep.subr.mxu0 %v3183_v4 }
  0x12   :  { %2879 = vmatmul.mubr.msk.f32.vlgmr.msra.gmra.mrb[0].mxu0 %vm95_vm1, %v3313_v8 }
  0x13   :  { %2883 = vmatprep.mubr.msk.f32.mxu0 %vm3182_vm0, %v3183_v4 }
  0xe5   :  { %v165_v11 = vpop.f32.mrb[0].mxu0 }
  0xe6   :  { %v3323_v12 = vadd.f32 %v2702_v9, %v165_v11  ;;  %v2880_v13 = vpop.f32.mrb[1].mxu0 }
  0xe8   :  { %340 = vrot.lane.b32.xlu1 %v3323_v12, %s3185_s27  ;;  %174 = vrot.lane.b32.xlu0 %v3323_v12, %s3186_s28 }
  0xec   :  { %342 = vrot.lane.b32.xlu0 %v3323_v12, %s3187_s19  ;;  %64 = vperm.xlu1 %3135, %v60_v14  }
 0x15a   :  { %v175_v15 = vpop.permute.xlu0 %174  ;;  %v341_v17 = vpop.permute.xlu1 %340 }
 0x15b   :  { %2882 = vmatpush3.xpose.msk.msra.mxu0 %vm176_vm2, %v175_v15 }
 0x15c   :  { %2891 = vmatprep.subr.mxu0 %v3183_v4 }
 0x15e   :  { %2884 = vmatmul.mubr.msk.f32.vlgmr.msra.gmra.mrb[2].mxu0 %vm176_vm2, %v3323_v12  ;;  %v343_v16 = vpop.permute.xlu0 %342 }
 0x15f   :  { %2892 = vmatpush3.xpose.msk.msra.mxu0 %vm176_vm2, %v343_v16  ;;  %2893 = vmatprep.mubr.msk.f32.mxu0 %vm3182_vm0, %v3183_v4 }
 0x160   :  { %2901 = vmatprep.subr.mxu0 %v3183_v4 }
 0x162   :  { %2894 = vmatmul.mubr.msk.f32.vlgmr.msra.gmra.mrb[4].mxu0 %vm176_vm2, %v341_v17 }
 0x163   :  { %2903 = vmatprep.mubr.msk.f32.mxu0 %vm3182_vm0, %v3183_v4  ;;  %2902 = vmatpush3.msra.mxu0 %v170_v48  ;;  %v2720_v48 = vld [vmem:[%s3724_s9] ss:$0 sm:$0xff] }
 0x164   :  { %2911 = vmatprep.subr.mxu0 %v3183_v4 }
 0x16b   :  { %v65_v25 = vpop.permute.xlu1 %64 }
 0x16c   :  { %vm73_vm5 = vcmp.ne.f32.partialorder %v65_v25, %v2701_v24  ;;  %v171_v24 = vld [vmem:[%s3723_s8 + $0x10] sm:$0xff] }
 0x16d   :  { %vm82_vm6 = vmor %vm73_vm5, %vm81_vm4 }
 0x16e   :  { %v3352_v26 = vsel %vm82_vm6, -1e+09, %v3183_v4 }
 0x231   :  { %v247_v27 = vpop.f32.mrb[2].mxu0 }
 0x232   :  { %v251_v28 = vmul.f32 0.35355338, %v247_v27  ;;  %v2885_v29 = vpop.f32.mrb[3].mxu0 }
 0x234   :  { %v252_v30 = vadd.f32 %v251_v28, %v3352_v26 }
 0x235   :  { %v414_v31 = vpop.f32.mrb[4].mxu0 }
 0x236   :  { %v418_v32 = vmul.f32 0.35355338, %v414_v31  ;;  %v2895_v33 = vpop.f32.mrb[5].mxu0  ;;  %v253_v34 = vsel %vm176_vm2, %v252_v30, -inf }
 0x237   :  { %254 = vmax.xlane.f32.xlu0 %v253_v34 }
 0x238   :  { %v419_v35 = vadd.f32 %v418_v32, %v3352_v26 }
 0x23a   :  { %v420_v36 = vsel %vm176_vm2, %v419_v35, -inf }
 0x23b   :  { %421 = vmax.xlane.f32.xlu1 %v420_v36 }
 0x24c   :  { %264 = vrot.lane.b32.xlu1 %v3323_v12, %s3188_s2 }
 0x250   :  { %655 = vrot.lane.b32.xlu1 %v3323_v12, %s3189_s3 }
 0x254   :  { %653 = vrot.lane.b32.xlu1 %v3323_v12, %s3190_s22 }
 0x2c4   :  { %v255_v37 = vpop.xlane.xlu0 %254 }
 0x2c5   :  { %v256_v38 = vsub.f32 %v252_v30, %v255_v37 }
 0x2c7   :  { %v257_v39 = vmul.f32 1.442695, %v256_v38  ;;  %v172_v38 = vld [vmem:[%s3723_s8 + $0x18] sm:$0xff] }
 0x2c8   :  { %v422_v40 = vpop.xlane.xlu1 %421 }
 0x2c9   :  { %3137 = vpow2.f32 %v257_v39  ;;  %v423_v41 = vsub.f32 %v419_v35, %v422_v40 }
 0x2cb   :  { %v424_v42 = vmul.f32 1.442695, %v423_v41 }
 0x2cc   :  { %v265_v43 = vpop.permute.xlu1 %264 }
 0x2cd   :  { %3139 = vpow2.f32 %v424_v42  ;;  %2887 = vmatpush3.msra.mxu1 %v265_v43 }
 0x2ce   :  { %2896 = vmatprep.subr.mxu1 %v3183_v4 }
 0x2d0   :  { %v656_v59 = vpop.permute.xlu1 %655 }
 0x2d3   :  { %v3138_v44 = vpop.eup %3137 }
 0x2d4   :  { %v259_v45 = vsel %vm176_vm2, %v3138_v44, 0.0  ;;  %v654_v62 = vpop.permute.xlu1 %653 }
 0x2d5   :  { %260 = vadd.xlane.f32.xlu0 %v259_v45 }
 0x2d7   :  { %v3140_v46 = vpop.eup %3139 }
 0x2d8   :  { %v426_v47 = vsel %vm176_vm2, %v3140_v46, 0.0 }
 0x2d9   :  { %427 = vadd.xlane.f32.xlu0 %v426_v47 }
 0x2ef   :  { %431 = vrot.lane.b32.xlu0 %v3323_v12, %s3191_s7 }
 0x362   :  { %v261_v49 = vpop.xlane.xlu0 %260 }
 0x363   :  { %3141 = vrcp.f32 %v261_v49 }
 0x366   :  { %v428_v50 = vpop.xlane.xlu0 %427 }
 0x367   :  { %3143 = vrcp.f32 %v428_v50 }
 0x36a   :  { %v432_v53 = vpop.permute.xlu0 %431 }
 0x36d   :  { %v3142_v51 = vpop.eup %3141 }
 0x36e   :  { %v263_v52 = vmul.f32 %v3142_v51, %v3138_v44 }
 0x370   :  { %2889 = vmatmul.mubr.msk.f32.vlgmr.msra.gmra.mrb[0].mxu1 %vm176_vm2, %v263_v52 }
 0x371   :  { %v3144_v54 = vpop.eup %3143  ;;  %2897 = vmatpush3.msra.mxu1 %v432_v53  ;;  %2898 = vmatprep.mubr.msk.f32.mxu1 %vm3182_vm0, %v3183_v4 }
 0x372   :  { %v430_v55 = vmul.f32 %v3144_v54, %v3140_v46  ;;  %2906 = vmatprep.subr.mxu1 %v3183_v4 }
 0x374   :  { %2899 = vmatmul.mubr.msk.f32.vlgmr.msra.gmra.mrb[2].mxu1 %vm176_vm2, %v430_v55 }
 0x375   :  { %2908 = vmatprep.mubr.msk.f32.mxu1 %vm3182_vm0, %v3183_v4  ;;  %2907 = vmatpush3.msra.mxu1 %v169_v56 }
 0x376   :  { %2916 = vmatprep.subr.mxu1 %v3183_v4 }
 0x443   :  { %v336_v57 = vpop.f32.mrb[0].mxu1 }
 0x444   :  { %v2890_v58 = vpop.f32.mrb[1].mxu1  ;;  %2909 = vmatmul.mubr.msk.f32.vlgmr.msra.gmra.mrb[4].mxu1 %vm176_vm2, %v336_v57 }
 0x445   :  { %2918 = vmatprep.mubr.msk.f32.mxu1 %vm3182_vm0, %v3183_v4 }
 0x447   :  { %v503_v60 = vpop.f32.mrb[2].mxu1 }
 0x448   :  { %v2900_v61 = vpop.f32.mrb[3].mxu1  ;;  %2904 = vmatmul.mubr.msk.f32.vlgmr.msra.gmra.mrb[6].mxu0 %vm176_vm2, %v503_v60 }
 0x449   :  { %2912 = vmatpush3.xpose.msk.msra.mxu0 %vm176_vm2, %v656_v59  ;;  %2913 = vmatprep.mubr.msk.f32.mxu0 %vm3182_vm0, %v3183_v4  ;;  %v1146_v59 = vld [vmem:[%s3725_s12] sm:$0xff]  ;;  %v1148_v61 = vld [vmem:[%s3725_s12 + $0x10] sm:$0xff] }
 0x44a   :  { %2921 = vmatprep.subr.mxu0 %v3183_v4 }
 0x44c   :  { %2914 = vmatmul.mubr.msk.f32.vlgmr.msra.gmra.mrb[8].mxu0 %vm176_vm2, %v654_v62  ;;  %v1149_v62 = vld [vmem:[%s3725_s12 + $0x18] sm:$0xff] }
 0x44d   :  { %2923 = vmatprep.mubr.msk.f32.mxu0 %vm3182_vm0, %v3183_v4  ;;  %2922 = vmatpush3.msra.mxu0 %v171_v24 }
 0x44e   :  { %2931 = vmatprep.subr.mxu0 %v3183_v4 }
 0x517   :  { %v649_v63 = vpop.f32.mrb[4].mxu1 }
 0x518   :  { %v2910_v1 = vpop.f32.mrb[5].mxu1 }
 0x51b   :  { %v576_v2 = vpop.f32.mrb[6].mxu0 }
 0x51c   :  { %v650_v3 = vadd.f32 %v649_v63, %v576_v2  ;;  %v2905_v5 = vpop.f32.mrb[7].mxu0  ;;  %v3082_v63 = vpack.c.bf16 %v1149_v62, %v1148_v61 }
 0x51f   :  { %v727_v6 = vpop.f32.mrb[8].mxu0 }
 0x520   :  { %v731_v7 = vmul.f32 0.35355338, %v727_v6  ;;  %v2915_v9 = vpop.f32.mrb[9].mxu0  ;;  %v2721_v6 = vld [vmem:[%s3726_s10] ss:$0 sm:$0xff] }
 0x521   :  { %v2722_v9 = vld [vmem:[%s3727_s11] ss:$0 sm:$0xff] }
 0x522   :  { %v732_v10 = vadd.f32 %v731_v7, %v3352_v26 }
 0x524   :  { %v733_v11 = vsel %vm176_vm2, %v732_v10, -inf }
 0x525   :  { %734 = vmax.xlane.f32.xlu0 %v733_v11 }
 0x53b   :  { %744 = vrot.lane.b32.xlu0 %v3323_v12, %s3739_s6 }
 0x53f   :  { %894 = vrot.lane.b32.xlu0 %v3323_v12, %s3740_s1 }
 0x5b2   :  { %v735_v13 = vpop.xlane.xlu0 %734 }
 0x5b3   :  { %v736_v14 = vsub.f32 %v732_v10, %v735_v13  ;;  %v1151_v13 = vld [vmem:[%s3728_s14] sm:$0xff] }
 0x5b5   :  { %v737_v15 = vmul.f32 1.442695, %v736_v14  ;;  %v1152_v14 = vld [vmem:[%s3728_s14 + $0x8] sm:$0xff] }
 0x5b6   :  { %v745_v16 = vpop.permute.xlu0 %744 }
 0x5b7   :  { %3145 = vpow2.f32 %v737_v15  ;;  %2917 = vmatpush3.msra.mxu1 %v745_v16  ;;  %v3085_v15 = vpack.c.bf16 %v1152_v14, %v1151_v13  ;;  %v1153_v16 = vld [vmem:[%s3728_s14 + $0x10] sm:$0xff] }
 0x5b8   :  { %2926 = vmatprep.subr.mxu1 %v3183_v4 }
 0x5ba   :  { %v895_v23 = vpop.permute.xlu0 %894 }
 0x5c1   :  { %v3146_v17 = vpop.eup %3145 }
 0x5c2   :  { %v739_v18 = vsel %vm176_vm2, %v3146_v17, 0.0 }
 0x5c3   :  { %740 = vadd.xlane.f32.xlu1 %v739_v18 }
 0x5d4   :  { %896 = vrot.lane.b32.xlu1 %v3323_v12, %s3741_s0 }
 0x650   :  { %v741_v19 = vpop.xlane.xlu1 %740 }
 0x651   :  { %3147 = vrcp.f32 %v741_v19  ;;  %v1155_v19 = vld [vmem:[%s3728_s14 + $0x20] sm:$0xff] }
 0x654   :  { %v897_v22 = vpop.permute.xlu1 %896 }
 0x65b   :  { %v3148_v20 = vpop.eup %3147 }
 0x65c   :  { %v743_v21 = vmul.f32 %v3148_v20, %v3146_v17  ;;  %v1154_v17 = vld [vmem:[%s3728_s14 + $0x18] sm:$0xff]  ;;  %v1156_v20 = vld [vmem:[%s3728_s14 + $0x28] sm:$0xff] }
 0x65d   :  { %v3088_v18 = vpack.c.bf16 %v1154_v17, %v1153_v16 }
 0x65e   :  { %2919 = vmatmul.mubr.msk.f32.vlgmr.msra.gmra.mrb[6].mxu1 %vm176_vm2, %v743_v21  ;;  %v3091_v21 = vpack.c.bf16 %v1156_v20, %v1155_v19 }
 0x65f   :  { %2927 = vmatpush3.xpose.msk.msra.mxu1 %vm176_vm2, %v897_v22  ;;  %2928 = vmatprep.mubr.msk.f32.mxu1 %vm3182_vm0, %v3183_v4  ;;  %v1157_v22 = vld [vmem:[%s3728_s14 + $0x30] sm:$0xff] }
 0x660   :  { %2936 = vmatprep.subr.mxu1 %v3183_v4 }
 0x662   :  { %2929 = vmatmul.mubr.msk.f32.vlgmr.msra.gmra.mrb[8].mxu1 %vm176_vm2, %v895_v23  ;;  %v1158_v23 = vld [vmem:[%s3728_s14 + $0x38] sm:$0xff] }
 0x663   :  { %2938 = vmatprep.mubr.msk.f32.mxu1 %vm3182_vm0, %v3183_v4  ;;  %2937 = vmatpush3.msra.mxu1 %v172_v38  ;;  %v3094_v24 = vpack.c.bf16 %v1158_v23, %v1157_v22 }
 0x664   :  { %3084 = vmatprep.subr.bf16.mxu1 %v3181_v0 }
 0x731   :  { %v816_v25 = vpop.f32.mrb[6].mxu1 }
 0x732   :  { %v2920_v27 = vpop.f32.mrb[7].mxu1  ;;  %2924 = vmatmul.mubr.msk.f32.vlgmr.msra.gmra.mrb[10].mxu0 %vm176_vm2, %v816_v25  ;;  %v2723_v25 = vld [vmem:[%s3729_s13] ss:$0 sm:$0xff] }
 0x733   :  { %2933 = vmatprep.mubr.msk.f32.mxu0 %vm3182_vm0, %v3183_v4 }
 0x735   :  { %v968_v28 = vpop.f32.mrb[8].mxu1 }
 0x736   :  { %v972_v29 = vmul.f32 0.35355338, %v968_v28  ;;  %v2930_v30 = vpop.f32.mrb[9].mxu1 }
 0x738   :  { %v973_v31 = vadd.f32 %v972_v29, %v3352_v26 }
 0x73a   :  { %v974_v32 = vsel %vm176_vm2, %v973_v31, -inf }
 0x73b   :  { %975 = vmax.xlane.f32.xlu1 %v974_v32 }
 0x7c8   :  { %v976_v33 = vpop.xlane.xlu1 %975 }
 0x7c9   :  { %v977_v34 = vsub.f32 %v973_v31, %v976_v33 }
 0x7cb   :  { %v978_v35 = vmul.f32 1.442695, %v977_v34 }
 0x7cd   :  { %3149 = vpow2.f32 %v978_v35 }
 0x7d7   :  { %v3150_v36 = vpop.eup %3149 }
 0x7d8   :  { %v980_v37 = vsel %vm176_vm2, %v3150_v36, 0.0 }
 0x7d9   :  { %981 = vadd.xlane.f32.xlu0 %v980_v37 }
 0x7ef   :  { %985 = vrot.lane.b32.xlu0 %v3323_v12, %s3738_s23 }
 0x805   :  { %v889_v39 = vpop.f32.mrb[10].mxu0 }
 0x806   :  { %v893_v40 = vadd.f32 %v889_v39, %v650_v3  ;;  %v2925_v41 = vpop.f32.mrb[11].mxu0  ;;  %v2725_v39 = vld [vmem:[%s3730_s15] ss:$0 sm:$0xff] }
 0x866   :  { %v982_v42 = vpop.xlane.xlu0 %981 }
 0x867   :  { %3151 = vrcp.f32 %v982_v42 }
 0x86a   :  { %v986_v43 = vpop.permute.xlu0 %985 }
 0x86b   :  { %2932 = vmatpush3.msra.mxu0 %v986_v43 }
 0x86c   :  { %3078 = vmatprep.subr.bf16.mxu0 %v3181_v0 }
 0x871   :  { %v3152_v44 = vpop.eup %3151 }
 0x872   :  { %v984_v45 = vmul.f32 %v3152_v44, %v3150_v36 }
 0x874   :  { %2934 = vmatmul.mubr.msk.f32.vlgmr.msra.gmra.mrb[12].mxu0 %vm176_vm2, %v984_v45 }
 0x875   :  { %2949 = vmatprep.mubr.msk.f32.mxu0 %vm3182_vm0, %v3183_v4 }
 0x947   :  { %v1057_v12 = vpop.f32.mrb[12].mxu0 }
 0x948   :  { %v2935_v46 = vpop.f32.mrb[13].mxu0  ;;  %2939 = vmatmul.mubr.msk.f32.vlgmr.msra.gmra.mrb[10].mxu1 %vm176_vm2, %v1057_v12 }
 0x949   :  { %2968 = vmatprep.mubr.msk.f32.mxu1 %vm3182_vm0, %v3183_v4  ;;  %3086 = vmatpush3.bf16.msra.mxu1 %v3085_v15 }
 0x94a   :  { %3087 = vmatprep.subr.bf16.mxu1 %v3181_v0 }
 0x94d   :  { %3089 = vmatpush3.bf16.msra.mxu1 %v3088_v18 }
 0x94e   :  { %3090 = vmatprep.subr.bf16.mxu1 %v3181_v0 }
 0x951   :  { %3092 = vmatpush3.bf16.msra.mxu1 %v3091_v21 }
 0x952   :  { %3093 = vmatprep.subr.bf16.mxu1 %v3181_v0 }
 0x955   :  { %3095 = vmatpush3.bf16.msra.mxu1 %v3094_v24 }
 0x956   :  { %2987 = vmatprep.subr.mxu1 %v3183_v4 }
 0xa1b   :  { %v1130_v47 = vpop.f32.mrb[10].mxu1 }
 0xa1c   :  { %v1134_v49 = vadd.f32 %v1130_v47, %v893_v40  ;;  %v2940_v50 = vpop.f32.mrb[11].mxu1 }
 0xa1d   :  { %v2732_v50 = vld [vmem:[%s3745_s29 + $0x28] sm:$0xff] }
 0xa1e   :  { %v1142_v51 = vadd.f32 %v2720_v48, %v1134_v49  ;;  %v2731_v49 = vld [vmem:[%s3745_s29 + $0x20] sm:$0xff] }
 0xa20   :  { %v3440_v52 = vadd.f32 %v1142_v51, %v3313_v8  ;;  %v1147_v8 = vld [vmem:[%s3725_s12 + $0x8] sm:$0xff]  ;;  %v3097_v51 = vpack.c.bf16 %v2732_v50, %v2731_v49 }
 0xa21   :  { %v3079_v60 = vpack.c.bf16 %v1147_v8, %v1146_v59  ;;  %v2729_v59 = vld [vmem:[%s3731_s4 + $0x1] ss:$0 sm:$0xff] }
 0xa22   :  { %v1160_v53 = vsel %vm95_vm1, %v3440_v52, 0.0 }
 0xa23   :  { %1161 = vadd.xlane.f32.xlu1 %v1160_v53  ;;  %3080 = vmatpush3.bf16.msra.mxu0 %v3079_v60  ;;  %v2734_v53 = vld [vmem:[%s3745_s29 + $0x38] sm:$0xff]  ;;  %v2730_v60 = vld [vmem:[%s3732_s5 + $0x1] ss:$0 sm:$0xff] }
 0xa24   :  { %3081 = vmatprep.subr.bf16.mxu0 %v3181_v0 }
 0xa27   :  { %3083 = vmatpush3.bf16.msra.mxu0 %v3082_v63  ;;  %v2736_v63 = vld [vmem:[%s3747_s26 + $0x1] ss:$0 sm:$0xff] }
 0xa28   :  { %3096 = vmatprep.subr.bf16.mxu0 %v3181_v0 }
 0xab0   :  { %v1162_v54 = vpop.xlane.xlu1 %1161 }
 0xab1   :  { %v1164_v55 = vmul.f32 0.03125, %v1162_v54 }
 0xab3   :  { %v1165_v56 = vsub.f32 %v3440_v52, %v1164_v55 }
 0xab5   :  { %v1166_v57 = vmul.f32 %v1165_v56, %v1165_v56 }
 0xab7   :  { %v1167_v58 = vsel %vm95_vm1, %v1166_v57, 0.0 }
 0xab8   :  { %1168 = vadd.xlane.f32.xlu1 %v1167_v58 }
 0xb45   :  { %v1169_v1 = vpop.xlane.xlu1 %1168 }
 0xb46   :  { %v1170_v2 = vmul.f32 0.03125, %v1169_v1 }
 0xb48   :  { %v1171_v3 = vadd.f32 1e-06, %v1170_v2 }
 0xb4a   :  { %3153 = vrsqrt.f32 %v1171_v3 }
 0xb54   :  { %v3154_v5 = vpop.eup %3153 }
 0xb55   :  { %v1173_v7 = vmul.f32 %v3154_v5, %v1165_v56 }
 0xb57   :  { %v1180_v10 = vmul.f32 %v2721_v6, %v1173_v7 }
 0xb59   :  { %v1187_v11 = vadd.f32 %v2722_v9, %v1180_v10 }
 0xb5b   :  { %2950 = vmatmul.mubr.msk.f32.vlgmr.msra.gmra.mrb[14].mxu0 %vm95_vm1, %v1187_v11 }
 0xb5c   :  { %2979 = vmatprep.mubr.msk.f32.mxu0 %vm3182_vm0, %v3183_v4  ;;  %3098 = vmatpush3.bf16.msra.mxu0 %v3097_v51 }
 0xb5d   :  { %3099 = vmatprep.subr.bf16.mxu0 %v3181_v0 }
 0xc2e   :  { %v1263_v27 = vpop.f32.mrb[14].mxu0 }
 0xc2f   :  { %v1264_v28 = vadd.f32 %v2723_v25, %v1263_v27  ;;  %v2951_v29 = vpop.f32.mrb[15].mxu0 }
 0xc31   :  { %v1268_v30 = vmul.f32 0.044715, %v1264_v28  ;;  %v1267_v36 = vmul.f32 0.5, %v1264_v28 }
 0xc33   :  { %v1269_v31 = vmul.f32 %v1268_v30, %v1264_v28 }
 0xc35   :  { %v1270_v32 = vmul.f32 %v1269_v31, %v1264_v28  ;;  %v2739_v31 = vld [vmem:[%s3723_s8 + $0x28] sm:$0xff] }
 0xc37   :  { %v1271_v33 = vadd.f32 %v1270_v32, %v1264_v28 }
 0xc39   :  { %v1272_v34 = vmul.f32 0.7978846, %v1271_v33 }
 0xc3b   :  { %3155 = vtanh.f32 %v1272_v34 }
 0xc45   :  { %v3156_v35 = vpop.eup %3155 }
 0xc46   :  { %v1274_v37 = vadd.f32 1.0, %v3156_v35 }
 0xc48   :  { %v1275_v38 = vmul.f32 %v1274_v37, %v1267_v36 }
 0xc4a   :  { %2969 = vmatmul.mubr.msk.f32.vlgmr.msra.gmra.mrb[12].mxu1 %vm1282_vm7, %v1275_v38 }
 0xc4b   :  { %2989 = vmatprep.mubr.msk.f32.mxu1 %vm3182_vm0, %v3183_v4 }
 0xd1d   :  { %v1352_v40 = vpop.f32.mrb[12].mxu1 }
 0xd1e   :  { %v1353_v41 = vadd.f32 %v2725_v39, %v1352_v40  ;;  %v2970_v42 = vpop.f32.mrb[13].mxu1  ;;  %v2738_v40 = vld [vmem:[%s3723_s8 + $0x20] sm:$0xff] }
 0xd20   :  { %v3507_v43 = vadd.f32 %v1353_v41, %v3440_v52  ;;  %v2733_v52 = vld [vmem:[%s3745_s29 + $0x30] sm:$0xff] }
 0xd21   :  { %v3100_v54 = vpack.c.bf16 %v2734_v53, %v2733_v52 }
 0xd22   :  { %v1361_v44 = vsel %vm95_vm1, %v3507_v43, 0.0 }
 0xd23   :  { %1362 = vadd.xlane.f32.xlu1 %v1361_v44  ;;  %3101 = vmatpush3.bf16.msra.mxu0 %v3100_v54 }
 0xd24   :  { %2982 = vmatprep.subr.mxu0 %v3183_v4 }
 0xdb0   :  { %v1363_v45 = vpop.xlane.xlu1 %1362 }
 0xdb1   :  { %v1364_v12 = vmul.f32 0.03125, %v1363_v45 }
 0xdb3   :  { %v1365_v46 = vsub.f32 %v3507_v43, %v1364_v12 }
 0xdb5   :  { %v1366_v47 = vmul.f32 %v1365_v46, %v1365_v46 }
 0xdb7   :  { %v1367_v48 = vsel %vm95_vm1, %v1366_v47, 0.0 }
 0xdb8   :  { %1368 = vadd.xlane.f32.xlu1 %v1367_v48 }
 0xe45   :  { %v1369_v55 = vpop.xlane.xlu1 %1368 }
 0xe46   :  { %v1370_v56 = vmul.f32 0.03125, %v1369_v55 }
 0xe48   :  { %v1371_v57 = vadd.f32 1e-06, %v1370_v56 }
 0xe4a   :  { %3157 = vrsqrt.f32 %v1371_v57 }
 0xe54   :  { %v3158_v58 = vpop.eup %3157 }
 0xe55   :  { %v1373_v8 = vmul.f32 %v3158_v58, %v1365_v46 }
 0xe57   :  { %v1380_v61 = vmul.f32 %v2729_v59, %v1373_v8 }
 0xe59   :  { %v1387_v62 = vadd.f32 %v2730_v60, %v1380_v61 }
 0xe5b   :  { %2980 = vmatmul.mubr.msk.f32.vlgmr.msra.gmra.mrb[16].mxu0 %vm95_vm1, %v1387_v62 }
 0xe5c   :  { %2984 = vmatprep.mubr.msk.f32.mxu0 %vm3182_vm0, %v3183_v4 }
 0xf2e   :  { %v1470_v1 = vpop.f32.mrb[16].mxu0 }
 0xf2f   :  { %v3539_v2 = vadd.f32 %v2736_v63, %v1470_v1  ;;  %v2981_v3 = vpop.f32.mrb[17].mxu0 }
 0xf31   :  { %1647 = vrot.lane.b32.xlu0 %v3539_v2, %s3187_s19  ;;  %1480 = vrot.lane.b32.xlu1 %v3539_v2, %s3186_s28  ;;  %s3748_s28 = smov 72   ;;  %s3749_s19 = smov 104  }
 0xf35   :  { %1645 = vrot.lane.b32.xlu0 %v3539_v2, %s3185_s27 }
 0xfa3   :  { %v1481_v5 = vpop.permute.xlu1 %1480  ;;  %v1648_v6 = vpop.permute.xlu0 %1647 }
 0xfa4   :  { %2983 = vmatpush3.xpose.msk.msra.mxu0 %vm176_vm2, %v1481_v5 }
 0xfa5   :  { %2992 = vmatprep.subr.mxu0 %v3183_v4 }
 0xfa7   :  { %2985 = vmatmul.mubr.msk.f32.vlgmr.msra.gmra.mrb[18].mxu0 %vm176_vm2, %v3539_v2  ;;  %v1646_v7 = vpop.permute.xlu0 %1645 }
 0xfa8   :  { %2993 = vmatpush3.xpose.msk.msra.mxu0 %vm176_vm2, %v1648_v6  ;;  %2994 = vmatprep.mubr.msk.f32.mxu0 %vm3182_vm0, %v3183_v4  ;;  %v2740_v6 = vld [vmem:[%s3723_s8 + $0x30] sm:$0xff] }
 0xfa9   :  { %3002 = vmatprep.subr.mxu0 %v3183_v4 }
 0xfab   :  { %2995 = vmatmul.mubr.msk.f32.vlgmr.msra.gmra.mrb[20].mxu0 %vm176_vm2, %v1646_v7 }
 0xfac   :  { %3004 = vmatprep.mubr.msk.f32.mxu0 %vm3182_vm0, %v3183_v4  ;;  %3003 = vmatpush3.msra.mxu0 %v2739_v31  ;;  %v2759_v31 = vld [vmem:[%s3724_s9 + $0x1] ss:$0 sm:$0xff] }
 0xfad   :  { %3012 = vmatprep.subr.mxu0 %v3183_v4 }
0x107a   :  { %v1552_v9 = vpop.f32.mrb[18].mxu0 }
0x107b   :  { %v1556_v10 = vmul.f32 0.35355338, %v1552_v9  ;;  %v2986_v11 = vpop.f32.mrb[19].mxu0 }
0x107d   :  { %v1557_v13 = vadd.f32 %v1556_v10, %v3352_v26 }
0x107e   :  { %v1719_v14 = vpop.f32.mrb[20].mxu0 }
0x107f   :  { %v1723_v15 = vmul.f32 0.35355338, %v1719_v14  ;;  %v2996_v16 = vpop.f32.mrb[21].mxu0  ;;  %v1558_v17 = vsel %vm176_vm2, %v1557_v13, -inf }
0x1080   :  { %1559 = vmax.xlane.f32.xlu0 %v1558_v17 }
0x1081   :  { %v1724_v18 = vadd.f32 %v1723_v15, %v3352_v26 }
0x1083   :  { %v1725_v19 = vsel %vm176_vm2, %v1724_v18, -inf }
0x1084   :  { %1726 = vmax.xlane.f32.xlu1 %v1725_v19 }
0x1095   :  { %1736 = vrot.lane.b32.xlu1 %v3539_v2, %s3191_s7  ;;  %s3751_s7 = smov 40  }
0x1099   :  { %1960 = vrot.lane.b32.xlu1 %v3539_v2, %s3189_s3 }
0x110d   :  { %v1560_v20 = vpop.xlane.xlu0 %1559 }
0x110e   :  { %v1561_v21 = vsub.f32 %v1557_v13, %v1560_v20 }
0x1110   :  { %v1562_v22 = vmul.f32 1.442695, %v1561_v21 }
0x1111   :  { %v1727_v23 = vpop.xlane.xlu1 %1726 }
0x1112   :  { %3159 = vpow2.f32 %v1562_v22  ;;  %v1728_v24 = vsub.f32 %v1724_v18, %v1727_v23 }
0x1114   :  { %v1729_v25 = vmul.f32 1.442695, %v1728_v24 }
0x1115   :  { %v1737_v37 = vpop.permute.xlu1 %1736 }
0x1116   :  { %3161 = vpow2.f32 %v1729_v25 }
0x1119   :  { %v1961_v45 = vpop.permute.xlu1 %1960 }
0x111c   :  { %v3160_v27 = vpop.eup %3159 }
0x111d   :  { %v1564_v28 = vsel %vm176_vm2, %v3160_v27, 0.0 }
0x111e   :  { %1565 = vadd.xlane.f32.xlu0 %v1564_v28 }
0x1120   :  { %v3162_v29 = vpop.eup %3161 }
0x1121   :  { %v1731_v30 = vsel %vm176_vm2, %v3162_v29, 0.0 }
0x1122   :  { %1732 = vadd.xlane.f32.xlu0 %v1731_v30 }
0x1138   :  { %1569 = vrot.lane.b32.xlu0 %v3539_v2, %s3188_s2  ;;  %s3750_s2 = smov 48  }
0x113c   :  { %1958 = vrot.lane.b32.xlu0 %v3539_v2, %s3190_s22 }
0x11ab   :  { %v1566_v32 = vpop.xlane.xlu0 %1565 }
0x11ac   :  { %3163 = vrcp.f32 %v1566_v32 }
0x11af   :  { %v1733_v33 = vpop.xlane.xlu0 %1732 }
0x11b0   :  { %3165 = vrcp.f32 %v1733_v33 }
0x11b3   :  { %v1570_v34 = vpop.permute.xlu0 %1569 }
0x11b4   :  { %2988 = vmatpush3.msra.mxu1 %v1570_v34 }
0x11b5   :  { %2997 = vmatprep.subr.mxu1 %v3183_v4 }
0x11b6   :  { %v3164_v35 = vpop.eup %3163 }
0x11b7   :  { %v1568_v36 = vmul.f32 %v3164_v35, %v3160_v27  ;;  %v1959_v46 = vpop.permute.xlu0 %1958 }
0x11b9   :  { %2990 = vmatmul.mubr.msk.f32.vlgmr.msra.gmra.mrb[14].mxu1 %vm176_vm2, %v1568_v36 }
0x11ba   :  { %v3166_v38 = vpop.eup %3165  ;;  %2998 = vmatpush3.msra.mxu1 %v1737_v37  ;;  %2999 = vmatprep.mubr.msk.f32.mxu1 %vm3182_vm0, %v3183_v4 }
0x11bb   :  { %v1735_v39 = vmul.f32 %v3166_v38, %v3162_v29  ;;  %3007 = vmatprep.subr.mxu1 %v3183_v4 }
0x11bd   :  { %3000 = vmatmul.mubr.msk.f32.vlgmr.msra.gmra.mrb[16].mxu1 %vm176_vm2, %v1735_v39 }
0x11be   :  { %3009 = vmatprep.mubr.msk.f32.mxu1 %vm3182_vm0, %v3183_v4  ;;  %3008 = vmatpush3.msra.mxu1 %v2738_v40 }
0x11bf   :  { %3017 = vmatprep.subr.mxu1 %v3183_v4 }
0x128c   :  { %v1641_v41 = vpop.f32.mrb[14].mxu1 }
0x128d   :  { %v2991_v42 = vpop.f32.mrb[15].mxu1  ;;  %3010 = vmatmul.mubr.msk.f32.vlgmr.msra.gmra.mrb[18].mxu1 %vm176_vm2, %v1641_v41  ;;  %v2762_v41 = vld [vmem:[%s3725_s12 + $0x20] sm:$0xff] }
0x128e   :  { %3019 = vmatprep.mubr.msk.f32.mxu1 %vm3182_vm0, %v3183_v4 }
0x1290   :  { %v1808_v44 = vpop.f32.mrb[16].mxu1 }
0x1291   :  { %v3001_v12 = vpop.f32.mrb[17].mxu1  ;;  %3005 = vmatmul.mubr.msk.f32.vlgmr.msra.gmra.mrb[22].mxu0 %vm176_vm2, %v1808_v44  ;;  %v2764_v44 = vld [vmem:[%s3725_s12 + $0x30] sm:$0xff] }
0x1292   :  { %3013 = vmatpush3.xpose.msk.msra.mxu0 %vm176_vm2, %v1961_v45  ;;  %3014 = vmatprep.mubr.msk.f32.mxu0 %vm3182_vm0, %v3183_v4  ;;  %v2765_v45 = vld [vmem:[%s3725_s12 + $0x38] sm:$0xff] }
0x1293   :  { %3022 = vmatprep.subr.mxu0 %v3183_v4  ;;  %v3106_v12 = vpack.c.bf16 %v2765_v45, %v2764_v44 }
0x1295   :  { %3015 = vmatmul.mubr.msk.f32.vlgmr.msra.gmra.mrb[24].mxu0 %vm176_vm2, %v1959_v46 }
0x1296   :  { %3024 = vmatprep.mubr.msk.f32.mxu0 %vm3182_vm0, %v3183_v4  ;;  %3023 = vmatpush3.msra.mxu0 %v2740_v6 }
0x1297   :  { %3032 = vmatprep.subr.mxu0 %v3183_v4 }
0x1360   :  { %v1954_v47 = vpop.f32.mrb[18].mxu1 }
0x1361   :  { %v3011_v48 = vpop.f32.mrb[19].mxu1 }
0x1364   :  { %v1881_v49 = vpop.f32.mrb[22].mxu0 }
0x1365   :  { %v1955_v50 = vadd.f32 %v1954_v47, %v1881_v49  ;;  %v3006_v51 = vpop.f32.mrb[23].mxu0 }
0x1368   :  { %v2032_v52 = vpop.f32.mrb[24].mxu0 }
0x1369   :  { %v2036_v53 = vmul.f32 0.35355338, %v2032_v52  ;;  %v3016_v54 = vpop.f32.mrb[25].mxu0  ;;  %v2777_v52 = vld [vmem:[%s3727_s11 + $0x1] ss:$0 sm:$0xff] }
0x136b   :  { %v2037_v55 = vadd.f32 %v2036_v53, %v3352_v26 }
0x136d   :  { %v2038_v56 = vsel %vm176_vm2, %v2037_v55, -inf }
0x136e   :  { %2039 = vmax.xlane.f32.xlu1 %v2038_v56  ;;  %v2768_v56 = vld [vmem:[%s3728_s14 + $0x48] sm:$0xff] }
0x137f   :  { %2201 = vrot.lane.b32.xlu1 %v3539_v2, %s3748_s28 }
0x1383   :  { %2199 = vrot.lane.b32.xlu1 %v3539_v2, %s3749_s19 }
0x13fb   :  { %v2040_v57 = vpop.xlane.xlu1 %2039 }
0x13fc   :  { %v2041_v58 = vsub.f32 %v2037_v55, %v2040_v57  ;;  %v2767_v55 = vld [vmem:[%s3728_s14 + $0x40] sm:$0xff] }
0x13fd   :  { %v3109_v57 = vpack.c.bf16 %v2768_v56, %v2767_v55 }
0x13fe   :  { %v2042_v59 = vmul.f32 1.442695, %v2041_v58  ;;  %v2769_v58 = vld [vmem:[%s3728_s14 + $0x50] sm:$0xff] }
0x13ff   :  { %v2202_v1 = vpop.permute.xlu1 %2201 }
0x1400   :  { %3167 = vpow2.f32 %v2042_v59  ;;  %v2770_v59 = vld [vmem:[%s3728_s14 + $0x58] sm:$0xff] }
0x1403   :  { %v2200_v5 = vpop.permute.xlu1 %2199 }
0x140a   :  { %v3168_v8 = vpop.eup %3167 }
0x140b   :  { %v2044_v60 = vsel %vm176_vm2, %v3168_v8, 0.0 }
0x140c   :  { %2045 = vadd.xlane.f32.xlu0 %v2044_v60  ;;  %v2771_v60 = vld [vmem:[%s3728_s14 + $0x60] sm:$0xff] }
0x1422   :  { %2049 = vrot.lane.b32.xlu0 %v3539_v2, %s3750_s2 }
0x1499   :  { %v2046_v61 = vpop.xlane.xlu0 %2045 }
0x149a   :  { %3169 = vrcp.f32 %v2046_v61  ;;  %v2772_v61 = vld [vmem:[%s3728_s14 + $0x68] sm:$0xff] }
0x149d   :  { %v2050_v62 = vpop.permute.xlu0 %2049 }
0x149e   :  { %3018 = vmatpush3.msra.mxu1 %v2050_v62  ;;  %v3115_v62 = vpack.c.bf16 %v2772_v61, %v2771_v60 }
0x149f   :  { %3027 = vmatprep.subr.mxu1 %v3183_v4 }
0x14a4   :  { %v3170_v63 = vpop.eup %3169 }
0x14a5   :  { %v2048_v3 = vmul.f32 %v3170_v63, %v3168_v8  ;;  %v3112_v8 = vpack.c.bf16 %v2770_v59, %v2769_v58  ;;  %v2773_v63 = vld [vmem:[%s3728_s14 + $0x70] sm:$0xff] }
0x14a7   :  { %3020 = vmatmul.mubr.msk.f32.vlgmr.msra.gmra.mrb[20].mxu1 %vm176_vm2, %v2048_v3 }
0x14a8   :  { %3028 = vmatpush3.xpose.msk.msra.mxu1 %vm176_vm2, %v2202_v1  ;;  %3029 = vmatprep.mubr.msk.f32.mxu1 %vm3182_vm0, %v3183_v4  ;;  %v2774_v1 = vld [vmem:[%s3728_s14 + $0x78] sm:$0xff] }
0x14a9   :  { %3037 = vmatprep.subr.mxu1 %v3183_v4  ;;  %v3118_v3 = vpack.c.bf16 %v2774_v1, %v2773_v63 }
0x14ab   :  { %3030 = vmatmul.mubr.msk.f32.vlgmr.msra.gmra.mrb[22].mxu1 %vm176_vm2, %v2200_v5  ;;  %v2778_v5 = vld [vmem:[%s3729_s13 + $0x1] ss:$0 sm:$0xff] }
0x14ac   :  { %3039 = vmatprep.mubr.msk.f32.mxu1 %vm3182_vm0, %v3183_v4 }
0x157a   :  { %v2121_v7 = vpop.f32.mrb[20].mxu1 }
0x157b   :  { %v3021_v9 = vpop.f32.mrb[21].mxu1  ;;  %3025 = vmatmul.mubr.msk.f32.vlgmr.msra.gmra.mrb[26].mxu0 %vm176_vm2, %v2121_v7 }
0x157c   :  { %3034 = vmatprep.mubr.msk.f32.mxu0 %vm3182_vm0, %v3183_v4 }
0x157e   :  { %v2273_v10 = vpop.f32.mrb[22].mxu1 }
0x157f   :  { %v2277_v11 = vmul.f32 0.35355338, %v2273_v10  ;;  %v3031_v13 = vpop.f32.mrb[23].mxu1 }
0x1581   :  { %v2278_v14 = vadd.f32 %v2277_v11, %v3352_v26  ;;  %v2741_v26 = vld [vmem:[%s3723_s8 + $0x38] sm:$0xff] }
0x1582   :  { %3038 = vmatpush3.msra.mxu1 %v2741_v26 }
0x1583   :  { %v2279_v15 = vsel %vm176_vm2, %v2278_v14, -inf  ;;  %3108 = vmatprep.subr.bf16.mxu1 %v3181_v0 }
0x1584   :  { %2280 = vmax.xlane.f32.xlu0 %v2279_v15 }
0x159a   :  { %2290 = vrot.lane.b32.xlu0 %v3539_v2, %s3751_s7 }
0x1611   :  { %v2281_v16 = vpop.xlane.xlu0 %2280 }
0x1612   :  { %v2282_v17 = vsub.f32 %v2278_v14, %v2281_v16 }
0x1614   :  { %v2283_v18 = vmul.f32 1.442695, %v2282_v17 }
0x1615   :  { %v2291_v19 = vpop.permute.xlu0 %2290 }
0x1616   :  { %3171 = vpow2.f32 %v2283_v18  ;;  %3033 = vmatpush3.msra.mxu0 %v2291_v19 }
0x1617   :  { %3102 = vmatprep.subr.bf16.mxu0 %v3181_v0 }
0x1620   :  { %v3172_v20 = vpop.eup %3171 }
0x1621   :  { %v2285_v21 = vsel %vm176_vm2, %v3172_v20, 0.0 }
0x1622   :  { %2286 = vadd.xlane.f32.xlu1 %v2285_v21 }
0x164e   :  { %v2194_v2 = vpop.f32.mrb[26].mxu0 }
0x164f   :  { %v2198_v22 = vadd.f32 %v2194_v2, %v1955_v50  ;;  %v3026_v23 = vpop.f32.mrb[27].mxu0  ;;  %v2776_v50 = vld [vmem:[%s3726_s10 + $0x1] ss:$0 sm:$0xff] }
0x16af   :  { %v2287_v24 = vpop.xlane.xlu1 %2286 }
0x16b0   :  { %3173 = vrcp.f32 %v2287_v24 }
0x16ba   :  { %v3174_v25 = vpop.eup %3173 }
0x16bb   :  { %v2289_v27 = vmul.f32 %v3174_v25, %v3172_v20 }
0x16bd   :  { %3035 = vmatmul.mubr.msk.f32.vlgmr.msra.gmra.mrb[28].mxu0 %vm176_vm2, %v2289_v27 }
0x16be   :  { %3050 = vmatprep.mubr.msk.f32.mxu0 %vm3182_vm0, %v3183_v4 }
0x1790   :  { %v2362_v28 = vpop.f32.mrb[28].mxu0 }
0x1791   :  { %v3036_v29 = vpop.f32.mrb[29].mxu0  ;;  %3040 = vmatmul.mubr.msk.f32.vlgmr.msra.gmra.mrb[24].mxu1 %vm176_vm2, %v2362_v28 }
0x1792   :  { %3069 = vmatprep.mubr.msk.f32.mxu1 %vm3182_vm0, %v3183_v4  ;;  %3110 = vmatpush3.bf16.msra.mxu1 %v3109_v57 }
0x1793   :  { %3111 = vmatprep.subr.bf16.mxu1 %v3181_v0 }
0x1796   :  { %3113 = vmatpush3.bf16.msra.mxu1 %v3112_v8 }
0x1797   :  { %3114 = vmatprep.subr.bf16.mxu1 %v3181_v0 }
0x179a   :  { %3116 = vmatpush3.bf16.msra.mxu1 %v3115_v62 }
0x179b   :  { %3117 = vmatprep.subr.bf16.mxu1 %v3181_v0 }
0x179e   :  { %3119 = vmatpush3.bf16.msra.mxu1 %v3118_v3 }
0x1864   :  { %v2435_v30 = vpop.f32.mrb[24].mxu1 }
0x1865   :  { %v2439_v32 = vadd.f32 %v2435_v30, %v2198_v22  ;;  %v3041_v33 = vpop.f32.mrb[25].mxu1 }
0x1866   :  { %v2782_v33 = vld [vmem:[%s3733_s16] ss:$0 sm:$0xff] }
0x1867   :  { %v2448_v34 = vadd.f32 %v2759_v31, %v2439_v32 }
0x1869   :  { %v3644_v35 = vadd.f32 %v2448_v34, %v3507_v43  ;;  %v2763_v43 = vld [vmem:[%s3725_s12 + $0x28] sm:$0xff] }
0x186a   :  { %v3103_v42 = vpack.c.bf16 %v2763_v43, %v2762_v41 }
0x186b   :  { %v2472_v36 = vsel %vm95_vm1, %v3644_v35, 0.0 }
0x186c   :  { %2473 = vadd.xlane.f32.xlu1 %v2472_v36  ;;  %3104 = vmatpush3.bf16.msra.mxu0 %v3103_v42 }
0x186d   :  { %3105 = vmatprep.subr.bf16.mxu0 %v3181_v0  ;;  %v2780_v0 = vld [vmem:[%s3730_s15 + $0x1] ss:$0 sm:$0xff] }
0x1870   :  { %3107 = vmatpush3.bf16.msra.mxu0 %v3106_v12 }
0x18f9   :  { %v2474_v37 = vpop.xlane.xlu1 %2473 }
0x18fa   :  { %v2475_v38 = vmul.f32 0.03125, %v2474_v37 }
0x18fc   :  { %v2476_v39 = vsub.f32 %v3644_v35, %v2475_v38 }
0x18fe   :  { %v2477_v4 = vmul.f32 %v2476_v39, %v2476_v39 }
0x1900   :  { %v2478_v40 = vsel %vm95_vm1, %v2477_v4, 0.0 }
0x1901   :  { %2479 = vadd.xlane.f32.xlu1 %v2478_v40 }
0x198e   :  { %v2480_v46 = vpop.xlane.xlu1 %2479 }
0x198f   :  { %v2481_v47 = vmul.f32 0.03125, %v2480_v46 }
0x1991   :  { %v2482_v48 = vadd.f32 1e-06, %v2481_v47 }
0x1993   :  { %3175 = vrsqrt.f32 %v2482_v48 }
0x199d   :  { %v3176_v49 = vpop.eup %3175 }
0x199e   :  { %v2484_v51 = vmul.f32 %v3176_v49, %v2476_v39 }
0x19a0   :  { %v2491_v53 = vmul.f32 %v2776_v50, %v2484_v51 }
0x19a2   :  { %v2498_v54 = vadd.f32 %v2777_v52, %v2491_v53 }
0x19a4   :  { %3051 = vmatmul.mubr.msk.f32.vlgmr.msra.gmra.mrb[30].mxu0 %vm95_vm1, %v2498_v54 }
0x1a77   :  { %v2574_v6 = vpop.f32.mrb[30].mxu0 }
0x1a78   :  { %v2575_v7 = vadd.f32 %v2778_v5, %v2574_v6  ;;  %v3052_v9 = vpop.f32.mrb[31].mxu0 }
0x1a7a   :  { %v2579_v10 = vmul.f32 0.044715, %v2575_v7  ;;  %v2578_v17 = vmul.f32 0.5, %v2575_v7 }
0x1a7c   :  { %v2580_v11 = vmul.f32 %v2579_v10, %v2575_v7 }
0x1a7e   :  { %v2581_v13 = vmul.f32 %v2580_v11, %v2575_v7 }
0x1a80   :  { %v2582_v14 = vadd.f32 %v2581_v13, %v2575_v7 }
0x1a82   :  { %v2583_v15 = vmul.f32 0.7978846, %v2582_v14 }
0x1a84   :  { %3177 = vtanh.f32 %v2583_v15 }
0x1a8e   :  { %v3178_v16 = vpop.eup %3177 }
0x1a8f   :  { %v2585_v18 = vadd.f32 1.0, %v3178_v16 }
0x1a91   :  { %v2586_v19 = vmul.f32 %v2585_v18, %v2578_v17 }
0x1a93   :  { %3070 = vmatmul.mubr.msk.f32.vlgmr.msra.gmra.mrb[26].mxu1 %vm1282_vm7, %v2586_v19 }
0x1b66   :  { %v2662_v20 = vpop.f32.mrb[26].mxu1 }
0x1b67   :  { %v2663_v21 = vadd.f32 %v2780_v0, %v2662_v20  ;;  %v3071_v26 = vpop.f32.mrb[27].mxu1 }
0x1b69   :  { %v2666_v2 = vadd.f32 %v2663_v21, %v3644_v35  ;;  %v2783_v35 = vld [vmem:[%s3734_s17] ss:$0 sm:$0xff] }
0x1b6b   :  { %v2669_v22 = vsel %vm95_vm1, %v2666_v2, 0.0 }
0x1b6c   :  { %2670 = vadd.xlane.f32.xlu1 %v2669_v22 }
0x1bf9   :  { %v2671_v23 = vpop.xlane.xlu1 %2670 }
0x1bfa   :  { %v2672_v24 = vmul.f32 0.03125, %v2671_v23 }
0x1bfc   :  { %v2673_v25 = vsub.f32 %v2666_v2, %v2672_v24 }
0x1bfe   :  { %v2674_v27 = vmul.f32 %v2673_v25, %v2673_v25 }
0x1c00   :  { %v2675_v28 = vsel %vm95_vm1, %v2674_v27, 0.0 }
0x1c01   :  { %2676 = vadd.xlane.f32.xlu1 %v2675_v28 }
0x1c8e   :  { %v2677_v29 = vpop.xlane.xlu1 %2676 }
0x1c8f   :  { %v2678_v30 = vmul.f32 0.03125, %v2677_v29 }
0x1c91   :  { %v2679_v31 = vadd.f32 1e-06, %v2678_v30 }
0x1c93   :  { %3179 = vrsqrt.f32 %v2679_v31 }
0x1c9d   :  { %v3180_v32 = vpop.eup %3179 }
0x1c9e   :  { %v2681_v34 = vmul.f32 %v3180_v32, %v2673_v25 }
0x1ca0   :  { %v2688_v36 = vmul.f32 %v2782_v33, %v2681_v34 }
0x1ca2   :  { %v2695_v37 = vadd.f32 %v2783_v35, %v2688_v36 }
0x1ca4   :  { %2696 = vst.msk [vmem:[%s3735_s18] sm:$0xff] %vm95_vm1, %v2695_v37 }

// kernel: model_forward.3
= control target key start
LH: loop header
LB: loop body
LE: loop exit
PB: predicated region body
PF: predicated region fallthrough
CT: control target
= control target key end

     0   :  { %vm145_vm0 = vcmask 261120   ;;  %vm281_vm1 = vcmask 64512   ;;  %s7223_s24 = smov 96   ;;  %v7224_v28 = vmov 0   ;;  %v117_v48 = vlaneseq  ;;  %s7228_s30 = smov 120   ;;  %s8733_s6 = inlined_call_operand.vmem [shape: f32[2,32,96], index: 6, kind: input, shape index: {}]   ;;  %s8734_s0 = inlined_call_operand.vmem [shape: f32[48,32], index: 0, kind: input, shape index: {}]   ;;  %s8735_s7 = inlined_call_operand.vmem [shape: f32[2,1,96], index: 7, kind: input, shape index: {}]   ;;  %s8736_s1 = inlined_call_operand.vmem [shape: f32[48,1], index: 1, kind: input, shape index: {}]   ;;  %s8737_s3 = inlined_call_operand.vmem [shape: f32[1,48], index: 3, kind: input, shape index: {}]   ;;  %s8738_s2 = inlined_call_operand.vmem [shape: f32[1,48], index: 2, kind: input, shape index: {}]   ;;  %s8739_s8 = inlined_call_operand.vmem [shape: f32[2,32,32], index: 8, kind: input, shape index: {}]   ;;  %s8740_s9 = inlined_call_operand.vmem [shape: f32[2,1,32], index: 9, kind: input, shape index: {}]   ;;  %s8741_s12 = inlined_call_operand.vmem [shape: f32[2,32,64], index: 12, kind: input, shape index: {}]   ;;  %s8742_s10 = inlined_call_operand.vmem [shape: f32[2,1,32], index: 10, kind: input, shape index: {}]   ;;  %s8743_s11 = inlined_call_operand.vmem [shape: f32[2,1,32], index: 11, kind: input, shape index: {}]   ;;  %s8744_s14 = inlined_call_operand.vmem [shape: f32[2,64,32], index: 14, kind: input, shape index: {}]   ;;  %s8745_s13 = inlined_call_operand.vmem [shape: f32[2,1,64], index: 13, kind: input, shape index: {}]   ;;  %s8746_s15 = inlined_call_operand.vmem [shape: f32[2,1,32], index: 15, kind: input, shape index: {}]   ;;  %s8747_s4 = inlined_call_operand.vmem [shape: f32[2,1,32], index: 4, kind: input, shape index: {}]   ;;  %s8748_s5 = inlined_call_operand.vmem [shape: f32[2,1,32], index: 5, kind: input, shape index: {}]   ;;  %s8749_s16 = inlined_call_operand.vmem [shape: f32[1,32], index: 16, kind: input, shape index: {}]   ;;  %s8750_s17 = inlined_call_operand.vmem [shape: f32[1,32], index: 17, kind: input, shape index: {}]   ;;  %s8751_s18 = inlined_call_operand.vmem [shape: f32[48,32], index: 18, kind: output, shape index: {}]  }
   0x1   :  { %8761 = sst [smem:[#allocation2_spill]] %s8733_s6  ;;  %6726 = vset.pattern.permute.xlu1 %v7224_v28  ;;  %v65_v29 = vld [vmem:[%s8736_s1] sm:$0xff]  ;;  %6727 = vset.pattern.permute.xlu0 %v7224_v28  ;;  %v66_v30 = vld [vmem:[%s8736_s1 + $0x8] sm:$0xff]  ;;  %v67_v31 = vld [vmem:[%s8736_s1 + $0x10] sm:$0xff]  ;;  %v7225_v59 = vmov 0.0   ;;  %vm413_vm10 = vcmask 392192  }
   0x2   :  { %8762 = sst [smem:[#allocation3_spill]] %s8734_s0  ;;  %s8764_s29 = sld [smem:[#allocation2_spill]]  ;;  %v69_v32 = vld [vmem:[%s8736_s1 + $0x20] sm:$0xff]  ;;  %v68_v33 = vld [vmem:[%s8736_s1 + $0x18] sm:$0xff]  ;;  %v70_v34 = vld [vmem:[%s8736_s1 + $0x28] sm:$0xff]  ;;  %v118_v50 = vshrl.u32 %v117_v48, 7 }
   0x3   :  { %8763 = sst [smem:[#allocation4_spill]] %s8735_s7  ;;  %s8765_s23 = sld [smem:[#allocation3_spill]]  ;;  %vm7422_vm2 = vmpackc.low %vm281_vm1, %vm281_vm1  ;;  %v114_v49 = vld [vmem:[%s8737_s3] sm:$0x1] }
   0x4   :  { %s8766_s7 = sld [smem:[#allocation4_spill]]  ;;  %vm115_vm3 = vcmp.gt.f32.partialorder %v114_v49, 0.5  ;;  %v119_v52 = vsub.s32 0, %v118_v50  ;;  %v5227_v57 = vld [vmem:[%s8738_s2] ss:$0 sm:$0xff]  ;;  %s7226_s2 = smov 64  }
   0x5   :  { %v116_v53 = vsel %vm115_vm3, 1, %v7224_v28  ;;  %s7227_s3 = smov 88   ;;  %s7229_s6 = smov 80  }
   0x6   :  { %v120_v55 = vrot.slane %v116_v53, %v119_v52  ;;  %s7230_s19 = smov 112   ;;  %s7231_s0 = smov 56  }
   0x7   :  { %s7232_s20 = smov 72   ;;  %s8759_s21 = smov 104  }
   0x8   :  { %v134_v0 = vld [vmem:[%s8764_s29] sm:$0xff]  ;;  %v135_v1 = vld [vmem:[%s8764_s29 + $0x8] sm:$0xff]  ;;  %v136_v2 = vld [vmem:[%s8764_s29 + $0x10] sm:$0xff]  ;;  %vm121_vm5 = vcmp.eq.s32.totalorder %v120_v55, 1  ;;  %s8757_s1 = smov 48   ;;  %s8755_s28 = smov 40  }
   0x9   :  { %v6358_v3 = vpack.c.bf16 %v135_v1, %v134_v0  ;;  %v137_v4 = vld [vmem:[%s8764_s29 + $0x18] sm:$0xff]  ;;  %v59_v5 = vld [vmem:[%s8765_s23] sm:$0xff]  ;;  %v60_v7 = vld [vmem:[%s8765_s23 + $0x8] sm:$0xff] }
   0xa   :  { %v6362_v6 = vpack.c.bf16 %v137_v4, %v136_v2  ;;  %5824 = vmatprep.mubr.msk.f32.mxu0 %vm145_vm0, %v59_v5  ;;  %v61_v8 = vld [vmem:[%s8765_s23 + $0x10] sm:$0xff]  ;;  %v62_v9 = vld [vmem:[%s8765_s23 + $0x18] sm:$0xff]  ;;  %v63_v10 = vld [vmem:[%s8765_s23 + $0x20] sm:$0xff] }
   0xb   :  { %6359 = vmatprep.subr.bf16.mxu0 %v6358_v3  ;;  %v64_v11 = vld [vmem:[%s8765_s23 + $0x28] sm:$0xff]  ;;  %v5228_v12 = vld [vmem:[%s8766_s7] ss:$0 sm:$0xff] }
   0xc   :  { %6361 = vmatpush3.bf16.msra.mxu0 %v6358_v3 }
   0xd   :  { %6363 = vmatprep.subr.bf16.mxu0 %v6362_v6 }
  0x10   :  { %6365 = vmatpush3.bf16.msra.mxu0 %v6362_v6 }
  0x13   :  { %5825 = vmatmul.mubr.msk.f32.vlgmr.msra.gmra.mrb[0].mxu0 %vm145_vm0, %v60_v7 }
  0x14   :  { %5827 = vmatprep.mubr.msk.f32.mxu0 %vm145_vm0, %v61_v8 }
  0x17   :  { %5828 = vmatmul.mubr.msk.f32.gmra.mrb[2].mxu0 %vm145_vm0, %v62_v9 }
  0x18   :  { %5830 = vmatprep.mubr.msk.f32.mxu0 %vm145_vm0, %v63_v10 }
  0x1b   :  { %5831 = vmatmul.mubr.msk.f32.gmra.mrb[4].mxu0 %vm145_vm0, %v64_v11 }
  0xe6   :  { %v5826_v13 = vpop.f32.mrb[0].mxu0 }
  0xe7   :  { %v7370_v14 = vadd.f32 %v5826_v13, %v5228_v12  ;;  %v230_v15 = vpop.f32.mrb[1].mxu0 }
  0xe8   :  { %v7372_v16 = vadd.f32 %v5228_v12, %v230_v15 }
  0xea   :  { %5845 = vmatprep.mubr.msk.f32.mxu1 %vm281_vm1, %v7372_v16  ;;  %v7378_v17 = vpack.i.bf16 %v7370_v14, %v7372_v16  ;;  %v5829_v18 = vpop.f32.mrb[2].mxu0 }
  0xeb   :  { %v7380_v19 = vadd.f32 %v5829_v18, %v5228_v12  ;;  %v240_v20 = vpop.f32.mrb[3].mxu0 }
  0xec   :  { %6712 = vrot.lane.b32.xlu0 %v7378_v17, %s7223_s24  ;;  %v7384_v21 = vadd.f32 %v5228_v12, %v240_v20 }
  0xee   :  { %v7388_v22 = vpack.i.bf16 %v7380_v19, %v7384_v21  ;;  %v5832_v23 = vpop.f32.mrb[4].mxu0 }
  0xef   :  { %v7390_v24 = vadd.f32 %v5832_v23, %v5228_v12  ;;  %v250_v25 = vpop.f32.mrb[5].mxu0 }
  0xf0   :  { %6717 = vrot.lane.b32.xlu0 %v7388_v22, %s7223_s24  ;;  %v7394_v26 = vadd.f32 %v5228_v12, %v250_v25 }
  0xf2   :  { %v7398_v27 = vpack.i.bf16 %v7390_v24, %v7394_v26 }
  0xf4   :  { %6722 = vrot.lane.b32.xlu1 %v7398_v27, %s7223_s24  ;;  %79 = vperm.xlu0 %6727, %v66_v30  }
  0xf8   :  { %74 = vperm.xlu1 %6726, %v65_v29   ;;  %94 = vperm.xlu0 %6727, %v69_v32  }
  0xfc   :  { %84 = vperm.xlu1 %6726, %v67_v31  }
 0x100   :  { %89 = vperm.xlu1 %6726, %v68_v33  }
 0x104   :  { %99 = vperm.xlu1 %6726, %v70_v34  }
 0x15e   :  { %v6713_v35 = vpop.permute.xlu0 %6712 }
 0x15f   :  { %v6715_v36 = vunpack.i.h.bf16 %v6713_v35  ;;  %v6714_v37 = vunpack.i.l.bf16 %v6713_v35 }
 0x161   :  { %v6366_v39 = vpack.c.bf16 %v6715_v36, %v6714_v37 }
 0x162   :  { %v6718_v40 = vpop.permute.xlu0 %6717 }
 0x163   :  { %6368 = vmatprep.subr.msk.bf16.mxu1 %vm7422_vm2, %v6366_v39  ;;  %v6720_v41 = vunpack.i.h.bf16 %v6718_v40  ;;  %v6719_v42 = vunpack.i.l.bf16 %v6718_v40 }
 0x164   :  { %6371 = vmatpush3.bf16.xpose.msk.msra.mxu1 %vm7422_vm2, %v6366_v39 }
 0x165   :  { %v6372_v43 = vpack.c.bf16 %v6720_v41, %v6719_v42 }
 0x166   :  { %v6723_v44 = vpop.permute.xlu1 %6722 }
 0x167   :  { %6374 = vmatprep.subr.msk.bf16.mxu1 %vm7422_vm2, %v6372_v43  ;;  %v6725_v45 = vunpack.i.h.bf16 %v6723_v44  ;;  %v6724_v46 = vunpack.i.l.bf16 %v6723_v44 }
 0x169   :  { %v6378_v47 = vpack.c.bf16 %v6725_v45, %v6724_v46 }
 0x16c   :  { %6377 = vmatpush3.bf16.xpose.msk.msra.mxu1 %vm7422_vm2, %v6372_v43 }
 0x16d   :  { %6380 = vmatprep.subr.msk.bf16.mxu1 %vm7422_vm2, %v6378_v47 }
 0x173   :  { %v80_v54 = vpop.permute.xlu0 %79 }
 0x174   :  { %6383 = vmatpush3.bf16.xpose.msk.msra.mxu1 %vm7422_vm2, %v6378_v47  ;;  %vm109_vm4 = vcmp.ne.f32.partialorder %v80_v54, %v5227_v57 }
 0x175   :  { %vm123_vm7 = vmor %vm109_vm4, %vm121_vm5 }
 0x176   :  { %v7456_v60 = vsel %vm123_vm7, -1e+09, %v7225_v59 }
 0x177   :  { %v75_v51 = vpop.permute.xlu1 %74  ;;  %v95_v1 = vpop.permute.xlu0 %94 }
 0x178   :  { %vm108_vm6 = vcmp.ne.f32.partialorder %v75_v51, %v5227_v57  ;;  %vm112_vm13 = vcmp.ne.f32.partialorder %v95_v1, %v5227_v57 }
 0x179   :  { %vm122_vm8 = vmor %vm108_vm6, %vm121_vm5 }
 0x17a   :  { %v7458_v2 = vsel %vm122_vm8, -1e+09, %v7225_v59  ;;  %vm126_vm3 = vmor %vm112_vm13, %vm121_vm5 }
 0x17b   :  { %5846 = vmatmul.mubr.msk.f32.vlgmr.msra.gmra.mrb[0].mxu1 %vm281_vm1, %v7370_v14  ;;  %v85_v56 = vpop.permute.xlu1 %84  ;;  %v7475_v30 = vsel %vm126_vm3, -1e+09, %v7225_v59 }
 0x17c   :  { %5848 = vmatprep.mubr.msk.f32.mxu1 %vm281_vm1, %v7384_v21  ;;  %vm110_vm11 = vcmp.ne.f32.partialorder %v85_v56, %v5227_v57 }
 0x17d   :  { %vm124_vm14 = vmor %vm110_vm11, %vm121_vm5 }
 0x17e   :  { %v7470_v18 = vsel %vm124_vm14, -1e+09, %v7225_v59 }
 0x17f   :  { %5849 = vmatmul.mubr.msk.f32.gmra.mrb[2].mxu1 %vm281_vm1, %v7380_v19  ;;  %v90_v58 = vpop.permute.xlu1 %89 }
 0x180   :  { %5851 = vmatprep.mubr.msk.f32.mxu1 %vm281_vm1, %v7394_v26  ;;  %vm111_vm9 = vcmp.ne.f32.partialorder %v90_v58, %v5227_v57 }
 0x181   :  { %vm125_vm12 = vmor %vm111_vm9, %vm121_vm5 }
 0x182   :  { %v7465_v10 = vsel %vm125_vm12, -1e+09, %v7225_v59 }
 0x183   :  { %5852 = vmatmul.mubr.msk.f32.gmra.mrb[4].mxu1 %vm281_vm1, %v7390_v24  ;;  %v100_v4 = vpop.permute.xlu1 %99 }
 0x184   :  { %vm113_vm15 = vcmp.ne.f32.partialorder %v100_v4, %v5227_v57 }
 0x185   :  { %vm127_vm4 = vmor %vm113_vm15, %vm121_vm5  ;;  %vm2448_vm5 = vcmask 523264  }
 0x186   :  { %v7478_v32 = vsel %vm127_vm4, -1e+09, %v7225_v59 }
 0x24e   :  { %v5847_v61 = vpop.f32.mrb[0].mxu1 }
 0x24f   :  { %v402_v62 = vmul.f32 0.35355338, %v5847_v61  ;;  %v372_v63 = vpop.f32.mrb[1].mxu1 }
 0x250   :  { %v401_v0 = vmul.f32 0.35355338, %v372_v63 }
 0x251   :  { %v408_v3 = vadd.f32 %v402_v62, %v7456_v60 }
 0x252   :  { %v5850_v5 = vpop.f32.mrb[2].mxu1  ;;  %v407_v6 = vadd.f32 %v401_v0, %v7458_v2 }
 0x253   :  { %v404_v7 = vmul.f32 0.35355338, %v5850_v5  ;;  %v382_v8 = vpop.f32.mrb[3].mxu1  ;;  %v417_v9 = vsel %vm413_vm10, %v408_v3, -inf }
 0x254   :  { %v403_v11 = vmul.f32 0.35355338, %v382_v8  ;;  %418 = vmax.xlane.f32.xlu1 %v417_v9  ;;  %v414_v12 = vsel %vm413_vm10, %v407_v6, -inf }
 0x255   :  { %415 = vmax.xlane.f32.xlu0 %v414_v12  ;;  %v410_v13 = vadd.f32 %v404_v7, %v7465_v10 }
 0x256   :  { %v5853_v15 = vpop.f32.mrb[4].mxu1  ;;  %v409_v29 = vadd.f32 %v403_v11, %v7470_v18 }
 0x257   :  { %v392_v20 = vpop.f32.mrb[5].mxu1  ;;  %v423_v23 = vsel %vm413_vm10, %v410_v13, -inf  ;;  %v406_v25 = vmul.f32 0.35355338, %v5853_v15 }
 0x258   :  { %v405_v28 = vmul.f32 0.35355338, %v392_v20  ;;  %v420_v33 = vsel %vm413_vm10, %v409_v29, -inf }
 0x259   :  { %424 = vmax.xlane.f32.xlu0 %v423_v23  ;;  %v412_v35 = vadd.f32 %v406_v25, %v7478_v32 }
 0x25a   :  { %v411_v31 = vadd.f32 %v405_v28, %v7475_v30 }
 0x25b   :  { %v429_v36 = vsel %vm413_vm10, %v412_v35, -inf }
 0x25c   :  { %v426_v34 = vsel %vm413_vm10, %v411_v31, -inf }
 0x25d   :  { %421 = vmax.xlane.f32.xlu0 %v420_v33  ;;  %427 = vmax.xlane.f32.xlu1 %v426_v34 }
 0x261   :  { %430 = vmax.xlane.f32.xlu0 %v429_v36 }
 0x26e   :  { %6729 = vrot.lane.b32.xlu1 %v7378_v17, %s7226_s2 }
 0x272   :  { %6739 = vrot.lane.b32.xlu1 %v7398_v27, %s7226_s2 }
 0x277   :  { %6734 = vrot.lane.b32.xlu0 %v7388_v22, %s7226_s2 }
 0x2e1   :  { %v419_v37 = vpop.xlane.xlu1 %418 }
 0x2e2   :  { %v433_v39 = vsub.f32 %v408_v3, %v419_v37  ;;  %v416_v40 = vpop.xlane.xlu0 %415 }
 0x2e3   :  { %v432_v41 = vsub.f32 %v407_v6, %v416_v40 }
 0x2e4   :  { %v440_v42 = vmul.f32 1.442695, %v433_v39 }
 0x2e5   :  { %v438_v43 = vmul.f32 1.442695, %v432_v41 }
 0x2e6   :  { %6953 = vpow2.f32 %v440_v42  ;;  %v425_v44 = vpop.xlane.xlu0 %424 }
 0x2e7   :  { %6955 = vpow2.f32 %v438_v43  ;;  %v435_v45 = vsub.f32 %v410_v13, %v425_v44 }
 0x2e9   :  { %v444_v46 = vmul.f32 1.442695, %v435_v45 }
 0x2ea   :  { %v422_v47 = vpop.xlane.xlu0 %421  ;;  %v428_v48 = vpop.xlane.xlu1 %427 }
 0x2eb   :  { %6957 = vpow2.f32 %v444_v46  ;;  %v434_v49 = vsub.f32 %v409_v29, %v422_v47  ;;  %v436_v51 = vsub.f32 %v411_v31, %v428_v48 }
 0x2ed   :  { %v442_v50 = vmul.f32 1.442695, %v434_v49  ;;  %v446_v59 = vmul.f32 1.442695, %v436_v51 }
 0x2ee   :  { %v431_v52 = vpop.xlane.xlu0 %430  ;;  %v6730_v53 = vpop.permute.xlu1 %6729 }
 0x2ef   :  { %6959 = vpow2.f32 %v442_v50  ;;  %v437_v54 = vsub.f32 %v412_v35, %v431_v52  ;;  %v6732_v55 = vunpack.i.h.bf16 %v6730_v53  ;;  %v6731_v56 = vunpack.i.l.bf16 %v6730_v53 }
 0x2f0   :  { %v7490_v57 = vpop.eup %6953 }
 0x2f1   :  { %v7492_v58 = vpop.eup %6955  ;;  %v448_v61 = vmul.f32 1.442695, %v437_v54  ;;  %v453_v62 = vsel %vm413_vm10, %v7490_v57, 0.0  ;;  %v6384_v63 = vpack.c.bf16 %v6732_v55, %v6731_v56 }
 0x2f2   :  { %454 = vadd.xlane.f32.xlu0 %v453_v62  ;;  %v6735_v0 = vpop.permute.xlu0 %6734  ;;  %v6740_v1 = vpop.permute.xlu1 %6739  ;;  %v450_v3 = vsel %vm413_vm10, %v7492_v58, 0.0 }
 0x2f3   :  { %6961 = vpow2.f32 %v448_v61  ;;  %v6737_v4 = vunpack.i.h.bf16 %v6735_v0  ;;  %v6736_v5 = vunpack.i.l.bf16 %v6735_v0  ;;  %v6742_v6 = vunpack.i.h.bf16 %v6740_v1  ;;  %451 = vadd.xlane.f32.xlu1 %v450_v3  ;;  %6385 = vmatprep.subr.bf16.mxu0 %v6384_v63 }
 0x2f4   :  { %v6741_v7 = vunpack.i.l.bf16 %v6740_v1  ;;  %6387 = vmatpush3.bf16.msra.mxu0 %v6384_v63  ;;  %6963 = vpow2.f32 %v446_v59 }
 0x2f5   :  { %v7498_v8 = vpop.eup %6957  ;;  %v6388_v9 = vpack.c.bf16 %v6737_v4, %v6736_v5 }
 0x2f6   :  { %v459_v11 = vsel %vm413_vm10, %v7498_v8, 0.0  ;;  %v6392_v12 = vpack.c.bf16 %v6742_v6, %v6741_v7 }
 0x2f7   :  { %460 = vadd.xlane.f32.xlu0 %v459_v11  ;;  %6389 = vmatprep.subr.bf16.mxu0 %v6388_v9 }
 0x2f8   :  { %6391 = vmatpush3.bf16.msra.mxu0 %v6388_v9 }
 0x2f9   :  { %v6960_v13 = vpop.eup %6959  ;;  %6393 = vmatprep.subr.bf16.mxu0 %v6392_v12 }
 0x2fa   :  { %v456_v15 = vsel %vm413_vm10, %v6960_v13, 0.0 }
 0x2fb   :  { %457 = vadd.xlane.f32.xlu1 %v456_v15 }
 0x2fc   :  { %6395 = vmatpush3.bf16.msra.mxu0 %v6392_v12 }
 0x2fd   :  { %v7503_v20 = vpop.eup %6961 }
 0x2fe   :  { %v465_v23 = vsel %vm413_vm10, %v7503_v20, 0.0  ;;  %v7507_v25 = vpop.eup %6963 }
 0x2ff   :  { %466 = vadd.xlane.f32.xlu0 %v465_v23  ;;  %v462_v28 = vsel %vm413_vm10, %v7507_v25, 0.0 }
 0x303   :  { %463 = vadd.xlane.f32.xlu0 %v462_v28 }
 0x30c   :  { %6749 = vrot.lane.b32.xlu1 %v7388_v22, %s7227_s3 }
 0x310   :  { %6754 = vrot.lane.b32.xlu1 %v7398_v27, %s7227_s3 }
 0x314   :  { %611 = vrot.lane.b32.xlu1 %v7372_v16, %s7228_s30 }
 0x318   :  { %613 = vrot.lane.b32.xlu1 %v7370_v14, %s7228_s30 }
 0x319   :  { %6744 = vrot.lane.b32.xlu0 %v7378_v17, %s7227_s3 }
 0x31c   :  { %617 = vrot.lane.b32.xlu1 %v7380_v19, %s7228_s30 }
 0x31d   :  { %615 = vrot.lane.b32.xlu0 %v7384_v21, %s7228_s30 }
 0x320   :  { %621 = vrot.lane.b32.xlu1 %v7390_v24, %s7228_s30 }
 0x321   :  { %619 = vrot.lane.b32.xlu0 %v7394_v26, %s7228_s30 }
 0x324   :  { %6764 = vrot.lane.b32.xlu1 %v7388_v22, %s7229_s6 }
 0x325   :  { %6759 = vrot.lane.b32.xlu0 %v7378_v17, %s7229_s6 }
 0x328   :  { %1189 = vrot.lane.b32.xlu1 %v7372_v16, %s7230_s19 }
 0x329   :  { %6769 = vrot.lane.b32.xlu0 %v7398_v27, %s7229_s6 }
 0x32c   :  { %1193 = vrot.lane.b32.xlu1 %v7384_v21, %s7230_s19 }
 0x32d   :  { %1191 = vrot.lane.b32.xlu0 %v7370_v14, %s7230_s19 }
 0x330   :  { %1197 = vrot.lane.b32.xlu1 %v7394_v26, %s7230_s19 }
 0x331   :  { %1195 = vrot.lane.b32.xlu0 %v7380_v19, %s7230_s19 }
 0x335   :  { %1199 = vrot.lane.b32.xlu0 %v7390_v24, %s7230_s19 }
 0x37f   :  { %v455_v29 = vpop.xlane.xlu0 %454 }
 0x380   :  { %6965 = vrcp.f32 %v455_v29  ;;  %v452_v31 = vpop.xlane.xlu1 %451 }
 0x381   :  { %6967 = vrcp.f32 %v452_v31 }
 0x384   :  { %v461_v33 = vpop.xlane.xlu0 %460 }
 0x385   :  { %6969 = vrcp.f32 %v461_v33 }
 0x388   :  { %v458_v34 = vpop.xlane.xlu1 %457 }
 0x389   :  { %6971 = vrcp.f32 %v458_v34 }
 0x38a   :  { %v6966_v35 = vpop.eup %6965 }
 0x38b   :  { %v6968_v36 = vpop.eup %6967  ;;  %v475_v41 = vmul.f32 %v6966_v35, %v7490_v57 }
 0x38c   :  { %v467_v37 = vpop.xlane.xlu0 %466  ;;  %v6750_v39 = vpop.permute.xlu1 %6749  ;;  %v474_v40 = vmul.f32 %v6968_v36, %v7492_v58 }
 0x38d   :  { %6973 = vrcp.f32 %v467_v37  ;;  %v6752_v46 = vunpack.i.h.bf16 %v6750_v39  ;;  %v6751_v50 = vunpack.i.l.bf16 %v6750_v39 }
 0x38e   :  { %5866 = vmatprep.mubr.msk.f32.mxu0 %vm413_vm10, %v474_v40 }
 0x38f   :  { %5867 = vmatmul.mubr.msk.f32.vlgmr.msra.gmra.mrb[6].mxu0 %vm413_vm10, %v475_v41  ;;  %v6970_v44 = vpop.eup %6969  ;;  %v6402_v57 = vpack.c.bf16 %v6752_v46, %v6751_v50 }
 0x390   :  { %v464_v42 = vpop.xlane.xlu0 %463  ;;  %v6755_v43 = vpop.permute.xlu1 %6754  ;;  %v477_v53 = vmul.f32 %v6970_v44, %v7498_v8 }
 0x391   :  { %6975 = vrcp.f32 %v464_v42  ;;  %v6757_v63 = vunpack.i.h.bf16 %v6755_v43  ;;  %v6756_v0 = vunpack.i.l.bf16 %v6755_v43 }
 0x393   :  { %v6972_v45 = vpop.eup %6971  ;;  %v6408_v4 = vpack.c.bf16 %v6757_v63, %v6756_v0 }
 0x394   :  { %v6745_v47 = vpop.permute.xlu0 %6744  ;;  %v612_v48 = vpop.permute.xlu1 %611  ;;  %v476_v49 = vmul.f32 %v6972_v45, %v6960_v13 }
 0x395   :  { %v6747_v51 = vunpack.i.h.bf16 %v6745_v47  ;;  %v6746_v52 = vunpack.i.l.bf16 %v6745_v47 }
 0x396   :  { %5869 = vmatprep.mubr.msk.f32.mxu0 %vm413_vm10, %v476_v49 }
 0x397   :  { %v6396_v54 = vpack.c.bf16 %v6747_v51, %v6746_v52  ;;  %5870 = vmatmul.mubr.msk.f32.gmra.mrb[8].mxu0 %vm413_vm10, %v477_v53  ;;  %v6974_v58 = vpop.eup %6973 }
 0x398   :  { %v616_v55 = vpop.permute.xlu0 %615  ;;  %v614_v56 = vpop.permute.xlu1 %613  ;;  %v479_v1 = vmul.f32 %v6974_v58, %v7503_v20 }
 0x399   :  { %6398 = vmatprep.subr.msk.bf16.mxu0 %vm7422_vm2, %v6396_v54 }
 0x39a   :  { %6401 = vmatpush3.bf16.xpose.msk.msra.mxu0 %vm7422_vm2, %v6396_v54 }
 0x39b   :  { %v6976_v59 = vpop.eup %6975  ;;  %6404 = vmatprep.subr.msk.bf16.mxu0 %vm7422_vm2, %v6402_v57 }
 0x39c   :  { %v620_v61 = vpop.permute.xlu0 %619  ;;  %v478_v62 = vmul.f32 %v6976_v59, %v7507_v25  ;;  %v618_v3 = vpop.permute.xlu1 %617 }
 0x39e   :  { %5872 = vmatprep.mubr.msk.f32.mxu0 %vm413_vm10, %v478_v62 }
 0x39f   :  { %5873 = vmatmul.mubr.msk.f32.gmra.mrb[10].mxu0 %vm413_vm10, %v479_v1 }
 0x3a0   :  { %5887 = vmatprep.mubr.msk.f32.mxu0 %vm281_vm1, %v612_v48  ;;  %v6760_v5 = vpop.permute.xlu0 %6759  ;;  %v622_v6 = vpop.permute.xlu1 %621 }
 0x3a1   :  { %v6762_v7 = vunpack.i.h.bf16 %v6760_v5  ;;  %v6761_v8 = vunpack.i.l.bf16 %v6760_v5 }
 0x3a2   :  { %6407 = vmatpush3.bf16.xpose.msk.msra.mxu0 %vm7422_vm2, %v6402_v57 }
 0x3a3   :  { %6410 = vmatprep.subr.msk.bf16.mxu0 %vm7422_vm2, %v6408_v4  ;;  %v6426_v9 = vpack.c.bf16 %v6762_v7, %v6761_v8 }
 0x3a4   :  { %v6765_v11 = vpop.permute.xlu1 %6764  ;;  %v6770_v20 = vpop.permute.xlu0 %6769 }
 0x3a5   :  { %v6767_v12 = vunpack.i.h.bf16 %v6765_v11  ;;  %v6766_v13 = vunpack.i.l.bf16 %v6765_v11  ;;  %v6772_v23 = vunpack.i.h.bf16 %v6770_v20  ;;  %v6771_v25 = vunpack.i.l.bf16 %v6770_v20 }
 0x3a7   :  { %v6432_v15 = vpack.c.bf16 %v6767_v12, %v6766_v13  ;;  %v6438_v28 = vpack.c.bf16 %v6772_v23, %v6771_v25 }
 0x3a8   :  { %v1190_v29 = vpop.permute.xlu1 %1189  ;;  %v1192_v31 = vpop.permute.xlu0 %1191 }
 0x3aa   :  { %6413 = vmatpush3.bf16.xpose.msk.msra.mxu0 %vm7422_vm2, %v6408_v4 }
 0x3ab   :  { %6428 = vmatprep.subr.msk.bf16.mxu0 %vm7422_vm2, %v6426_v9 }
 0x3ac   :  { %v1194_v33 = vpop.permute.xlu1 %1193  ;;  %v1196_v34 = vpop.permute.xlu0 %1195 }
 0x3b0   :  { %v1198_v35 = vpop.permute.xlu1 %1197  ;;  %v1200_v36 = vpop.permute.xlu0 %1199 }
 0x3b1   :  { %5888 = vmatmul.mubr.msk.f32.vlgmr.msra.gmra.mrb[12].mxu0 %vm281_vm1, %v614_v56 }
 0x3b2   :  { %5890 = vmatprep.mubr.msk.f32.mxu0 %vm281_vm1, %v616_v55  ;;  %6431 = vmatpush3.bf16.xpose.msk.msra.mxu0 %vm7422_vm2, %v6426_v9 }
 0x3b3   :  { %6434 = vmatprep.subr.msk.bf16.mxu0 %vm7422_vm2, %v6432_v15 }
 0x3b5   :  { %5891 = vmatmul.mubr.msk.f32.gmra.mrb[14].mxu0 %vm281_vm1, %v618_v3 }
 0x3b6   :  { %5893 = vmatprep.mubr.msk.f32.mxu0 %vm281_vm1, %v620_v61 }
 0x3b9   :  { %5894 = vmatmul.mubr.msk.f32.gmra.mrb[16].mxu0 %vm281_vm1, %v622_v6 }
 0x3ba   :  { %6437 = vmatpush3.bf16.xpose.msk.msra.mxu0 %vm7422_vm2, %v6432_v15  ;;  %5951 = vmatprep.mubr.msk.f32.mxu0 %vm281_vm1, %v1190_v29 }
 0x3bb   :  { %6440 = vmatprep.subr.msk.bf16.mxu0 %vm7422_vm2, %v6438_v28 }
 0x3c2   :  { %6443 = vmatpush3.bf16.xpose.msk.msra.mxu0 %vm7422_vm2, %v6438_v28 }
 0x3c9   :  { %5952 = vmatmul.mubr.msk.f32.vlgmr.msra.gmra.mrb[18].mxu0 %vm281_vm1, %v1192_v31 }
 0x3ca   :  { %5954 = vmatprep.mubr.msk.f32.mxu0 %vm281_vm1, %v1194_v33 }
 0x3cd   :  { %5955 = vmatmul.mubr.msk.f32.gmra.mrb[20].mxu0 %vm281_vm1, %v1196_v34 }
 0x3ce   :  { %5957 = vmatprep.mubr.msk.f32.mxu0 %vm281_vm1, %v1198_v35 }
 0x3d1   :  { %5958 = vmatmul.mubr.msk.f32.gmra.mrb[22].mxu0 %vm281_vm1, %v1200_v36 }
 0x462   :  { %v7594_v37 = vpop.f32.mrb[6].mxu0 }
 0x463   :  { %v7596_v39 = vpop.f32.mrb[7].mxu0 }
 0x46a   :  { %v7598_v40 = vpop.f32.mrb[8].mxu0 }
 0x46b   :  { %v7600_v41 = vpop.f32.mrb[9].mxu0 }
 0x472   :  { %v7602_v42 = vpop.f32.mrb[10].mxu0 }
 0x473   :  { %v7604_v43 = vpop.f32.mrb[11].mxu0 }
 0x484   :  { %v5889_v44 = vpop.f32.mrb[12].mxu0 }
 0x485   :  { %v755_v45 = vmul.f32 0.35355338, %v5889_v44  ;;  %v725_v46 = vpop.f32.mrb[13].mxu0 }
 0x486   :  { %v754_v47 = vmul.f32 0.35355338, %v725_v46 }
 0x487   :  { %v761_v48 = vadd.f32 %v755_v45, %v7456_v60 }
 0x488   :  { %v5892_v49 = vpop.f32.mrb[14].mxu0  ;;  %v760_v50 = vadd.f32 %v754_v47, %v7458_v2 }
 0x489   :  { %v757_v51 = vmul.f32 0.35355338, %v5892_v49  ;;  %v735_v52 = vpop.f32.mrb[15].mxu0  ;;  %v769_v53 = vsel %vm413_vm10, %v761_v48, -inf }
 0x48a   :  { %v756_v54 = vmul.f32 0.35355338, %v735_v52  ;;  %770 = vmax.xlane.f32.xlu0 %v769_v53  ;;  %v766_v55 = vsel %vm413_vm10, %v760_v50, -inf }
 0x48b   :  { %767 = vmax.xlane.f32.xlu1 %v766_v55  ;;  %v763_v56 = vadd.f32 %v757_v51, %v7465_v10 }
 0x48c   :  { %v5895_v57 = vpop.f32.mrb[16].mxu0  ;;  %v762_v58 = vadd.f32 %v756_v54, %v7470_v18 }
 0x48d   :  { %v759_v59 = vmul.f32 0.35355338, %v5895_v57  ;;  %v745_v61 = vpop.f32.mrb[17].mxu0  ;;  %v775_v62 = vsel %vm413_vm10, %v763_v56, -inf }
 0x48e   :  { %v758_v63 = vmul.f32 0.35355338, %v745_v61  ;;  %v772_v0 = vsel %vm413_vm10, %v762_v58, -inf }
 0x48f   :  { %776 = vmax.xlane.f32.xlu1 %v775_v62  ;;  %773 = vmax.xlane.f32.xlu0 %v772_v0  ;;  %v765_v1 = vadd.f32 %v759_v59, %v7478_v32 }
 0x490   :  { %v764_v3 = vadd.f32 %v758_v63, %v7475_v30 }
 0x491   :  { %v781_v4 = vsel %vm413_vm10, %v765_v1, -inf }
 0x492   :  { %v778_v5 = vsel %vm413_vm10, %v764_v3, -inf }
 0x493   :  { %782 = vmax.xlane.f32.xlu1 %v781_v4  ;;  %779 = vmax.xlane.f32.xlu0 %v778_v5 }
 0x49c   :  { %v7618_v6 = vpop.f32.mrb[18].mxu0 }
 0x49d   :  { %v1303_v7 = vpop.f32.mrb[19].mxu0 }
 0x49e   :  { %v1332_v63 = vmul.f32 0.35355338, %v1303_v7 }
 0x4a0   :  { %v5956_v8 = vpop.f32.mrb[20].mxu0 }
 0x4a1   :  { %v7620_v9 = vpop.f32.mrb[21].mxu0  ;;  %v1335_v0 = vmul.f32 0.35355338, %v5956_v8 }
 0x4a4   :  { %v7622_v11 = vpop.f32.mrb[22].mxu0 }
 0x4a5   :  { %v7624_v12 = vpop.f32.mrb[23].mxu0 }
 0x517   :  { %v771_v13 = vpop.xlane.xlu0 %770 }
 0x518   :  { %v785_v15 = vsub.f32 %v761_v48, %v771_v13  ;;  %v768_v20 = vpop.xlane.xlu1 %767 }
 0x519   :  { %v784_v23 = vsub.f32 %v760_v50, %v768_v20 }
 0x51a   :  { %v792_v25 = vmul.f32 1.442695, %v785_v15 }
 0x51b   :  { %v790_v28 = vmul.f32 1.442695, %v784_v23 }
 0x51c   :  { %6977 = vpow2.f32 %v792_v25  ;;  %v777_v29 = vpop.xlane.xlu1 %776  ;;  %v774_v31 = vpop.xlane.xlu0 %773 }
 0x51d   :  { %6979 = vpow2.f32 %v790_v28  ;;  %v787_v33 = vsub.f32 %v763_v56, %v777_v29  ;;  %v786_v34 = vsub.f32 %v762_v58, %v774_v31 }
 0x51f   :  { %v796_v35 = vmul.f32 1.442695, %v787_v33  ;;  %v794_v36 = vmul.f32 1.442695, %v786_v34 }
 0x520   :  { %v783_v44 = vpop.xlane.xlu1 %782  ;;  %v780_v45 = vpop.xlane.xlu0 %779 }
 0x521   :  { %6981 = vpow2.f32 %v796_v35  ;;  %v789_v46 = vsub.f32 %v765_v1, %v783_v44  ;;  %v788_v47 = vsub.f32 %v764_v3, %v780_v45  ;;  %v7676_v1 = vadd.f32 %v1332_v63, %v7458_v2 }
 0x522   :  { %6983 = vpow2.f32 %v794_v36  ;;  %v7686_v3 = vadd.f32 %v1335_v0, %v7465_v10 }
 0x523   :  { %v800_v49 = vmul.f32 1.442695, %v789_v46  ;;  %v798_v48 = vmul.f32 1.442695, %v788_v47 }
 0x525   :  { %6985 = vpow2.f32 %v800_v49 }
 0x526   :  { %v7626_v50 = vpop.eup %6977  ;;  %6987 = vpow2.f32 %v798_v48 }
 0x527   :  { %v7628_v51 = vpop.eup %6979  ;;  %v805_v52 = vsel %vm413_vm10, %v7626_v50, 0.0 }
 0x528   :  { %806 = vadd.xlane.f32.xlu1 %v805_v52  ;;  %v802_v53 = vsel %vm413_vm10, %v7628_v51, 0.0 }
 0x529   :  { %803 = vadd.xlane.f32.xlu0 %v802_v53 }
 0x52b   :  { %v7634_v54 = vpop.eup %6981 }
 0x52c   :  { %v7636_v55 = vpop.eup %6983  ;;  %v811_v56 = vsel %vm413_vm10, %v7634_v54, 0.0 }
 0x52d   :  { %812 = vadd.xlane.f32.xlu1 %v811_v56  ;;  %v808_v57 = vsel %vm413_vm10, %v7636_v55, 0.0 }
 0x52e   :  { %809 = vadd.xlane.f32.xlu0 %v808_v57 }
 0x52f   :  { %v7642_v58 = vpop.eup %6985 }
 0x530   :  { %v7644_v59 = vpop.eup %6987  ;;  %v817_v61 = vsel %vm413_vm10, %v7642_v58, 0.0 }
 0x531   :  { %818 = vadd.xlane.f32.xlu1 %v817_v61  ;;  %v814_v62 = vsel %vm413_vm10, %v7644_v59, 0.0 }
 0x532   :  { %815 = vadd.xlane.f32.xlu0 %v814_v62 }
 0x542   :  { %6779 = vrot.lane.b32.xlu1 %v7388_v22, %s7231_s0 }
 0x546   :  { %6784 = vrot.lane.b32.xlu1 %v7398_v27, %s7231_s0 }
 0x548   :  { %6774 = vrot.lane.b32.xlu0 %v7378_v17, %s7231_s0 }
 0x54a   :  { %6794 = vrot.lane.b32.xlu1 %v7388_v22, %s7232_s20 }
 0x54c   :  { %6789 = vrot.lane.b32.xlu0 %v7378_v17, %s7232_s20 }
 0x54e   :  { %1660 = vrot.lane.b32.xlu1 %v7372_v16, %s8759_s21  ;;  %v1333_v16 = vmul.f32 0.35355338, %v7618_v6  ;;  %v1353_v6 = vsel %vm413_vm10, %v7686_v3, -inf }
 0x550   :  { %6799 = vrot.lane.b32.xlu0 %v7398_v27, %s7232_s20 }
 0x552   :  { %1664 = vrot.lane.b32.xlu1 %v7384_v21, %s8759_s21  ;;  %v1334_v21 = vmul.f32 0.35355338, %v7620_v9 }
 0x554   :  { %1662 = vrot.lane.b32.xlu0 %v7370_v14, %s8759_s21  ;;  %v7680_v14 = vadd.f32 %v1333_v16, %v7456_v60  ;;  %v7692_v5 = vadd.f32 %v1334_v21, %v7470_v18 }
 0x556   :  { %1668 = vrot.lane.b32.xlu1 %v7394_v26, %s8759_s21  ;;  %v1337_v26 = vmul.f32 0.35355338, %v7622_v11  ;;  %v1347_v4 = vsel %vm413_vm10, %v7680_v14, -inf  ;;  %v1350_v8 = vsel %vm413_vm10, %v7692_v5, -inf }
 0x558   :  { %1666 = vrot.lane.b32.xlu0 %v7380_v19, %s8759_s21  ;;  %v1344_v19 = vsel %vm413_vm10, %v7676_v1, -inf  ;;  %v7697_v7 = vadd.f32 %v1337_v26, %v7478_v32 }
 0x55a   :  { %v1359_v11 = vsel %vm413_vm10, %v7697_v7, -inf }
 0x55c   :  { %1670 = vrot.lane.b32.xlu0 %v7390_v24, %s8759_s21  ;;  %v1336_v24 = vmul.f32 0.35355338, %v7624_v12 }
 0x55e   :  { %v7702_v9 = vadd.f32 %v1336_v24, %v7475_v30 }
 0x560   :  { %v1356_v12 = vsel %vm413_vm10, %v7702_v9, -inf }
 0x57a   :  { %1345 = vmax.xlane.f32.xlu1 %v1344_v19 }
 0x57b   :  { %1348 = vmax.xlane.f32.xlu0 %v1347_v4 }
 0x57e   :  { %1354 = vmax.xlane.f32.xlu1 %v1353_v6 }
 0x57f   :  { %1351 = vmax.xlane.f32.xlu0 %v1350_v8 }
 0x582   :  { %1360 = vmax.xlane.f32.xlu1 %v1359_v11 }
 0x583   :  { %1357 = vmax.xlane.f32.xlu0 %v1356_v12 }
 0x5b5   :  { %v807_v13 = vpop.xlane.xlu1 %806 }
 0x5b6   :  { %v804_v15 = vpop.xlane.xlu0 %803 }
 0x5b7   :  { %6989 = vrcp.f32 %v804_v15 }
 0x5b8   :  { %6991 = vrcp.f32 %v807_v13 }
 0x5ba   :  { %v813_v20 = vpop.xlane.xlu1 %812 }
 0x5bb   :  { %v810_v23 = vpop.xlane.xlu0 %809 }
 0x5bc   :  { %6993 = vrcp.f32 %v810_v23 }
 0x5bd   :  { %6995 = vrcp.f32 %v813_v20 }
 0x5be   :  { %v819_v25 = vpop.xlane.xlu1 %818 }
 0x5bf   :  { %v816_v28 = vpop.xlane.xlu0 %815 }
 0x5c0   :  { %6997 = vrcp.f32 %v816_v28 }
 0x5c1   :  { %v6990_v29 = vpop.eup %6989  ;;  %6999 = vrcp.f32 %v819_v25 }
 0x5c2   :  { %v6780_v31 = vpop.permute.xlu1 %6779  ;;  %v826_v33 = vmul.f32 %v6990_v29, %v7628_v51  ;;  %v6992_v19 = vpop.eup %6991 }
 0x5c3   :  { %v6782_v34 = vunpack.i.h.bf16 %v6780_v31  ;;  %v6781_v35 = vunpack.i.l.bf16 %v6780_v31  ;;  %v6775_v36 = vpop.permute.xlu0 %6774  ;;  %v827_v8 = vmul.f32 %v6992_v19, %v7626_v50  ;;  %v260_v19 = vld [vmem:[%s8739_s8 + $0x8] sm:$0xff] }
 0x5c4   :  { %v6777_v44 = vunpack.i.h.bf16 %v6775_v36  ;;  %v6776_v45 = vunpack.i.l.bf16 %v6775_v36  ;;  %5908 = vmatprep.mubr.msk.f32.mxu1 %vm413_vm10, %v826_v33 }
 0x5c5   :  { %v6418_v48 = vpack.c.bf16 %v6782_v34, %v6781_v35 }
 0x5c6   :  { %v6785_v46 = vpop.permute.xlu1 %6784  ;;  %v6414_v47 = vpack.c.bf16 %v6777_v44, %v6776_v45  ;;  %v6994_v24 = vpop.eup %6993 }
 0x5c7   :  { %v6790_v49 = vpop.permute.xlu0 %6789  ;;  %v6787_v52 = vunpack.i.h.bf16 %v6785_v46  ;;  %v6786_v53 = vunpack.i.l.bf16 %v6785_v46  ;;  %v6996_v11 = vpop.eup %6995  ;;  %v828_v12 = vmul.f32 %v6994_v24, %v7636_v55  ;;  %v259_v24 = vld [vmem:[%s8739_s8] sm:$0xff] }
 0x5c8   :  { %v6792_v56 = vunpack.i.h.bf16 %v6790_v49  ;;  %v6791_v57 = vunpack.i.l.bf16 %v6790_v49  ;;  %6415 = vmatprep.subr.bf16.mxu1 %v6414_v47  ;;  %v829_v20 = vmul.f32 %v6996_v11, %v7634_v54 }
 0x5c9   :  { %6417 = vmatpush3.bf16.msra.mxu1 %v6414_v47  ;;  %v6422_v16 = vpack.c.bf16 %v6787_v52, %v6786_v53 }
 0x5ca   :  { %v6456_v51 = vpack.c.bf16 %v6792_v56, %v6791_v57  ;;  %6419 = vmatprep.subr.bf16.mxu1 %v6418_v48  ;;  %v6795_v61 = vpop.permute.xlu1 %6794  ;;  %v6998_v13 = vpop.eup %6997 }
 0x5cb   :  { %v6797_v62 = vunpack.i.h.bf16 %v6795_v61  ;;  %v6796_v63 = vunpack.i.l.bf16 %v6795_v61  ;;  %v6800_v21 = vpop.permute.xlu0 %6799  ;;  %v7000_v23 = vpop.eup %6999  ;;  %v830_v50 = vmul.f32 %v6998_v13, %v7644_v59 }
 0x5cc   :  { %6458 = vmatprep.subr.msk.bf16.mxu0 %vm7422_vm2, %v6456_v51  ;;  %v6802_v4 = vunpack.i.h.bf16 %v6800_v21  ;;  %v6801_v6 = vunpack.i.l.bf16 %v6800_v21  ;;  %v831_v55 = vmul.f32 %v7000_v23, %v7642_v58 }
 0x5cd   :  { %v6462_v0 = vpack.c.bf16 %v6797_v62, %v6796_v63  ;;  %6421 = vmatpush3.bf16.msra.mxu1 %v6418_v48  ;;  %6461 = vmatpush3.bf16.xpose.msk.msra.mxu0 %vm7422_vm2, %v6456_v51 }
 0x5ce   :  { %6423 = vmatprep.subr.bf16.mxu1 %v6422_v16  ;;  %v1661_v26 = vpop.permute.xlu1 %1660  ;;  %v6468_v15 = vpack.c.bf16 %v6802_v4, %v6801_v6 }
 0x5cf   :  { %6464 = vmatprep.subr.msk.bf16.mxu0 %vm7422_vm2, %v6462_v0  ;;  %6004 = vmatprep.mubr.msk.f32.mxu0 %vm281_vm1, %v1661_v26  ;;  %v1663_v25 = vpop.permute.xlu0 %1662 }
 0x5d1   :  { %6425 = vmatpush3.bf16.msra.mxu1 %v6422_v16 }
 0x5d2   :  { %v1665_v28 = vpop.permute.xlu1 %1664  ;;  %5917 = vmatprep.subr.mxu1 %v260_v19 }
 0x5d3   :  { %v1667_v29 = vpop.permute.xlu0 %1666 }
 0x5d4   :  { %5909 = vmatmul.mubr.msk.f32.vlgmr.msra.gmra.mrb[6].mxu1 %vm413_vm10, %v827_v8 }
 0x5d5   :  { %5911 = vmatprep.mubr.msk.f32.mxu1 %vm413_vm10, %v828_v12  ;;  %6467 = vmatpush3.bf16.xpose.msk.msra.mxu0 %vm7422_vm2, %v6462_v0 }
 0x5d6   :  { %6470 = vmatprep.subr.msk.bf16.mxu0 %vm7422_vm2, %v6468_v15  ;;  %v1669_v54 = vpop.permute.xlu1 %1668  ;;  %5918 = vmatpush3.msra.mxu1 %v260_v19 }
 0x5d7   :  { %v1671_v59 = vpop.permute.xlu0 %1670  ;;  %5928 = vmatprep.subr.mxu1 %v259_v24 }
 0x5d8   :  { %5912 = vmatmul.mubr.msk.f32.gmra.mrb[8].mxu1 %vm413_vm10, %v829_v20 }
 0x5d9   :  { %5914 = vmatprep.mubr.msk.f32.mxu1 %vm413_vm10, %v830_v50 }
 0x5dc   :  { %5915 = vmatmul.mubr.msk.f32.gmra.mrb[10].mxu1 %vm413_vm10, %v831_v55 }
 0x5dd   :  { %6473 = vmatpush3.bf16.xpose.msk.msra.mxu0 %vm7422_vm2, %v6468_v15 }
 0x5e4   :  { %6005 = vmatmul.mubr.msk.f32.vlgmr.msra.gmra.mrb[24].mxu0 %vm281_vm1, %v1663_v25 }
 0x5e5   :  { %6007 = vmatprep.mubr.msk.f32.mxu0 %vm281_vm1, %v1665_v28 }
 0x5e8   :  { %6008 = vmatmul.mubr.msk.f32.gmra.mrb[26].mxu0 %vm281_vm1, %v1667_v29 }
 0x5e9   :  { %6010 = vmatprep.mubr.msk.f32.mxu0 %vm281_vm1, %v1669_v54 }
 0x5ec   :  { %6011 = vmatmul.mubr.msk.f32.gmra.mrb[28].mxu0 %vm281_vm1, %v1671_v59 }
 0x607   :  { %v1346_v58 = vpop.xlane.xlu1 %1345 }
 0x608   :  { %v1362_v31 = vsub.f32 %v7676_v1, %v1346_v58  ;;  %v1349_v33 = vpop.xlane.xlu0 %1348 }
 0x609   :  { %v1363_v34 = vsub.f32 %v7680_v14, %v1349_v33 }
 0x60a   :  { %v1368_v35 = vmul.f32 1.442695, %v1362_v31 }
 0x60b   :  { %v1370_v36 = vmul.f32 1.442695, %v1363_v34  ;;  %v1355_v44 = vpop.xlane.xlu1 %1354 }
 0x60c   :  { %7001 = vpow2.f32 %v1368_v35  ;;  %v1365_v45 = vsub.f32 %v7686_v3, %v1355_v44  ;;  %v1352_v46 = vpop.xlane.xlu0 %1351 }
 0x60d   :  { %7003 = vpow2.f32 %v1370_v36  ;;  %v1364_v47 = vsub.f32 %v7692_v5, %v1352_v46 }
 0x60e   :  { %v1374_v49 = vmul.f32 1.442695, %v1365_v45 }
 0x60f   :  { %v1372_v48 = vmul.f32 1.442695, %v1364_v47  ;;  %v1361_v52 = vpop.xlane.xlu1 %1360 }
 0x610   :  { %7005 = vpow2.f32 %v1374_v49  ;;  %v1367_v53 = vsub.f32 %v7697_v7, %v1361_v52  ;;  %v1358_v1 = vpop.xlane.xlu0 %1357 }
 0x611   :  { %7007 = vpow2.f32 %v1372_v48  ;;  %v1366_v14 = vsub.f32 %v7702_v9, %v1358_v1 }
 0x612   :  { %v1378_v56 = vmul.f32 1.442695, %v1367_v53 }
 0x613   :  { %v1376_v57 = vmul.f32 1.442695, %v1366_v14 }
 0x614   :  { %7009 = vpow2.f32 %v1378_v56 }
 0x615   :  { %7011 = vpow2.f32 %v1376_v57 }
 0x616   :  { %v7744_v51 = vpop.eup %7001 }
 0x617   :  { %v7746_v3 = vpop.eup %7003  ;;  %v1380_v5 = vsel %vm413_vm10, %v7744_v51, 0.0 }
 0x618   :  { %1381 = vadd.xlane.f32.xlu0 %v1380_v5  ;;  %v1383_v61 = vsel %vm413_vm10, %v7746_v3, 0.0 }
 0x619   :  { %1384 = vadd.xlane.f32.xlu1 %v1383_v61 }
 0x61a   :  { %v7752_v7 = vpop.eup %7005 }
 0x61b   :  { %v7754_v62 = vpop.eup %7007  ;;  %v1389_v9 = vsel %vm413_vm10, %v7752_v7, 0.0 }
 0x61c   :  { %v1386_v63 = vsel %vm413_vm10, %v7754_v62, 0.0 }
 0x61d   :  { %1390 = vadd.xlane.f32.xlu1 %v1389_v9  ;;  %1387 = vadd.xlane.f32.xlu0 %v1386_v63 }
 0x61e   :  { %v7760_v16 = vpop.eup %7009 }
 0x61f   :  { %v7762_v0 = vpop.eup %7011  ;;  %v1395_v21 = vsel %vm413_vm10, %v7760_v16, 0.0 }
 0x620   :  { %v1392_v26 = vsel %vm413_vm10, %v7762_v0, 0.0 }
 0x621   :  { %1396 = vadd.xlane.f32.xlu1 %v1395_v21  ;;  %1393 = vadd.xlane.f32.xlu0 %v1392_v26 }
 0x632   :  { %6809 = vrot.lane.b32.xlu1 %v7388_v22, %s8757_s1 }
 0x636   :  { %6814 = vrot.lane.b32.xlu1 %v7398_v27, %s8757_s1 }
 0x637   :  { %6804 = vrot.lane.b32.xlu0 %v7378_v17, %s8757_s1 }
 0x6a5   :  { %v1382_v4 = vpop.xlane.xlu0 %1381 }
 0x6a6   :  { %v1385_v6 = vpop.xlane.xlu1 %1384  ;;  %7013 = vrcp.f32 %v1382_v4 }
 0x6a7   :  { %v5910_v8 = vpop.f32.mrb[6].mxu1  ;;  %7015 = vrcp.f32 %v1385_v6 }
 0x6a8   :  { %v934_v11 = vpop.f32.mrb[7].mxu1 }
 0x6a9   :  { %5919 = vmatprep.mubr.msk.f32.mxu1 %vm281_vm1, %v934_v11 }
 0x6aa   :  { %v1391_v12 = vpop.xlane.xlu1 %1390  ;;  %v1388_v13 = vpop.xlane.xlu0 %1387  ;;  %5920 = vmatmul.mubr.msk.f32.vlgmr.msra.gmra.mrb[12].mxu1 %vm281_vm1, %v5910_v8 }
 0x6ab   :  { %v5913_v15 = vpop.f32.mrb[8].mxu1  ;;  %5929 = vmatpush3.msra.mxu1 %v259_v24  ;;  %7017 = vrcp.f32 %v1388_v13 }
 0x6ac   :  { %v944_v20 = vpop.f32.mrb[9].mxu1  ;;  %7019 = vrcp.f32 %v1391_v12 }
 0x6ad   :  { %5922 = vmatprep.mubr.msk.f32.mxu1 %vm281_vm1, %v944_v20 }
 0x6ae   :  { %v1397_v23 = vpop.xlane.xlu1 %1396  ;;  %v1394_v50 = vpop.xlane.xlu0 %1393  ;;  %5923 = vmatmul.mubr.msk.f32.gmra.mrb[14].mxu1 %vm281_vm1, %v5913_v15 }
 0x6af   :  { %v5916_v55 = vpop.f32.mrb[10].mxu1  ;;  %7021 = vrcp.f32 %v1394_v50 }
 0x6b0   :  { %v954_v25 = vpop.f32.mrb[11].mxu1  ;;  %v7014_v49 = vpop.eup %7013  ;;  %7023 = vrcp.f32 %v1397_v23 }
 0x6b1   :  { %5925 = vmatprep.mubr.msk.f32.mxu1 %vm281_vm1, %v954_v25  ;;  %v7016_v53 = vpop.eup %7015  ;;  %v1404_v5 = vmul.f32 %v7014_v49, %v7744_v51 }
 0x6b2   :  { %v6810_v28 = vpop.permute.xlu1 %6809  ;;  %v6805_v29 = vpop.permute.xlu0 %6804  ;;  %5926 = vmatmul.mubr.msk.f32.gmra.mrb[16].mxu1 %vm281_vm1, %v5916_v55  ;;  %v1405_v63 = vmul.f32 %v7016_v53, %v7746_v3 }
 0x6b3   :  { %v6812_v54 = vunpack.i.h.bf16 %v6810_v28  ;;  %v6811_v59 = vunpack.i.l.bf16 %v6810_v28  ;;  %v6807_v58 = vunpack.i.h.bf16 %v6805_v29  ;;  %v6806_v31 = vunpack.i.l.bf16 %v6805_v29  ;;  %5930 = vmatprep.mubr.msk.f32.mxu1 %vm281_vm1, %v7596_v39 }
 0x6b5   :  { %v6444_v33 = vpack.c.bf16 %v6807_v58, %v6806_v31  ;;  %v6448_v45 = vpack.c.bf16 %v6812_v54, %v6811_v59 }
 0x6b6   :  { %v6815_v34 = vpop.permute.xlu1 %6814  ;;  %5931 = vmatmul.mubr.msk.f32.vlgmr.msra.gmra.mrb[12].mxu1 %vm281_vm1, %v7594_v37 }
 0x6b7   :  { %v6817_v35 = vunpack.i.h.bf16 %v6815_v34  ;;  %v6816_v36 = vunpack.i.l.bf16 %v6815_v34  ;;  %5933 = vmatprep.mubr.msk.f32.mxu1 %vm281_vm1, %v7600_v41  ;;  %6445 = vmatprep.subr.bf16.mxu1 %v6444_v33  ;;  %v6006_v44 = vpop.f32.mrb[24].mxu0 }
 0x6b8   :  { %v1804_v46 = vmul.f32 0.35355338, %v6006_v44  ;;  %6447 = vmatpush3.bf16.msra.mxu1 %v6444_v33  ;;  %v1774_v47 = vpop.f32.mrb[25].mxu0 }
 0x6b9   :  { %v1803_v39 = vmul.f32 0.35355338, %v1774_v47  ;;  %6449 = vmatprep.subr.bf16.mxu1 %v6448_v45  ;;  %v6452_v48 = vpack.c.bf16 %v6817_v35, %v6816_v36 }
 0x6ba   :  { %5934 = vmatmul.mubr.msk.f32.gmra.mrb[14].mxu1 %vm281_vm1, %v7598_v40  ;;  %v1810_v37 = vadd.f32 %v1804_v46, %v7456_v60 }
 0x6bb   :  { %5936 = vmatprep.mubr.msk.f32.mxu1 %vm281_vm1, %v7604_v43  ;;  %v6009_v41 = vpop.f32.mrb[26].mxu0  ;;  %v1809_v52 = vadd.f32 %v1803_v39, %v7458_v2  ;;  %v7018_v43 = vpop.eup %7017 }
 0x6bc   :  { %6451 = vmatpush3.bf16.msra.mxu1 %v6448_v45  ;;  %v1784_v1 = vpop.f32.mrb[27].mxu0  ;;  %v1818_v14 = vsel %vm413_vm10, %v1810_v37, -inf  ;;  %v1806_v56 = vmul.f32 0.35355338, %v6009_v41  ;;  %v7020_v4 = vpop.eup %7019 }
 0x6bd   :  { %v1805_v57 = vmul.f32 0.35355338, %v1784_v1  ;;  %1819 = vmax.xlane.f32.xlu1 %v1818_v14  ;;  %6453 = vmatprep.subr.bf16.mxu1 %v6452_v48  ;;  %v1815_v40 = vsel %vm413_vm10, %v1809_v52, -inf  ;;  %v7022_v6 = vpop.eup %7021  ;;  %v1407_v12 = vmul.f32 %v7020_v4, %v7752_v7  ;;  %v261_v7 = vld [vmem:[%s8739_s8 + $0x10] sm:$0xff] }
 0x6be   :  { %1816 = vmax.xlane.f32.xlu0 %v1815_v40  ;;  %5937 = vmatmul.mubr.msk.f32.gmra.mrb[16].mxu1 %vm281_vm1, %v7602_v42  ;;  %v1812_v51 = vadd.f32 %v1806_v56, %v7465_v10  ;;  %v1406_v42 = vmul.f32 %v7018_v43, %v7754_v62  ;;  %v7024_v15 = vpop.eup %7023  ;;  %v1408_v62 = vmul.f32 %v7022_v6, %v7762_v0 }
 0x6bf   :  { %5972 = vmatprep.mubr.msk.f32.mxu1 %vm413_vm10, %v1404_v5  ;;  %v6012_v61 = vpop.f32.mrb[28].mxu0  ;;  %v1811_v9 = vadd.f32 %v1805_v57, %v7470_v18  ;;  %v1409_v23 = vmul.f32 %v7024_v15, %v7760_v16 }
 0x6c0   :  { %6455 = vmatpush3.bf16.msra.mxu1 %v6452_v48  ;;  %v1794_v21 = vpop.f32.mrb[29].mxu0  ;;  %v1808_v26 = vmul.f32 0.35355338, %v6012_v61  ;;  %v1824_v3 = vsel %vm413_vm10, %v1812_v51, -inf }
 0x6c1   :  { %v1807_v19 = vmul.f32 0.35355338, %v1794_v21  ;;  %v1821_v24 = vsel %vm413_vm10, %v1811_v9, -inf  ;;  %5981 = vmatprep.subr.mxu1 %v261_v7 }
 0x6c2   :  { %1822 = vmax.xlane.f32.xlu0 %v1821_v24  ;;  %v1814_v13 = vadd.f32 %v1808_v26, %v7478_v32 }
 0x6c3   :  { %5973 = vmatmul.mubr.msk.f32.vlgmr.msra.gmra.mrb[18].mxu1 %vm413_vm10, %v1405_v63  ;;  %v1813_v8 = vadd.f32 %v1807_v19, %v7475_v30 }
 0x6c4   :  { %5975 = vmatprep.mubr.msk.f32.mxu1 %vm413_vm10, %v1406_v42  ;;  %v1830_v20 = vsel %vm413_vm10, %v1814_v13, -inf  ;;  %5982 = vmatpush3.msra.mxu1 %v261_v7 }
 0x6c5   :  { %v1827_v11 = vsel %vm413_vm10, %v1813_v8, -inf }
 0x6c6   :  { %1825 = vmax.xlane.f32.xlu0 %v1824_v3  ;;  %1828 = vmax.xlane.f32.xlu1 %v1827_v11 }
 0x6c7   :  { %5976 = vmatmul.mubr.msk.f32.gmra.mrb[20].mxu1 %vm413_vm10, %v1407_v12 }
 0x6c8   :  { %5978 = vmatprep.mubr.msk.f32.mxu1 %vm413_vm10, %v1408_v62 }
 0x6ca   :  { %1831 = vmax.xlane.f32.xlu0 %v1830_v20 }
 0x6cb   :  { %5979 = vmatmul.mubr.msk.f32.gmra.mrb[22].mxu1 %vm413_vm10, %v1409_v23 }
 0x6d7   :  { %6819 = vrot.lane.b32.xlu1 %v7378_v17, %s8755_s28 }
 0x74a   :  { %v1820_v0 = vpop.xlane.xlu1 %1819 }
 0x74b   :  { %v1834_v50 = vsub.f32 %v1810_v37, %v1820_v0  ;;  %v1817_v55 = vpop.xlane.xlu0 %1816  ;;  %v262_v0 = vld [vmem:[%s8739_s8 + $0x18] sm:$0xff] }
 0x74c   :  { %v1833_v25 = vsub.f32 %v1809_v52, %v1817_v55 }
 0x74d   :  { %v1841_v28 = vmul.f32 1.442695, %v1834_v50 }
 0x74e   :  { %v1839_v29 = vmul.f32 1.442695, %v1833_v25 }
 0x74f   :  { %7025 = vpow2.f32 %v1841_v28  ;;  %v1823_v16 = vpop.xlane.xlu0 %1822 }
 0x750   :  { %7027 = vpow2.f32 %v1839_v29  ;;  %v1835_v54 = vsub.f32 %v1811_v9, %v1823_v16 }
 0x752   :  { %v1843_v59 = vmul.f32 1.442695, %v1835_v54 }
 0x753   :  { %v1826_v58 = vpop.xlane.xlu0 %1825  ;;  %v1829_v31 = vpop.xlane.xlu1 %1828 }
 0x754   :  { %7029 = vpow2.f32 %v1843_v59  ;;  %v1836_v17 = vsub.f32 %v1812_v51, %v1826_v58  ;;  %v1837_v34 = vsub.f32 %v1813_v8, %v1829_v31 }
 0x756   :  { %v1845_v33 = vmul.f32 1.442695, %v1836_v17  ;;  %v1847_v49 = vmul.f32 1.442695, %v1837_v34 }
 0x757   :  { %v1832_v35 = vpop.xlane.xlu0 %1831  ;;  %v6820_v36 = vpop.permute.xlu1 %6819 }
 0x758   :  { %7031 = vpow2.f32 %v1845_v33  ;;  %v1838_v44 = vsub.f32 %v1814_v13, %v1832_v35  ;;  %v6822_v45 = vunpack.i.h.bf16 %v6820_v36  ;;  %v6821_v46 = vunpack.i.l.bf16 %v6820_v36 }
 0x759   :  { %v7827_v47 = vpop.eup %7025 }
 0x75a   :  { %v7028_v39 = vpop.eup %7027  ;;  %v1849_v37 = vmul.f32 1.442695, %v1838_v44  ;;  %v1854_v41 = vsel %vm413_vm10, %v7827_v47, 0.0  ;;  %v6474_v48 = vpack.c.bf16 %v6822_v45, %v6821_v46  ;;  %v5331_v44 = vld [vmem:[%s8740_s9] ss:$0 sm:$0xff] }
 0x75b   :  { %1855 = vadd.xlane.f32.xlu0 %v1854_v41  ;;  %v1851_v52 = vsel %vm413_vm10, %v7028_v39, 0.0  ;;  %v7218_v41 = vld [vmem:[%s8765_s23] sm:$0xff] }
 0x75c   :  { %7033 = vpow2.f32 %v1849_v37  ;;  %1852 = vadd.xlane.f32.xlu1 %v1851_v52  ;;  %6475 = vmatprep.subr.bf16.mxu1 %v6474_v48 }
 0x75d   :  { %7035 = vpow2.f32 %v1847_v49  ;;  %v7217_v49 = vld [vmem:[%s8765_s23 + $0x8] sm:$0xff] }
 0x75e   :  { %v7030_v53 = vpop.eup %7029 }
 0x75f   :  { %v1857_v1 = vsel %vm413_vm10, %v7030_v53, 0.0 }
 0x760   :  { %1858 = vadd.xlane.f32.xlu1 %v1857_v1 }
 0x762   :  { %v7032_v14 = vpop.eup %7031 }
 0x763   :  { %v1860_v56 = vsel %vm413_vm10, %v7032_v14, 0.0 }
 0x764   :  { %1861 = vadd.xlane.f32.xlu0 %v1860_v56 }
 0x766   :  { %v7834_v57 = vpop.eup %7033 }
 0x767   :  { %v1866_v40 = vsel %vm413_vm10, %v7834_v57, 0.0  ;;  %v7036_v5 = vpop.eup %7035 }
 0x768   :  { %1867 = vadd.xlane.f32.xlu0 %v1866_v40  ;;  %v1863_v43 = vsel %vm413_vm10, %v7036_v5, 0.0  ;;  %v7219_v40 = vld [vmem:[%s8765_s23 + $0x10] sm:$0xff] }
 0x76c   :  { %1864 = vadd.xlane.f32.xlu0 %v1863_v43 }
 0x771   :  { %6829 = vrot.lane.b32.xlu1 %v7398_v27, %s8755_s28 }
 0x782   :  { %6824 = vrot.lane.b32.xlu0 %v7388_v22, %s8755_s28 }
 0x796   :  { %v5974_v61 = vpop.f32.mrb[18].mxu1 }
 0x797   :  { %v1512_v9 = vpop.f32.mrb[19].mxu1 }
 0x798   :  { %5983 = vmatprep.mubr.msk.f32.mxu1 %vm281_vm1, %v1512_v9  ;;  %v7220_v9 = vld [vmem:[%s8765_s23 + $0x18] sm:$0xff] }
 0x799   :  { %5984 = vmatmul.mubr.msk.f32.vlgmr.msra.gmra.mrb[12].mxu1 %vm281_vm1, %v5974_v61 }
 0x79a   :  { %6477 = vmatpush3.bf16.msra.mxu1 %v6474_v48  ;;  %v5977_v63 = vpop.f32.mrb[20].mxu1 }
 0x79b   :  { %v1522_v21 = vpop.f32.mrb[21].mxu1 }
 0x79c   :  { %5986 = vmatprep.mubr.msk.f32.mxu1 %vm281_vm1, %v1522_v21 }
 0x79d   :  { %5987 = vmatmul.mubr.msk.f32.gmra.mrb[14].mxu1 %vm281_vm1, %v5977_v63 }
 0x79e   :  { %v5980_v26 = vpop.f32.mrb[22].mxu1 }
 0x79f   :  { %v1532_v19 = vpop.f32.mrb[23].mxu1 }
 0x7a0   :  { %5989 = vmatprep.mubr.msk.f32.mxu1 %vm281_vm1, %v1532_v19 }
 0x7a1   :  { %5990 = vmatmul.mubr.msk.f32.gmra.mrb[16].mxu1 %vm281_vm1, %v5980_v26 }
 0x7e8   :  { %v1856_v27 = vpop.xlane.xlu0 %1855 }
 0x7e9   :  { %v1853_v22 = vpop.xlane.xlu1 %1852 }
 0x7ea   :  { %7037 = vrcp.f32 %v1853_v22  ;;  %v7221_v22 = vld [vmem:[%s8765_s23 + $0x20] sm:$0xff] }
 0x7eb   :  { %7039 = vrcp.f32 %v1856_v27 }
 0x7ed   :  { %v1859_v4 = vpop.xlane.xlu1 %1858 }
 0x7ee   :  { %7041 = vrcp.f32 %v1859_v4 }
 0x7f1   :  { %v1862_v24 = vpop.xlane.xlu0 %1861  ;;  %v6830_v3 = vpop.permute.xlu1 %6829 }
 0x7f2   :  { %v6832_v12 = vunpack.i.h.bf16 %v6830_v3  ;;  %v6831_v13 = vunpack.i.l.bf16 %v6830_v3  ;;  %7043 = vrcp.f32 %v1862_v24  ;;  %v7222_v24 = vld [vmem:[%s8765_s23 + $0x28] sm:$0xff] }
 0x7f4   :  { %v7038_v51 = vpop.eup %7037  ;;  %v6482_v23 = vpack.c.bf16 %v6832_v12, %v6831_v13 }
 0x7f5   :  { %v1868_v42 = vpop.xlane.xlu0 %1867  ;;  %v1875_v6 = vmul.f32 %v7038_v51, %v7028_v39  ;;  %v7040_v7 = vpop.eup %7039 }
 0x7f6   :  { %v1876_v55 = vmul.f32 %v7040_v7, %v7827_v47 }
 0x7f7   :  { %6025 = vmatprep.mubr.msk.f32.mxu1 %vm413_vm10, %v1875_v6 }
 0x7f8   :  { %v7042_v50 = vpop.eup %7041 }
 0x7f9   :  { %v1865_v8 = vpop.xlane.xlu0 %1864  ;;  %v1877_v28 = vmul.f32 %v7042_v50, %v7030_v53 }
 0x7fa   :  { %7045 = vrcp.f32 %v1865_v8 }
 0x7fb   :  { %7047 = vrcp.f32 %v1868_v42 }
 0x7fc   :  { %v7044_v25 = vpop.eup %7043 }
 0x7fd   :  { %v6825_v11 = vpop.permute.xlu0 %6824  ;;  %v1878_v16 = vmul.f32 %v7044_v25, %v7032_v14 }
 0x7fe   :  { %v6827_v15 = vunpack.i.h.bf16 %v6825_v11  ;;  %v6826_v62 = vunpack.i.l.bf16 %v6825_v11 }
 0x800   :  { %v6478_v20 = vpack.c.bf16 %v6827_v15, %v6826_v62 }
 0x802   :  { %6479 = vmatprep.subr.bf16.mxu1 %v6478_v20 }
 0x803   :  { %6481 = vmatpush3.bf16.msra.mxu1 %v6478_v20 }
 0x804   :  { %6483 = vmatprep.subr.bf16.mxu1 %v6482_v23  ;;  %v7046_v29 = vpop.eup %7045 }
 0x805   :  { %v7048_v54 = vpop.eup %7047  ;;  %v1879_v59 = vmul.f32 %v7046_v29, %v7036_v5 }
 0x806   :  { %v1880_v58 = vmul.f32 %v7048_v54, %v7834_v57 }
 0x807   :  { %6485 = vmatpush3.bf16.msra.mxu1 %v6482_v23 }
 0x808   :  { %6034 = vmatprep.subr.mxu1 %v262_v0 }
 0x80a   :  { %6026 = vmatmul.mubr.msk.f32.vlgmr.msra.gmra.mrb[24].mxu1 %vm413_vm10, %v1876_v55 }
 0x80b   :  { %6028 = vmatprep.mubr.msk.f32.mxu1 %vm413_vm10, %v1877_v28  ;;  %6035 = vmatpush3.msra.mxu1 %v262_v0 }
 0x80e   :  { %6029 = vmatmul.mubr.msk.f32.gmra.mrb[26].mxu1 %vm413_vm10, %v1878_v16 }
 0x80f   :  { %6031 = vmatprep.mubr.msk.f32.mxu1 %vm413_vm10, %v1879_v59 }
 0x812   :  { %6032 = vmatmul.mubr.msk.f32.gmra.mrb[28].mxu1 %vm413_vm10, %v1880_v58 }
 0x8dd   :  { %v6027_v31 = vpop.f32.mrb[24].mxu1 }
 0x8de   :  { %v1983_v17 = vpop.f32.mrb[25].mxu1 }
 0x8df   :  { %6036 = vmatprep.mubr.msk.f32.mxu1 %vm281_vm1, %v1983_v17 }
 0x8e0   :  { %6037 = vmatmul.mubr.msk.f32.vlgmr.msra.gmra.mrb[12].mxu1 %vm281_vm1, %v6027_v31 }
 0x8e1   :  { %v6030_v33 = vpop.f32.mrb[26].mxu1 }
 0x8e2   :  { %v1993_v34 = vpop.f32.mrb[27].mxu1 }
 0x8e3   :  { %6039 = vmatprep.mubr.msk.f32.mxu1 %vm281_vm1, %v1993_v34 }
 0x8e4   :  { %6040 = vmatmul.mubr.msk.f32.gmra.mrb[14].mxu1 %vm281_vm1, %v6030_v33 }
 0x8e5   :  { %v6033_v35 = vpop.f32.mrb[28].mxu1 }
 0x8e6   :  { %v2003_v36 = vpop.f32.mrb[29].mxu1 }
 0x8e7   :  { %6042 = vmatprep.mubr.msk.f32.mxu1 %vm281_vm1, %v2003_v36 }
 0x8e8   :  { %6043 = vmatmul.mubr.msk.f32.gmra.mrb[16].mxu1 %vm281_vm1, %v6033_v35 }
 0x9b3   :  { %v6038_v45 = vpop.f32.mrb[12].mxu1 }
 0x9b4   :  { %v2139_v46 = vadd.f32 %v6038_v45, %v5331_v44  ;;  %v2096_v47 = vpop.f32.mrb[13].mxu1 }
 0x9b5   :  { %v2138_v39 = vadd.f32 %v5331_v44, %v2096_v47 }
 0x9b6   :  { %v7872_v37 = vadd.f32 %v7217_v49, %v2139_v46  ;;  %v2153_v49 = vld [vmem:[%s8741_s12 + $0x8] sm:$0xff] }
 0x9b7   :  { %v7877_v48 = vadd.f32 %v7218_v41, %v2138_v39  ;;  %v6041_v52 = vpop.f32.mrb[14].mxu1  ;;  %v2152_v39 = vld [vmem:[%s8741_s12] sm:$0xff] }
 0x9b8   :  { %v2106_v53 = vpop.f32.mrb[15].mxu1  ;;  %v2169_v1 = vsel %vm145_vm0, %v7872_v37, 0.0  ;;  %v2141_v14 = vadd.f32 %v6041_v52, %v5331_v44  ;;  %v6486_v41 = vpack.c.bf16 %v2153_v49, %v2152_v39  ;;  %v2154_v52 = vld [vmem:[%s8741_s12 + $0x10] sm:$0xff] }
 0x9b9   :  { %v2140_v56 = vadd.f32 %v5331_v44, %v2106_v53  ;;  %2170 = vadd.xlane.f32.xlu0 %v2169_v1  ;;  %v2166_v57 = vsel %vm145_vm0, %v7877_v48, 0.0  ;;  %v2155_v53 = vld [vmem:[%s8741_s12 + $0x18] sm:$0xff] }
 0x9ba   :  { %2167 = vadd.xlane.f32.xlu1 %v2166_v57  ;;  %v7891_v63 = vadd.f32 %v7220_v9, %v2141_v14  ;;  %6487 = vmatprep.subr.bf16.mxu0 %v6486_v41  ;;  %v6490_v1 = vpack.c.bf16 %v2155_v53, %v2154_v52  ;;  %v2160_v52 = vld [vmem:[%s8744_s14 + $0x18] sm:$0xff] }
 0x9bb   :  { %v7886_v5 = vadd.f32 %v7219_v40, %v2140_v56  ;;  %v6044_v43 = vpop.f32.mrb[16].mxu1  ;;  %6489 = vmatpush3.bf16.msra.mxu0 %v6486_v41 }
 0x9bc   :  { %v2116_v61 = vpop.f32.mrb[17].mxu1  ;;  %v2143_v21 = vadd.f32 %v6044_v43, %v5331_v44  ;;  %v2175_v4 = vsel %vm145_vm0, %v7891_v63, 0.0  ;;  %6491 = vmatprep.subr.bf16.mxu0 %v6490_v1 }
 0x9bd   :  { %v2142_v26 = vadd.f32 %v5331_v44, %v2116_v61  ;;  %v2172_v19 = vsel %vm145_vm0, %v7886_v5, 0.0 }
 0x9be   :  { %2173 = vadd.xlane.f32.xlu1 %v2172_v19  ;;  %v7903_v51 = vadd.f32 %v7222_v24, %v2143_v21 }
 0x9bf   :  { %v7898_v27 = vadd.f32 %v7221_v22, %v2142_v26  ;;  %6493 = vmatpush3.bf16.msra.mxu0 %v6490_v1  ;;  %v2161_v1 = vld [vmem:[%s8744_s14 + $0x20] sm:$0xff] }
 0x9c0   :  { %v2181_v6 = vsel %vm145_vm0, %v7903_v51, 0.0 }
 0x9c1   :  { %v2178_v42 = vsel %vm145_vm0, %v7898_v27, 0.0 }
 0x9c2   :  { %2176 = vadd.xlane.f32.xlu1 %v2175_v4  ;;  %2179 = vadd.xlane.f32.xlu0 %v2178_v42 }
 0x9c6   :  { %2182 = vadd.xlane.f32.xlu1 %v2181_v6 }
 0xa46   :  { %v2171_v8 = vpop.xlane.xlu0 %2170 }
 0xa47   :  { %v2186_v3 = vmul.f32 0.03125, %v2171_v8  ;;  %v2168_v11 = vpop.xlane.xlu1 %2167 }
 0xa48   :  { %v2185_v12 = vmul.f32 0.03125, %v2168_v11 }
 0xa49   :  { %v7912_v13 = vsub.f32 %v7872_v37, %v2186_v3 }
 0xa4a   :  { %v7915_v15 = vsub.f32 %v7877_v48, %v2185_v12  ;;  %v5332_v12 = vld [vmem:[%s8742_s10] ss:$0 sm:$0xff] }
 0xa4b   :  { %v2174_v62 = vpop.xlane.xlu1 %2173  ;;  %v2198_v20 = vmul.f32 %v7912_v13, %v7912_v13 }
 0xa4c   :  { %v2187_v23 = vmul.f32 0.03125, %v2174_v62  ;;  %v2197_v7 = vmul.f32 %v7915_v15, %v7915_v15 }
 0xa4d   :  { %v2206_v0 = vsel %vm145_vm0, %v2198_v20, 0.0 }
 0xa4e   :  { %v7923_v50 = vsub.f32 %v7886_v5, %v2187_v23  ;;  %2207 = vadd.xlane.f32.xlu1 %v2206_v0  ;;  %v2203_v55 = vsel %vm145_vm0, %v2197_v7, 0.0 }
 0xa4f   :  { %v2177_v25 = vpop.xlane.xlu1 %2176  ;;  %2204 = vadd.xlane.f32.xlu0 %v2203_v55  ;;  %v2180_v28 = vpop.xlane.xlu0 %2179  ;;  %v5333_v55 = vld [vmem:[%s8743_s11] ss:$0 sm:$0xff] }
 0xa50   :  { %v2188_v29 = vmul.f32 0.03125, %v2177_v25  ;;  %v2189_v16 = vmul.f32 0.03125, %v2180_v28  ;;  %v2199_v54 = vmul.f32 %v7923_v50, %v7923_v50 }
 0xa52   :  { %v7929_v59 = vsub.f32 %v7891_v63, %v2188_v29  ;;  %v7932_v58 = vsub.f32 %v7898_v27, %v2189_v16  ;;  %v2209_v31 = vsel %vm145_vm0, %v2199_v54, 0.0 }
 0xa53   :  { %v2183_v17 = vpop.xlane.xlu1 %2182  ;;  %2210 = vadd.xlane.f32.xlu0 %v2209_v31 }
 0xa54   :  { %v2190_v33 = vmul.f32 0.03125, %v2183_v17  ;;  %v2200_v34 = vmul.f32 %v7929_v59, %v7929_v59  ;;  %v2201_v35 = vmul.f32 %v7932_v58, %v7932_v58 }
 0xa56   :  { %v7940_v36 = vsub.f32 %v7903_v51, %v2190_v33  ;;  %v2212_v44 = vsel %vm145_vm0, %v2200_v34, 0.0  ;;  %v2215_v45 = vsel %vm145_vm0, %v2201_v35, 0.0 }
 0xa57   :  { %2213 = vadd.xlane.f32.xlu1 %v2212_v44  ;;  %2216 = vadd.xlane.f32.xlu0 %v2215_v45 }
 0xa58   :  { %v2202_v46 = vmul.f32 %v7940_v36, %v7940_v36 }
 0xa5a   :  { %v2218_v47 = vsel %vm145_vm0, %v2202_v46, 0.0 }
 0xa5b   :  { %2219 = vadd.xlane.f32.xlu1 %v2218_v47 }
 0xadb   :  { %v2208_v14 = vpop.xlane.xlu1 %2207 }
 0xadc   :  { %v2222_v56 = vmul.f32 0.03125, %v2208_v14  ;;  %v2205_v57 = vpop.xlane.xlu0 %2204  ;;  %v2162_v14 = vld [vmem:[%s8744_s14 + $0x28] sm:$0xff] }
 0xadd   :  { %v2221_v40 = vmul.f32 0.03125, %v2205_v57  ;;  %v2163_v57 = vld [vmem:[%s8744_s14 + $0x30] sm:$0xff] }
 0xade   :  { %v2228_v43 = vadd.f32 1e-06, %v2222_v56  ;;  %v6502_v56 = vpack.c.bf16 %v2162_v14, %v2161_v1 }
 0xadf   :  { %v2227_v61 = vadd.f32 1e-06, %v2221_v40  ;;  %v2164_v40 = vld [vmem:[%s8744_s14 + $0x38] sm:$0xff] }
 0xae0   :  { %7049 = vrsqrt.f32 %v2228_v43  ;;  %v2211_v9 = vpop.xlane.xlu0 %2210  ;;  %v6506_v43 = vpack.c.bf16 %v2164_v40, %v2163_v57 }
 0xae1   :  { %7051 = vrsqrt.f32 %v2227_v61  ;;  %v2223_v21 = vmul.f32 0.03125, %v2211_v9  ;;  %v5334_v61 = vld [vmem:[%s8745_s13] ss:$0 sm:$0xff] }
 0xae3   :  { %v2229_v26 = vadd.f32 1e-06, %v2223_v21 }
 0xae4   :  { %v2214_v19 = vpop.xlane.xlu1 %2213  ;;  %v2217_v22 = vpop.xlane.xlu0 %2216 }
 0xae5   :  { %7053 = vrsqrt.f32 %v2229_v26  ;;  %v2224_v24 = vmul.f32 0.03125, %v2214_v19  ;;  %v2225_v4 = vmul.f32 0.03125, %v2217_v22 }
 0xae7   :  { %v2230_v42 = vadd.f32 1e-06, %v2224_v24  ;;  %v2231_v6 = vadd.f32 1e-06, %v2225_v4 }
 0xae8   :  { %v2220_v8 = vpop.xlane.xlu1 %2219 }
 0xae9   :  { %7055 = vrsqrt.f32 %v2230_v42  ;;  %v2226_v3 = vmul.f32 0.03125, %v2220_v8 }
 0xaea   :  { %v7050_v11 = vpop.eup %7049  ;;  %7057 = vrsqrt.f32 %v2231_v6 }
 0xaeb   :  { %v7052_v62 = vpop.eup %7051  ;;  %v2240_v20 = vmul.f32 %v7050_v11, %v7912_v13  ;;  %v2232_v23 = vadd.f32 1e-06, %v2226_v3 }
 0xaec   :  { %v2239_v7 = vmul.f32 %v7052_v62, %v7915_v15 }
 0xaed   :  { %v2252_v0 = vmul.f32 %v5332_v12, %v2240_v20  ;;  %7059 = vrsqrt.f32 %v2232_v23 }
 0xaee   :  { %v2251_v25 = vmul.f32 %v5332_v12, %v2239_v7 }
 0xaef   :  { %v7054_v28 = vpop.eup %7053  ;;  %v2264_v54 = vadd.f32 %v5333_v55, %v2252_v0 }
 0xaf0   :  { %v2263_v29 = vadd.f32 %v5333_v55, %v2251_v25  ;;  %v2241_v16 = vmul.f32 %v7054_v28, %v7923_v50 }
 0xaf2   :  { %6053 = vmatprep.mubr.msk.f32.mxu0 %vm145_vm0, %v2263_v29  ;;  %v2253_v31 = vmul.f32 %v5332_v12, %v2241_v16 }
 0xaf3   :  { %v7056_v17 = vpop.eup %7055  ;;  %6054 = vmatmul.mubr.msk.f32.vlgmr.msra.gmra.mrb[30].mxu0 %vm145_vm0, %v2264_v54 }
 0xaf4   :  { %v7058_v13 = vpop.eup %7057  ;;  %v2265_v15 = vadd.f32 %v5333_v55, %v2253_v31  ;;  %v2242_v33 = vmul.f32 %v7056_v17, %v7929_v59  ;;  %v2157_v59 = vld [vmem:[%s8744_s14] sm:$0xff] }
 0xaf5   :  { %v2243_v34 = vmul.f32 %v7058_v13, %v7932_v58  ;;  %v2158_v58 = vld [vmem:[%s8744_s14 + $0x8] sm:$0xff] }
 0xaf6   :  { %6056 = vmatprep.mubr.msk.f32.mxu0 %vm145_vm0, %v2265_v15  ;;  %v2254_v35 = vmul.f32 %v5332_v12, %v2242_v33  ;;  %v6494_v41 = vpack.c.bf16 %v2158_v58, %v2157_v59 }
 0xaf7   :  { %v7060_v44 = vpop.eup %7059  ;;  %v2255_v45 = vmul.f32 %v5332_v12, %v2243_v34 }
 0xaf8   :  { %v2266_v46 = vadd.f32 %v5333_v55, %v2254_v35  ;;  %v2244_v50 = vmul.f32 %v7060_v44, %v7940_v36  ;;  %6495 = vmatprep.subr.bf16.mxu0 %v6494_v41  ;;  %v2159_v36 = vld [vmem:[%s8744_s14 + $0x10] sm:$0xff] }
 0xaf9   :  { %v2267_v47 = vadd.f32 %v5333_v55, %v2255_v45  ;;  %6497 = vmatpush3.bf16.msra.mxu0 %v6494_v41  ;;  %v6498_v53 = vpack.c.bf16 %v2160_v52, %v2159_v36 }
 0xafa   :  { %6057 = vmatmul.mubr.msk.f32.gmra.mrb[32].mxu0 %vm145_vm0, %v2266_v46  ;;  %v2256_v39 = vmul.f32 %v5332_v12, %v2244_v50 }
 0xafb   :  { %6059 = vmatprep.mubr.msk.f32.mxu0 %vm145_vm0, %v2267_v47  ;;  %6499 = vmatprep.subr.bf16.mxu0 %v6498_v53 }
 0xafc   :  { %v2268_v49 = vadd.f32 %v5333_v55, %v2256_v39 }
 0xafd   :  { %6501 = vmatpush3.bf16.msra.mxu0 %v6498_v53 }
 0xafe   :  { %6060 = vmatmul.mubr.msk.f32.gmra.mrb[34].mxu0 %vm145_vm0, %v2268_v49  ;;  %6503 = vmatprep.subr.bf16.mxu0 %v6502_v56 }
 0xb01   :  { %6505 = vmatpush3.bf16.msra.mxu0 %v6502_v56 }
 0xb02   :  { %6507 = vmatprep.subr.bf16.mxu0 %v6506_v43 }
 0xb05   :  { %6509 = vmatpush3.bf16.msra.mxu0 %v6506_v43 }
 0xbc6   :  { %v6055_v9 = vpop.f32.mrb[30].mxu0 }
 0xbc7   :  { %v2365_v21 = vadd.f32 %v6055_v9, %v5334_v61  ;;  %v2359_v26 = vpop.f32.mrb[31].mxu0 }
 0xbc8   :  { %v2360_v19 = vadd.f32 %v5334_v61, %v2359_v26 }
 0xbc9   :  { %v2395_v22 = vmul.f32 0.044715, %v2365_v21  ;;  %v2389_v57 = vmul.f32 0.5, %v2365_v21 }
 0xbca   :  { %v2394_v24 = vmul.f32 0.044715, %v2360_v19  ;;  %v2388_v14 = vmul.f32 0.5, %v2360_v19 }
 0xbcb   :  { %v2401_v4 = vmul.f32 %v2395_v22, %v2365_v21 }
 0xbcc   :  { %v2400_v42 = vmul.f32 %v2394_v24, %v2360_v19 }
 0xbcd   :  { %v2407_v6 = vmul.f32 %v2401_v4, %v2365_v21  ;;  %v6058_v8 = vpop.f32.mrb[32].mxu0 }
 0xbce   :  { %v2406_v3 = vmul.f32 %v2400_v42, %v2360_v19  ;;  %v2375_v11 = vadd.f32 %v6058_v8, %v5334_v61  ;;  %v2369_v12 = vpop.f32.mrb[33].mxu0 }
 0xbcf   :  { %v2413_v62 = vadd.f32 %v2407_v6, %v2365_v21  ;;  %v2370_v20 = vadd.f32 %v5334_v61, %v2369_v12 }
 0xbd0   :  { %v2412_v23 = vadd.f32 %v2406_v3, %v2360_v19  ;;  %v2397_v7 = vmul.f32 0.044715, %v2375_v11  ;;  %v2391_v4 = vmul.f32 0.5, %v2375_v11 }
 0xbd1   :  { %v2419_v0 = vmul.f32 0.7978846, %v2413_v62  ;;  %v2396_v55 = vmul.f32 0.044715, %v2370_v20  ;;  %v6061_v25 = vpop.f32.mrb[34].mxu0  ;;  %v2390_v22 = vmul.f32 0.5, %v2370_v20 }
 0xbd2   :  { %v2403_v28 = vmul.f32 %v2397_v7, %v2375_v11  ;;  %v2385_v29 = vadd.f32 %v6061_v25, %v5334_v61  ;;  %v2379_v16 = vpop.f32.mrb[35].mxu0  ;;  %v2418_v54 = vmul.f32 0.7978846, %v2412_v23 }
 0xbd3   :  { %7061 = vtanh.f32 %v2419_v0  ;;  %v2402_v31 = vmul.f32 %v2396_v55, %v2370_v20  ;;  %v2380_v17 = vadd.f32 %v5334_v61, %v2379_v16 }
 0xbd4   :  { %v2409_v13 = vmul.f32 %v2403_v28, %v2375_v11  ;;  %v2399_v15 = vmul.f32 0.044715, %v2385_v29  ;;  %7063 = vtanh.f32 %v2418_v54  ;;  %v2393_v62 = vmul.f32 0.5, %v2385_v29 }
 0xbd5   :  { %v2408_v33 = vmul.f32 %v2402_v31, %v2370_v20  ;;  %v2398_v34 = vmul.f32 0.044715, %v2380_v17  ;;  %v2392_v21 = vmul.f32 0.5, %v2380_v17 }
 0xbd6   :  { %v2415_v35 = vadd.f32 %v2409_v13, %v2375_v11  ;;  %v2405_v44 = vmul.f32 %v2399_v15, %v2385_v29  ;;  %v5341_v11 = vld [vmem:[%s8746_s15] ss:$0 sm:$0xff] }
 0xbd7   :  { %v2414_v45 = vadd.f32 %v2408_v33, %v2370_v20  ;;  %v2404_v46 = vmul.f32 %v2398_v34, %v2380_v17 }
 0xbd8   :  { %v2411_v50 = vmul.f32 %v2405_v44, %v2385_v29  ;;  %v2421_v47 = vmul.f32 0.7978846, %v2415_v35 }
 0xbd9   :  { %v2410_v39 = vmul.f32 %v2404_v46, %v2380_v17  ;;  %v2420_v49 = vmul.f32 0.7978846, %v2414_v45 }
 0xbda   :  { %v2417_v59 = vadd.f32 %v2411_v50, %v2385_v29  ;;  %7065 = vtanh.f32 %v2421_v47 }
 0xbdb   :  { %v2416_v58 = vadd.f32 %v2410_v39, %v2380_v17  ;;  %7067 = vtanh.f32 %v2420_v49 }
 0xbdc   :  { %v2423_v41 = vmul.f32 0.7978846, %v2417_v59 }
 0xbdd   :  { %v7062_v36 = vpop.eup %7061  ;;  %v2422_v52 = vmul.f32 0.7978846, %v2416_v58 }
 0xbde   :  { %v7064_v53 = vpop.eup %7063  ;;  %v2431_v1 = vadd.f32 1.0, %v7062_v36  ;;  %7069 = vtanh.f32 %v2423_v41 }
 0xbdf   :  { %v2430_v56 = vadd.f32 1.0, %v7064_v53  ;;  %7071 = vtanh.f32 %v2422_v52 }
 0xbe0   :  { %v2437_v43 = vmul.f32 %v2431_v1, %v2389_v57 }
 0xbe1   :  { %v2436_v40 = vmul.f32 %v2430_v56, %v2388_v14 }
 0xbe3   :  { %6078 = vmatprep.mubr.msk.f32.mxu0 %vm2448_vm5, %v2436_v40 }
 0xbe4   :  { %v7066_v61 = vpop.eup %7065  ;;  %6079 = vmatmul.mubr.msk.f32.vlgmr.msra.gmra.mrb[36].mxu0 %vm2448_vm5, %v2437_v43 }
 0xbe5   :  { %v7068_v9 = vpop.eup %7067  ;;  %v2433_v26 = vadd.f32 1.0, %v7066_v61 }
 0xbe6   :  { %v2432_v24 = vadd.f32 1.0, %v7068_v9 }
 0xbe7   :  { %v2439_v19 = vmul.f32 %v2433_v26, %v2391_v4 }
 0xbe8   :  { %v7070_v42 = vpop.eup %7069  ;;  %v2438_v6 = vmul.f32 %v2432_v24, %v2390_v22 }
 0xbe9   :  { %v7072_v8 = vpop.eup %7071  ;;  %v2435_v3 = vadd.f32 1.0, %v7070_v42 }
 0xbea   :  { %6081 = vmatprep.mubr.msk.f32.mxu0 %vm2448_vm5, %v2438_v6  ;;  %v2434_v12 = vadd.f32 1.0, %v7072_v8 }
 0xbeb   :  { %6082 = vmatmul.mubr.msk.f32.gmra.mrb[38].mxu0 %vm2448_vm5, %v2439_v19  ;;  %v2441_v7 = vmul.f32 %v2435_v3, %v2393_v62 }
 0xbec   :  { %v2440_v23 = vmul.f32 %v2434_v12, %v2392_v21 }
 0xbee   :  { %6084 = vmatprep.mubr.msk.f32.mxu0 %vm2448_vm5, %v2440_v23  ;;  %v5352_v23 = vld [vmem:[%s8764_s29 + $0x20] sm:$0xff] }
 0xbef   :  { %6085 = vmatmul.mubr.msk.f32.gmra.mrb[40].mxu0 %vm2448_vm5, %v2441_v7  ;;  %v5353_v7 = vld [vmem:[%s8764_s29 + $0x28] sm:$0xff] }
 0xcb7   :  { %v6080_v20 = vpop.f32.mrb[36].mxu0 }
 0xcb8   :  { %v2539_v0 = vadd.f32 %v6080_v20, %v5341_v11  ;;  %v2533_v55 = vpop.f32.mrb[37].mxu0  ;;  %v5354_v20 = vld [vmem:[%s8764_s29 + $0x30] sm:$0xff] }
 0xcb9   :  { %v2534_v25 = vadd.f32 %v5341_v11, %v2533_v55 }
 0xcba   :  { %v8014_v28 = vadd.f32 %v2539_v0, %v7872_v37  ;;  %v5355_v0 = vld [vmem:[%s8764_s29 + $0x38] sm:$0xff] }
 0xcbb   :  { %v8017_v16 = vadd.f32 %v2534_v25, %v7877_v48  ;;  %v6514_v55 = vpack.c.bf16 %v5355_v0, %v5354_v20 }
 0xcbc   :  { %v2575_v29 = vsel %vm145_vm0, %v8014_v28, 0.0 }
 0xcbd   :  { %2576 = vadd.xlane.f32.xlu1 %v2575_v29  ;;  %v2572_v54 = vsel %vm145_vm0, %v8017_v16, 0.0 }
 0xcbe   :  { %v6083_v31 = vpop.f32.mrb[38].mxu0  ;;  %2573 = vadd.xlane.f32.xlu0 %v2572_v54 }
 0xcbf   :  { %v2549_v17 = vadd.f32 %v6083_v31, %v5341_v11  ;;  %v2543_v13 = vpop.f32.mrb[39].mxu0 }
 0xcc0   :  { %v2544_v15 = vadd.f32 %v5341_v11, %v2543_v13 }
 0xcc1   :  { %v8024_v33 = vadd.f32 %v2549_v17, %v7891_v63 }
 0xcc2   :  { %v8027_v37 = vadd.f32 %v2544_v15, %v7886_v5  ;;  %v6086_v48 = vpop.f32.mrb[40].mxu0 }
 0xcc3   :  { %v2559_v34 = vadd.f32 %v6086_v48, %v5341_v11  ;;  %v2553_v35 = vpop.f32.mrb[41].mxu0  ;;  %v2581_v44 = vsel %vm145_vm0, %v8024_v33, 0.0 }
 0xcc4   :  { %v2554_v45 = vadd.f32 %v5341_v11, %v2553_v35  ;;  %2582 = vadd.xlane.f32.xlu1 %v2581_v44  ;;  %v2578_v46 = vsel %vm145_vm0, %v8027_v37, 0.0  ;;  %v6510_v11 = vpack.c.bf16 %v5353_v7, %v5352_v23 }
 0xcc5   :  { %v8034_v50 = vadd.f32 %v2559_v34, %v7903_v51  ;;  %2579 = vadd.xlane.f32.xlu0 %v2578_v46 }
 0xcc6   :  { %v8037_v63 = vadd.f32 %v2554_v45, %v7898_v27  ;;  %6511 = vmatprep.subr.bf16.mxu1 %v6510_v11 }
 0xcc7   :  { %v2587_v5 = vsel %vm145_vm0, %v8034_v50, 0.0  ;;  %6513 = vmatpush3.bf16.msra.mxu1 %v6510_v11 }
 0xcc8   :  { %2588 = vadd.xlane.f32.xlu1 %v2587_v5  ;;  %v2584_v47 = vsel %vm145_vm0, %v8037_v63, 0.0  ;;  %6515 = vmatprep.subr.bf16.mxu1 %v6514_v55 }
 0xcc9   :  { %2585 = vadd.xlane.f32.xlu0 %v2584_v47 }
 0xccb   :  { %6517 = vmatpush3.bf16.msra.mxu1 %v6514_v55 }
 0xd4a   :  { %v2577_v39 = vpop.xlane.xlu1 %2576 }
 0xd4b   :  { %v2591_v49 = vmul.f32 0.03125, %v2577_v39  ;;  %v2574_v59 = vpop.xlane.xlu0 %2573 }
 0xd4c   :  { %v2590_v58 = vmul.f32 0.03125, %v2574_v59 }
 0xd4d   :  { %v8044_v41 = vsub.f32 %v8014_v28, %v2591_v49 }
 0xd4e   :  { %v8047_v51 = vsub.f32 %v8017_v16, %v2590_v58  ;;  %v5350_v58 = vld [vmem:[%s8747_s4 + $0x1] ss:$0 sm:$0xff] }
 0xd4f   :  { %v2603_v27 = vmul.f32 %v8044_v41, %v8044_v41 }
 0xd50   :  { %v2602_v36 = vmul.f32 %v8047_v51, %v8047_v51 }
 0xd51   :  { %v2583_v52 = vpop.xlane.xlu1 %2582  ;;  %v2611_v53 = vsel %vm145_vm0, %v2603_v27, 0.0 }
 0xd52   :  { %v2593_v1 = vmul.f32 0.03125, %v2583_v52  ;;  %v2580_v14 = vpop.xlane.xlu0 %2579  ;;  %2612 = vadd.xlane.f32.xlu1 %v2611_v53  ;;  %v2608_v56 = vsel %vm145_vm0, %v2602_v36, 0.0 }
 0xd53   :  { %v2592_v57 = vmul.f32 0.03125, %v2580_v14  ;;  %2609 = vadd.xlane.f32.xlu0 %v2608_v56  ;;  %v5351_v14 = vld [vmem:[%s8748_s5 + $0x1] ss:$0 sm:$0xff] }
 0xd54   :  { %v8056_v40 = vsub.f32 %v8024_v33, %v2593_v1 }
 0xd55   :  { %v8059_v43 = vsub.f32 %v8027_v37, %v2592_v57  ;;  %v2589_v61 = vpop.xlane.xlu1 %2588 }
 0xd56   :  { %v2595_v9 = vmul.f32 0.03125, %v2589_v61  ;;  %v2586_v26 = vpop.xlane.xlu0 %2585  ;;  %v2605_v22 = vmul.f32 %v8056_v40, %v8056_v40 }
 0xd57   :  { %v2594_v24 = vmul.f32 0.03125, %v2586_v26  ;;  %v2604_v4 = vmul.f32 %v8059_v43, %v8059_v43 }
 0xd58   :  { %v8066_v42 = vsub.f32 %v8034_v50, %v2595_v9  ;;  %v2617_v6 = vsel %vm145_vm0, %v2605_v22, 0.0 }
 0xd59   :  { %v8070_v8 = vsub.f32 %v8037_v63, %v2594_v24  ;;  %2618 = vadd.xlane.f32.xlu1 %v2617_v6  ;;  %v2614_v19 = vsel %vm145_vm0, %v2604_v4, 0.0 }
 0xd5a   :  { %2615 = vadd.xlane.f32.xlu0 %v2614_v19  ;;  %v2607_v3 = vmul.f32 %v8066_v42, %v8066_v42 }
 0xd5b   :  { %v2606_v21 = vmul.f32 %v8070_v8, %v8070_v8 }
 0xd5c   :  { %v2623_v12 = vsel %vm145_vm0, %v2607_v3, 0.0 }
 0xd5d   :  { %2624 = vadd.xlane.f32.xlu1 %v2623_v12  ;;  %v2620_v62 = vsel %vm145_vm0, %v2606_v21, 0.0 }
 0xd5e   :  { %2621 = vadd.xlane.f32.xlu0 %v2620_v62 }
 0xddf   :  { %v2613_v25 = vpop.xlane.xlu1 %2612 }
 0xde0   :  { %v2627_v29 = vmul.f32 0.03125, %v2613_v25  ;;  %v2610_v54 = vpop.xlane.xlu0 %2609 }
 0xde1   :  { %v2626_v31 = vmul.f32 0.03125, %v2610_v54 }
 0xde2   :  { %v2633_v17 = vadd.f32 1e-06, %v2627_v29 }
 0xde3   :  { %v2632_v13 = vadd.f32 1e-06, %v2626_v31 }
 0xde4   :  { %7073 = vrsqrt.f32 %v2633_v17 }
 0xde5   :  { %7075 = vrsqrt.f32 %v2632_v13 }
 0xde6   :  { %v2619_v15 = vpop.xlane.xlu1 %2618 }
 0xde7   :  { %v2629_v48 = vmul.f32 0.03125, %v2619_v15  ;;  %v2616_v34 = vpop.xlane.xlu0 %2615 }
 0xde8   :  { %v2628_v35 = vmul.f32 0.03125, %v2616_v34 }
 0xde9   :  { %v2635_v44 = vadd.f32 1e-06, %v2629_v48 }
 0xdea   :  { %v2634_v45 = vadd.f32 1e-06, %v2628_v35  ;;  %v2625_v46 = vpop.xlane.xlu1 %2624 }
 0xdeb   :  { %7077 = vrsqrt.f32 %v2635_v44  ;;  %v2631_v5 = vmul.f32 0.03125, %v2625_v46  ;;  %v2622_v47 = vpop.xlane.xlu0 %2621 }
 0xdec   :  { %7079 = vrsqrt.f32 %v2634_v45  ;;  %v2630_v39 = vmul.f32 0.03125, %v2622_v47 }
 0xded   :  { %v2637_v49 = vadd.f32 1e-06, %v2631_v5 }
 0xdee   :  { %v7074_v59 = vpop.eup %7073  ;;  %v2636_v27 = vadd.f32 1e-06, %v2630_v39 }
 0xdef   :  { %v7076_v36 = vpop.eup %7075  ;;  %v2645_v52 = vmul.f32 %v7074_v59, %v8044_v41  ;;  %7081 = vrsqrt.f32 %v2637_v49 }
 0xdf0   :  { %7083 = vrsqrt.f32 %v2636_v27  ;;  %v2644_v53 = vmul.f32 %v7076_v36, %v8047_v51 }
 0xdf1   :  { %v2657_v1 = vmul.f32 %v5350_v58, %v2645_v52 }
 0xdf2   :  { %v2656_v56 = vmul.f32 %v5350_v58, %v2644_v53 }
 0xdf3   :  { %v2669_v9 = vadd.f32 %v5351_v14, %v2657_v1 }
 0xdf4   :  { %v2668_v57 = vadd.f32 %v5351_v14, %v2656_v56 }
 0xdf5   :  { %v7078_v61 = vpop.eup %7077 }
 0xdf6   :  { %v7080_v26 = vpop.eup %7079  ;;  %6095 = vmatprep.mubr.msk.f32.mxu1 %vm145_vm0, %v2668_v57  ;;  %v2647_v22 = vmul.f32 %v7078_v61, %v8056_v40 }
 0xdf7   :  { %6096 = vmatmul.mubr.msk.f32.vlgmr.msra.gmra.mrb[30].mxu1 %vm145_vm0, %v2669_v9  ;;  %v2646_v41 = vmul.f32 %v7080_v26, %v8059_v43  ;;  %v5357_v43 = vld [vmem:[%s8766_s7 + $0x1] ss:$0 sm:$0xff]  ;;  %s8769_s7 = smov 104  }
 0xdf8   :  { %v2659_v24 = vmul.f32 %v5350_v58, %v2647_v22 }
 0xdf9   :  { %v7082_v51 = vpop.eup %7081  ;;  %v2658_v4 = vmul.f32 %v5350_v58, %v2646_v41 }
 0xdfa   :  { %v7084_v6 = vpop.eup %7083  ;;  %v2649_v19 = vmul.f32 %v7082_v51, %v8066_v42  ;;  %v2671_v12 = vadd.f32 %v5351_v14, %v2659_v24 }
 0xdfb   :  { %v2670_v3 = vadd.f32 %v5351_v14, %v2658_v4  ;;  %v2648_v21 = vmul.f32 %v7084_v6, %v8070_v8 }
 0xdfc   :  { %v2661_v62 = vmul.f32 %v5350_v58, %v2649_v19 }
 0xdfd   :  { %6098 = vmatprep.mubr.msk.f32.mxu1 %vm145_vm0, %v2670_v3  ;;  %v2660_v23 = vmul.f32 %v5350_v58, %v2648_v21 }
 0xdfe   :  { %6099 = vmatmul.mubr.msk.f32.gmra.mrb[32].mxu1 %vm145_vm0, %v2671_v12  ;;  %v2673_v7 = vadd.f32 %v5351_v14, %v2661_v62 }
 0xdff   :  { %v2672_v40 = vadd.f32 %v5351_v14, %v2660_v23 }
 0xe01   :  { %6101 = vmatprep.mubr.msk.f32.mxu1 %vm145_vm0, %v2672_v40 }
 0xe02   :  { %6102 = vmatmul.mubr.msk.f32.gmra.mrb[34].mxu1 %vm145_vm0, %v2673_v7 }
 0xeca   :  { %v6097_v42 = vpop.f32.mrb[30].mxu1 }
 0xecb   :  { %v8112_v11 = vadd.f32 %v6097_v42, %v5357_v43  ;;  %v2771_v8 = vpop.f32.mrb[31].mxu1 }
 0xecc   :  { %v8114_v20 = vadd.f32 %v5357_v43, %v2771_v8 }
 0xece   :  { %6116 = vmatprep.mubr.msk.f32.mxu0 %vm281_vm1, %v8114_v20  ;;  %v8120_v0 = vpack.i.bf16 %v8112_v11, %v8114_v20 }
 0xed0   :  { %6834 = vrot.lane.b32.xlu0 %v8120_v0, %s7223_s24 }
 0xed1   :  { %v6100_v55 = vpop.f32.mrb[32].mxu1 }
 0xed2   :  { %v8124_v25 = vadd.f32 %v6100_v55, %v5357_v43  ;;  %v2781_v29 = vpop.f32.mrb[33].mxu1 }
 0xed3   :  { %v8126_v54 = vadd.f32 %v5357_v43, %v2781_v29 }
 0xed5   :  { %v6103_v31 = vpop.f32.mrb[34].mxu1  ;;  %v8130_v17 = vpack.i.bf16 %v8124_v25, %v8126_v54 }
 0xed6   :  { %v8132_v13 = vadd.f32 %v6103_v31, %v5357_v43  ;;  %v2791_v15 = vpop.f32.mrb[35].mxu1 }
 0xed7   :  { %v8134_v48 = vadd.f32 %v5357_v43, %v2791_v15  ;;  %6839 = vrot.lane.b32.xlu1 %v8130_v17, %s7223_s24 }
 0xed9   :  { %v8140_v34 = vpack.i.bf16 %v8132_v13, %v8134_v48 }
 0xedb   :  { %6844 = vrot.lane.b32.xlu1 %v8140_v34, %s7223_s24 }
 0xf42   :  { %v6835_v35 = vpop.permute.xlu0 %6834 }
 0xf43   :  { %v6837_v44 = vunpack.i.h.bf16 %v6835_v35  ;;  %v6836_v45 = vunpack.i.l.bf16 %v6835_v35 }
 0xf45   :  { %v6518_v46 = vpack.c.bf16 %v6837_v44, %v6836_v45 }
 0xf47   :  { %6520 = vmatprep.subr.msk.bf16.mxu0 %vm7422_vm2, %v6518_v46 }
 0xf48   :  { %6523 = vmatpush3.bf16.xpose.msk.msra.mxu0 %vm7422_vm2, %v6518_v46 }
 0xf49   :  { %v6840_v5 = vpop.permute.xlu1 %6839 }
 0xf4a   :  { %v6842_v47 = vunpack.i.h.bf16 %v6840_v5  ;;  %v6841_v39 = vunpack.i.l.bf16 %v6840_v5 }
 0xf4c   :  { %v6524_v49 = vpack.c.bf16 %v6842_v47, %v6841_v39 }
 0xf4d   :  { %v6845_v59 = vpop.permute.xlu1 %6844 }
 0xf4e   :  { %v6847_v58 = vunpack.i.h.bf16 %v6845_v59  ;;  %v6846_v27 = vunpack.i.l.bf16 %v6845_v59  ;;  %6526 = vmatprep.subr.msk.bf16.mxu0 %vm7422_vm2, %v6524_v49 }
 0xf50   :  { %v6530_v36 = vpack.c.bf16 %v6847_v58, %v6846_v27  ;;  %6529 = vmatpush3.bf16.xpose.msk.msra.mxu0 %vm7422_vm2, %v6524_v49 }
 0xf52   :  { %6532 = vmatprep.subr.msk.bf16.mxu0 %vm7422_vm2, %v6530_v36 }
 0xf58   :  { %6535 = vmatpush3.bf16.xpose.msk.msra.mxu0 %vm7422_vm2, %v6530_v36 }
 0xf5f   :  { %6117 = vmatmul.mubr.msk.f32.vlgmr.msra.gmra.mrb[42].mxu0 %vm281_vm1, %v8112_v11 }
 0xf60   :  { %6119 = vmatprep.mubr.msk.f32.mxu0 %vm281_vm1, %v8126_v54 }
 0xf63   :  { %6120 = vmatmul.mubr.msk.f32.gmra.mrb[44].mxu0 %vm281_vm1, %v8124_v25 }
 0xf64   :  { %6122 = vmatprep.mubr.msk.f32.mxu0 %vm281_vm1, %v8134_v48 }
 0xf67   :  { %6123 = vmatmul.mubr.msk.f32.gmra.mrb[46].mxu0 %vm281_vm1, %v8132_v13 }
0x1032   :  { %v6118_v52 = vpop.f32.mrb[42].mxu0 }
0x1033   :  { %v2943_v53 = vmul.f32 0.35355338, %v6118_v52  ;;  %v2913_v1 = vpop.f32.mrb[43].mxu0 }
0x1034   :  { %v2942_v14 = vmul.f32 0.35355338, %v2913_v1 }
0x1035   :  { %v2949_v56 = vadd.f32 %v2943_v53, %v7456_v60 }
0x1036   :  { %v2948_v57 = vadd.f32 %v2942_v14, %v7458_v2  ;;  %v6121_v61 = vpop.f32.mrb[44].mxu0 }
0x1037   :  { %v2945_v9 = vmul.f32 0.35355338, %v6121_v61  ;;  %v2923_v26 = vpop.f32.mrb[45].mxu0  ;;  %v2957_v22 = vsel %vm413_vm10, %v2949_v56, -inf }
0x1038   :  { %v2944_v41 = vmul.f32 0.35355338, %v2923_v26  ;;  %2958 = vmax.xlane.f32.xlu1 %v2957_v22  ;;  %v2954_v24 = vsel %vm413_vm10, %v2948_v57, -inf }
0x1039   :  { %v2951_v51 = vadd.f32 %v2945_v9, %v7465_v10  ;;  %2955 = vmax.xlane.f32.xlu0 %v2954_v24 }
0x103a   :  { %v6124_v4 = vpop.f32.mrb[46].mxu0  ;;  %v2950_v3 = vadd.f32 %v2944_v41, %v7470_v18 }
0x103b   :  { %v2933_v6 = vpop.f32.mrb[47].mxu0  ;;  %v2963_v19 = vsel %vm413_vm10, %v2951_v51, -inf  ;;  %v2947_v21 = vmul.f32 0.35355338, %v6124_v4 }
0x103c   :  { %v2946_v12 = vmul.f32 0.35355338, %v2933_v6  ;;  %v2960_v40 = vsel %vm413_vm10, %v2950_v3, -inf }
0x103d   :  { %2964 = vmax.xlane.f32.xlu0 %v2963_v19  ;;  %v2953_v23 = vadd.f32 %v2947_v21, %v7478_v32 }
0x103e   :  { %v2952_v62 = vadd.f32 %v2946_v12, %v7475_v30 }
0x103f   :  { %v2969_v43 = vsel %vm413_vm10, %v2953_v23, -inf }
0x1040   :  { %v2966_v7 = vsel %vm413_vm10, %v2952_v62, -inf }
0x1041   :  { %2961 = vmax.xlane.f32.xlu0 %v2960_v40  ;;  %2967 = vmax.xlane.f32.xlu1 %v2966_v7 }
0x1045   :  { %2970 = vmax.xlane.f32.xlu0 %v2969_v43 }
0x1052   :  { %6849 = vrot.lane.b32.xlu1 %v8120_v0, %s7226_s2 }
0x1056   :  { %6859 = vrot.lane.b32.xlu1 %v8140_v34, %s7226_s2 }
0x105b   :  { %6854 = vrot.lane.b32.xlu0 %v8130_v17, %s7226_s2 }
0x10c5   :  { %v2959_v42 = vpop.xlane.xlu1 %2958 }
0x10c6   :  { %v2973_v8 = vsub.f32 %v2949_v56, %v2959_v42  ;;  %v2956_v55 = vpop.xlane.xlu0 %2955 }
0x10c7   :  { %v2972_v29 = vsub.f32 %v2948_v57, %v2956_v55 }
0x10c8   :  { %v2980_v31 = vmul.f32 1.442695, %v2973_v8 }
0x10c9   :  { %v2978_v15 = vmul.f32 1.442695, %v2972_v29 }
0x10ca   :  { %7085 = vpow2.f32 %v2980_v31  ;;  %v2965_v35 = vpop.xlane.xlu0 %2964 }
0x10cb   :  { %7087 = vpow2.f32 %v2978_v15  ;;  %v2975_v44 = vsub.f32 %v2951_v51, %v2965_v35 }
0x10cd   :  { %v2984_v45 = vmul.f32 1.442695, %v2975_v44 }
0x10ce   :  { %v2962_v46 = vpop.xlane.xlu0 %2961  ;;  %v2968_v5 = vpop.xlane.xlu1 %2967 }
0x10cf   :  { %7089 = vpow2.f32 %v2984_v45  ;;  %v2974_v47 = vsub.f32 %v2950_v3, %v2962_v46  ;;  %v2976_v49 = vsub.f32 %v2952_v62, %v2968_v5 }
0x10d1   :  { %v2982_v39 = vmul.f32 1.442695, %v2974_v47  ;;  %v2986_v14 = vmul.f32 1.442695, %v2976_v49 }
0x10d2   :  { %v2971_v59 = vpop.xlane.xlu0 %2970  ;;  %v6850_v58 = vpop.permute.xlu1 %6849 }
0x10d3   :  { %7091 = vpow2.f32 %v2982_v39  ;;  %v2977_v27 = vsub.f32 %v2953_v23, %v2971_v59  ;;  %v6852_v36 = vunpack.i.h.bf16 %v6850_v58  ;;  %v6851_v52 = vunpack.i.l.bf16 %v6850_v58 }
0x10d4   :  { %v8184_v53 = vpop.eup %7085 }
0x10d5   :  { %v8186_v1 = vpop.eup %7087  ;;  %v2988_v56 = vmul.f32 1.442695, %v2977_v27  ;;  %v2993_v57 = vsel %vm413_vm10, %v8184_v53, 0.0  ;;  %v6536_v61 = vpack.c.bf16 %v6852_v36, %v6851_v52 }
0x10d6   :  { %2994 = vadd.xlane.f32.xlu0 %v2993_v57  ;;  %v6855_v9 = vpop.permute.xlu0 %6854  ;;  %v6860_v26 = vpop.permute.xlu1 %6859  ;;  %v2990_v22 = vsel %vm413_vm10, %v8186_v1, 0.0 }
0x10d7   :  { %7093 = vpow2.f32 %v2988_v56  ;;  %v6857_v41 = vunpack.i.h.bf16 %v6855_v9  ;;  %v6856_v24 = vunpack.i.l.bf16 %v6855_v9  ;;  %v6862_v51 = vunpack.i.h.bf16 %v6860_v26  ;;  %2991 = vadd.xlane.f32.xlu1 %v2990_v22  ;;  %6537 = vmatprep.subr.bf16.mxu1 %v6536_v61 }
0x10d8   :  { %v6861_v4 = vunpack.i.l.bf16 %v6860_v26  ;;  %6539 = vmatpush3.bf16.msra.mxu1 %v6536_v61  ;;  %7095 = vpow2.f32 %v2986_v14 }
0x10d9   :  { %v8192_v6 = vpop.eup %7089  ;;  %v6540_v19 = vpack.c.bf16 %v6857_v41, %v6856_v24 }
0x10da   :  { %v2999_v3 = vsel %vm413_vm10, %v8192_v6, 0.0  ;;  %v6544_v21 = vpack.c.bf16 %v6862_v51, %v6861_v4 }
0x10db   :  { %3000 = vadd.xlane.f32.xlu0 %v2999_v3  ;;  %6541 = vmatprep.subr.bf16.mxu1 %v6540_v19 }
0x10dc   :  { %6543 = vmatpush3.bf16.msra.mxu1 %v6540_v19 }
0x10dd   :  { %v7092_v12 = vpop.eup %7091  ;;  %6545 = vmatprep.subr.bf16.mxu1 %v6544_v21 }
0x10de   :  { %v2996_v62 = vsel %vm413_vm10, %v7092_v12, 0.0 }
0x10df   :  { %2997 = vadd.xlane.f32.xlu1 %v2996_v62 }
0x10e0   :  { %6547 = vmatpush3.bf16.msra.mxu1 %v6544_v21 }
0x10e1   :  { %v8197_v23 = vpop.eup %7093 }
0x10e2   :  { %v3005_v40 = vsel %vm413_vm10, %v8197_v23, 0.0  ;;  %v8201_v7 = vpop.eup %7095 }
0x10e3   :  { %3006 = vadd.xlane.f32.xlu0 %v3005_v40  ;;  %v3002_v43 = vsel %vm413_vm10, %v8201_v7, 0.0 }
0x10e7   :  { %3003 = vadd.xlane.f32.xlu0 %v3002_v43 }
0x10f0   :  { %6869 = vrot.lane.b32.xlu1 %v8130_v17, %s7227_s3 }
0x10f4   :  { %6874 = vrot.lane.b32.xlu1 %v8140_v34, %s7227_s3 }
0x10f8   :  { %3151 = vrot.lane.b32.xlu1 %v8114_v20, %s7228_s30 }
0x10fc   :  { %3153 = vrot.lane.b32.xlu1 %v8112_v11, %s7228_s30 }
0x10fd   :  { %6864 = vrot.lane.b32.xlu0 %v8120_v0, %s7227_s3  ;;  %s8770_s3 = smov 48  }
0x1100   :  { %3157 = vrot.lane.b32.xlu1 %v8124_v25, %s7228_s30 }
0x1101   :  { %3155 = vrot.lane.b32.xlu0 %v8126_v54, %s7228_s30 }
0x1104   :  { %3161 = vrot.lane.b32.xlu1 %v8132_v13, %s7228_s30 }
0x1105   :  { %3159 = vrot.lane.b32.xlu0 %v8134_v48, %s7228_s30 }
0x1108   :  { %6884 = vrot.lane.b32.xlu1 %v8130_v17, %s7229_s6 }
0x1109   :  { %6879 = vrot.lane.b32.xlu0 %v8120_v0, %s7229_s6 }
0x110c   :  { %3729 = vrot.lane.b32.xlu1 %v8114_v20, %s7230_s19 }
0x110d   :  { %6889 = vrot.lane.b32.xlu0 %v8140_v34, %s7229_s6 }
0x1110   :  { %3733 = vrot.lane.b32.xlu1 %v8126_v54, %s7230_s19 }
0x1111   :  { %3731 = vrot.lane.b32.xlu0 %v8112_v11, %s7230_s19 }
0x1114   :  { %3737 = vrot.lane.b32.xlu1 %v8134_v48, %s7230_s19 }
0x1115   :  { %3735 = vrot.lane.b32.xlu0 %v8124_v25, %s7230_s19 }
0x1119   :  { %3739 = vrot.lane.b32.xlu0 %v8132_v13, %s7230_s19  ;;  %s8771_s19 = smov 40  }
0x1163   :  { %v2995_v42 = vpop.xlane.xlu0 %2994 }
0x1164   :  { %7097 = vrcp.f32 %v2995_v42  ;;  %v2992_v8 = vpop.xlane.xlu1 %2991 }
0x1165   :  { %7099 = vrcp.f32 %v2992_v8 }
0x1168   :  { %v3001_v55 = vpop.xlane.xlu0 %3000 }
0x1169   :  { %7101 = vrcp.f32 %v3001_v55 }
0x116c   :  { %v2998_v29 = vpop.xlane.xlu1 %2997 }
0x116d   :  { %7103 = vrcp.f32 %v2998_v29 }
0x116e   :  { %v7098_v31 = vpop.eup %7097 }
0x116f   :  { %v7100_v15 = vpop.eup %7099  ;;  %v3015_v46 = vmul.f32 %v7098_v31, %v8184_v53 }
0x1170   :  { %v3007_v35 = vpop.xlane.xlu0 %3006  ;;  %v6870_v44 = vpop.permute.xlu1 %6869  ;;  %v3014_v45 = vmul.f32 %v7100_v15, %v8186_v1 }
0x1171   :  { %7105 = vrcp.f32 %v3007_v35  ;;  %v6872_v59 = vunpack.i.h.bf16 %v6870_v44  ;;  %v6871_v52 = vunpack.i.l.bf16 %v6870_v44 }
0x1172   :  { %6137 = vmatprep.mubr.msk.f32.mxu1 %vm413_vm10, %v3014_v45 }
0x1173   :  { %6138 = vmatmul.mubr.msk.f32.vlgmr.msra.gmra.mrb[36].mxu1 %vm413_vm10, %v3015_v46  ;;  %v7102_v39 = vpop.eup %7101  ;;  %v6554_v9 = vpack.c.bf16 %v6872_v59, %v6871_v52 }
0x1174   :  { %v3004_v5 = vpop.xlane.xlu0 %3003  ;;  %v6875_v47 = vpop.permute.xlu1 %6874  ;;  %v3017_v1 = vmul.f32 %v7102_v39, %v8192_v6 }
0x1175   :  { %7107 = vrcp.f32 %v3004_v5  ;;  %v6877_v51 = vunpack.i.h.bf16 %v6875_v47  ;;  %v6876_v4 = vunpack.i.l.bf16 %v6875_v47 }
0x1177   :  { %v7104_v49 = vpop.eup %7103  ;;  %v6560_v3 = vpack.c.bf16 %v6877_v51, %v6876_v4 }
0x1178   :  { %v6865_v58 = vpop.permute.xlu0 %6864  ;;  %v3152_v27 = vpop.permute.xlu1 %3151  ;;  %v3016_v36 = vmul.f32 %v7104_v49, %v7092_v12 }
0x1179   :  { %v6867_v14 = vunpack.i.h.bf16 %v6865_v58  ;;  %v6866_v56 = vunpack.i.l.bf16 %v6865_v58 }
0x117a   :  { %6140 = vmatprep.mubr.msk.f32.mxu1 %vm413_vm10, %v3016_v36 }
0x117b   :  { %v6548_v53 = vpack.c.bf16 %v6867_v14, %v6866_v56  ;;  %6141 = vmatmul.mubr.msk.f32.gmra.mrb[38].mxu1 %vm413_vm10, %v3017_v1  ;;  %v7106_v26 = vpop.eup %7105 }
0x117c   :  { %v3156_v57 = vpop.permute.xlu0 %3155  ;;  %v3154_v61 = vpop.permute.xlu1 %3153  ;;  %v3019_v6 = vmul.f32 %v7106_v26, %v8197_v23 }
0x117d   :  { %6550 = vmatprep.subr.msk.bf16.mxu1 %vm7422_vm2, %v6548_v53 }
0x117e   :  { %6553 = vmatpush3.bf16.xpose.msk.msra.mxu1 %vm7422_vm2, %v6548_v53 }
0x117f   :  { %v7108_v22 = vpop.eup %7107  ;;  %6556 = vmatprep.subr.msk.bf16.mxu1 %vm7422_vm2, %v6554_v9 }
0x1180   :  { %v3160_v41 = vpop.permute.xlu0 %3159  ;;  %v3018_v24 = vmul.f32 %v7108_v22, %v8201_v7  ;;  %v3158_v19 = vpop.permute.xlu1 %3157 }
0x1182   :  { %6143 = vmatprep.mubr.msk.f32.mxu1 %vm413_vm10, %v3018_v24 }
0x1183   :  { %6144 = vmatmul.mubr.msk.f32.gmra.mrb[40].mxu1 %vm413_vm10, %v3019_v6 }
0x1184   :  { %6158 = vmatprep.mubr.msk.f32.mxu1 %vm281_vm1, %v3152_v27  ;;  %v6880_v21 = vpop.permute.xlu0 %6879  ;;  %v3162_v12 = vpop.permute.xlu1 %3161 }
0x1185   :  { %v6882_v62 = vunpack.i.h.bf16 %v6880_v21  ;;  %v6881_v40 = vunpack.i.l.bf16 %v6880_v21 }
0x1186   :  { %6559 = vmatpush3.bf16.xpose.msk.msra.mxu1 %vm7422_vm2, %v6554_v9 }
0x1187   :  { %6562 = vmatprep.subr.msk.bf16.mxu1 %vm7422_vm2, %v6560_v3  ;;  %v6578_v7 = vpack.c.bf16 %v6882_v62, %v6881_v40 }
0x1188   :  { %v6885_v23 = vpop.permute.xlu1 %6884  ;;  %v6890_v55 = vpop.permute.xlu0 %6889 }
0x1189   :  { %v6887_v43 = vunpack.i.h.bf16 %v6885_v23  ;;  %v6886_v42 = vunpack.i.l.bf16 %v6885_v23  ;;  %v6892_v29 = vunpack.i.h.bf16 %v6890_v55  ;;  %v6891_v31 = vunpack.i.l.bf16 %v6890_v55 }
0x118b   :  { %v6584_v8 = vpack.c.bf16 %v6887_v43, %v6886_v42  ;;  %v6590_v15 = vpack.c.bf16 %v6892_v29, %v6891_v31 }
0x118c   :  { %v3730_v35 = vpop.permute.xlu1 %3729  ;;  %v3732_v44 = vpop.permute.xlu0 %3731 }
0x118e   :  { %6565 = vmatpush3.bf16.xpose.msk.msra.mxu1 %vm7422_vm2, %v6560_v3 }
0x118f   :  { %6580 = vmatprep.subr.msk.bf16.mxu1 %vm7422_vm2, %v6578_v7 }
0x1190   :  { %v3734_v45 = vpop.permute.xlu1 %3733  ;;  %v3736_v46 = vpop.permute.xlu0 %3735 }
0x1194   :  { %v3738_v5 = vpop.permute.xlu1 %3737  ;;  %v3740_v47 = vpop.permute.xlu0 %3739 }
0x1195   :  { %6159 = vmatmul.mubr.msk.f32.vlgmr.msra.gmra.mrb[42].mxu1 %vm281_vm1, %v3154_v61 }
0x1196   :  { %6161 = vmatprep.mubr.msk.f32.mxu1 %vm281_vm1, %v3156_v57  ;;  %6583 = vmatpush3.bf16.xpose.msk.msra.mxu1 %vm7422_vm2, %v6578_v7 }
0x1197   :  { %6586 = vmatprep.subr.msk.bf16.mxu1 %vm7422_vm2, %v6584_v8 }
0x1199   :  { %6162 = vmatmul.mubr.msk.f32.gmra.mrb[44].mxu1 %vm281_vm1, %v3158_v19 }
0x119a   :  { %6164 = vmatprep.mubr.msk.f32.mxu1 %vm281_vm1, %v3160_v41 }
0x119d   :  { %6165 = vmatmul.mubr.msk.f32.gmra.mrb[46].mxu1 %vm281_vm1, %v3162_v12 }
0x119e   :  { %6589 = vmatpush3.bf16.xpose.msk.msra.mxu1 %vm7422_vm2, %v6584_v8  ;;  %6222 = vmatprep.mubr.msk.f32.mxu1 %vm281_vm1, %v3730_v35 }
0x119f   :  { %6592 = vmatprep.subr.msk.bf16.mxu1 %vm7422_vm2, %v6590_v15 }
0x11a6   :  { %6595 = vmatpush3.bf16.xpose.msk.msra.mxu1 %vm7422_vm2, %v6590_v15 }
0x11ad   :  { %6223 = vmatmul.mubr.msk.f32.vlgmr.msra.gmra.mrb[48].mxu1 %vm281_vm1, %v3732_v44 }
0x11ae   :  { %6225 = vmatprep.mubr.msk.f32.mxu1 %vm281_vm1, %v3734_v45 }
0x11b1   :  { %6226 = vmatmul.mubr.msk.f32.gmra.mrb[50].mxu1 %vm281_vm1, %v3736_v46 }
0x11b2   :  { %6228 = vmatprep.mubr.msk.f32.mxu1 %vm281_vm1, %v3738_v5 }
0x11b5   :  { %6229 = vmatmul.mubr.msk.f32.gmra.mrb[52].mxu1 %vm281_vm1, %v3740_v47 }
0x1246   :  { %v8288_v39 = vpop.f32.mrb[36].mxu1 }
0x1247   :  { %v8290_v49 = vpop.f32.mrb[37].mxu1 }
0x124e   :  { %v8292_v59 = vpop.f32.mrb[38].mxu1 }
0x124f   :  { %v8294_v58 = vpop.f32.mrb[39].mxu1 }
0x1256   :  { %v8296_v27 = vpop.f32.mrb[40].mxu1 }
0x1257   :  { %v8298_v36 = vpop.f32.mrb[41].mxu1 }
0x1268   :  { %v6160_v52 = vpop.f32.mrb[42].mxu1 }
0x1269   :  { %v3295_v14 = vmul.f32 0.35355338, %v6160_v52  ;;  %v3265_v56 = vpop.f32.mrb[43].mxu1 }
0x126a   :  { %v3294_v1 = vmul.f32 0.35355338, %v3265_v56 }
0x126b   :  { %v3301_v53 = vadd.f32 %v3295_v14, %v7456_v60 }
0x126c   :  { %v3300_v57 = vadd.f32 %v3294_v1, %v7458_v2  ;;  %v6163_v61 = vpop.f32.mrb[44].mxu1 }
0x126d   :  { %v3297_v9 = vmul.f32 0.35355338, %v6163_v61  ;;  %v3275_v26 = vpop.f32.mrb[45].mxu1  ;;  %v3309_v22 = vsel %vm413_vm10, %v3301_v53, -inf }
0x126e   :  { %v3296_v41 = vmul.f32 0.35355338, %v3275_v26  ;;  %3310 = vmax.xlane.f32.xlu0 %v3309_v22  ;;  %v3306_v24 = vsel %vm413_vm10, %v3300_v57, -inf }
0x126f   :  { %v3303_v51 = vadd.f32 %v3297_v9, %v7465_v10  ;;  %3307 = vmax.xlane.f32.xlu1 %v3306_v24 }
0x1270   :  { %v3302_v4 = vadd.f32 %v3296_v41, %v7470_v18  ;;  %v6166_v6 = vpop.f32.mrb[46].mxu1 }
0x1271   :  { %v3299_v19 = vmul.f32 0.35355338, %v6166_v6  ;;  %v3285_v3 = vpop.f32.mrb[47].mxu1  ;;  %v3315_v21 = vsel %vm413_vm10, %v3303_v51, -inf }
0x1272   :  { %v3298_v12 = vmul.f32 0.35355338, %v3285_v3  ;;  %v3312_v62 = vsel %vm413_vm10, %v3302_v4, -inf }
0x1273   :  { %v3305_v40 = vadd.f32 %v3299_v19, %v7478_v32  ;;  %3316 = vmax.xlane.f32.xlu1 %v3315_v21  ;;  %3313 = vmax.xlane.f32.xlu0 %v3312_v62 }
0x1274   :  { %v3304_v7 = vadd.f32 %v3298_v12, %v7475_v30 }
0x1275   :  { %v3321_v23 = vsel %vm413_vm10, %v3305_v40, -inf }
0x1276   :  { %v3318_v43 = vsel %vm413_vm10, %v3304_v7, -inf }
0x1277   :  { %3322 = vmax.xlane.f32.xlu1 %v3321_v23  ;;  %3319 = vmax.xlane.f32.xlu0 %v3318_v43 }
0x1280   :  { %v6224_v42 = vpop.f32.mrb[48].mxu1 }
0x1281   :  { %v3843_v8 = vpop.f32.mrb[49].mxu1 }
0x1284   :  { %v6227_v55 = vpop.f32.mrb[50].mxu1 }
0x1285   :  { %v3853_v29 = vpop.f32.mrb[51].mxu1 }
0x1288   :  { %v8312_v31 = vpop.f32.mrb[52].mxu1 }
0x1289   :  { %v8314_v15 = vpop.f32.mrb[53].mxu1 }
0x12fb   :  { %v3311_v35 = vpop.xlane.xlu0 %3310 }
0x12fc   :  { %v3325_v44 = vsub.f32 %v3301_v53, %v3311_v35  ;;  %v3308_v45 = vpop.xlane.xlu1 %3307  ;;  %v3872_v35 = vmul.f32 0.35355338, %v3843_v8 }
0x12fd   :  { %v3324_v46 = vsub.f32 %v3300_v57, %v3308_v45  ;;  %v3875_v45 = vmul.f32 0.35355338, %v6227_v55 }
0x12fe   :  { %v3332_v5 = vmul.f32 1.442695, %v3325_v44  ;;  %v8362_v44 = vadd.f32 %v3872_v35, %v7458_v2 }
0x12ff   :  { %v3330_v47 = vmul.f32 1.442695, %v3324_v46  ;;  %v3874_v46 = vmul.f32 0.35355338, %v3853_v29 }
0x1300   :  { %7109 = vpow2.f32 %v3332_v5  ;;  %v3317_v52 = vpop.xlane.xlu1 %3316  ;;  %v3314_v14 = vpop.xlane.xlu0 %3313 }
0x1301   :  { %7111 = vpow2.f32 %v3330_v47  ;;  %v3327_v56 = vsub.f32 %v3303_v51, %v3317_v52  ;;  %v3326_v1 = vsub.f32 %v3302_v4, %v3314_v14 }
0x1303   :  { %v3336_v61 = vmul.f32 1.442695, %v3327_v56  ;;  %v3334_v9 = vmul.f32 1.442695, %v3326_v1 }
0x1304   :  { %v3323_v26 = vpop.xlane.xlu1 %3322  ;;  %v3320_v22 = vpop.xlane.xlu0 %3319 }
0x1305   :  { %7113 = vpow2.f32 %v3336_v61  ;;  %v3329_v41 = vsub.f32 %v3305_v40, %v3323_v26  ;;  %v3328_v24 = vsub.f32 %v3304_v7, %v3320_v22 }
0x1306   :  { %7115 = vpow2.f32 %v3334_v9 }
0x1307   :  { %v3340_v6 = vmul.f32 1.442695, %v3329_v41  ;;  %v3338_v53 = vmul.f32 1.442695, %v3328_v24 }
0x1309   :  { %7117 = vpow2.f32 %v3340_v6 }
0x130a   :  { %v8316_v57 = vpop.eup %7109  ;;  %7119 = vpow2.f32 %v3338_v53 }
0x130b   :  { %v7112_v19 = vpop.eup %7111  ;;  %v3345_v3 = vsel %vm413_vm10, %v8316_v57, 0.0 }
0x130c   :  { %3346 = vadd.xlane.f32.xlu1 %v3345_v3  ;;  %v3342_v51 = vsel %vm413_vm10, %v7112_v19, 0.0 }
0x130d   :  { %3343 = vadd.xlane.f32.xlu0 %v3342_v51 }
0x130f   :  { %v8321_v4 = vpop.eup %7113 }
0x1310   :  { %v8323_v21 = vpop.eup %7115  ;;  %v3351_v12 = vsel %vm413_vm10, %v8321_v4, 0.0 }
0x1311   :  { %3352 = vadd.xlane.f32.xlu1 %v3351_v12  ;;  %v3348_v62 = vsel %vm413_vm10, %v8323_v21, 0.0 }
0x1312   :  { %3349 = vadd.xlane.f32.xlu0 %v3348_v62 }
0x1313   :  { %v8329_v40 = vpop.eup %7117 }
0x1314   :  { %v8331_v7 = vpop.eup %7119  ;;  %v3357_v23 = vsel %vm413_vm10, %v8329_v40, 0.0 }
0x1315   :  { %3358 = vadd.xlane.f32.xlu1 %v3357_v23  ;;  %v3354_v43 = vsel %vm413_vm10, %v8331_v7, 0.0 }
0x1316   :  { %3355 = vadd.xlane.f32.xlu0 %v3354_v43 }
0x1326   :  { %6899 = vrot.lane.b32.xlu1 %v8130_v17, %s7231_s0 }
0x132a   :  { %6904 = vrot.lane.b32.xlu1 %v8140_v34, %s7231_s0 }
0x132c   :  { %6894 = vrot.lane.b32.xlu0 %v8120_v0, %s7231_s0 }
0x132e   :  { %6914 = vrot.lane.b32.xlu1 %v8130_v17, %s7232_s20 }
0x1330   :  { %6909 = vrot.lane.b32.xlu0 %v8120_v0, %s7232_s20 }
0x1332   :  { %4200 = vrot.lane.b32.xlu1 %v8114_v20, %s8769_s7  ;;  %v3873_v20 = vmul.f32 0.35355338, %v6224_v42  ;;  %v3876_v42 = vmul.f32 0.35355338, %v8314_v15 }
0x1334   :  { %6919 = vrot.lane.b32.xlu0 %v8140_v34, %s7232_s20 }
0x1336   :  { %4204 = vrot.lane.b32.xlu1 %v8126_v54, %s8769_s7  ;;  %v8365_v54 = vadd.f32 %v3873_v20, %v7456_v60 }
0x1338   :  { %4202 = vrot.lane.b32.xlu0 %v8112_v11, %s8769_s7  ;;  %v8368_v11 = vadd.f32 %v3875_v45, %v7465_v10  ;;  %v3887_v8 = vsel %vm413_vm10, %v8365_v54, -inf }
0x133a   :  { %4208 = vrot.lane.b32.xlu1 %v8134_v48, %s8769_s7  ;;  %v3877_v48 = vmul.f32 0.35355338, %v8312_v31  ;;  %v3893_v29 = vsel %vm413_vm10, %v8368_v11, -inf  ;;  %v8385_v31 = vadd.f32 %v3876_v42, %v7475_v30 }
0x133c   :  { %4206 = vrot.lane.b32.xlu0 %v8124_v25, %s8769_s7  ;;  %v3884_v25 = vsel %vm413_vm10, %v8362_v44, -inf  ;;  %v8380_v55 = vadd.f32 %v3877_v48, %v7478_v32  ;;  %v3896_v47 = vsel %vm413_vm10, %v8385_v31, -inf }
0x133e   :  { %v3899_v15 = vsel %vm413_vm10, %v8380_v55, -inf }
0x1340   :  { %4210 = vrot.lane.b32.xlu0 %v8132_v13, %s8769_s7  ;;  %v8374_v13 = vadd.f32 %v3874_v46, %v7470_v18 }
0x1342   :  { %v3890_v5 = vsel %vm413_vm10, %v8374_v13, -inf }
0x135e   :  { %3885 = vmax.xlane.f32.xlu1 %v3884_v25 }
0x135f   :  { %3888 = vmax.xlane.f32.xlu0 %v3887_v8 }
0x1362   :  { %3894 = vmax.xlane.f32.xlu1 %v3893_v29 }
0x1363   :  { %3891 = vmax.xlane.f32.xlu0 %v3890_v5 }
0x1366   :  { %3900 = vmax.xlane.f32.xlu1 %v3899_v15 }
0x1367   :  { %3897 = vmax.xlane.f32.xlu0 %v3896_v47 }
0x1399   :  { %v3347_v52 = vpop.xlane.xlu1 %3346 }
0x139a   :  { %v3344_v14 = vpop.xlane.xlu0 %3343 }
0x139b   :  { %7121 = vrcp.f32 %v3344_v14 }
0x139c   :  { %7123 = vrcp.f32 %v3347_v52 }
0x139e   :  { %v3353_v56 = vpop.xlane.xlu1 %3352 }
0x139f   :  { %v3350_v1 = vpop.xlane.xlu0 %3349 }
0x13a0   :  { %7125 = vrcp.f32 %v3350_v1 }
0x13a1   :  { %7127 = vrcp.f32 %v3353_v56 }
0x13a2   :  { %v3359_v61 = vpop.xlane.xlu1 %3358 }
0x13a3   :  { %v3356_v9 = vpop.xlane.xlu0 %3355 }
0x13a4   :  { %7129 = vrcp.f32 %v3356_v9 }
0x13a5   :  { %v7122_v26 = vpop.eup %7121  ;;  %7131 = vrcp.f32 %v3359_v61 }
0x13a6   :  { %v6900_v22 = vpop.permute.xlu1 %6899  ;;  %v3366_v41 = vmul.f32 %v7122_v26, %v7112_v19  ;;  %v7124_v47 = vpop.eup %7123 }
0x13a7   :  { %v6902_v24 = vunpack.i.h.bf16 %v6900_v22  ;;  %v6901_v6 = vunpack.i.l.bf16 %v6900_v22  ;;  %v6895_v53 = vpop.permute.xlu0 %6894  ;;  %v3367_v1 = vmul.f32 %v7124_v47, %v8316_v57 }
0x13a8   :  { %v6897_v3 = vunpack.i.h.bf16 %v6895_v53  ;;  %v6896_v51 = vunpack.i.l.bf16 %v6895_v53  ;;  %6179 = vmatprep.mubr.msk.f32.mxu0 %vm413_vm10, %v3366_v41 }
0x13a9   :  { %v6570_v23 = vpack.c.bf16 %v6902_v24, %v6901_v6 }
0x13aa   :  { %v6566_v12 = vpack.c.bf16 %v6897_v3, %v6896_v51  ;;  %v6905_v62 = vpop.permute.xlu1 %6904  ;;  %v7126_v52 = vpop.eup %7125 }
0x13ab   :  { %v6910_v43 = vpop.permute.xlu0 %6909  ;;  %v6907_v35 = vunpack.i.h.bf16 %v6905_v62  ;;  %v6906_v20 = vunpack.i.l.bf16 %v6905_v62  ;;  %v7128_v61 = vpop.eup %7127  ;;  %v3368_v9 = vmul.f32 %v7126_v52, %v8323_v21 }
0x13ac   :  { %v6912_v45 = vunpack.i.h.bf16 %v6910_v43  ;;  %v6911_v46 = vunpack.i.l.bf16 %v6910_v43  ;;  %6567 = vmatprep.subr.bf16.mxu0 %v6566_v12  ;;  %v3369_v41 = vmul.f32 %v7128_v61, %v8321_v4  ;;  %v5365_v61 = vld [vmem:[%s8739_s8 + $0x28] sm:$0xff] }
0x13ad   :  { %6569 = vmatpush3.bf16.msra.mxu0 %v6566_v12  ;;  %v6574_v8 = vpack.c.bf16 %v6907_v35, %v6906_v20 }
0x13ae   :  { %v6608_v19 = vpack.c.bf16 %v6912_v45, %v6911_v46  ;;  %6571 = vmatprep.subr.bf16.mxu0 %v6570_v23  ;;  %v6915_v48 = vpop.permute.xlu1 %6914  ;;  %v7130_v26 = vpop.eup %7129 }
0x13af   :  { %v6917_v25 = vunpack.i.h.bf16 %v6915_v48  ;;  %v6916_v42 = vunpack.i.l.bf16 %v6915_v48  ;;  %v6920_v5 = vpop.permute.xlu0 %6919  ;;  %v7132_v24 = vpop.eup %7131  ;;  %v3370_v57 = vmul.f32 %v7130_v26, %v8331_v7 }
0x13b0   :  { %6610 = vmatprep.subr.msk.bf16.mxu1 %vm7422_vm2, %v6608_v19  ;;  %v6922_v14 = vunpack.i.h.bf16 %v6920_v5  ;;  %v6921_v56 = vunpack.i.l.bf16 %v6920_v5  ;;  %v3371_v21 = vmul.f32 %v7132_v24, %v8329_v40 }
0x13b1   :  { %v6614_v29 = vpack.c.bf16 %v6917_v25, %v6916_v42  ;;  %6573 = vmatpush3.bf16.msra.mxu0 %v6570_v23  ;;  %6613 = vmatpush3.bf16.xpose.msk.msra.mxu1 %vm7422_vm2, %v6608_v19 }
0x13b2   :  { %6575 = vmatprep.subr.bf16.mxu0 %v6574_v8  ;;  %v4201_v15 = vpop.permute.xlu1 %4200  ;;  %v6620_v22 = vpack.c.bf16 %v6922_v14, %v6921_v56 }
0x13b3   :  { %6616 = vmatprep.subr.msk.bf16.mxu1 %vm7422_vm2, %v6614_v29  ;;  %6275 = vmatprep.mubr.msk.f32.mxu1 %vm281_vm1, %v4201_v15  ;;  %v4203_v6 = vpop.permute.xlu0 %4202 }
0x13b5   :  { %6577 = vmatpush3.bf16.msra.mxu0 %v6574_v8 }
0x13b6   :  { %v4205_v53 = vpop.permute.xlu1 %4204  ;;  %6188 = vmatprep.subr.mxu0 %v5365_v61 }
0x13b7   :  { %v4207_v3 = vpop.permute.xlu0 %4206 }
0x13b8   :  { %6180 = vmatmul.mubr.msk.f32.vlgmr.msra.gmra.mrb[48].mxu0 %vm413_vm10, %v3367_v1 }
0x13b9   :  { %6182 = vmatprep.mubr.msk.f32.mxu0 %vm413_vm10, %v3368_v9  ;;  %6619 = vmatpush3.bf16.xpose.msk.msra.mxu1 %vm7422_vm2, %v6614_v29  ;;  %v5364_v9 = vld [vmem:[%s8739_s8 + $0x20] sm:$0xff] }
0x13ba   :  { %6622 = vmatprep.subr.msk.bf16.mxu1 %vm7422_vm2, %v6620_v22  ;;  %v4209_v4 = vpop.permute.xlu1 %4208  ;;  %6189 = vmatpush3.msra.mxu0 %v5365_v61 }
0x13bb   :  { %v4211_v7 = vpop.permute.xlu0 %4210  ;;  %6199 = vmatprep.subr.mxu0 %v5364_v9 }
0x13bc   :  { %6183 = vmatmul.mubr.msk.f32.gmra.mrb[50].mxu0 %vm413_vm10, %v3369_v41 }
0x13bd   :  { %6185 = vmatprep.mubr.msk.f32.mxu0 %vm413_vm10, %v3370_v57 }
0x13c0   :  { %6186 = vmatmul.mubr.msk.f32.gmra.mrb[52].mxu0 %vm413_vm10, %v3371_v21 }
0x13c1   :  { %6625 = vmatpush3.bf16.xpose.msk.msra.mxu1 %vm7422_vm2, %v6620_v22 }
0x13c8   :  { %6276 = vmatmul.mubr.msk.f32.vlgmr.msra.gmra.mrb[54].mxu1 %vm281_vm1, %v4203_v6 }
0x13c9   :  { %6278 = vmatprep.mubr.msk.f32.mxu1 %vm281_vm1, %v4205_v53 }
0x13cc   :  { %6279 = vmatmul.mubr.msk.f32.gmra.mrb[56].mxu1 %vm281_vm1, %v4207_v3 }
0x13cd   :  { %6281 = vmatprep.mubr.msk.f32.mxu1 %vm281_vm1, %v4209_v4 }
0x13d0   :  { %6282 = vmatmul.mubr.msk.f32.gmra.mrb[58].mxu1 %vm281_vm1, %v4211_v7 }
0x13eb   :  { %v3886_v40 = vpop.xlane.xlu1 %3885 }
0x13ec   :  { %v3902_v51 = vsub.f32 %v8362_v44, %v3886_v40  ;;  %v3889_v38 = vpop.xlane.xlu0 %3888 }
0x13ed   :  { %v3903_v12 = vsub.f32 %v8365_v54, %v3889_v38 }
0x13ee   :  { %v3908_v62 = vmul.f32 1.442695, %v3902_v51 }
0x13ef   :  { %v3910_v23 = vmul.f32 1.442695, %v3903_v12  ;;  %v3895_v43 = vpop.xlane.xlu1 %3894 }
0x13f0   :  { %7133 = vpow2.f32 %v3908_v62  ;;  %v3905_v35 = vsub.f32 %v8368_v11, %v3895_v43  ;;  %v3892_v20 = vpop.xlane.xlu0 %3891 }
0x13f1   :  { %7135 = vpow2.f32 %v3910_v23  ;;  %v3904_v45 = vsub.f32 %v8374_v13, %v3892_v20 }
0x13f2   :  { %v3914_v46 = vmul.f32 1.442695, %v3905_v35 }
0x13f3   :  { %v3912_v19 = vmul.f32 1.442695, %v3904_v45  ;;  %v3901_v48 = vpop.xlane.xlu1 %3900 }
0x13f4   :  { %7137 = vpow2.f32 %v3914_v46  ;;  %v3907_v25 = vsub.f32 %v8380_v55, %v3901_v48  ;;  %v3898_v44 = vpop.xlane.xlu0 %3897 }
0x13f5   :  { %7139 = vpow2.f32 %v3912_v19  ;;  %v3906_v54 = vsub.f32 %v8385_v31, %v3898_v44 }
0x13f6   :  { %v3918_v42 = vmul.f32 1.442695, %v3907_v25 }
0x13f7   :  { %v3916_v8 = vmul.f32 1.442695, %v3906_v54 }
0x13f8   :  { %7141 = vpow2.f32 %v3918_v42 }
0x13f9   :  { %7143 = vpow2.f32 %v3916_v8 }
0x13fa   :  { %v8428_v29 = vpop.eup %7133 }
0x13fb   :  { %v8430_v11 = vpop.eup %7135  ;;  %v3920_v13 = vsel %vm413_vm10, %v8428_v29, 0.0 }
0x13fc   :  { %3921 = vadd.xlane.f32.xlu0 %v3920_v13  ;;  %v3923_v5 = vsel %vm413_vm10, %v8430_v11, 0.0 }
0x13fd   :  { %3924 = vadd.xlane.f32.xlu1 %v3923_v5 }
0x13fe   :  { %v8436_v55 = vpop.eup %7137 }
0x13ff   :  { %v8438_v15 = vpop.eup %7139  ;;  %v3929_v31 = vsel %vm413_vm10, %v8436_v55, 0.0 }
0x1400   :  { %v3926_v47 = vsel %vm413_vm10, %v8438_v15, 0.0 }
0x1401   :  { %3930 = vadd.xlane.f32.xlu1 %v3929_v31  ;;  %3927 = vadd.xlane.f32.xlu0 %v3926_v47 }
0x1402   :  { %v8444_v52 = vpop.eup %7141 }
0x1403   :  { %v8446_v14 = vpop.eup %7143  ;;  %v3935_v56 = vsel %vm413_vm10, %v8444_v52, 0.0 }
0x1404   :  { %v3932_v1 = vsel %vm413_vm10, %v8446_v14, 0.0 }
0x1405   :  { %3936 = vadd.xlane.f32.xlu1 %v3935_v56  ;;  %3933 = vadd.xlane.f32.xlu0 %v3932_v1 }
0x1416   :  { %6929 = vrot.lane.b32.xlu1 %v8130_v17, %s8770_s3 }
0x141a   :  { %6934 = vrot.lane.b32.xlu1 %v8140_v34, %s8770_s3 }
0x141b   :  { %6924 = vrot.lane.b32.xlu0 %v8120_v0, %s8770_s3 }
0x1489   :  { %v3922_v26 = vpop.xlane.xlu0 %3921 }
0x148a   :  { %v3925_v22 = vpop.xlane.xlu1 %3924  ;;  %7145 = vrcp.f32 %v3922_v26 }
0x148b   :  { %v6181_v41 = vpop.f32.mrb[48].mxu0  ;;  %7147 = vrcp.f32 %v3925_v22 }
0x148c   :  { %v3474_v24 = vpop.f32.mrb[49].mxu0 }
0x148d   :  { %6190 = vmatprep.mubr.msk.f32.mxu0 %vm281_vm1, %v3474_v24 }
0x148e   :  { %v3931_v57 = vpop.xlane.xlu1 %3930  ;;  %v3928_v21 = vpop.xlane.xlu0 %3927  ;;  %6191 = vmatmul.mubr.msk.f32.vlgmr.msra.gmra.mrb[54].mxu0 %vm281_vm1, %v6181_v41 }
0x148f   :  { %v6184_v6 = vpop.f32.mrb[50].mxu0  ;;  %6200 = vmatpush3.msra.mxu0 %v5364_v9  ;;  %7149 = vrcp.f32 %v3928_v21 }
0x1490   :  { %v3484_v53 = vpop.f32.mrb[51].mxu0  ;;  %7151 = vrcp.f32 %v3931_v57 }
0x1491   :  { %6193 = vmatprep.mubr.msk.f32.mxu0 %vm281_vm1, %v3484_v53 }
0x1492   :  { %v3937_v3 = vpop.xlane.xlu1 %3936  ;;  %v3934_v4 = vpop.xlane.xlu0 %3933  ;;  %6194 = vmatmul.mubr.msk.f32.gmra.mrb[56].mxu0 %vm281_vm1, %v6184_v6 }
0x1493   :  { %v6187_v7 = vpop.f32.mrb[52].mxu0  ;;  %7153 = vrcp.f32 %v3934_v4 }
0x1494   :  { %v3494_v40 = vpop.f32.mrb[53].mxu0  ;;  %v7146_v54 = vpop.eup %7145  ;;  %7155 = vrcp.f32 %v3937_v3 }
0x1495   :  { %6196 = vmatprep.mubr.msk.f32.mxu0 %vm281_vm1, %v3494_v40  ;;  %v7148_v13 = vpop.eup %7147 }
0x1496   :  { %v6930_v51 = vpop.permute.xlu1 %6929  ;;  %v6925_v38 = vpop.permute.xlu0 %6924  ;;  %6197 = vmatmul.mubr.msk.f32.gmra.mrb[58].mxu0 %vm281_vm1, %v6187_v7  ;;  %v3945_v61 = vmul.f32 %v7148_v13, %v8430_v11 }
0x1497   :  { %v6932_v12 = vunpack.i.h.bf16 %v6930_v51  ;;  %v6931_v62 = vunpack.i.l.bf16 %v6930_v51  ;;  %v6927_v23 = vunpack.i.h.bf16 %v6925_v38  ;;  %v6926_v43 = vunpack.i.l.bf16 %v6925_v38  ;;  %6201 = vmatprep.mubr.msk.f32.mxu0 %vm281_vm1, %v8290_v49 }
0x1499   :  { %v6596_v35 = vpack.c.bf16 %v6927_v23, %v6926_v43  ;;  %v6600_v45 = vpack.c.bf16 %v6932_v12, %v6931_v62 }
0x149a   :  { %v6935_v20 = vpop.permute.xlu1 %6934  ;;  %6202 = vmatmul.mubr.msk.f32.vlgmr.msra.gmra.mrb[54].mxu0 %vm281_vm1, %v8288_v39 }
0x149b   :  { %v6937_v46 = vunpack.i.h.bf16 %v6935_v20  ;;  %v6936_v19 = vunpack.i.l.bf16 %v6935_v20  ;;  %6204 = vmatprep.mubr.msk.f32.mxu0 %vm281_vm1, %v8294_v58  ;;  %6597 = vmatprep.subr.bf16.mxu0 %v6596_v35  ;;  %v6277_v48 = vpop.f32.mrb[54].mxu1 }
0x149c   :  { %v4344_v25 = vmul.f32 0.35355338, %v6277_v48  ;;  %6599 = vmatpush3.bf16.msra.mxu0 %v6596_v35  ;;  %v4314_v44 = vpop.f32.mrb[55].mxu1 }
0x149d   :  { %v4343_v49 = vmul.f32 0.35355338, %v4314_v44  ;;  %6601 = vmatprep.subr.bf16.mxu0 %v6600_v45  ;;  %v6604_v39 = vpack.c.bf16 %v6937_v46, %v6936_v19 }
0x149e   :  { %v4350_v42 = vadd.f32 %v4344_v25, %v7456_v60  ;;  %6205 = vmatmul.mubr.msk.f32.gmra.mrb[56].mxu0 %vm281_vm1, %v8292_v59  ;;  %v3944_v59 = vmul.f32 %v7146_v54, %v8428_v29 }
0x149f   :  { %v4349_v8 = vadd.f32 %v4343_v49, %v7458_v2  ;;  %6207 = vmatprep.mubr.msk.f32.mxu0 %vm281_vm1, %v8298_v36  ;;  %v6280_v58 = vpop.f32.mrb[56].mxu1  ;;  %v7150_v2 = vpop.eup %7149 }
0x14a0   :  { %6603 = vmatpush3.bf16.msra.mxu0 %v6600_v45  ;;  %v4324_v5 = vpop.f32.mrb[57].mxu1  ;;  %v4358_v31 = vsel %vm413_vm10, %v4350_v42, -inf  ;;  %v4346_v47 = vmul.f32 0.35355338, %v6280_v58  ;;  %v7152_v24 = vpop.eup %7151 }
0x14a1   :  { %v4345_v56 = vmul.f32 0.35355338, %v4324_v5  ;;  %4359 = vmax.xlane.f32.xlu1 %v4358_v31  ;;  %6605 = vmatprep.subr.bf16.mxu0 %v6604_v39  ;;  %v4355_v60 = vsel %vm413_vm10, %v4349_v8, -inf  ;;  %v7154_v57 = vpop.eup %7153  ;;  %v3947_v6 = vmul.f32 %v7152_v24, %v8436_v55 }
0x14a2   :  { %4356 = vmax.xlane.f32.xlu0 %v4355_v60  ;;  %6208 = vmatmul.mubr.msk.f32.gmra.mrb[58].mxu0 %vm281_vm1, %v8296_v27  ;;  %v4352_v26 = vadd.f32 %v4346_v47, %v7465_v10  ;;  %v3946_v27 = vmul.f32 %v7150_v2, %v8438_v15  ;;  %v7156_v53 = vpop.eup %7155  ;;  %v3948_v15 = vmul.f32 %v7154_v57, %v8446_v14 }
0x14a3   :  { %v4351_v36 = vadd.f32 %v4345_v56, %v7470_v18  ;;  %6243 = vmatprep.mubr.msk.f32.mxu0 %vm413_vm10, %v3944_v59  ;;  %v6283_v1 = vpop.f32.mrb[58].mxu1  ;;  %v3949_v3 = vmul.f32 %v7156_v53, %v8444_v52 }
0x14a4   :  { %6607 = vmatpush3.bf16.msra.mxu0 %v6604_v39  ;;  %v4334_v9 = vpop.f32.mrb[59].mxu1  ;;  %v4348_v22 = vmul.f32 0.35355338, %v6283_v1  ;;  %v4364_v21 = vsel %vm413_vm10, %v4352_v26, -inf }
0x14a5   :  { %v4347_v41 = vmul.f32 0.35355338, %v4334_v9  ;;  %v4361_v29 = vsel %vm413_vm10, %v4351_v36, -inf }
0x14a6   :  { %4362 = vmax.xlane.f32.xlu0 %v4361_v29  ;;  %v4354_v11 = vadd.f32 %v4348_v22, %v7478_v32  ;;  %v5366_v32 = vld [vmem:[%s8739_s8 + $0x30] sm:$0xff] }
0x14a7   :  { %v4353_v18 = vadd.f32 %v4347_v41, %v7475_v30  ;;  %6244 = vmatmul.mubr.msk.f32.vlgmr.msra.gmra.mrb[60].mxu0 %vm413_vm10, %v3945_v61  ;;  %6252 = vmatprep.subr.mxu0 %v5366_v32 }
0x14a8   :  { %6246 = vmatprep.mubr.msk.f32.mxu0 %vm413_vm10, %v3946_v27  ;;  %v4370_v30 = vsel %vm413_vm10, %v4354_v11, -inf  ;;  %6253 = vmatpush3.msra.mxu0 %v5366_v32  ;;  %v5367_v32 = vld [vmem:[%s8739_s8 + $0x38] sm:$0xff] }
0x14a9   :  { %v4367_v10 = vsel %vm413_vm10, %v4353_v18, -inf }
0x14aa   :  { %4365 = vmax.xlane.f32.xlu0 %v4364_v21  ;;  %4368 = vmax.xlane.f32.xlu1 %v4367_v10 }
0x14ab   :  { %6247 = vmatmul.mubr.msk.f32.gmra.mrb[62].mxu0 %vm413_vm10, %v3947_v6 }
0x14ac   :  { %6249 = vmatprep.mubr.msk.f32.mxu0 %vm413_vm10, %v3948_v15 }
0x14ae   :  { %4371 = vmax.xlane.f32.xlu0 %v4370_v30 }
0x14af   :  { %6250 = vmatmul.mubr.msk.f32.gmra.mrb[64].mxu0 %vm413_vm10, %v3949_v3 }
0x14bb   :  { %6939 = vrot.lane.b32.xlu1 %v8120_v0, %s8771_s19 }
0x152e   :  { %v4360_v55 = vpop.xlane.xlu1 %4359 }
0x152f   :  { %v4374_v14 = vsub.f32 %v4350_v42, %v4360_v55  ;;  %v4357_v4 = vpop.xlane.xlu0 %4356 }
0x1530   :  { %v4373_v7 = vsub.f32 %v4349_v8, %v4357_v4 }
0x1531   :  { %v4381_v40 = vmul.f32 1.442695, %v4374_v14 }
0x1532   :  { %v4379_v51 = vmul.f32 1.442695, %v4373_v7 }
0x1533   :  { %7157 = vpow2.f32 %v4381_v40  ;;  %v4363_v52 = vpop.xlane.xlu0 %4362 }
0x1534   :  { %7159 = vpow2.f32 %v4379_v51  ;;  %v4375_v38 = vsub.f32 %v4351_v36, %v4363_v52 }
0x1536   :  { %v4383_v12 = vmul.f32 1.442695, %v4375_v38 }
0x1537   :  { %v4366_v62 = vpop.xlane.xlu0 %4365  ;;  %v4369_v23 = vpop.xlane.xlu1 %4368 }
0x1538   :  { %7161 = vpow2.f32 %v4383_v12  ;;  %v4376_v0 = vsub.f32 %v4352_v26, %v4366_v62  ;;  %v4377_v43 = vsub.f32 %v4353_v18, %v4369_v23 }
0x153a   :  { %v4385_v35 = vmul.f32 1.442695, %v4376_v0  ;;  %v4387_v20 = vmul.f32 1.442695, %v4377_v43 }
0x153b   :  { %v4372_v45 = vpop.xlane.xlu0 %4371  ;;  %v6940_v46 = vpop.permute.xlu1 %6939 }
0x153c   :  { %7163 = vpow2.f32 %v4385_v35  ;;  %v4378_v19 = vsub.f32 %v4354_v11, %v4372_v45  ;;  %v6942_v48 = vunpack.i.h.bf16 %v6940_v46  ;;  %v6941_v25 = vunpack.i.l.bf16 %v6940_v46  ;;  %v5465_v45 = vld [vmem:[%s8740_s9 + $0x1] ss:$0 sm:$0xff] }
0x153d   :  { %v8511_v44 = vpop.eup %7157  ;;  %7165 = vpow2.f32 %v4387_v20 }
0x153e   :  { %v7160_v49 = vpop.eup %7159  ;;  %v4389_v54 = vmul.f32 1.442695, %v4378_v19  ;;  %v6626_v42 = vpack.c.bf16 %v6942_v48, %v6941_v25  ;;  %v4394_v39 = vsel %vm413_vm10, %v8511_v44, 0.0 }
0x153f   :  { %4395 = vadd.xlane.f32.xlu0 %v4394_v39  ;;  %v4391_v8 = vsel %vm413_vm10, %v7160_v49, 0.0 }
0x1540   :  { %7167 = vpow2.f32 %v4389_v54  ;;  %4392 = vadd.xlane.f32.xlu1 %v4391_v8  ;;  %6627 = vmatprep.subr.bf16.mxu0 %v6626_v42 }
0x1542   :  { %v7162_v58 = vpop.eup %7161 }
0x1543   :  { %v4397_v13 = vsel %vm413_vm10, %v7162_v58, 0.0 }
0x1544   :  { %4398 = vadd.xlane.f32.xlu1 %v4397_v13 }
0x1546   :  { %v7164_v5 = vpop.eup %7163 }
0x1547   :  { %v8517_v31 = vpop.eup %7165  ;;  %v4400_v47 = vsel %vm413_vm10, %v7164_v5, 0.0 }
0x1548   :  { %4401 = vadd.xlane.f32.xlu0 %v4400_v47  ;;  %v4403_v56 = vsel %vm413_vm10, %v8517_v31, 0.0 }
0x1549   :  { %4404 = vadd.xlane.f32.xlu1 %v4403_v56 }
0x154a   :  { %v7168_v60 = vpop.eup %7167 }
0x154b   :  { %v4406_v59 = vsel %vm413_vm10, %v7168_v60, 0.0 }
0x154c   :  { %4407 = vadd.xlane.f32.xlu0 %v4406_v59 }
0x155a   :  { %6949 = vrot.lane.b32.xlu1 %v8140_v34, %s8771_s19 }
0x1562   :  { %6944 = vrot.lane.b32.xlu0 %v8130_v17, %s8771_s19 }
0x157a   :  { %v6245_v2 = vpop.f32.mrb[60].mxu0 }
0x157b   :  { %v4052_v36 = vpop.f32.mrb[61].mxu0 }
0x157c   :  { %6254 = vmatprep.mubr.msk.f32.mxu0 %vm281_vm1, %v4052_v36 }
0x157d   :  { %6255 = vmatmul.mubr.msk.f32.vlgmr.msra.gmra.mrb[54].mxu0 %vm281_vm1, %v6245_v2 }
0x157e   :  { %6629 = vmatpush3.bf16.msra.mxu0 %v6626_v42  ;;  %v6248_v1 = vpop.f32.mrb[62].mxu0 }
0x157f   :  { %v4062_v61 = vpop.f32.mrb[63].mxu0 }
0x1580   :  { %6257 = vmatprep.mubr.msk.f32.mxu0 %vm281_vm1, %v4062_v61 }
0x1581   :  { %6258 = vmatmul.mubr.msk.f32.gmra.mrb[56].mxu0 %vm281_vm1, %v6248_v1 }
0x1582   :  { %v6251_v9 = vpop.f32.mrb[64].mxu0 }
0x1583   :  { %v4072_v26 = vpop.f32.mrb[65].mxu0 }
0x1584   :  { %6260 = vmatprep.mubr.msk.f32.mxu0 %vm281_vm1, %v4072_v26 }
0x1585   :  { %6261 = vmatmul.mubr.msk.f32.gmra.mrb[58].mxu0 %vm281_vm1, %v6251_v9 }
0x15cc   :  { %v4396_v34 = vpop.xlane.xlu0 %4395 }
0x15cd   :  { %v4393_v17 = vpop.xlane.xlu1 %4392 }
0x15ce   :  { %7169 = vrcp.f32 %v4393_v17 }
0x15cf   :  { %7171 = vrcp.f32 %v4396_v34 }
0x15d1   :  { %v4399_v22 = vpop.xlane.xlu1 %4398 }
0x15d2   :  { %7173 = vrcp.f32 %v4399_v22 }
0x15d5   :  { %v4402_v41 = vpop.xlane.xlu0 %4401 }
0x15d6   :  { %v4405_v29 = vpop.xlane.xlu1 %4404  ;;  %7175 = vrcp.f32 %v4402_v41 }
0x15d7   :  { %7177 = vrcp.f32 %v4405_v29 }
0x15d8   :  { %v7170_v24 = vpop.eup %7169 }
0x15d9   :  { %v4408_v27 = vpop.xlane.xlu0 %4407  ;;  %v4415_v57 = vmul.f32 %v7170_v24, %v7160_v49  ;;  %v7172_v3 = vpop.eup %7171 }
0x15da   :  { %v6950_v18 = vpop.permute.xlu1 %6949  ;;  %7179 = vrcp.f32 %v4408_v27  ;;  %v4416_v14 = vmul.f32 %v7172_v3, %v8511_v44 }
0x15db   :  { %6296 = vmatprep.mubr.msk.f32.mxu0 %vm413_vm10, %v4415_v57  ;;  %v6952_v21 = vunpack.i.h.bf16 %v6950_v18  ;;  %v6951_v10 = vunpack.i.l.bf16 %v6950_v18 }
0x15dc   :  { %v7174_v55 = vpop.eup %7173 }
0x15dd   :  { %v6945_v11 = vpop.permute.xlu0 %6944  ;;  %v6634_v30 = vpack.c.bf16 %v6952_v21, %v6951_v10  ;;  %v4417_v7 = vmul.f32 %v7174_v55, %v7162_v58 }
0x15de   :  { %v6947_v6 = vunpack.i.h.bf16 %v6945_v11  ;;  %v6946_v53 = vunpack.i.l.bf16 %v6945_v11 }
0x15e0   :  { %v6630_v15 = vpack.c.bf16 %v6947_v6, %v6946_v53  ;;  %v7176_v4 = vpop.eup %7175 }
0x15e1   :  { %v7178_v40 = vpop.eup %7177  ;;  %v4418_v51 = vmul.f32 %v7176_v4, %v7164_v5 }
0x15e2   :  { %6631 = vmatprep.subr.bf16.mxu0 %v6630_v15  ;;  %v4419_v38 = vmul.f32 %v7178_v40, %v8517_v31 }
0x15e3   :  { %6633 = vmatpush3.bf16.msra.mxu0 %v6630_v15 }
0x15e4   :  { %6635 = vmatprep.subr.bf16.mxu0 %v6634_v30  ;;  %v7180_v52 = vpop.eup %7179 }
0x15e5   :  { %v4420_v12 = vmul.f32 %v7180_v52, %v7168_v60  ;;  %v5468_v52 = vld [vmem:[%s8741_s12 + $0x20] sm:$0xff] }
0x15e7   :  { %6637 = vmatpush3.bf16.msra.mxu0 %v6634_v30 }
0x15e8   :  { %6305 = vmatprep.subr.mxu0 %v5367_v32 }
0x15ea   :  { %6297 = vmatmul.mubr.msk.f32.vlgmr.msra.gmra.mrb[66].mxu0 %vm413_vm10, %v4416_v14 }
0x15eb   :  { %6299 = vmatprep.mubr.msk.f32.mxu0 %vm413_vm10, %v4417_v7  ;;  %6306 = vmatpush3.msra.mxu0 %v5367_v32 }
0x15ee   :  { %6300 = vmatmul.mubr.msk.f32.gmra.mrb[68].mxu0 %vm413_vm10, %v4418_v51 }
0x15ef   :  { %6302 = vmatprep.mubr.msk.f32.mxu0 %vm413_vm10, %v4419_v38  ;;  %v5469_v38 = vld [vmem:[%s8741_s12 + $0x28] sm:$0xff] }
0x15f2   :  { %6303 = vmatmul.mubr.msk.f32.gmra.mrb[70].mxu0 %vm413_vm10, %v4420_v12  ;;  %v6638_v12 = vpack.c.bf16 %v5469_v38, %v5468_v52  ;;  %v5479_v38 = vld [vmem:[%s8744_s14 + $0x70] sm:$0xff] }
0x15f4   :  { %6639 = vmatprep.subr.bf16.mxu1 %v6638_v12 }
0x15f5   :  { %6641 = vmatpush3.bf16.msra.mxu1 %v6638_v12  ;;  %v5480_v12 = vld [vmem:[%s8744_s14 + $0x78] sm:$0xff] }
0x16bd   :  { %v6298_v62 = vpop.f32.mrb[66].mxu0 }
0x16be   :  { %v4523_v23 = vpop.f32.mrb[67].mxu0 }
0x16bf   :  { %6307 = vmatprep.mubr.msk.f32.mxu0 %vm281_vm1, %v4523_v23  ;;  %v5471_v23 = vld [vmem:[%s8741_s12 + $0x38] sm:$0xff] }
0x16c0   :  { %6308 = vmatmul.mubr.msk.f32.vlgmr.msra.gmra.mrb[54].mxu0 %vm281_vm1, %v6298_v62  ;;  %v5470_v62 = vld [vmem:[%s8741_s12 + $0x30] sm:$0xff] }
0x16c1   :  { %v6301_v0 = vpop.f32.mrb[68].mxu0 }
0x16c2   :  { %v4533_v43 = vpop.f32.mrb[69].mxu0 }
0x16c3   :  { %6310 = vmatprep.mubr.msk.f32.mxu0 %vm281_vm1, %v4533_v43 }
0x16c4   :  { %6311 = vmatmul.mubr.msk.f32.gmra.mrb[56].mxu0 %vm281_vm1, %v6301_v0  ;;  %v6642_v0 = vpack.c.bf16 %v5471_v23, %v5470_v62  ;;  %v6658_v62 = vpack.c.bf16 %v5480_v12, %v5479_v38  ;;  %v5484_v23 = vld [vmem:[%s8745_s13 + $0x1] ss:$0 sm:$0xff] }
0x16c5   :  { %v6304_v35 = vpop.f32.mrb[70].mxu0 }
0x16c6   :  { %v4543_v20 = vpop.f32.mrb[71].mxu0  ;;  %6643 = vmatprep.subr.bf16.mxu1 %v6642_v0 }
0x16c7   :  { %6313 = vmatprep.mubr.msk.f32.mxu0 %vm281_vm1, %v4543_v20  ;;  %6645 = vmatpush3.bf16.msra.mxu1 %v6642_v0 }
0x16c8   :  { %6314 = vmatmul.mubr.msk.f32.gmra.mrb[58].mxu0 %vm281_vm1, %v6304_v35 }
0x1793   :  { %v6309_v46 = vpop.f32.mrb[54].mxu0 }
0x1794   :  { %v4680_v19 = vadd.f32 %v6309_v46, %v5465_v45  ;;  %v4636_v48 = vpop.f32.mrb[55].mxu0 }
0x1795   :  { %v4679_v25 = vadd.f32 %v5465_v45, %v4636_v48 }
0x1796   :  { %v8554_v44 = vadd.f32 %v4680_v19, %v8014_v28 }
0x1797   :  { %v8557_v49 = vadd.f32 %v4679_v25, %v8017_v16  ;;  %v6312_v54 = vpop.f32.mrb[56].mxu0 }
0x1798   :  { %v4682_v42 = vadd.f32 %v6312_v54, %v5465_v45  ;;  %v4646_v39 = vpop.f32.mrb[57].mxu0  ;;  %v4716_v8 = vsel %vm145_vm0, %v8554_v44, 0.0 }
0x1799   :  { %v4681_v58 = vadd.f32 %v5465_v45, %v4646_v39  ;;  %4717 = vadd.xlane.f32.xlu0 %v4716_v8  ;;  %v4713_v13 = vsel %vm145_vm0, %v8557_v49, 0.0 }
0x179a   :  { %v8564_v5 = vadd.f32 %v4682_v42, %v8024_v33  ;;  %4714 = vadd.xlane.f32.xlu1 %v4713_v13 }
0x179b   :  { %v8567_v28 = vadd.f32 %v4681_v58, %v8027_v37  ;;  %v6315_v16 = vpop.f32.mrb[58].mxu0 }
0x179c   :  { %v4684_v31 = vadd.f32 %v6315_v16, %v5465_v45  ;;  %v4656_v47 = vpop.f32.mrb[59].mxu0  ;;  %v4722_v56 = vsel %vm145_vm0, %v8564_v5, 0.0 }
0x179d   :  { %v4683_v60 = vadd.f32 %v5465_v45, %v4656_v47  ;;  %v4719_v59 = vsel %vm145_vm0, %v8567_v28, 0.0 }
0x179e   :  { %v8574_v2 = vadd.f32 %v4684_v31, %v8034_v50  ;;  %4723 = vadd.xlane.f32.xlu1 %v4722_v56  ;;  %4720 = vadd.xlane.f32.xlu0 %v4719_v59  ;;  %v5482_v59 = vld [vmem:[%s8742_s10 + $0x1] ss:$0 sm:$0xff] }
0x179f   :  { %v8577_v33 = vadd.f32 %v4683_v60, %v8037_v63 }
0x17a0   :  { %v4728_v37 = vsel %vm145_vm0, %v8574_v2, 0.0 }
0x17a1   :  { %v4725_v36 = vsel %vm145_vm0, %v8577_v33, 0.0 }
0x17a2   :  { %4729 = vadd.xlane.f32.xlu1 %v4728_v37  ;;  %4726 = vadd.xlane.f32.xlu0 %v4725_v36 }
0x1826   :  { %v4718_v1 = vpop.xlane.xlu0 %4717 }
0x1827   :  { %v4732_v61 = vmul.f32 0.03125, %v4718_v1  ;;  %v4715_v9 = vpop.xlane.xlu1 %4714 }
0x1828   :  { %v4731_v26 = vmul.f32 0.03125, %v4715_v9 }
0x1829   :  { %v8584_v50 = vsub.f32 %v8554_v44, %v4732_v61  ;;  %v5483_v61 = vld [vmem:[%s8743_s11 + $0x1] ss:$0 sm:$0xff] }
0x182a   :  { %v8587_v17 = vsub.f32 %v8557_v49, %v4731_v26 }
0x182b   :  { %v4724_v63 = vpop.xlane.xlu1 %4723  ;;  %v4721_v34 = vpop.xlane.xlu0 %4720  ;;  %v4744_v22 = vmul.f32 %v8584_v50, %v8584_v50 }
0x182c   :  { %v4734_v41 = vmul.f32 0.03125, %v4724_v63  ;;  %v4733_v29 = vmul.f32 0.03125, %v4721_v34  ;;  %v4743_v24 = vmul.f32 %v8587_v17, %v8587_v17 }
0x182d   :  { %v4752_v27 = vsel %vm145_vm0, %v4744_v22, 0.0 }
0x182e   :  { %v8595_v57 = vsub.f32 %v8564_v5, %v4734_v41  ;;  %v8598_v18 = vsub.f32 %v8567_v28, %v4733_v29  ;;  %4753 = vadd.xlane.f32.xlu1 %v4752_v27  ;;  %v4749_v11 = vsel %vm145_vm0, %v4743_v24, 0.0 }
0x182f   :  { %v4730_v21 = vpop.xlane.xlu1 %4729  ;;  %4750 = vadd.xlane.f32.xlu0 %v4749_v11  ;;  %v4727_v10 = vpop.xlane.xlu0 %4726 }
0x1830   :  { %v4736_v6 = vmul.f32 0.03125, %v4730_v21  ;;  %v4735_v53 = vmul.f32 0.03125, %v4727_v10  ;;  %v4746_v15 = vmul.f32 %v8595_v57, %v8595_v57  ;;  %v4745_v30 = vmul.f32 %v8598_v18, %v8598_v18 }
0x1832   :  { %v8606_v3 = vsub.f32 %v8574_v2, %v4736_v6  ;;  %v8609_v32 = vsub.f32 %v8577_v33, %v4735_v53  ;;  %v4758_v55 = vsel %vm145_vm0, %v4746_v15, 0.0  ;;  %v4755_v14 = vsel %vm145_vm0, %v4745_v30, 0.0 }
0x1833   :  { %4759 = vadd.xlane.f32.xlu1 %v4758_v55  ;;  %4756 = vadd.xlane.f32.xlu0 %v4755_v14  ;;  %v5473_v55 = vld [vmem:[%s8744_s14 + $0x40] sm:$0xff]  ;;  %v5475_v14 = vld [vmem:[%s8744_s14 + $0x50] sm:$0xff] }
0x1834   :  { %v4748_v4 = vmul.f32 %v8606_v3, %v8606_v3  ;;  %v4747_v7 = vmul.f32 %v8609_v32, %v8609_v32 }
0x1836   :  { %v4764_v40 = vsel %vm145_vm0, %v4748_v4, 0.0  ;;  %v4761_v51 = vsel %vm145_vm0, %v4747_v7, 0.0  ;;  %v5476_v4 = vld [vmem:[%s8744_s14 + $0x58] sm:$0xff] }
0x1837   :  { %4765 = vadd.xlane.f32.xlu1 %v4764_v40  ;;  %4762 = vadd.xlane.f32.xlu0 %v4761_v51  ;;  %v6650_v7 = vpack.c.bf16 %v5476_v4, %v5475_v14  ;;  %v5477_v40 = vld [vmem:[%s8744_s14 + $0x60] sm:$0xff]  ;;  %v5478_v51 = vld [vmem:[%s8744_s14 + $0x68] sm:$0xff] }
0x1838   :  { %v6654_v52 = vpack.c.bf16 %v5478_v51, %v5477_v40 }
0x18bb   :  { %v4754_v43 = vpop.xlane.xlu1 %4753 }
0x18bc   :  { %v4768_v35 = vmul.f32 0.03125, %v4754_v43  ;;  %v4751_v20 = vpop.xlane.xlu0 %4750 }
0x18bd   :  { %v4767_v45 = vmul.f32 0.03125, %v4751_v20 }
0x18be   :  { %v4774_v46 = vadd.f32 1e-06, %v4768_v35 }
0x18bf   :  { %v4773_v19 = vadd.f32 1e-06, %v4767_v45 }
0x18c0   :  { %7181 = vrsqrt.f32 %v4774_v46  ;;  %v4760_v48 = vpop.xlane.xlu1 %4759  ;;  %v4757_v25 = vpop.xlane.xlu0 %4756 }
0x18c1   :  { %7183 = vrsqrt.f32 %v4773_v19  ;;  %v4770_v54 = vmul.f32 0.03125, %v4760_v48  ;;  %v4769_v42 = vmul.f32 0.03125, %v4757_v25 }
0x18c3   :  { %v4776_v39 = vadd.f32 1e-06, %v4770_v54  ;;  %v4775_v8 = vadd.f32 1e-06, %v4769_v42 }
0x18c4   :  { %v4766_v58 = vpop.xlane.xlu1 %4765  ;;  %v4763_v13 = vpop.xlane.xlu0 %4762 }
0x18c5   :  { %7185 = vrsqrt.f32 %v4776_v39  ;;  %v4772_v16 = vmul.f32 0.03125, %v4766_v58  ;;  %v4771_v31 = vmul.f32 0.03125, %v4763_v13 }
0x18c6   :  { %7187 = vrsqrt.f32 %v4775_v8 }
0x18c7   :  { %v4778_v47 = vadd.f32 1e-06, %v4772_v16  ;;  %v4777_v56 = vadd.f32 1e-06, %v4771_v31 }
0x18c9   :  { %7189 = vrsqrt.f32 %v4778_v47 }
0x18ca   :  { %v7182_v60 = vpop.eup %7181  ;;  %7191 = vrsqrt.f32 %v4777_v56 }
0x18cb   :  { %v7184_v37 = vpop.eup %7183  ;;  %v4786_v36 = vmul.f32 %v7182_v60, %v8584_v50 }
0x18cc   :  { %v4785_v1 = vmul.f32 %v7184_v37, %v8587_v17 }
0x18cd   :  { %v4798_v9 = vmul.f32 %v5482_v59, %v4786_v36 }
0x18ce   :  { %v4797_v26 = vmul.f32 %v5482_v59, %v4785_v1 }
0x18cf   :  { %v7186_v63 = vpop.eup %7185  ;;  %v4810_v29 = vadd.f32 %v5483_v61, %v4798_v9 }
0x18d0   :  { %v7188_v34 = vpop.eup %7187  ;;  %v4809_v22 = vadd.f32 %v5483_v61, %v4797_v26  ;;  %v4788_v41 = vmul.f32 %v7186_v63, %v8595_v57 }
0x18d1   :  { %v4787_v24 = vmul.f32 %v7188_v34, %v8598_v18 }
0x18d2   :  { %6324 = vmatprep.mubr.msk.f32.mxu1 %vm145_vm0, %v4809_v22  ;;  %v4800_v27 = vmul.f32 %v5482_v59, %v4788_v41 }
0x18d3   :  { %v7190_v50 = vpop.eup %7189  ;;  %6325 = vmatmul.mubr.msk.f32.vlgmr.msra.gmra.mrb[60].mxu1 %vm145_vm0, %v4810_v29  ;;  %v4799_v17 = vmul.f32 %v5482_v59, %v4787_v24 }
0x18d4   :  { %v7192_v11 = vpop.eup %7191  ;;  %v4812_v21 = vadd.f32 %v5483_v61, %v4800_v27  ;;  %v4790_v10 = vmul.f32 %v7190_v50, %v8606_v3  ;;  %v5474_v3 = vld [vmem:[%s8744_s14 + $0x48] sm:$0xff] }
0x18d5   :  { %v4811_v6 = vadd.f32 %v5483_v61, %v4799_v17  ;;  %v4789_v53 = vmul.f32 %v7192_v11, %v8609_v32  ;;  %v6646_v32 = vpack.c.bf16 %v5474_v3, %v5473_v55 }
0x18d6   :  { %v4802_v15 = vmul.f32 %v5482_v59, %v4790_v10 }
0x18d7   :  { %6327 = vmatprep.mubr.msk.f32.mxu1 %vm145_vm0, %v4811_v6  ;;  %v4801_v57 = vmul.f32 %v5482_v59, %v4789_v53  ;;  %6647 = vmatprep.subr.bf16.mxu1 %v6646_v32 }
0x18d8   :  { %6328 = vmatmul.mubr.msk.f32.gmra.mrb[62].mxu1 %vm145_vm0, %v4812_v21  ;;  %v4814_v18 = vadd.f32 %v5483_v61, %v4802_v15 }
0x18d9   :  { %v4813_v30 = vadd.f32 %v5483_v61, %v4801_v57  ;;  %6649 = vmatpush3.bf16.msra.mxu1 %v6646_v32 }
0x18da   :  { %6651 = vmatprep.subr.bf16.mxu1 %v6650_v7 }
0x18db   :  { %6330 = vmatprep.mubr.msk.f32.mxu1 %vm145_vm0, %v4813_v30 }
0x18dc   :  { %6331 = vmatmul.mubr.msk.f32.gmra.mrb[64].mxu1 %vm145_vm0, %v4814_v18 }
0x18dd   :  { %6653 = vmatpush3.bf16.msra.mxu1 %v6650_v7 }
0x18de   :  { %6655 = vmatprep.subr.bf16.mxu1 %v6654_v52 }
0x18e1   :  { %6657 = vmatpush3.bf16.msra.mxu1 %v6654_v52 }
0x18e2   :  { %6659 = vmatprep.subr.bf16.mxu1 %v6658_v62 }
0x18e5   :  { %6661 = vmatpush3.bf16.msra.mxu1 %v6658_v62 }
0x19a6   :  { %v6326_v0 = vpop.f32.mrb[60].mxu1 }
0x19a7   :  { %v4911_v43 = vadd.f32 %v6326_v0, %v5484_v23  ;;  %v4905_v35 = vpop.f32.mrb[61].mxu1 }
0x19a8   :  { %v4906_v20 = vadd.f32 %v5484_v23, %v4905_v35 }
0x19a9   :  { %v4941_v45 = vmul.f32 0.044715, %v4911_v43  ;;  %v4935_v32 = vmul.f32 0.5, %v4911_v43 }
0x19aa   :  { %v4940_v46 = vmul.f32 0.044715, %v4906_v20  ;;  %v4934_v55 = vmul.f32 0.5, %v4906_v20 }
0x19ab   :  { %v4947_v19 = vmul.f32 %v4941_v45, %v4911_v43  ;;  %v6329_v48 = vpop.f32.mrb[62].mxu1 }
0x19ac   :  { %v4946_v25 = vmul.f32 %v4940_v46, %v4906_v20  ;;  %v4921_v54 = vadd.f32 %v6329_v48, %v5484_v23  ;;  %v4915_v42 = vpop.f32.mrb[63].mxu1 }
0x19ad   :  { %v4953_v39 = vmul.f32 %v4947_v19, %v4911_v43  ;;  %v4916_v8 = vadd.f32 %v5484_v23, %v4915_v42 }
0x19ae   :  { %v4952_v58 = vmul.f32 %v4946_v25, %v4906_v20  ;;  %v4943_v13 = vmul.f32 0.044715, %v4921_v54  ;;  %v4937_v12 = vmul.f32 0.5, %v4921_v54  ;;  %v5491_v25 = vld [vmem:[%s8746_s15 + $0x1] ss:$0 sm:$0xff] }
0x19af   :  { %v4959_v16 = vadd.f32 %v4953_v39, %v4911_v43  ;;  %v4942_v31 = vmul.f32 0.044715, %v4916_v8  ;;  %v6332_v47 = vpop.f32.mrb[64].mxu1  ;;  %v4936_v52 = vmul.f32 0.5, %v4916_v8 }
0x19b0   :  { %v4958_v56 = vadd.f32 %v4952_v58, %v4906_v20  ;;  %v4949_v60 = vmul.f32 %v4943_v13, %v4921_v54  ;;  %v4931_v59 = vadd.f32 %v6332_v47, %v5484_v23  ;;  %v4925_v37 = vpop.f32.mrb[65].mxu1 }
0x19b1   :  { %v4965_v36 = vmul.f32 0.7978846, %v4959_v16  ;;  %v4948_v1 = vmul.f32 %v4942_v31, %v4916_v8  ;;  %v4926_v61 = vadd.f32 %v5484_v23, %v4925_v37 }
0x19b2   :  { %v4955_v9 = vmul.f32 %v4949_v60, %v4921_v54  ;;  %v4945_v26 = vmul.f32 0.044715, %v4931_v59  ;;  %v4964_v63 = vmul.f32 0.7978846, %v4958_v56  ;;  %v4939_v46 = vmul.f32 0.5, %v4931_v59 }
0x19b3   :  { %7193 = vtanh.f32 %v4965_v36  ;;  %v4954_v34 = vmul.f32 %v4948_v1, %v4916_v8  ;;  %v4944_v22 = vmul.f32 0.044715, %v4926_v61  ;;  %v4938_v43 = vmul.f32 0.5, %v4926_v61 }
0x19b4   :  { %v4961_v41 = vadd.f32 %v4955_v9, %v4921_v54  ;;  %v4951_v29 = vmul.f32 %v4945_v26, %v4931_v59  ;;  %7195 = vtanh.f32 %v4964_v63 }
0x19b5   :  { %v4960_v24 = vadd.f32 %v4954_v34, %v4916_v8  ;;  %v4950_v27 = vmul.f32 %v4944_v22, %v4926_v61 }
0x19b6   :  { %v4957_v50 = vmul.f32 %v4951_v29, %v4931_v59  ;;  %v4967_v17 = vmul.f32 0.7978846, %v4961_v41 }
0x19b7   :  { %v4956_v11 = vmul.f32 %v4950_v27, %v4926_v61  ;;  %v4966_v21 = vmul.f32 0.7978846, %v4960_v24 }
0x19b8   :  { %v4963_v10 = vadd.f32 %v4957_v50, %v4931_v59  ;;  %7197 = vtanh.f32 %v4967_v17 }
0x19b9   :  { %v4962_v6 = vadd.f32 %v4956_v11, %v4926_v61  ;;  %7199 = vtanh.f32 %v4966_v21 }
0x19ba   :  { %v4969_v53 = vmul.f32 0.7978846, %v4963_v10 }
0x19bb   :  { %v4968_v15 = vmul.f32 0.7978846, %v4962_v6 }
0x19bc   :  { %7201 = vtanh.f32 %v4969_v53 }
0x19bd   :  { %v7194_v57 = vpop.eup %7193  ;;  %7203 = vtanh.f32 %v4968_v15 }
0x19be   :  { %v7196_v18 = vpop.eup %7195  ;;  %v4977_v30 = vadd.f32 1.0, %v7194_v57 }
0x19bf   :  { %v4976_v3 = vadd.f32 1.0, %v7196_v18 }
0x19c0   :  { %v4983_v7 = vmul.f32 %v4977_v30, %v4935_v32 }
0x19c1   :  { %v4982_v14 = vmul.f32 %v4976_v3, %v4934_v55 }
0x19c2   :  { %v7198_v4 = vpop.eup %7197 }
0x19c3   :  { %v7200_v40 = vpop.eup %7199  ;;  %6349 = vmatprep.mubr.msk.f32.mxu1 %vm2448_vm5, %v4982_v14  ;;  %v4979_v51 = vadd.f32 1.0, %v7198_v4 }
0x19c4   :  { %6350 = vmatmul.mubr.msk.f32.vlgmr.msra.gmra.mrb[66].mxu1 %vm2448_vm5, %v4983_v7  ;;  %v4978_v38 = vadd.f32 1.0, %v7200_v40 }
0x19c5   :  { %v4985_v35 = vmul.f32 %v4979_v51, %v4937_v12 }
0x19c6   :  { %v7202_v62 = vpop.eup %7201  ;;  %v4984_v23 = vmul.f32 %v4978_v38, %v4936_v52 }
0x19c7   :  { %v7204_v0 = vpop.eup %7203  ;;  %v4981_v45 = vadd.f32 1.0, %v7202_v62 }
0x19c8   :  { %6352 = vmatprep.mubr.msk.f32.mxu1 %vm2448_vm5, %v4984_v23  ;;  %v4980_v20 = vadd.f32 1.0, %v7204_v0 }
0x19c9   :  { %6353 = vmatmul.mubr.msk.f32.gmra.mrb[68].mxu1 %vm2448_vm5, %v4985_v35  ;;  %v4987_v48 = vmul.f32 %v4981_v45, %v4939_v46 }
0x19ca   :  { %v4986_v19 = vmul.f32 %v4980_v20, %v4938_v43 }
0x19cc   :  { %6355 = vmatprep.mubr.msk.f32.mxu1 %vm2448_vm5, %v4986_v19 }
0x19cd   :  { %6356 = vmatmul.mubr.msk.f32.gmra.mrb[70].mxu1 %vm2448_vm5, %v4987_v48 }
0x1a97   :  { %v6351_v54 = vpop.f32.mrb[66].mxu1 }
0x1a98   :  { %v5084_v42 = vadd.f32 %v6351_v54, %v5491_v25  ;;  %v5078_v39 = vpop.f32.mrb[67].mxu1 }
0x1a99   :  { %v5079_v8 = vadd.f32 %v5491_v25, %v5078_v39 }
0x1a9a   :  { %v5108_v58 = vadd.f32 %v5084_v42, %v8554_v44 }
0x1a9b   :  { %v5107_v13 = vadd.f32 %v5079_v8, %v8557_v49 }
0x1a9c   :  { %v6354_v16 = vpop.f32.mrb[68].mxu1  ;;  %v5118_v31 = vsel %vm145_vm0, %v5108_v58, 0.0 }
0x1a9d   :  { %v5094_v47 = vadd.f32 %v6354_v16, %v5491_v25  ;;  %v5088_v56 = vpop.f32.mrb[69].mxu1  ;;  %5119 = vadd.xlane.f32.xlu1 %v5118_v31  ;;  %v5115_v60 = vsel %vm145_vm0, %v5107_v13, 0.0 }
0x1a9e   :  { %v5089_v59 = vadd.f32 %v5491_v25, %v5088_v56  ;;  %5116 = vadd.xlane.f32.xlu0 %v5115_v60  ;;  %v5498_v56 = vld [vmem:[%s8749_s16] ss:$0 sm:$0xff] }
0x1a9f   :  { %v5110_v37 = vadd.f32 %v5094_v47, %v8564_v5 }
0x1aa0   :  { %v5109_v36 = vadd.f32 %v5089_v59, %v8567_v28  ;;  %v6357_v1 = vpop.f32.mrb[70].mxu1 }
0x1aa1   :  { %v5104_v61 = vadd.f32 %v6357_v1, %v5491_v25  ;;  %v5098_v9 = vpop.f32.mrb[71].mxu1  ;;  %v5124_v44 = vsel %vm145_vm0, %v5110_v37, 0.0 }
0x1aa2   :  { %v5099_v49 = vadd.f32 %v5491_v25, %v5098_v9  ;;  %5125 = vadd.xlane.f32.xlu1 %v5124_v44  ;;  %v5121_v26 = vsel %vm145_vm0, %v5109_v36, 0.0 }
0x1aa3   :  { %v5112_v63 = vadd.f32 %v5104_v61, %v8574_v2  ;;  %5122 = vadd.xlane.f32.xlu0 %v5121_v26 }
0x1aa4   :  { %v5111_v34 = vadd.f32 %v5099_v49, %v8577_v33 }
0x1aa5   :  { %v5130_v22 = vsel %vm145_vm0, %v5112_v63, 0.0 }
0x1aa6   :  { %5131 = vadd.xlane.f32.xlu1 %v5130_v22  ;;  %v5127_v5 = vsel %vm145_vm0, %v5111_v34, 0.0 }
0x1aa7   :  { %5128 = vadd.xlane.f32.xlu0 %v5127_v5 }
0x1b2a   :  { %v5120_v28 = vpop.xlane.xlu1 %5119 }
0x1b2b   :  { %v5134_v41 = vmul.f32 0.03125, %v5120_v28  ;;  %v5117_v29 = vpop.xlane.xlu0 %5116 }
0x1b2c   :  { %v5133_v24 = vmul.f32 0.03125, %v5117_v29 }
0x1b2d   :  { %v5140_v27 = vsub.f32 %v5108_v58, %v5134_v41 }
0x1b2e   :  { %v5139_v50 = vsub.f32 %v5107_v13, %v5133_v24 }
0x1b2f   :  { %v5126_v17 = vpop.xlane.xlu1 %5125  ;;  %v5146_v11 = vmul.f32 %v5140_v27, %v5140_v27 }
0x1b30   :  { %v5136_v21 = vmul.f32 0.03125, %v5126_v17  ;;  %v5123_v10 = vpop.xlane.xlu0 %5122  ;;  %v5145_v2 = vmul.f32 %v5139_v50, %v5139_v50 }
0x1b31   :  { %v5135_v6 = vmul.f32 0.03125, %v5123_v10  ;;  %v5154_v33 = vsel %vm145_vm0, %v5146_v11, 0.0 }
0x1b32   :  { %v5142_v53 = vsub.f32 %v5110_v37, %v5136_v21  ;;  %5155 = vadd.xlane.f32.xlu1 %v5154_v33  ;;  %v5151_v15 = vsel %vm145_vm0, %v5145_v2, 0.0  ;;  %v5499_v37 = vld [vmem:[%s8750_s17] ss:$0 sm:$0xff] }
0x1b33   :  { %v5141_v57 = vsub.f32 %v5109_v36, %v5135_v6  ;;  %v5132_v18 = vpop.xlane.xlu1 %5131  ;;  %5152 = vadd.xlane.f32.xlu0 %v5151_v15 }
0x1b34   :  { %v5138_v30 = vmul.f32 0.03125, %v5132_v18  ;;  %v5129_v55 = vpop.xlane.xlu0 %5128  ;;  %v5148_v3 = vmul.f32 %v5142_v53, %v5142_v53 }
0x1b35   :  { %v5137_v32 = vmul.f32 0.03125, %v5129_v55  ;;  %v5147_v14 = vmul.f32 %v5141_v57, %v5141_v57 }
0x1b36   :  { %v5144_v4 = vsub.f32 %v5112_v63, %v5138_v30  ;;  %v5160_v7 = vsel %vm145_vm0, %v5148_v3, 0.0 }
0x1b37   :  { %v5143_v40 = vsub.f32 %v5111_v34, %v5137_v32  ;;  %5161 = vadd.xlane.f32.xlu1 %v5160_v7  ;;  %v5157_v51 = vsel %vm145_vm0, %v5147_v14, 0.0 }
0x1b38   :  { %5158 = vadd.xlane.f32.xlu0 %v5157_v51  ;;  %v5150_v52 = vmul.f32 %v5144_v4, %v5144_v4 }
0x1b39   :  { %v5149_v38 = vmul.f32 %v5143_v40, %v5143_v40 }
0x1b3a   :  { %v5166_v12 = vsel %vm145_vm0, %v5150_v52, 0.0 }
0x1b3b   :  { %5167 = vadd.xlane.f32.xlu1 %v5166_v12  ;;  %v5163_v62 = vsel %vm145_vm0, %v5149_v38, 0.0 }
0x1b3c   :  { %5164 = vadd.xlane.f32.xlu0 %v5163_v62 }
0x1bbf   :  { %v5156_v23 = vpop.xlane.xlu1 %5155 }
0x1bc0   :  { %v5170_v0 = vmul.f32 0.03125, %v5156_v23  ;;  %v5153_v35 = vpop.xlane.xlu0 %5152 }
0x1bc1   :  { %v5169_v45 = vmul.f32 0.03125, %v5153_v35 }
0x1bc2   :  { %v5176_v43 = vadd.f32 1e-06, %v5170_v0 }
0x1bc3   :  { %v5175_v20 = vadd.f32 1e-06, %v5169_v45 }
0x1bc4   :  { %7205 = vrsqrt.f32 %v5176_v43  ;;  %v5162_v46 = vpop.xlane.xlu1 %5161 }
0x1bc5   :  { %7207 = vrsqrt.f32 %v5175_v20  ;;  %v5172_v19 = vmul.f32 0.03125, %v5162_v46  ;;  %v5159_v48 = vpop.xlane.xlu0 %5158 }
0x1bc6   :  { %v5171_v25 = vmul.f32 0.03125, %v5159_v48 }
0x1bc7   :  { %v5178_v54 = vadd.f32 1e-06, %v5172_v19 }
0x1bc8   :  { %v5177_v42 = vadd.f32 1e-06, %v5171_v25  ;;  %v5168_v39 = vpop.xlane.xlu1 %5167 }
0x1bc9   :  { %7209 = vrsqrt.f32 %v5178_v54  ;;  %v5174_v8 = vmul.f32 0.03125, %v5168_v39  ;;  %v5165_v58 = vpop.xlane.xlu0 %5164 }
0x1bca   :  { %7211 = vrsqrt.f32 %v5177_v42  ;;  %v5173_v13 = vmul.f32 0.03125, %v5165_v58 }
0x1bcb   :  { %v5180_v16 = vadd.f32 1e-06, %v5174_v8 }
0x1bcc   :  { %v5179_v31 = vadd.f32 1e-06, %v5173_v13 }
0x1bcd   :  { %7213 = vrsqrt.f32 %v5180_v16 }
0x1bce   :  { %v7206_v47 = vpop.eup %7205  ;;  %7215 = vrsqrt.f32 %v5179_v31 }
0x1bcf   :  { %v7208_v60 = vpop.eup %7207  ;;  %v5188_v59 = vmul.f32 %v7206_v47, %v5140_v27 }
0x1bd0   :  { %v5187_v36 = vmul.f32 %v7208_v60, %v5139_v50 }
0x1bd1   :  { %v5200_v1 = vmul.f32 %v5498_v56, %v5188_v59 }
0x1bd2   :  { %v5199_v61 = vmul.f32 %v5498_v56, %v5187_v36 }
0x1bd3   :  { %v7210_v9 = vpop.eup %7209  ;;  %v5212_v44 = vadd.f32 %v5499_v37, %v5200_v1 }
0x1bd4   :  { %v7212_v49 = vpop.eup %7211  ;;  %v5211_v26 = vadd.f32 %v5499_v37, %v5199_v61  ;;  %v5190_v63 = vmul.f32 %v7210_v9, %v5142_v53 }
0x1bd5   :  { %5218 = vst.msk [vmem:[%s8751_s18 + $0x8] sm:$0xff] %vm145_vm0, %v5212_v44  ;;  %v5189_v34 = vmul.f32 %v7212_v49, %v5141_v57 }
0x1bd6   :  { %5217 = vst.msk [vmem:[%s8751_s18] sm:$0xff] %vm145_vm0, %v5211_v26  ;;  %v5202_v22 = vmul.f32 %v5498_v56, %v5190_v63 }
0x1bd7   :  { %v7214_v5 = vpop.eup %7213  ;;  %v5201_v28 = vmul.f32 %v5498_v56, %v5189_v34 }
0x1bd8   :  { %v7216_v41 = vpop.eup %7215  ;;  %v5214_v29 = vadd.f32 %v5499_v37, %v5202_v22  ;;  %v5192_v24 = vmul.f32 %v7214_v5, %v5144_v4 }
0x1bd9   :  { %v5213_v27 = vadd.f32 %v5499_v37, %v5201_v28  ;;  %v5191_v50 = vmul.f32 %v7216_v41, %v5143_v40 }
0x1bda   :  { %5220 = vst.msk [vmem:[%s8751_s18 + $0x18] sm:$0xff] %vm145_vm0, %v5214_v29  ;;  %v5204_v17 = vmul.f32 %v5498_v56, %v5192_v24 }
0x1bdb   :  { %5219 = vst.msk [vmem:[%s8751_s18 + $0x10] sm:$0xff] %vm145_vm0, %v5213_v27  ;;  %v5203_v11 = vmul.f32 %v5498_v56, %v5191_v50 }
0x1bdc   :  { %v5216_v21 = vadd.f32 %v5499_v37, %v5204_v17 }
0x1bdd   :  { %v5215_v10 = vadd.f32 %v5499_v37, %v5203_v11 }
0x1bde   :  { %5222 = vst.msk [vmem:[%s8751_s18 + $0x28] sm:$0xff] %vm145_vm0, %v5216_v21 }
0x1bdf   :  { %5221 = vst.msk [vmem:[%s8751_s18 + $0x20] sm:$0xff] %vm145_vm0, %v5215_v10 }

// kernel: model_forward.5
= control target key start
LH: loop header
LB: loop body
LE: loop exit
PB: predicated region body
PF: predicated region fallthrough
CT: control target
= control target key end

     0   :  { %s7466_s6 = smov 1   ;;  %s7467_s10 = smov 2   ;;  %s8330_s0 = inlined_call_operand.smem [shape: u32[32], index: -1, kind: input, shape index: {}] }
   0x1   :  { %s7523_s5 = sld [smem:[%s8330_s0]]   ;;  %s7468_s14 = smov 3  }
   0x2   :  { %s7528_s9 = sld [smem:[%s8330_s0 + %s7466_s6]]   ;;  %s7469_s18 = smov 4  }
   0x3   :  { %s7533_s13 = sld [smem:[%s8330_s0 + %s7467_s10]]   ;;  %s7470_s22 = smov 5  }
   0x4   :  { %s7538_s17 = sld [smem:[%s8330_s0 + %s7468_s14]]   ;;  %s7471_s26 = smov 6  }
   0x5   :  { %s7543_s21 = sld [smem:[%s8330_s0 + %s7469_s18]]   ;;  %s7472_s30 = smov 7  }
   0x6   :  { %s7548_s25 = sld [smem:[%s8330_s0 + %s7470_s22]]   ;;  %s7473_s4 = smov 8  }
   0x7   :  { %s7553_s29 = sld [smem:[%s8330_s0 + %s7471_s26]]   ;;  %s7474_s10 = smov 9  }
   0x8   :  { %8349 = sst [smem:[#allocation5_spill]] %s7528_s9  ;;  %s7475_s15 = smov 10  }
   0x9   :  { %s7558_s3 = sld [smem:[%s8330_s0 + %s7472_s30]]   ;;  %s7476_s20 = smov 11  }
   0xa   :  { %s7563_s8 = sld [smem:[%s8330_s0 + %s7473_s4]]   ;;  %s7477_s26 = smov 12  }
   0xb   :  { %s7568_s14 = sld [smem:[%s8330_s0 + %s7474_s10]]   ;;  %s7478_s1 = smov 13  }
   0xc   :  { %s7573_s19 = sld [smem:[%s8330_s0 + %s7475_s15]]   ;;  %s7479_s7 = smov 14  }
   0xd   :  { %s7578_s24 = sld [smem:[%s8330_s0 + %s7476_s20]]   ;;  %s7480_s15 = smov 15  }
   0xe   :  { %s7583_s30 = sld [smem:[%s8330_s0 + %s7477_s26]]   ;;  %s7481_s22 = smov 16  }
   0xf   :  { %8350 = sst [smem:[#allocation6_spill]] %s7558_s3  ;;  %s7482_s28 = smov 17  }
  0x10   :  { %8351 = sst [smem:[#allocation7_spill]] %s7563_s8 }
  0x11   :  { %s7588_s6 = sld [smem:[%s8330_s0 + %s7478_s1]]  }
  0x12   :  { %s7593_s12 = sld [smem:[%s8330_s0 + %s7479_s7]]   ;;  %s7483_s7 = smov 18  }
  0x13   :  { %s7598_s20 = sld [smem:[%s8330_s0 + %s7480_s15]]   ;;  %s7484_s15 = smov 19  }
  0x14   :  { %s7603_s27 = sld [smem:[%s8330_s0 + %s7481_s22]]   ;;  %s7485_s22 = smov 20  }
  0x15   :  { %s7608_s4 = sld [smem:[%s8330_s0 + %s7482_s28]]   ;;  %s7486_s28 = smov 21  }
  0x16   :  { %s7613_s3 = sld [smem:[%s8330_s0 + %s7483_s7]]   ;;  %s7487_s7 = smov 22  }
  0x17   :  { %s7618_s8 = sld [smem:[%s8330_s0 + %s7484_s15]]   ;;  %s7488_s15 = smov 23  }
  0x18   :  { %s7638_s9 = sld [smem:[%s8330_s0 + %s7488_s15]]   ;;  %s7492_s15 = smov 27  }
  0x19   :  { %8352 = sst [smem:[#allocation8_spill]] %s7598_s20 }
  0x1a   :  { %8353 = sst [smem:[#allocation9_spill]] %s7603_s27 }
  0x1b   :  { %s7623_s27 = sld [smem:[%s8330_s0 + %s7485_s22]]   ;;  %s7489_s22 = smov 24  }
  0x1c   :  { %8354 = sst [smem:[#allocation10_spill]] %s7613_s3 }
  0x1d   :  { %s7628_s20 = sld [smem:[%s8330_s0 + %s7486_s28]]   ;;  %s7490_s28 = smov 25  }
  0x1e   :  { %s7633_s3 = sld [smem:[%s8330_s0 + %s7487_s7]]   ;;  %s7491_s7 = smov 26  }
  0x1f   :  { %8358 = sst [smem:[#allocation14_spill]] %s7638_s9 }
  0x20   :  { %s7658_s9 = sld [smem:[%s8330_s0 + %s7492_s15]]   ;;  %s7496_s15 = smov 31  }
  0x21   :  { %8355 = sst [smem:[#allocation11_spill]] %s7623_s27 }
  0x22   :  { %s7643_s27 = sld [smem:[%s8330_s0 + %s7489_s22]]   ;;  %s7493_s22 = smov 28  }
  0x23   :  { %8356 = sst [smem:[#allocation12_spill]] %s7628_s20 }
  0x24   :  { %8357 = sst [smem:[#allocation13_spill]] %s7633_s3 }
  0x25   :  { %s7648_s20 = sld [smem:[%s8330_s0 + %s7490_s28]]   ;;  %s7494_s28 = smov 29  }
  0x26   :  { %s7653_s3 = sld [smem:[%s8330_s0 + %s7491_s7]]   ;;  %s7495_s7 = smov 30  }
  0x27   :  { %8362 = sst [smem:[#allocation18_spill]] %s7658_s9 }
  0x28   :  { %8359 = sst [smem:[#allocation15_spill]] %s7643_s27 }
  0x29   :  { %s7663_s27 = sld [smem:[%s8330_s0 + %s7493_s22]]  }
  0x2a   :  { %s7678_s9 = sld [smem:[%s8330_s0 + %s7496_s15]]  }
  0x2b   :  { %8360 = sst [smem:[#allocation16_spill]] %s7648_s20 }
  0x2c   :  { %8361 = sst [smem:[#allocation17_spill]] %s7653_s3 }
  0x2d   :  { %s7668_s20 = sld [smem:[%s8330_s0 + %s7494_s28]]  }
  0x2e   :  { %s7673_s3 = sld [smem:[%s8330_s0 + %s7495_s7]]  }
  0x2f   :  { %v7681_v0 = vld [vmem:[%s7523_s5] sm:$0xff]  ;;  %vm213_vm0 = vcmask 261120   ;;  %v7684_v1 = vld [vmem:[%s7523_s5 + $0x8] sm:$0xff] }
  0x30   :  { %68 = vsyncpa [#allocation3], 0  ;;  %v214_v2 = vsel %vm213_vm0, %v7681_v0, 0.0  ;;  %v217_v3 = vsel %vm213_vm0, %v7684_v1, 0.0  ;;  %v257_v14 = vld [vmem:[%s7578_s24] sm:$0xff]  ;;  %v258_v15 = vld [vmem:[%s7578_s24 + $0x8] sm:$0xff] }
  0x31   :  { %215 = vadd.xlane.f32.xlu0 %v214_v2  ;;  %v259_v16 = vld [vmem:[%s7578_s24 + $0x10] sm:$0xff]  ;;  %v6950_v17 = vpack.c.bf16 %v258_v15, %v257_v14  ;;  %v260_v18 = vld [vmem:[%s7578_s24 + $0x18] sm:$0xff]  ;;  %v6115_v27 = vld [vmem:[%s7568_s14] ss:$0 sm:$0xff]  ;;  %v7497_v36 = vmov 0   ;;  %vm359_vm1 = vcmask 64512  }
  0x32   :  { %v6954_v19 = vpack.c.bf16 %v260_v18, %v259_v16  ;;  %v6116_v29 = vld [vmem:[%s7573_s19] ss:$0 sm:$0xff]  ;;  %7205 = vset.pattern.permute.xlu0 %v7497_v36  ;;  %7206 = vset.pattern.permute.xlu1 %v7497_v36  ;;  %s7498_s0 = smov 88   ;;  %s7499_s5 = smov 96   ;;  %v157_v44 = vld [vmem:[%s7543_s21 + $0x8] sm:$0xff]  ;;  %vm7735_vm2 = vmpackc.low %vm359_vm1, %vm359_vm1  ;;  %v7503_v14 = vmov 0.0  }
  0x33   :  { %6951 = vmatprep.subr.bf16.mxu1 %v6950_v17  ;;  %v6117_v37 = vld [vmem:[%s7583_s30] ss:$0 sm:$0xff]  ;;  %s7500_s22 = smov 120   ;;  %s7501_s23 = smov 112   ;;  %v135_v46 = vld [vmem:[%s7533_s13 + $0x8] sm:$0xff]  ;;  %vm447_vm13 = vcmask 130048  }
  0x34   :  { %6953 = vmatpush3.bf16.msra.mxu1 %v6950_v17  ;;  %v134_v43 = vld [vmem:[%s7533_s13] sm:$0xff]  ;;  %s7502_s26 = smov 80   ;;  %s7504_s13 = smov 56   ;;  %vm7511_vm14 = vmmov 0  }
  0x35   :  { %218 = vadd.xlane.f32.xlu0 %v217_v3  ;;  %6955 = vmatprep.subr.bf16.mxu1 %v6954_v19  ;;  %v156_v45 = vld [vmem:[%s7543_s21] sm:$0xff]  ;;  %s8347_s21 = smov 72   ;;  %s8343_s28 = smov 40  }
  0x36   :  { %s8365_s1 = sld [smem:[#allocation5_spill]]  ;;  %s8366_s2 = sld [smem:[#allocation8_spill]] }
  0x37   :  { %s8367_s7 = sld [smem:[#allocation9_spill]]  ;;  %s8368_s10 = sld [smem:[#allocation11_spill]] }
  0x38   :  { %6957 = vmatpush3.bf16.msra.mxu1 %v6954_v19  ;;  %s8369_s11 = sld [smem:[#allocation10_spill]]  ;;  %s8370_s15 = sld [smem:[#allocation7_spill]] }
  0x39   :  { %s8371_s16 = sld [smem:[#allocation6_spill]]  ;;  %s8372_s18 = sld [smem:[#allocation12_spill]] }
  0xbe   :  { %v216_v4 = vpop.xlane.xlu0 %215 }
  0xbf   :  { %v221_v5 = vmul.f32 0.03125, %v216_v4 }
  0xc1   :  { %v223_v6 = vsub.f32 %v7681_v0, %v221_v5 }
  0xc2   :  { %v219_v7 = vpop.xlane.xlu0 %218 }
  0xc3   :  { %v222_v8 = vmul.f32 0.03125, %v219_v7  ;;  %v225_v9 = vmul.f32 %v223_v6, %v223_v6  ;;  %v178_v7 = vld [vmem:[%s7553_s29] sm:$0x1]  ;;  %s8344_s29 = smov 48  }
  0xc4   :  { %vm179_vm3 = vcmp.gt.f32.partialorder %v178_v7, 0.5 }
  0xc5   :  { %v224_v10 = vsub.f32 %v7684_v1, %v222_v8  ;;  %v227_v11 = vsel %vm213_vm0, %v225_v9, 0.0 }
  0xc6   :  { %228 = vadd.xlane.f32.xlu1 %v227_v11  ;;  %v6112_v11 = vld [vmem:[%s7538_s17] ss:$0 sm:$0xff]  ;;  %s7505_s17 = smov 64  }
  0xc7   :  { %v226_v12 = vmul.f32 %v224_v10, %v224_v10 }
  0xc9   :  { %v230_v13 = vsel %vm213_vm0, %v226_v12, 0.0  ;;  %v6113_v12 = vld [vmem:[%s7548_s25] ss:$0 sm:$0xff]  ;;  %s8345_s25 = smov 104  }
  0xca   :  { %231 = vadd.xlane.f32.xlu1 %v230_v13 }
 0x153   :  { %v229_v20 = vpop.xlane.xlu1 %228 }
 0x154   :  { %v233_v21 = vmul.f32 0.03125, %v229_v20 }
 0x156   :  { %v235_v22 = vadd.f32 1e-06, %v233_v21 }
 0x157   :  { %v232_v23 = vpop.xlane.xlu1 %231 }
 0x158   :  { %7277 = vrsqrt.f32 %v235_v22  ;;  %v234_v24 = vmul.f32 0.03125, %v232_v23 }
 0x15a   :  { %v236_v25 = vadd.f32 1e-06, %v234_v24 }
 0x15c   :  { %7279 = vrsqrt.f32 %v236_v25 }
 0x162   :  { %v7278_v26 = vpop.eup %7277 }
 0x163   :  { %v239_v28 = vmul.f32 %v7278_v26, %v223_v6  ;;  %v181_v6 = vlaneseq }
 0x165   :  { %v247_v30 = vmul.f32 %v6115_v27, %v239_v28  ;;  %v7762_v8 = vshrl.u32 %v181_v6, 7 }
 0x166   :  { %v7280_v31 = vpop.eup %7279 }
 0x167   :  { %v240_v32 = vmul.f32 %v7280_v31, %v224_v10  ;;  %v255_v33 = vadd.f32 %v6116_v29, %v247_v30  ;;  %v183_v9 = vsub.s32 0, %v7762_v8  ;;  %v180_v10 = vsel %vm179_vm3, 1, %v7497_v36 }
 0x169   :  { %v248_v34 = vmul.f32 %v6115_v27, %v240_v32  ;;  %6560 = vmatprep.mubr.msk.f32.mxu1 %vm213_vm0, %v255_v33  ;;  %v184_v13 = vrot.slane %v180_v10, %v183_v9 }
 0x16b   :  { %v256_v35 = vadd.f32 %v6116_v29, %v248_v34  ;;  %vm185_vm8 = vcmp.eq.s32.totalorder %v184_v13, 1 }
 0x16d   :  { %6561 = vmatmul.mubr.msk.f32.vlgmr.msra.gmra.mrb[0].mxu1 %vm213_vm0, %v256_v35 }
 0x240   :  { %v6562_v38 = vpop.f32.mrb[0].mxu1 }
 0x241   :  { %v7705_v39 = vadd.f32 %v6562_v38, %v6117_v37  ;;  %v340_v40 = vpop.f32.mrb[1].mxu1 }
 0x242   :  { %v7707_v41 = vadd.f32 %v6117_v37, %v340_v40 }
 0x244   :  { %6567 = vmatprep.mubr.msk.f32.mxu1 %vm359_vm1, %v7707_v41  ;;  %v7713_v42 = vpack.i.bf16 %v7705_v39, %v7707_v41 }
 0x246   :  { %7201 = vrot.lane.b32.xlu1 %v7713_v42, %s7498_s0  ;;  %7196 = vrot.lane.b32.xlu0 %v7713_v42, %s7499_s5 }
 0x24a   :  { %557 = vrot.lane.b32.xlu1 %v7707_v41, %s7500_s22  ;;  %139 = vperm.xlu0 %7205, %v134_v43  }
 0x24e   :  { %559 = vrot.lane.b32.xlu1 %v7705_v39, %s7500_s22  ;;  %171 = vperm.xlu0 %7205, %v157_v44  }
 0x252   :  { %166 = vperm.xlu1 %7206, %v156_v45   ;;  %923 = vrot.lane.b32.xlu0 %v7707_v41, %s7501_s23 }
 0x256   :  { %144 = vperm.xlu1 %7206, %v135_v46  }
 0x25a   :  { %7208 = vrot.lane.b32.xlu1 %v7713_v42, %s7502_s26 }
 0x25e   :  { %925 = vrot.lane.b32.xlu1 %v7705_v39, %s7501_s23 }
 0x2b8   :  { %v7202_v47 = vpop.permute.xlu1 %7201  ;;  %v7197_v48 = vpop.permute.xlu0 %7196 }
 0x2b9   :  { %v7204_v49 = vunpack.i.h.bf16 %v7202_v47  ;;  %v7203_v50 = vunpack.i.l.bf16 %v7202_v47  ;;  %v7199_v51 = vunpack.i.h.bf16 %v7197_v48  ;;  %v7198_v52 = vunpack.i.l.bf16 %v7197_v48 }
 0x2bb   :  { %v6958_v54 = vpack.c.bf16 %v7199_v51, %v7198_v52  ;;  %v6968_v55 = vpack.c.bf16 %v7204_v49, %v7203_v50 }
 0x2bc   :  { %v558_v56 = vpop.permute.xlu1 %557 }
 0x2bd   :  { %6960 = vmatprep.subr.msk.bf16.mxu1 %vm7735_vm2, %v6958_v54 }
 0x2be   :  { %6963 = vmatpush3.bf16.xpose.msk.msra.mxu1 %vm7735_vm2, %v6958_v54 }
 0x2bf   :  { %6970 = vmatprep.subr.msk.bf16.mxu1 %vm7735_vm2, %v6968_v55 }
 0x2c0   :  { %v560_v58 = vpop.permute.xlu1 %559 }
 0x2c5   :  { %6568 = vmatmul.mubr.msk.f32.vlgmr.msra.gmra.mrb[2].mxu1 %vm359_vm1, %v7705_v39 }
 0x2c6   :  { %6973 = vmatpush3.bf16.xpose.msk.msra.mxu1 %vm7735_vm2, %v6968_v55  ;;  %6581 = vmatprep.mubr.msk.f32.mxu1 %vm359_vm1, %v558_v56 }
 0x2c9   :  { %v7750_v57 = vpop.permute.xlu0 %139 }
 0x2ca   :  { %vm153_vm6 = vcmp.ne.f32.partialorder %v7750_v57, %v6112_v11 }
 0x2cd   :  { %v172_v59 = vpop.permute.xlu0 %171  ;;  %6582 = vmatmul.mubr.msk.f32.vlgmr.msra.gmra.mrb[4].mxu1 %vm359_vm1, %v560_v58 }
 0x2ce   :  { %vm175_vm4 = vcmp.gt.f32.partialorder %v6113_v12, %v172_v59 }
 0x2d1   :  { %v167_v60 = vpop.permute.xlu1 %166  ;;  %v924_v61 = vpop.permute.xlu0 %923 }
 0x2d2   :  { %6605 = vmatprep.mubr.msk.f32.mxu1 %vm359_vm1, %v924_v61  ;;  %vm174_vm7 = vcmp.gt.f32.partialorder %v6113_v12, %v167_v60 }
 0x2d3   :  { %vm176_vm10 = vmor %vm153_vm6, %vm174_vm7 }
 0x2d4   :  { %vm186_vm12 = vmor %vm176_vm10, %vm185_vm8 }
 0x2d5   :  { %v7754_v62 = vpop.permute.xlu1 %144  ;;  %v7776_v17 = vsel %vm186_vm12, -1e+09, %v7503_v14 }
 0x2d6   :  { %vm154_vm5 = vcmp.ne.f32.partialorder %v7754_v62, %v6112_v11 }
 0x2d7   :  { %vm177_vm9 = vmor %vm154_vm5, %vm175_vm4 }
 0x2d8   :  { %vm187_vm11 = vmor %vm177_vm9, %vm185_vm8  ;;  %vm3025_vm8 = vcmask 523264  }
 0x2d9   :  { %v7209_v63 = vpop.permute.xlu1 %7208  ;;  %v7773_v15 = vsel %vm187_vm11, -1e+09, %v7503_v14 }
 0x2da   :  { %v7211_v2 = vunpack.i.h.bf16 %v7209_v63  ;;  %v7210_v3 = vunpack.i.l.bf16 %v7209_v63 }
 0x2dc   :  { %v6978_v4 = vpack.c.bf16 %v7211_v2, %v7210_v3 }
 0x2dd   :  { %v926_v5 = vpop.permute.xlu1 %925 }
 0x2de   :  { %6980 = vmatprep.subr.msk.bf16.mxu1 %vm7735_vm2, %v6978_v4 }
 0x2df   :  { %6983 = vmatpush3.bf16.xpose.msk.msra.mxu1 %vm7735_vm2, %v6978_v4 }
 0x2e6   :  { %6606 = vmatmul.mubr.msk.f32.vlgmr.msra.gmra.mrb[6].mxu1 %vm359_vm1, %v926_v5 }
 0x398   :  { %v6569_v16 = vpop.f32.mrb[2].mxu1 }
 0x399   :  { %v444_v18 = vmul.f32 0.35355338, %v6569_v16  ;;  %v434_v19 = vpop.f32.mrb[3].mxu1 }
 0x39a   :  { %v443_v20 = vmul.f32 0.35355338, %v434_v19 }
 0x39b   :  { %v446_v21 = vadd.f32 %v444_v18, %v7773_v15 }
 0x39c   :  { %v445_v22 = vadd.f32 %v443_v20, %v7776_v17 }
 0x39d   :  { %v451_v23 = vsel %vm447_vm13, %v446_v21, -inf }
 0x39e   :  { %452 = vmax.xlane.f32.xlu1 %v451_v23  ;;  %v448_v24 = vsel %vm447_vm13, %v445_v22, -inf }
 0x39f   :  { %449 = vmax.xlane.f32.xlu0 %v448_v24 }
 0x3a0   :  { %v6583_v25 = vpop.f32.mrb[4].mxu1 }
 0x3a1   :  { %v639_v26 = vpop.f32.mrb[5].mxu1  ;;  %v649_v27 = vmul.f32 0.35355338, %v6583_v25 }
 0x3a2   :  { %v648_v28 = vmul.f32 0.35355338, %v639_v26 }
 0x3a3   :  { %v651_v31 = vadd.f32 %v649_v27, %v7773_v15 }
 0x3a4   :  { %v650_v29 = vadd.f32 %v648_v28, %v7776_v17 }
 0x3a5   :  { %v655_v32 = vsel %vm447_vm13, %v651_v31, -inf }
 0x3a6   :  { %v652_v30 = vsel %vm447_vm13, %v650_v29, -inf }
 0x3a7   :  { %653 = vmax.xlane.f32.xlu0 %v652_v30 }
 0x3ab   :  { %656 = vmax.xlane.f32.xlu0 %v655_v32 }
 0x3b9   :  { %v6607_v33 = vpop.f32.mrb[6].mxu1 }
 0x3ba   :  { %v1005_v34 = vpop.f32.mrb[7].mxu1  ;;  %v1015_v61 = vmul.f32 0.35355338, %v6607_v33 }
 0x3bb   :  { %v1014_v2 = vmul.f32 0.35355338, %v1005_v34 }
 0x3bc   :  { %v1017_v63 = vadd.f32 %v1015_v61, %v7773_v15 }
 0x3bd   :  { %v1016_v4 = vadd.f32 %v1014_v2, %v7776_v17 }
 0x3be   :  { %v1021_v3 = vsel %vm447_vm13, %v1017_v63, -inf }
 0x3bf   :  { %v1018_v5 = vsel %vm447_vm13, %v1016_v4, -inf }
 0x42b   :  { %v453_v35 = vpop.xlane.xlu1 %452 }
 0x42c   :  { %v455_v37 = vsub.f32 %v446_v21, %v453_v35  ;;  %v450_v38 = vpop.xlane.xlu0 %449 }
 0x42d   :  { %v454_v40 = vsub.f32 %v445_v22, %v450_v38 }
 0x42e   :  { %v458_v43 = vmul.f32 1.442695, %v455_v37 }
 0x42f   :  { %v456_v44 = vmul.f32 1.442695, %v454_v40 }
 0x430   :  { %7281 = vpow2.f32 %v458_v43 }
 0x431   :  { %7283 = vpow2.f32 %v456_v44 }
 0x434   :  { %v654_v45 = vpop.xlane.xlu0 %653 }
 0x435   :  { %v658_v46 = vsub.f32 %v650_v29, %v654_v45 }
 0x437   :  { %v660_v47 = vmul.f32 1.442695, %v658_v46 }
 0x438   :  { %v657_v48 = vpop.xlane.xlu0 %656 }
 0x439   :  { %7285 = vpow2.f32 %v660_v47  ;;  %v659_v49 = vsub.f32 %v651_v31, %v657_v48  ;;  %v350_v48 = vld [vmem:[%s7588_s6 + $0x8] sm:$0xff] }
 0x43a   :  { %v7282_v50 = vpop.eup %7281 }
 0x43b   :  { %v7284_v51 = vpop.eup %7283  ;;  %v662_v52 = vmul.f32 1.442695, %v659_v49  ;;  %v463_v54 = vsel %vm447_vm13, %v7282_v50, 0.0  ;;  %v349_v49 = vld [vmem:[%s7588_s6] sm:$0xff] }
 0x43c   :  { %464 = vadd.xlane.f32.xlu1 %v463_v54  ;;  %v460_v55 = vsel %vm447_vm13, %v7284_v51, 0.0 }
 0x43d   :  { %7287 = vpow2.f32 %v662_v52  ;;  %461 = vadd.xlane.f32.xlu0 %v460_v55 }
 0x443   :  { %v7286_v56 = vpop.eup %7285 }
 0x444   :  { %v664_v58 = vsel %vm447_vm13, %v7286_v56, 0.0 }
 0x445   :  { %665 = vadd.xlane.f32.xlu0 %v664_v58 }
 0x447   :  { %v7288_v59 = vpop.eup %7287 }
 0x448   :  { %v667_v60 = vsel %vm447_vm13, %v7288_v59, 0.0 }
 0x449   :  { %668 = vadd.xlane.f32.xlu1 %v667_v60 }
 0x45a   :  { %7218 = vrot.lane.b32.xlu1 %v7713_v42, %s7504_s13 }
 0x45b   :  { %7213 = vrot.lane.b32.xlu0 %v7713_v42, %s7505_s17 }
 0x45e   :  { %7223 = vrot.lane.b32.xlu1 %v7713_v42, %s8347_s21 }
 0x45f   :  { %1212 = vrot.lane.b32.xlu0 %v7705_v39, %s8345_s25 }
 0x462   :  { %1210 = vrot.lane.b32.xlu1 %v7707_v41, %s8345_s25 }
 0x47e   :  { %1022 = vmax.xlane.f32.xlu0 %v1021_v3 }
 0x486   :  { %1019 = vmax.xlane.f32.xlu1 %v1018_v5 }
 0x497   :  { %7228 = vrot.lane.b32.xlu1 %v7713_v42, %s8344_s29  ;;  %s8376_s29 = sld [smem:[#allocation15_spill]] }
 0x49b   :  { %7233 = vrot.lane.b32.xlu1 %v7713_v42, %s8343_s28  ;;  %s8375_s28 = sld [smem:[#allocation14_spill]] }
 0x4c9   :  { %v465_v41 = vpop.xlane.xlu1 %464 }
 0x4ca   :  { %v462_v39 = vpop.xlane.xlu0 %461 }
 0x4cb   :  { %7289 = vrcp.f32 %v462_v39 }
 0x4cc   :  { %7291 = vrcp.f32 %v465_v41 }
 0x4d2   :  { %v666_v6 = vpop.xlane.xlu0 %665 }
 0x4d3   :  { %7293 = vrcp.f32 %v666_v6 }
 0x4d5   :  { %v7290_v7 = vpop.eup %7289 }
 0x4d6   :  { %v669_v10 = vpop.xlane.xlu1 %668  ;;  %v7214_v11 = vpop.permute.xlu0 %7213  ;;  %v468_v12 = vmul.f32 %v7290_v7, %v7284_v51  ;;  %v351_v7 = vld [vmem:[%s7588_s6 + $0x10] sm:$0xff] }
 0x4d7   :  { %7295 = vrcp.f32 %v669_v10  ;;  %v7216_v13 = vunpack.i.h.bf16 %v7214_v11  ;;  %v7215_v16 = vunpack.i.l.bf16 %v7214_v11  ;;  %v7292_v19 = vpop.eup %7291 }
 0x4d8   :  { %6574 = vmatprep.mubr.msk.f32.mxu0 %vm447_vm13, %v468_v12  ;;  %v469_v23 = vmul.f32 %v7292_v19, %v7282_v50 }
 0x4d9   :  { %v6964_v18 = vpack.c.bf16 %v7216_v13, %v7215_v16 }
 0x4da   :  { %v7219_v20 = vpop.permute.xlu1 %7218  ;;  %v1213_v33 = vpop.permute.xlu0 %1212 }
 0x4db   :  { %v7221_v21 = vunpack.i.h.bf16 %v7219_v20  ;;  %v7220_v42 = vunpack.i.l.bf16 %v7219_v20  ;;  %6965 = vmatprep.subr.bf16.mxu0 %v6964_v18 }
 0x4dc   :  { %6967 = vmatpush3.bf16.msra.mxu0 %v6964_v18 }
 0x4dd   :  { %v7294_v22 = vpop.eup %7293  ;;  %v6974_v24 = vpack.c.bf16 %v7221_v21, %v7220_v42 }
 0x4de   :  { %v7224_v25 = vpop.permute.xlu1 %7223  ;;  %v672_v26 = vmul.f32 %v7294_v22, %v7286_v56 }
 0x4df   :  { %v7226_v27 = vunpack.i.h.bf16 %v7224_v25  ;;  %v7225_v28 = vunpack.i.l.bf16 %v7224_v25  ;;  %6575 = vmatmul.mubr.msk.f32.vlgmr.msra.gmra.mrb[0].mxu0 %vm447_vm13, %v469_v23  ;;  %6975 = vmatprep.subr.bf16.mxu0 %v6974_v24 }
 0x4e0   :  { %6977 = vmatpush3.bf16.msra.mxu0 %v6974_v24  ;;  %6588 = vmatprep.mubr.msk.f32.mxu0 %vm447_vm13, %v672_v26 }
 0x4e1   :  { %v7296_v29 = vpop.eup %7295  ;;  %v6988_v30 = vpack.c.bf16 %v7226_v27, %v7225_v28  ;;  %6591 = vmatprep.subr.mxu0 %v350_v48 }
 0x4e2   :  { %v1211_v31 = vpop.permute.xlu1 %1210  ;;  %v673_v32 = vmul.f32 %v7296_v29, %v7288_v59 }
 0x4e3   :  { %6990 = vmatprep.subr.msk.bf16.mxu1 %vm7735_vm2, %v6988_v30  ;;  %6624 = vmatprep.mubr.msk.f32.mxu1 %vm359_vm1, %v1211_v31 }
 0x4e4   :  { %6589 = vmatmul.mubr.msk.f32.vlgmr.msra.gmra.mrb[2].mxu0 %vm447_vm13, %v673_v32  ;;  %6993 = vmatpush3.bf16.xpose.msk.msra.mxu1 %vm7735_vm2, %v6988_v30  ;;  %v352_v32 = vld [vmem:[%s7588_s6 + $0x18] sm:$0xff] }
 0x4e5   :  { %6592 = vmatpush3.msra.mxu0 %v350_v48 }
 0x4e6   :  { %6596 = vmatprep.subr.mxu0 %v349_v49 }
 0x4eb   :  { %6625 = vmatmul.mubr.msk.f32.vlgmr.msra.gmra.mrb[8].mxu1 %vm359_vm1, %v1213_v33 }
 0x50b   :  { %v1023_v34 = vpop.xlane.xlu0 %1022 }
 0x50c   :  { %v1025_v35 = vsub.f32 %v1017_v63, %v1023_v34 }
 0x50e   :  { %v1028_v40 = vmul.f32 1.442695, %v1025_v35 }
 0x513   :  { %v1020_v37 = vpop.xlane.xlu1 %1019 }
 0x514   :  { %v1024_v38 = vsub.f32 %v1016_v4, %v1020_v37 }
 0x516   :  { %v1026_v43 = vmul.f32 1.442695, %v1024_v38 }
 0x517   :  { %v7229_v52 = vpop.permute.xlu1 %7228 }
 0x518   :  { %7297 = vpow2.f32 %v1026_v43  ;;  %v7231_v56 = vunpack.i.h.bf16 %v7229_v52  ;;  %v7230_v58 = vunpack.i.l.bf16 %v7229_v52 }
 0x519   :  { %7299 = vpow2.f32 %v1028_v40 }
 0x51a   :  { %v6984_v61 = vpack.c.bf16 %v7231_v56, %v7230_v58 }
 0x51b   :  { %v7234_v3 = vpop.permute.xlu1 %7233 }
 0x51c   :  { %v7236_v10 = vunpack.i.h.bf16 %v7234_v3  ;;  %v7235_v11 = vunpack.i.l.bf16 %v7234_v3  ;;  %v1644_v3 = vld [vmem:[%s7618_s8] sm:$0xff] }
 0x51e   :  { %v6994_v19 = vpack.c.bf16 %v7236_v10, %v7235_v11  ;;  %v1647_v10 = vld [vmem:[%s7618_s8 + $0x18] sm:$0xff] }
 0x522   :  { %v7298_v44 = vpop.eup %7297 }
 0x523   :  { %v1030_v45 = vsel %vm447_vm13, %v7298_v44, 0.0  ;;  %v7300_v46 = vpop.eup %7299 }
 0x524   :  { %1031 = vadd.xlane.f32.xlu0 %v1030_v45  ;;  %v1033_v47 = vsel %vm447_vm13, %v7300_v46, 0.0  ;;  %v6152_v45 = vld [vmem:[%s7593_s12] ss:$0 sm:$0xff] }
 0x528   :  { %1034 = vadd.xlane.f32.xlu0 %v1033_v47 }
 0x5b1   :  { %v1032_v50 = vpop.xlane.xlu0 %1031 }
 0x5b2   :  { %v6576_v51 = vpop.f32.mrb[0].mxu0  ;;  %7301 = vrcp.f32 %v1032_v50 }
 0x5b3   :  { %v548_v54 = vpop.f32.mrb[1].mxu0 }
 0x5b5   :  { %v1035_v55 = vpop.xlane.xlu0 %1034 }
 0x5b6   :  { %7303 = vrcp.f32 %v1035_v55 }
 0x5b7   :  { %v6590_v59 = vpop.f32.mrb[2].mxu0 }
 0x5b8   :  { %v752_v60 = vpop.f32.mrb[3].mxu0 }
 0x5b9   :  { %6593 = vmatprep.mubr.msk.f32.mxu0 %vm359_vm1, %v752_v60 }
 0x5ba   :  { %6594 = vmatmul.mubr.msk.f32.vlgmr.msra.gmra.mrb[4].mxu0 %vm359_vm1, %v6590_v59 }
 0x5bb   :  { %6597 = vmatpush3.msra.mxu0 %v349_v49  ;;  %6598 = vmatprep.mubr.msk.f32.mxu0 %vm359_vm1, %v548_v54 }
 0x5bc   :  { %6985 = vmatprep.subr.bf16.mxu0 %v6984_v61  ;;  %v7302_v63 = vpop.eup %7301 }
 0x5bd   :  { %v1038_v6 = vmul.f32 %v7302_v63, %v7298_v44 }
 0x5be   :  { %v6626_v2 = vpop.f32.mrb[8].mxu1 }
 0x5bf   :  { %v1292_v4 = vpop.f32.mrb[9].mxu1  ;;  %v1302_v5 = vmul.f32 0.35355338, %v6626_v2 }
 0x5c0   :  { %v1301_v39 = vmul.f32 0.35355338, %v1292_v4  ;;  %v7304_v41 = vpop.eup %7303  ;;  %v1645_v4 = vld [vmem:[%s7618_s8 + $0x8] sm:$0xff] }
 0x5c1   :  { %v1039_v16 = vmul.f32 %v7304_v41, %v7300_v46  ;;  %v1304_v18 = vadd.f32 %v1302_v5, %v7773_v15  ;;  %v1552_v5 = vld [vmem:[%s7608_s4] sm:$0xff]  ;;  %v7007_v41 = vpack.c.bf16 %v1645_v4, %v1644_v3 }
 0x5c2   :  { %6599 = vmatmul.mubr.msk.f32.vlgmr.msra.gmra.mrb[4].mxu0 %vm359_vm1, %v6576_v51  ;;  %v1303_v12 = vadd.f32 %v1301_v39, %v7776_v17  ;;  %v7510_v39 = vmov 0.0|0.0  }
 0x5c3   :  { %6987 = vmatpush3.bf16.msra.mxu0 %v6984_v61  ;;  %6612 = vmatprep.mubr.msk.f32.mxu0 %vm447_vm13, %v1038_v6  ;;  %v1308_v20 = vsel %vm447_vm13, %v1304_v18, -inf  ;;  %v1553_v6 = vld [vmem:[%s7608_s4 + $0x8] sm:$0xff] }
 0x5c4   :  { %v1305_v13 = vsel %vm447_vm13, %v1303_v12, -inf  ;;  %6615 = vmatprep.subr.mxu0 %v351_v7  ;;  %v6998_v11 = vpack.c.bf16 %v1553_v6, %v1552_v5 }
 0x5c5   :  { %1306 = vmax.xlane.f32.xlu0 %v1305_v13  ;;  %v1555_v13 = vld [vmem:[%s7608_s4 + $0x18] sm:$0xff] }
 0x5c6   :  { %6613 = vmatmul.mubr.msk.f32.vlgmr.msra.gmra.mrb[6].mxu0 %vm447_vm13, %v1039_v16  ;;  %6999 = vmatprep.subr.bf16.mxu1 %v6998_v11 }
 0x5c7   :  { %6616 = vmatpush3.msra.mxu0 %v351_v7  ;;  %v1646_v7 = vld [vmem:[%s7618_s8 + $0x10] sm:$0xff]  ;;  %7001 = vmatpush3.bf16.msra.mxu1 %v6998_v11 }
 0x5c8   :  { %6995 = vmatprep.subr.bf16.mxu0 %v6994_v19  ;;  %v7010_v16 = vpack.c.bf16 %v1647_v10, %v1646_v7 }
 0x5c9   :  { %1309 = vmax.xlane.f32.xlu0 %v1308_v20 }
 0x652   :  { %v1307_v21 = vpop.xlane.xlu0 %1306 }
 0x653   :  { %v1311_v42 = vsub.f32 %v1303_v12, %v1307_v21  ;;  %v1554_v12 = vld [vmem:[%s7608_s4 + $0x10] sm:$0xff] }
 0x655   :  { %v1313_v22 = vmul.f32 1.442695, %v1311_v42 }
 0x656   :  { %v1310_v23 = vpop.xlane.xlu0 %1309 }
 0x657   :  { %7305 = vpow2.f32 %v1313_v22  ;;  %v1312_v24 = vsub.f32 %v1304_v18, %v1310_v23  ;;  %v7002_v18 = vpack.c.bf16 %v1555_v13, %v1554_v12 }
 0x659   :  { %v1315_v25 = vmul.f32 1.442695, %v1312_v24  ;;  %7003 = vmatprep.subr.bf16.mxu1 %v7002_v18 }
 0x65a   :  { %7005 = vmatpush3.bf16.msra.mxu1 %v7002_v18 }
 0x65b   :  { %7307 = vpow2.f32 %v1315_v25 }
 0x661   :  { %v7306_v26 = vpop.eup %7305 }
 0x662   :  { %v1317_v27 = vsel %vm447_vm13, %v7306_v26, 0.0 }
 0x663   :  { %1318 = vadd.xlane.f32.xlu0 %v1317_v27 }
 0x665   :  { %v7308_v28 = vpop.eup %7307 }
 0x666   :  { %v1320_v29 = vsel %vm447_vm13, %v7308_v28, 0.0 }
 0x667   :  { %1321 = vadd.xlane.f32.xlu0 %v1320_v29 }
 0x699   :  { %v6614_v30 = vpop.f32.mrb[6].mxu0 }
 0x69a   :  { %v1118_v31 = vpop.f32.mrb[7].mxu0 }
 0x69b   :  { %6617 = vmatprep.mubr.msk.f32.mxu0 %vm359_vm1, %v1118_v31 }
 0x69c   :  { %6618 = vmatmul.mubr.msk.f32.vlgmr.msra.gmra.mrb[4].mxu0 %vm359_vm1, %v6614_v30 }
 0x69d   :  { %6997 = vmatpush3.bf16.msra.mxu0 %v6994_v19  ;;  %v133_v19 = vld [vmem:[%s8365_s1] sm:$0xff] }
 0x69e   :  { %6634 = vmatprep.subr.mxu0 %v352_v32 }
 0x6f0   :  { %v1319_v33 = vpop.xlane.xlu0 %1318 }
 0x6f1   :  { %7309 = vrcp.f32 %v1319_v33 }
 0x6f4   :  { %v1322_v34 = vpop.xlane.xlu0 %1321 }
 0x6f5   :  { %7311 = vrcp.f32 %v1322_v34 }
 0x6fb   :  { %v7310_v35 = vpop.eup %7309 }
 0x6fc   :  { %v1325_v37 = vmul.f32 %v7310_v35, %v7306_v26  ;;  %v6153_v26 = vld [vmem:[%s8366_s2] ss:$0 sm:$0xff] }
 0x6fd   :  { %v6158_v35 = vld [vmem:[%s8368_s10] ss:$0 sm:$0xff] }
 0x6fe   :  { %6631 = vmatprep.mubr.msk.f32.mxu0 %vm447_vm13, %v1325_v37 }
 0x6ff   :  { %v7312_v38 = vpop.eup %7311 }
 0x700   :  { %v1326_v40 = vmul.f32 %v7312_v38, %v7308_v28  ;;  %v6154_v28 = vld [vmem:[%s8367_s7] ss:$0 sm:$0xff] }
 0x702   :  { %6632 = vmatmul.mubr.msk.f32.vlgmr.msra.gmra.mrb[8].mxu0 %vm447_vm13, %v1326_v40 }
 0x703   :  { %6635 = vmatpush3.msra.mxu0 %v352_v32 }
 0x704   :  { %7006 = vmatprep.subr.bf16.mxu0 %v7510_v39 }
 0x7d5   :  { %v6633_v43 = vpop.f32.mrb[8].mxu0 }
 0x7d6   :  { %v1405_v44 = vpop.f32.mrb[9].mxu0 }
 0x7d7   :  { %6636 = vmatprep.mubr.msk.f32.mxu0 %vm359_vm1, %v1405_v44  ;;  %v6155_v44 = vld [vmem:[%s8369_s11] ss:$0 sm:$0xff] }
 0x7d8   :  { %6637 = vmatmul.mubr.msk.f32.vlgmr.msra.gmra.mrb[4].mxu0 %vm359_vm1, %v6633_v43 }
 0x7d9   :  { %6658 = vmatprep.mubr.msk.f32.mxu0 %vm7511_vm14, %v7503_v14  ;;  %7008 = vmatpush3.bf16.msra.mxu0 %v7007_v41 }
 0x7da   :  { %7009 = vmatprep.subr.bf16.mxu0 %v7510_v39 }
 0x7dd   :  { %7011 = vmatpush3.bf16.msra.mxu0 %v7010_v16 }
 0x7e0   :  { %6659 = vmatmul.mubr.msk.f32.vlgmr.msra.gmra.mrb[10].mxu0 %vm213_vm0, %v133_v19 }
 0x8ab   :  { %v6638_v46 = vpop.f32.mrb[4].mxu0 }
 0x8ac   :  { %v1505_v47 = vadd.f32 %v6638_v46, %v6152_v45  ;;  %v1486_v48 = vpop.f32.mrb[5].mxu0 }
 0x8ad   :  { %v1504_v49 = vadd.f32 %v6152_v45, %v1486_v48 }
 0x8ae   :  { %v7844_v50 = vadd.f32 %v1505_v47, %v7684_v1 }
 0x8af   :  { %v7847_v51 = vadd.f32 %v1504_v49, %v7681_v0 }
 0x8b0   :  { %v1513_v52 = vsel %vm213_vm0, %v7844_v50, 0.0 }
 0x8b1   :  { %1514 = vadd.xlane.f32.xlu1 %v1513_v52  ;;  %v1510_v54 = vsel %vm213_vm0, %v7847_v51, 0.0 }
 0x8b2   :  { %1511 = vadd.xlane.f32.xlu0 %v1510_v54  ;;  %v199_v54 = vld [vmem:[%s8370_s15] sm:$0x1]  ;;  %s8373_s15 = sld [smem:[#allocation13_spill]] }
 0x8b3   :  { %v1724_v37 = vpop.f32.mrb[10].mxu0  ;;  %vm200_vm15 = vcmp.gt.f32.partialorder %v199_v54, 0.5 }
 0x8b4   :  { %v7876_v38 = vadd.f32 %v6158_v35, %v1724_v37  ;;  %v6660_v40 = vpop.f32.mrb[11].mxu0 }
 0x8b6   :  { %6661 = vmatprep.subr.msk.mxu1 %vm359_vm1, %v7876_v38 }
 0x93e   :  { %v1515_v55 = vpop.xlane.xlu1 %1514 }
 0x93f   :  { %v1517_v56 = vmul.f32 0.03125, %v1515_v55  ;;  %v1512_v58 = vpop.xlane.xlu0 %1511  ;;  %v201_v55 = vsel %vm200_vm15, 1, %v7497_v36 }
 0x940   :  { %v1516_v1 = vmul.f32 0.03125, %v1512_v58  ;;  %v6114_v58 = vld [vmem:[%s8371_s16] ss:$0 sm:$0xff]  ;;  %s8374_s16 = sld [smem:[#allocation16_spill]] }
 0x941   :  { %v1519_v0 = vsub.f32 %v7844_v50, %v1517_v56  ;;  %v205_v56 = vrot.slane %v201_v55, %v183_v9  ;;  %vm198_vm4 = vcmp.ne.f32.partialorder %v7754_v62, %v6114_v58  ;;  %vm197_vm5 = vcmp.ne.f32.partialorder %v7750_v57, %v6114_v58 }
 0x942   :  { %v1518_v59 = vsub.f32 %v7847_v51, %v1516_v1 }
 0x943   :  { %v1521_v63 = vmul.f32 %v1519_v0, %v1519_v0  ;;  %vm206_vm3 = vcmp.eq.s32.totalorder %v205_v56, 1 }
 0x944   :  { %v1520_v60 = vmul.f32 %v1518_v59, %v1518_v59  ;;  %vm208_vm6 = vmor %vm198_vm4, %vm206_vm3 }
 0x945   :  { %v1525_v2 = vsel %vm213_vm0, %v1521_v63, 0.0  ;;  %vm207_vm7 = vmor %vm197_vm5, %vm206_vm3 }
 0x946   :  { %v1522_v61 = vsel %vm213_vm0, %v1520_v60, 0.0  ;;  %v7909_v60 = vsel %vm208_vm6, -1e+09, %v7503_v14  ;;  %v7912_v36 = vsel %vm207_vm7, -1e+09, %v7503_v14 }
 0x947   :  { %1523 = vadd.xlane.f32.xlu0 %v1522_v61 }
 0x94b   :  { %1526 = vadd.xlane.f32.xlu0 %v1525_v2 }
 0x961   :  { %1930 = vrot.lane.b32.xlu0 %v7876_v38, %s7500_s22 }
 0x9d4   :  { %v1524_v20 = vpop.xlane.xlu0 %1523 }
 0x9d5   :  { %v1528_v21 = vmul.f32 0.03125, %v1524_v20 }
 0x9d7   :  { %v1530_v42 = vadd.f32 1e-06, %v1528_v21 }
 0x9d8   :  { %v1527_v22 = vpop.xlane.xlu0 %1526 }
 0x9d9   :  { %7313 = vrsqrt.f32 %v1530_v42  ;;  %v1529_v23 = vmul.f32 0.03125, %v1527_v22 }
 0x9db   :  { %v1531_v24 = vadd.f32 1e-06, %v1529_v23 }
 0x9dc   :  { %v1931_v43 = vpop.permute.xlu0 %1930 }
 0x9dd   :  { %7315 = vrsqrt.f32 %v1531_v24  ;;  %6671 = vmatprep.subr.msk.mxu0 %vm359_vm1, %v1931_v43 }
 0x9de   :  { %6672 = vmatpush3.xpose.msk.msra.mxu0 %vm359_vm1, %v1931_v43 }
 0x9e3   :  { %v7314_v25 = vpop.eup %7313 }
 0x9e4   :  { %v1534_v27 = vmul.f32 %v7314_v25, %v1518_v59 }
 0x9e6   :  { %v1542_v29 = vmul.f32 %v6153_v26, %v1534_v27 }
 0x9e7   :  { %v7316_v30 = vpop.eup %7315 }
 0x9e8   :  { %v1535_v31 = vmul.f32 %v7316_v30, %v1519_v0  ;;  %v1550_v32 = vadd.f32 %v6154_v28, %v1542_v29 }
 0x9ea   :  { %v1543_v33 = vmul.f32 %v6153_v26, %v1535_v31  ;;  %6647 = vmatprep.mubr.msk.f32.mxu1 %vm213_vm0, %v1550_v32 }
 0x9ec   :  { %v1551_v34 = vadd.f32 %v6154_v28, %v1543_v33 }
 0x9ee   :  { %6648 = vmatmul.mubr.msk.f32.vlgmr.msra.gmra.mrb[10].mxu1 %vm213_vm0, %v1551_v34 }
 0x9ef   :  { %6662 = vmatpush3.xpose.msk.msra.mxu1 %vm359_vm1, %v7876_v38 }
 0xac1   :  { %v6649_v45 = vpop.f32.mrb[10].mxu1 }
 0xac2   :  { %v7887_v46 = vadd.f32 %v6649_v45, %v6155_v44  ;;  %v1635_v47 = vpop.f32.mrb[11].mxu1 }
 0xac3   :  { %v7889_v48 = vadd.f32 %v6155_v44, %v1635_v47 }
 0xac4   :  { %1928 = vrot.lane.b32.xlu1 %v7887_v46, %s7500_s22 }
 0xac5   :  { %1926 = vrot.lane.b32.xlu0 %v7889_v48, %s7500_s22  ;;  %6663 = vmatprep.mubr.msk.f32.mxu1 %vm359_vm1, %v7889_v48 }
 0xac6   :  { %6664 = vmatmul.mubr.msk.f32.vlgmr.msra.gmra.mrb[12].mxu1 %vm359_vm1, %v7887_v46 }
 0xb36   :  { %v1929_v52 = vpop.permute.xlu1 %1928 }
 0xb37   :  { %v1927_v49 = vpop.permute.xlu0 %1926 }
 0xb38   :  { %6673 = vmatprep.mubr.msk.f32.mxu0 %vm359_vm1, %v1927_v49 }
 0xb39   :  { %6674 = vmatmul.mubr.msk.f32.vlgmr.msra.gmra.mrb[12].mxu0 %vm359_vm1, %v1929_v52 }
 0xb99   :  { %v6665_v1 = vpop.f32.mrb[12].mxu1 }
 0xb9a   :  { %v1817_v0 = vmul.f32 0.35355338, %v6665_v1  ;;  %v1807_v59 = vpop.f32.mrb[13].mxu1 }
 0xb9b   :  { %v1816_v61 = vmul.f32 0.35355338, %v1807_v59  ;;  %v1728_v59 = vld [vmem:[%s8372_s18] sm:$0xff] }
 0xb9c   :  { %v1819_v8 = vadd.f32 %v1817_v0, %v7909_v60  ;;  %v1729_v0 = vld [vmem:[%s8372_s18 + $0x8] sm:$0xff] }
 0xb9d   :  { %v1818_v9 = vadd.f32 %v1816_v61, %v7912_v36  ;;  %6681 = vmatprep.subr.mxu0 %v1729_v0 }
 0xb9e   :  { %v1823_v62 = vsel %vm359_vm1, %v1819_v8, -inf  ;;  %6682 = vmatpush3.msra.mxu0 %v1729_v0 }
 0xb9f   :  { %1824 = vmax.xlane.f32.xlu1 %v1823_v62  ;;  %v1820_v57 = vsel %vm359_vm1, %v1818_v9, -inf  ;;  %6686 = vmatprep.subr.mxu0 %v1728_v59 }
 0xba0   :  { %1821 = vmax.xlane.f32.xlu0 %v1820_v57 }
 0xbb0   :  { %1842 = vrot.lane.b32.xlu1 %v7876_v38, %s7499_s5 }
 0xbb4   :  { %2289 = vrot.lane.b32.xlu1 %v7876_v38, %s7501_s23 }
 0xbb8   :  { %2285 = vrot.lane.b32.xlu1 %v7889_v48, %s7501_s23 }
 0xc0c   :  { %v6675_v63 = vpop.f32.mrb[12].mxu0 }
 0xc0d   :  { %v2004_v2 = vpop.f32.mrb[13].mxu0  ;;  %v2014_v3 = vmul.f32 0.35355338, %v6675_v63 }
 0xc0e   :  { %v2013_v4 = vmul.f32 0.35355338, %v2004_v2 }
 0xc0f   :  { %v2016_v6 = vadd.f32 %v2014_v3, %v7909_v60 }
 0xc10   :  { %v2015_v5 = vadd.f32 %v2013_v4, %v7912_v36 }
 0xc11   :  { %v2020_v7 = vsel %vm359_vm1, %v2016_v6, -inf }
 0xc12   :  { %v2017_v41 = vsel %vm359_vm1, %v2015_v5, -inf }
 0xc13   :  { %2018 = vmax.xlane.f32.xlu0 %v2017_v41 }
 0xc17   :  { %2021 = vmax.xlane.f32.xlu0 %v2020_v7 }
 0xc2c   :  { %v1825_v10 = vpop.xlane.xlu1 %1824 }
 0xc2d   :  { %v1827_v11 = vsub.f32 %v1819_v8, %v1825_v10  ;;  %v1822_v12 = vpop.xlane.xlu0 %1821 }
 0xc2e   :  { %v1826_v13 = vsub.f32 %v1818_v9, %v1822_v12 }
 0xc2f   :  { %v1830_v16 = vmul.f32 1.442695, %v1827_v11 }
 0xc30   :  { %v1828_v18 = vmul.f32 1.442695, %v1826_v13  ;;  %v1843_v19 = vpop.permute.xlu1 %1842 }
 0xc31   :  { %7317 = vpow2.f32 %v1830_v16  ;;  %6666 = vmatprep.subr.mxu1 %v1843_v19 }
 0xc32   :  { %6667 = vmatpush3.msra.mxu1 %v1843_v19  ;;  %7319 = vpow2.f32 %v1828_v18 }
 0xc34   :  { %v2290_v49 = vpop.permute.xlu1 %2289 }
 0xc38   :  { %v2286_v58 = vpop.permute.xlu1 %2285 }
 0xc3b   :  { %v7318_v20 = vpop.eup %7317 }
 0xc3c   :  { %v1835_v21 = vsel %vm359_vm1, %v7318_v20, 0.0  ;;  %v7320_v42 = vpop.eup %7319 }
 0xc3d   :  { %1836 = vadd.xlane.f32.xlu0 %v1835_v21  ;;  %v1832_v22 = vsel %vm359_vm1, %v7320_v42, 0.0 }
 0xc41   :  { %1833 = vadd.xlane.f32.xlu0 %v1832_v22 }
 0xca0   :  { %v2019_v23 = vpop.xlane.xlu0 %2018 }
 0xca1   :  { %v2023_v24 = vsub.f32 %v2015_v5, %v2019_v23 }
 0xca3   :  { %v2025_v27 = vmul.f32 1.442695, %v2023_v24 }
 0xca4   :  { %v2022_v25 = vpop.xlane.xlu0 %2021 }
 0xca5   :  { %v2024_v26 = vsub.f32 %v2016_v6, %v2022_v25 }
 0xca7   :  { %v2027_v28 = vmul.f32 1.442695, %v2024_v26 }
 0xca9   :  { %7321 = vpow2.f32 %v2027_v28 }
 0xcaa   :  { %7323 = vpow2.f32 %v2025_v27 }
 0xcb3   :  { %v7322_v29 = vpop.eup %7321 }
 0xcb4   :  { %v2032_v30 = vsel %vm359_vm1, %v7322_v29, 0.0  ;;  %v7324_v31 = vpop.eup %7323 }
 0xcb5   :  { %2033 = vadd.xlane.f32.xlu0 %v2032_v30  ;;  %v2029_v32 = vsel %vm359_vm1, %v7324_v31, 0.0 }
 0xcb9   :  { %2030 = vadd.xlane.f32.xlu0 %v2029_v32 }
 0xcca   :  { %v1837_v33 = vpop.xlane.xlu0 %1836 }
 0xccb   :  { %7325 = vrcp.f32 %v1837_v33 }
 0xcce   :  { %v1834_v34 = vpop.xlane.xlu0 %1833 }
 0xccf   :  { %7327 = vrcp.f32 %v1834_v34  ;;  %2039 = vrot.lane.b32.xlu0 %v7876_v38, %s7498_s0 }
 0xcd3   :  { %2287 = vrot.lane.b32.xlu0 %v7887_v46, %s7501_s23 }
 0xcd5   :  { %v7326_v35 = vpop.eup %7325 }
 0xcd6   :  { %v1841_v43 = vmul.f32 %v7326_v35, %v7318_v20 }
 0xcd9   :  { %v7328_v37 = vpop.eup %7327 }
 0xcda   :  { %v1840_v40 = vmul.f32 %v7328_v37, %v7320_v42 }
 0xcdc   :  { %6668 = vmatprep.mubr.msk.f32.mxu1 %vm359_vm1, %v1840_v40 }
 0xcdd   :  { %6669 = vmatmul.mubr.msk.f32.vlgmr.msra.gmra.mrb[14].mxu1 %vm359_vm1, %v1841_v43 }
 0xd42   :  { %v2034_v44 = vpop.xlane.xlu0 %2033 }
 0xd43   :  { %7329 = vrcp.f32 %v2034_v44 }
 0xd46   :  { %v2031_v45 = vpop.xlane.xlu0 %2030 }
 0xd47   :  { %7331 = vrcp.f32 %v2031_v45 }
 0xd4a   :  { %v2040_v47 = vpop.permute.xlu0 %2039 }
 0xd4b   :  { %6676 = vmatprep.subr.mxu1 %v2040_v47 }
 0xd4c   :  { %6677 = vmatpush3.msra.mxu1 %v2040_v47 }
 0xd4d   :  { %6691 = vmatprep.subr.msk.mxu1 %vm359_vm1, %v2290_v49  ;;  %v7330_v52 = vpop.eup %7329 }
 0xd4e   :  { %v2038_v56 = vmul.f32 %v7330_v52, %v7322_v29  ;;  %v2288_v1 = vpop.permute.xlu0 %2287  ;;  %v1730_v29 = vld [vmem:[%s8372_s18 + $0x10] sm:$0xff] }
 0xd51   :  { %v7332_v54 = vpop.eup %7331 }
 0xd52   :  { %v2037_v55 = vmul.f32 %v7332_v54, %v7324_v31 }
 0xd54   :  { %6678 = vmatprep.mubr.msk.f32.mxu1 %vm359_vm1, %v2037_v55 }
 0xd55   :  { %6679 = vmatmul.mubr.msk.f32.vlgmr.msra.gmra.mrb[16].mxu1 %vm359_vm1, %v2038_v56 }
 0xd56   :  { %6692 = vmatpush3.xpose.msk.msra.mxu1 %vm359_vm1, %v2290_v49  ;;  %6693 = vmatprep.mubr.msk.f32.mxu1 %vm359_vm1, %v2286_v58 }
 0xd59   :  { %6694 = vmatmul.mubr.msk.f32.vlgmr.msra.gmra.mrb[18].mxu1 %vm359_vm1, %v2288_v1 }
 0xdb0   :  { %v6670_v61 = vpop.f32.mrb[14].mxu1 }
 0xdb1   :  { %v1917_v8 = vpop.f32.mrb[15].mxu1 }
 0xe28   :  { %v6680_v9 = vpop.f32.mrb[16].mxu1 }
 0xe29   :  { %v2114_v62 = vpop.f32.mrb[17].mxu1 }
 0xe2a   :  { %6683 = vmatprep.mubr.msk.f32.mxu0 %vm359_vm1, %v2114_v62 }
 0xe2b   :  { %6684 = vmatmul.mubr.msk.f32.vlgmr.msra.gmra.mrb[14].mxu0 %vm359_vm1, %v6680_v9  ;;  %v1731_v9 = vld [vmem:[%s8372_s18 + $0x18] sm:$0xff] }
 0xe2c   :  { %6688 = vmatprep.mubr.msk.f32.mxu0 %vm359_vm1, %v1917_v8  ;;  %v6695_v57 = vpop.f32.mrb[18].mxu1  ;;  %6687 = vmatpush3.msra.mxu0 %v1728_v59 }
 0xe2d   :  { %v2373_v63 = vmul.f32 0.35355338, %v6695_v57  ;;  %v2363_v2 = vpop.f32.mrb[19].mxu1  ;;  %6701 = vmatprep.subr.mxu0 %v1730_v29 }
 0xe2e   :  { %v2372_v3 = vmul.f32 0.35355338, %v2363_v2 }
 0xe2f   :  { %v2375_v4 = vadd.f32 %v2373_v63, %v7909_v60 }
 0xe30   :  { %v2374_v5 = vadd.f32 %v2372_v3, %v7912_v36 }
 0xe31   :  { %v2379_v41 = vsel %vm359_vm1, %v2375_v4, -inf }
 0xe32   :  { %2380 = vmax.xlane.f32.xlu0 %v2379_v41  ;;  %v2376_v6 = vsel %vm359_vm1, %v2374_v5, -inf }
 0xe33   :  { %6689 = vmatmul.mubr.msk.f32.vlgmr.msra.gmra.mrb[14].mxu0 %vm359_vm1, %v6670_v61  ;;  %2377 = vmax.xlane.f32.xlu1 %v2376_v6 }
 0xe34   :  { %6702 = vmatpush3.msra.mxu0 %v1730_v29 }
 0xebf   :  { %v2381_v7 = vpop.xlane.xlu0 %2380 }
 0xec0   :  { %v2383_v10 = vsub.f32 %v2375_v4, %v2381_v7  ;;  %v2378_v11 = vpop.xlane.xlu1 %2377  ;;  %v6188_v4 = vld [vmem:[%s8373_s15] ss:$0 sm:$0xff] }
 0xec1   :  { %v2382_v12 = vsub.f32 %v2374_v5, %v2378_v11 }
 0xec2   :  { %v2386_v13 = vmul.f32 1.442695, %v2383_v10 }
 0xec3   :  { %v2384_v16 = vmul.f32 1.442695, %v2382_v12 }
 0xec4   :  { %7333 = vpow2.f32 %v2386_v13 }
 0xec5   :  { %7335 = vpow2.f32 %v2384_v16 }
 0xece   :  { %v7334_v18 = vpop.eup %7333 }
 0xecf   :  { %v7336_v19 = vpop.eup %7335  ;;  %v2391_v20 = vsel %vm359_vm1, %v7334_v18, 0.0 }
 0xed0   :  { %2392 = vadd.xlane.f32.xlu1 %v2391_v20  ;;  %v2388_v21 = vsel %vm359_vm1, %v7336_v19, 0.0 }
 0xed1   :  { %2389 = vadd.xlane.f32.xlu0 %v2388_v21 }
 0xee1   :  { %2569 = vrot.lane.b32.xlu1 %v7876_v38, %s8345_s25 }
 0xee5   :  { %2565 = vrot.lane.b32.xlu1 %v7889_v48, %s8345_s25 }
 0xee7   :  { %2398 = vrot.lane.b32.xlu0 %v7876_v38, %s7502_s26 }
 0xeeb   :  { %2567 = vrot.lane.b32.xlu0 %v7887_v46, %s8345_s25  ;;  %s8377_s25 = sld [smem:[#allocation18_spill]] }
 0xf5d   :  { %v2393_v42 = vpop.xlane.xlu1 %2392 }
 0xf5e   :  { %7337 = vrcp.f32 %v2393_v42  ;;  %v2390_v22 = vpop.xlane.xlu0 %2389 }
 0xf5f   :  { %7339 = vrcp.f32 %v2390_v22 }
 0xf61   :  { %v2570_v24 = vpop.permute.xlu1 %2569 }
 0xf62   :  { %v2399_v23 = vpop.permute.xlu0 %2398 }
 0xf63   :  { %6696 = vmatprep.subr.mxu1 %v2399_v23 }
 0xf64   :  { %6697 = vmatpush3.msra.mxu1 %v2399_v23 }
 0xf65   :  { %6706 = vmatprep.subr.msk.mxu1 %vm359_vm1, %v2570_v24  ;;  %v2566_v28 = vpop.permute.xlu1 %2565 }
 0xf66   :  { %v2568_v46 = vpop.permute.xlu0 %2567 }
 0xf68   :  { %v7338_v25 = vpop.eup %7337 }
 0xf69   :  { %v7340_v26 = vpop.eup %7339  ;;  %v2397_v27 = vmul.f32 %v7338_v25, %v7334_v18  ;;  %v2859_v25 = vld [vmem:[%s8374_s16 + $0x8] sm:$0xff] }
 0xf6a   :  { %v2396_v48 = vmul.f32 %v7340_v26, %v7336_v19 }
 0xf6c   :  { %6698 = vmatprep.mubr.msk.f32.mxu1 %vm359_vm1, %v2396_v48  ;;  %v2860_v48 = vld [vmem:[%s8374_s16 + $0x10] sm:$0xff] }
 0xf6d   :  { %6699 = vmatmul.mubr.msk.f32.vlgmr.msra.gmra.mrb[20].mxu1 %vm359_vm1, %v2397_v27  ;;  %v2861_v27 = vld [vmem:[%s8374_s16 + $0x18] sm:$0xff] }
 0xf6e   :  { %6707 = vmatpush3.xpose.msk.msra.mxu1 %vm359_vm1, %v2570_v24  ;;  %6708 = vmatprep.mubr.msk.f32.mxu1 %vm359_vm1, %v2566_v28  ;;  %v2858_v24 = vld [vmem:[%s8374_s16] sm:$0xff]  ;;  %v7016_v28 = vpack.c.bf16 %v2861_v27, %v2860_v48 }
 0xf6f   :  { %v7012_v26 = vpack.c.bf16 %v2859_v25, %v2858_v24 }
 0xf71   :  { %6709 = vmatmul.mubr.msk.f32.vlgmr.msra.gmra.mrb[22].mxu1 %vm359_vm1, %v2568_v46  ;;  %7013 = vmatprep.subr.bf16.mxu1 %v7012_v26 }
 0xf72   :  { %7015 = vmatpush3.bf16.msra.mxu1 %v7012_v26  ;;  %v6194_v26 = vld [vmem:[%s7663_s27] ss:$0 sm:$0xff] }
 0xf73   :  { %7017 = vmatprep.subr.bf16.mxu1 %v7016_v28 }
 0xf76   :  { %7019 = vmatpush3.bf16.msra.mxu1 %v7016_v28 }
0x1040   :  { %v6700_v30 = vpop.f32.mrb[20].mxu1 }
0x1041   :  { %v2473_v31 = vpop.f32.mrb[21].mxu1 }
0x1042   :  { %6703 = vmatprep.mubr.msk.f32.mxu0 %vm359_vm1, %v2473_v31 }
0x1043   :  { %6704 = vmatmul.mubr.msk.f32.vlgmr.msra.gmra.mrb[14].mxu0 %vm359_vm1, %v6700_v30 }
0x1044   :  { %v6710_v32 = vpop.f32.mrb[22].mxu1 }
0x1045   :  { %v2653_v33 = vmul.f32 0.35355338, %v6710_v32  ;;  %v2643_v34 = vpop.f32.mrb[23].mxu1 }
0x1046   :  { %v2652_v35 = vmul.f32 0.35355338, %v2643_v34 }
0x1047   :  { %v2655_v37 = vadd.f32 %v2653_v33, %v7909_v60 }
0x1048   :  { %v2654_v40 = vadd.f32 %v2652_v35, %v7912_v36  ;;  %v6189_v35 = vld [vmem:[%s8375_s28] ss:$0 sm:$0xff] }
0x1049   :  { %v2659_v43 = vsel %vm359_vm1, %v2655_v37, -inf }
0x104a   :  { %2660 = vmax.xlane.f32.xlu0 %v2659_v43  ;;  %v2656_v44 = vsel %vm359_vm1, %v2654_v40, -inf }
0x104b   :  { %2657 = vmax.xlane.f32.xlu1 %v2656_v44 }
0x10d7   :  { %v2661_v45 = vpop.xlane.xlu0 %2660 }
0x10d8   :  { %v2663_v47 = vsub.f32 %v2655_v37, %v2661_v45  ;;  %v2658_v49 = vpop.xlane.xlu1 %2657 }
0x10d9   :  { %v2662_v52 = vsub.f32 %v2654_v40, %v2658_v49  ;;  %v6190_v40 = vld [vmem:[%s8376_s29] ss:$0 sm:$0xff] }
0x10da   :  { %v2666_v54 = vmul.f32 1.442695, %v2663_v47 }
0x10db   :  { %v2664_v55 = vmul.f32 1.442695, %v2662_v52 }
0x10dc   :  { %7341 = vpow2.f32 %v2666_v54  ;;  %v2863_v54 = vld [vmem:[%s8377_s25] sm:$0xff] }
0x10dd   :  { %7343 = vpow2.f32 %v2664_v55  ;;  %v2864_v55 = vld [vmem:[%s8377_s25 + $0x8] sm:$0xff] }
0x10e6   :  { %v7342_v56 = vpop.eup %7341 }
0x10e7   :  { %v7344_v58 = vpop.eup %7343  ;;  %v2671_v1 = vsel %vm359_vm1, %v7342_v56, 0.0 }
0x10e8   :  { %2672 = vadd.xlane.f32.xlu1 %v2671_v1  ;;  %v2668_v0 = vsel %vm359_vm1, %v7344_v58, 0.0  ;;  %v2866_v1 = vld [vmem:[%s8377_s25 + $0x18] sm:$0xff] }
0x10e9   :  { %2669 = vadd.xlane.f32.xlu0 %v2668_v0 }
0x10ff   :  { %2678 = vrot.lane.b32.xlu0 %v7876_v38, %s8347_s21  ;;  %s8378_s21 = sld [smem:[#allocation17_spill]] }
0x1175   :  { %v2673_v59 = vpop.xlane.xlu1 %2672 }
0x1176   :  { %7345 = vrcp.f32 %v2673_v59  ;;  %v2670_v61 = vpop.xlane.xlu0 %2669  ;;  %v2867_v59 = vld [vmem:[%s8377_s25 + $0x20] sm:$0xff] }
0x1177   :  { %7347 = vrcp.f32 %v2670_v61  ;;  %v2868_v61 = vld [vmem:[%s8377_s25 + $0x28] sm:$0xff] }
0x117a   :  { %v2679_v8 = vpop.permute.xlu0 %2678 }
0x117b   :  { %6711 = vmatprep.subr.mxu0 %v2679_v8 }
0x117c   :  { %6712 = vmatpush3.msra.mxu0 %v2679_v8  ;;  %v7028_v8 = vpack.c.bf16 %v2868_v61, %v2867_v59 }
0x117d   :  { %6716 = vmatprep.subr.mxu0 %v1731_v9 }
0x1180   :  { %v7346_v62 = vpop.eup %7345 }
0x1181   :  { %v7348_v57 = vpop.eup %7347  ;;  %v2677_v2 = vmul.f32 %v7346_v62, %v7342_v56  ;;  %v7020_v56 = vpack.c.bf16 %v2864_v55, %v2863_v54  ;;  %v2870_v62 = vld [vmem:[%s8377_s25 + $0x38] sm:$0xff]  ;;  %v6203_v54 = vld [vmem:[%s7578_s24 + $0x30] sm:$0xff] }
0x1182   :  { %v2676_v63 = vmul.f32 %v7348_v57, %v7344_v58  ;;  %v2865_v58 = vld [vmem:[%s8377_s25 + $0x10] sm:$0xff]  ;;  %v6204_v55 = vld [vmem:[%s7578_s24 + $0x38] sm:$0xff] }
0x1183   :  { %v7024_v0 = vpack.c.bf16 %v2866_v1, %v2865_v58 }
0x1184   :  { %6713 = vmatprep.mubr.msk.f32.mxu0 %vm359_vm1, %v2676_v63  ;;  %v6191_v63 = vld [vmem:[%s8378_s21] ss:$0 sm:$0xff] }
0x1185   :  { %6714 = vmatmul.mubr.msk.f32.vlgmr.msra.gmra.mrb[16].mxu0 %vm359_vm1, %v2677_v2 }
0x1186   :  { %6717 = vmatpush3.msra.mxu0 %v1731_v9  ;;  %v2869_v9 = vld [vmem:[%s8377_s25 + $0x30] sm:$0xff] }
0x1187   :  { %7021 = vmatprep.subr.bf16.mxu0 %v7020_v56  ;;  %v7032_v57 = vpack.c.bf16 %v2870_v62, %v2869_v9  ;;  %v6199_v62 = vld [vmem:[%s7568_s14 + $0x1] ss:$0 sm:$0xff]  ;;  %s8379_s14 = smov 72  }
0x1258   :  { %v6715_v38 = vpop.f32.mrb[16].mxu0 }
0x1259   :  { %v2753_v3 = vpop.f32.mrb[17].mxu0 }
0x125a   :  { %6718 = vmatprep.mubr.msk.f32.mxu0 %vm359_vm1, %v2753_v3 }
0x125b   :  { %6719 = vmatmul.mubr.msk.f32.vlgmr.msra.gmra.mrb[14].mxu0 %vm359_vm1, %v6715_v38 }
0x125c   :  { %7023 = vmatpush3.bf16.msra.mxu0 %v7020_v56  ;;  %v7040_v56 = vpack.c.bf16 %v6204_v55, %v6203_v54 }
0x125d   :  { %7025 = vmatprep.subr.bf16.mxu0 %v7024_v0 }
0x1260   :  { %7027 = vmatpush3.bf16.msra.mxu0 %v7024_v0 }
0x1261   :  { %7029 = vmatprep.subr.bf16.mxu0 %v7028_v8 }
0x1264   :  { %7031 = vmatpush3.bf16.msra.mxu0 %v7028_v8 }
0x1265   :  { %7033 = vmatprep.subr.bf16.mxu0 %v7032_v57 }
0x1268   :  { %7035 = vmatpush3.bf16.msra.mxu0 %v7032_v57 }
0x132e   :  { %v6720_v5 = vpop.f32.mrb[14].mxu0 }
0x132f   :  { %v2834_v41 = vpop.f32.mrb[15].mxu0  ;;  %v2853_v6 = vadd.f32 %v6720_v5, %v6188_v4 }
0x1330   :  { %v2852_v7 = vadd.f32 %v6188_v4, %v2834_v41 }
0x1331   :  { %v7991_v11 = vadd.f32 %v2853_v6, %v7844_v50 }
0x1332   :  { %v7988_v10 = vadd.f32 %v2852_v7, %v7847_v51 }
0x1333   :  { %v2875_v13 = vsel %vm213_vm0, %v7991_v11, 0.0 }
0x1334   :  { %v2872_v12 = vsel %vm213_vm0, %v7988_v10, 0.0 }
0x1335   :  { %2873 = vadd.xlane.f32.xlu1 %v2872_v12 }
0x1339   :  { %2876 = vadd.xlane.f32.xlu1 %v2875_v13 }
0x13c2   :  { %v2874_v16 = vpop.xlane.xlu1 %2873 }
0x13c3   :  { %v2878_v18 = vmul.f32 0.03125, %v2874_v16 }
0x13c5   :  { %v2880_v19 = vsub.f32 %v7988_v10, %v2878_v18 }
0x13c6   :  { %v2877_v51 = vpop.xlane.xlu1 %2876 }
0x13c7   :  { %v2879_v20 = vmul.f32 0.03125, %v2877_v51  ;;  %v2882_v50 = vmul.f32 %v2880_v19, %v2880_v19 }
0x13c9   :  { %v2881_v21 = vsub.f32 %v7991_v11, %v2879_v20  ;;  %v2884_v42 = vsel %vm213_vm0, %v2882_v50, 0.0 }
0x13ca   :  { %2885 = vadd.xlane.f32.xlu1 %v2884_v42 }
0x13cb   :  { %v2883_v22 = vmul.f32 %v2881_v21, %v2881_v21 }
0x13cd   :  { %v2887_v23 = vsel %vm213_vm0, %v2883_v22, 0.0 }
0x13ce   :  { %2888 = vadd.xlane.f32.xlu1 %v2887_v23 }
0x1457   :  { %v2886_v46 = vpop.xlane.xlu1 %2885 }
0x1458   :  { %v2890_v29 = vmul.f32 0.03125, %v2886_v46 }
0x145a   :  { %v2892_v30 = vadd.f32 1e-06, %v2890_v29 }
0x145b   :  { %v2889_v31 = vpop.xlane.xlu1 %2888 }
0x145c   :  { %7349 = vrsqrt.f32 %v2892_v30  ;;  %v2891_v32 = vmul.f32 0.03125, %v2889_v31 }
0x145e   :  { %v2893_v33 = vadd.f32 1e-06, %v2891_v32 }
0x1460   :  { %7351 = vrsqrt.f32 %v2893_v33 }
0x1466   :  { %v7350_v34 = vpop.eup %7349 }
0x1467   :  { %v2896_v37 = vmul.f32 %v7350_v34, %v2880_v19 }
0x1469   :  { %v2904_v43 = vmul.f32 %v6189_v35, %v2896_v37 }
0x146a   :  { %v7352_v44 = vpop.eup %7351 }
0x146b   :  { %v2897_v45 = vmul.f32 %v7352_v44, %v2881_v21  ;;  %v2912_v47 = vadd.f32 %v6190_v40, %v2904_v43 }
0x146d   :  { %v2905_v49 = vmul.f32 %v6189_v35, %v2897_v45  ;;  %6729 = vmatprep.mubr.msk.f32.mxu1 %vm213_vm0, %v2912_v47  ;;  %v6201_v47 = vld [vmem:[%s7578_s24 + $0x20] sm:$0xff] }
0x146f   :  { %v2913_v52 = vadd.f32 %v6190_v40, %v2905_v49  ;;  %v6202_v49 = vld [vmem:[%s7578_s24 + $0x28] sm:$0xff]  ;;  %s8381_s24 = smov 48  }
0x1471   :  { %6730 = vmatmul.mubr.msk.f32.vlgmr.msra.gmra.mrb[24].mxu1 %vm213_vm0, %v2913_v52  ;;  %v7036_v52 = vpack.c.bf16 %v6202_v49, %v6201_v47 }
0x1473   :  { %7037 = vmatprep.subr.bf16.mxu1 %v7036_v52 }
0x1474   :  { %7039 = vmatpush3.bf16.msra.mxu1 %v7036_v52 }
0x1475   :  { %7041 = vmatprep.subr.bf16.mxu1 %v7040_v56 }
0x1478   :  { %7043 = vmatpush3.bf16.msra.mxu1 %v7040_v56 }
0x1544   :  { %v6731_v2 = vpop.f32.mrb[24].mxu1 }
0x1545   :  { %v2998_v38 = vadd.f32 %v6731_v2, %v6191_v63  ;;  %v2992_v3 = vpop.f32.mrb[25].mxu1 }
0x1546   :  { %v2993_v4 = vadd.f32 %v6191_v63, %v2992_v3  ;;  %v6200_v63 = vld [vmem:[%s7573_s19 + $0x1] ss:$0 sm:$0xff]  ;;  %s8380_s19 = smov 104  }
0x1547   :  { %v3004_v5 = vmul.f32 0.044715, %v2998_v38  ;;  %v3002_v23 = vmul.f32 0.5, %v2998_v38 }
0x1548   :  { %v3003_v41 = vmul.f32 0.044715, %v2993_v4  ;;  %v3001_v42 = vmul.f32 0.5, %v2993_v4 }
0x1549   :  { %v3006_v6 = vmul.f32 %v3004_v5, %v2998_v38 }
0x154a   :  { %v3005_v7 = vmul.f32 %v3003_v41, %v2993_v4 }
0x154b   :  { %v3008_v12 = vmul.f32 %v3006_v6, %v2998_v38  ;;  %v6206_v6 = vld [vmem:[%s7583_s30 + $0x1] ss:$0 sm:$0xff]  ;;  %s8382_s30 = smov 40  }
0x154c   :  { %v3007_v13 = vmul.f32 %v3005_v7, %v2993_v4 }
0x154d   :  { %v3010_v16 = vadd.f32 %v3008_v12, %v2998_v38 }
0x154e   :  { %v3009_v18 = vadd.f32 %v3007_v13, %v2993_v4 }
0x154f   :  { %v3012_v19 = vmul.f32 0.7978846, %v3010_v16 }
0x1550   :  { %v3011_v51 = vmul.f32 0.7978846, %v3009_v18 }
0x1551   :  { %7353 = vtanh.f32 %v3012_v19 }
0x1552   :  { %7355 = vtanh.f32 %v3011_v51 }
0x155b   :  { %v7354_v20 = vpop.eup %7353 }
0x155c   :  { %v7356_v50 = vpop.eup %7355  ;;  %v3016_v21 = vadd.f32 1.0, %v7354_v20 }
0x155d   :  { %v3015_v22 = vadd.f32 1.0, %v7356_v50 }
0x155e   :  { %v3018_v25 = vmul.f32 %v3016_v21, %v3002_v23 }
0x155f   :  { %v3017_v24 = vmul.f32 %v3015_v22, %v3001_v42 }
0x1561   :  { %6748 = vmatprep.mubr.msk.f32.mxu0 %vm3025_vm8, %v3017_v24 }
0x1562   :  { %6749 = vmatmul.mubr.msk.f32.vlgmr.msra.gmra.mrb[18].mxu0 %vm3025_vm8, %v3018_v25 }
0x1635   :  { %v6750_v48 = vpop.f32.mrb[18].mxu0 }
0x1636   :  { %v3098_v27 = vpop.f32.mrb[19].mxu0  ;;  %v3104_v28 = vadd.f32 %v6750_v48, %v6194_v26 }
0x1637   :  { %v3099_v46 = vadd.f32 %v6194_v26, %v3098_v27 }
0x1638   :  { %v8025_v30 = vadd.f32 %v3104_v28, %v7991_v11 }
0x1639   :  { %v8022_v29 = vadd.f32 %v3099_v46, %v7988_v10 }
0x163a   :  { %v3116_v32 = vsel %vm213_vm0, %v8025_v30, 0.0 }
0x163b   :  { %v3113_v31 = vsel %vm213_vm0, %v8022_v29, 0.0 }
0x163c   :  { %3114 = vadd.xlane.f32.xlu1 %v3113_v31 }
0x1640   :  { %3117 = vadd.xlane.f32.xlu1 %v3116_v32 }
0x16c9   :  { %v3115_v33 = vpop.xlane.xlu1 %3114 }
0x16ca   :  { %v3119_v34 = vmul.f32 0.03125, %v3115_v33 }
0x16cc   :  { %v3121_v35 = vsub.f32 %v8022_v29, %v3119_v34 }
0x16cd   :  { %v3118_v10 = vpop.xlane.xlu1 %3117 }
0x16ce   :  { %v3120_v37 = vmul.f32 0.03125, %v3118_v10  ;;  %v3123_v11 = vmul.f32 %v3121_v35, %v3121_v35 }
0x16d0   :  { %v3122_v40 = vsub.f32 %v8025_v30, %v3120_v37  ;;  %v3125_v43 = vsel %vm213_vm0, %v3123_v11, 0.0 }
0x16d1   :  { %3126 = vadd.xlane.f32.xlu0 %v3125_v43 }
0x16d2   :  { %v3124_v44 = vmul.f32 %v3122_v40, %v3122_v40 }
0x16d4   :  { %v3128_v45 = vsel %vm213_vm0, %v3124_v44, 0.0 }
0x16d5   :  { %3129 = vadd.xlane.f32.xlu1 %v3128_v45 }
0x175e   :  { %v3127_v58 = vpop.xlane.xlu0 %3126 }
0x175f   :  { %v3131_v1 = vmul.f32 0.03125, %v3127_v58 }
0x1761   :  { %v3133_v0 = vadd.f32 1e-06, %v3131_v1 }
0x1762   :  { %v3130_v59 = vpop.xlane.xlu1 %3129 }
0x1763   :  { %7357 = vrsqrt.f32 %v3133_v0  ;;  %v3132_v61 = vmul.f32 0.03125, %v3130_v59 }
0x1765   :  { %v3134_v8 = vadd.f32 1e-06, %v3132_v61 }
0x1767   :  { %7359 = vrsqrt.f32 %v3134_v8 }
0x176d   :  { %v7358_v9 = vpop.eup %7357 }
0x176e   :  { %v3137_v57 = vmul.f32 %v7358_v9, %v3121_v35 }
0x1770   :  { %v3145_v2 = vmul.f32 %v6199_v62, %v3137_v57 }
0x1771   :  { %v7360_v38 = vpop.eup %7359 }
0x1772   :  { %v3138_v3 = vmul.f32 %v7360_v38, %v3122_v40  ;;  %v3153_v4 = vadd.f32 %v6200_v63, %v3145_v2 }
0x1774   :  { %v3146_v5 = vmul.f32 %v6199_v62, %v3138_v3  ;;  %6759 = vmatprep.mubr.msk.f32.mxu1 %vm213_vm0, %v3153_v4 }
0x1776   :  { %v3154_v41 = vadd.f32 %v6200_v63, %v3146_v5 }
0x1778   :  { %6760 = vmatmul.mubr.msk.f32.vlgmr.msra.gmra.mrb[26].mxu1 %vm213_vm0, %v3154_v41 }
0x184b   :  { %v6761_v7 = vpop.f32.mrb[26].mxu1 }
0x184c   :  { %v8044_v12 = vadd.f32 %v6761_v7, %v6206_v6  ;;  %v3240_v13 = vpop.f32.mrb[27].mxu1 }
0x184d   :  { %v8046_v16 = vadd.f32 %v6206_v6, %v3240_v13 }
0x184e   :  { %3458 = vrot.lane.b32.xlu0 %v8044_v12, %s7500_s22 }
0x184f   :  { %6766 = vmatprep.mubr.msk.f32.mxu1 %vm359_vm1, %v8046_v16  ;;  %v8054_v18 = vpack.i.bf16 %v8044_v12, %v8046_v16 }
0x1851   :  { %7238 = vrot.lane.b32.xlu1 %v8054_v18, %s7499_s5 }
0x1855   :  { %7243 = vrot.lane.b32.xlu1 %v8054_v18, %s7498_s0 }
0x1859   :  { %3456 = vrot.lane.b32.xlu1 %v8046_v16, %s7500_s22 }
0x185d   :  { %7248 = vrot.lane.b32.xlu1 %v8054_v18, %s7502_s26 }
0x1861   :  { %3822 = vrot.lane.b32.xlu1 %v8046_v16, %s7501_s23 }
0x1865   :  { %3824 = vrot.lane.b32.xlu1 %v8044_v12, %s7501_s23 }
0x18c0   :  { %v3459_v28 = vpop.permute.xlu0 %3458 }
0x18c3   :  { %v7239_v19 = vpop.permute.xlu1 %7238 }
0x18c4   :  { %v7241_v51 = vunpack.i.h.bf16 %v7239_v19  ;;  %v7240_v20 = vunpack.i.l.bf16 %v7239_v19 }
0x18c6   :  { %v7044_v50 = vpack.c.bf16 %v7241_v51, %v7240_v20 }
0x18c7   :  { %v7244_v21 = vpop.permute.xlu1 %7243 }
0x18c8   :  { %v7246_v42 = vunpack.i.h.bf16 %v7244_v21  ;;  %v7245_v22 = vunpack.i.l.bf16 %v7244_v21  ;;  %7046 = vmatprep.subr.msk.bf16.mxu1 %vm7735_vm2, %v7044_v50 }
0x18c9   :  { %7049 = vmatpush3.bf16.xpose.msk.msra.mxu1 %vm7735_vm2, %v7044_v50 }
0x18ca   :  { %v7054_v23 = vpack.c.bf16 %v7246_v42, %v7245_v22 }
0x18cb   :  { %v3457_v24 = vpop.permute.xlu1 %3456 }
0x18cc   :  { %7056 = vmatprep.subr.msk.bf16.mxu1 %vm7735_vm2, %v7054_v23 }
0x18cf   :  { %v7249_v25 = vpop.permute.xlu1 %7248 }
0x18d0   :  { %v7251_v26 = vunpack.i.h.bf16 %v7249_v25  ;;  %v7250_v48 = vunpack.i.l.bf16 %v7249_v25  ;;  %6767 = vmatmul.mubr.msk.f32.vlgmr.msra.gmra.mrb[28].mxu1 %vm359_vm1, %v8044_v12 }
0x18d1   :  { %7059 = vmatpush3.bf16.xpose.msk.msra.mxu1 %vm7735_vm2, %v7054_v23  ;;  %6780 = vmatprep.mubr.msk.f32.mxu1 %vm359_vm1, %v3457_v24 }
0x18d2   :  { %v7064_v27 = vpack.c.bf16 %v7251_v26, %v7250_v48 }
0x18d3   :  { %v3823_v46 = vpop.permute.xlu1 %3822 }
0x18d4   :  { %7066 = vmatprep.subr.msk.bf16.mxu1 %vm7735_vm2, %v7064_v27 }
0x18d7   :  { %v3825_v31 = vpop.permute.xlu1 %3824 }
0x18d8   :  { %6781 = vmatmul.mubr.msk.f32.vlgmr.msra.gmra.mrb[30].mxu1 %vm359_vm1, %v3459_v28 }
0x18d9   :  { %7069 = vmatpush3.bf16.xpose.msk.msra.mxu1 %vm7735_vm2, %v7064_v27  ;;  %6804 = vmatprep.mubr.msk.f32.mxu1 %vm359_vm1, %v3823_v46 }
0x18e0   :  { %6805 = vmatmul.mubr.msk.f32.vlgmr.msra.gmra.mrb[32].mxu1 %vm359_vm1, %v3825_v31 }
0x19a3   :  { %v6768_v32 = vpop.f32.mrb[28].mxu1 }
0x19a4   :  { %v3344_v33 = vmul.f32 0.35355338, %v6768_v32  ;;  %v3334_v34 = vpop.f32.mrb[29].mxu1 }
0x19a5   :  { %v3343_v35 = vmul.f32 0.35355338, %v3334_v34 }
0x19a6   :  { %v3346_v10 = vadd.f32 %v3344_v33, %v7773_v15 }
0x19a7   :  { %v3345_v37 = vadd.f32 %v3343_v35, %v7776_v17 }
0x19a8   :  { %v3350_v11 = vsel %vm447_vm13, %v3346_v10, -inf }
0x19a9   :  { %3351 = vmax.xlane.f32.xlu0 %v3350_v11  ;;  %v3347_v40 = vsel %vm447_vm13, %v3345_v37, -inf }
0x19aa   :  { %3348 = vmax.xlane.f32.xlu1 %v3347_v40 }
0x19ab   :  { %v6782_v43 = vpop.f32.mrb[30].mxu1 }
0x19ac   :  { %v3548_v44 = vmul.f32 0.35355338, %v6782_v43  ;;  %v3538_v45 = vpop.f32.mrb[31].mxu1 }
0x19ad   :  { %v3547_v47 = vmul.f32 0.35355338, %v3538_v45 }
0x19ae   :  { %v3550_v49 = vadd.f32 %v3548_v44, %v7773_v15 }
0x19af   :  { %v3549_v52 = vadd.f32 %v3547_v47, %v7776_v17 }
0x19b0   :  { %v3554_v54 = vsel %vm447_vm13, %v3550_v49, -inf }
0x19b1   :  { %3555 = vmax.xlane.f32.xlu0 %v3554_v54  ;;  %v3551_v55 = vsel %vm447_vm13, %v3549_v52, -inf }
0x19b2   :  { %3552 = vmax.xlane.f32.xlu1 %v3551_v55 }
0x19b3   :  { %v6806_v56 = vpop.f32.mrb[32].mxu1 }
0x19b4   :  { %v3904_v58 = vpop.f32.mrb[33].mxu1  ;;  %v3914_v42 = vmul.f32 0.35355338, %v6806_v56 }
0x19b5   :  { %v3913_v20 = vmul.f32 0.35355338, %v3904_v58 }
0x19b6   :  { %v3916_v22 = vadd.f32 %v3914_v42, %v7773_v15 }
0x19b7   :  { %v3915_v50 = vadd.f32 %v3913_v20, %v7776_v17 }
0x19b8   :  { %v3920_v23 = vsel %vm447_vm13, %v3916_v22, -inf }
0x19b9   :  { %v3917_v21 = vsel %vm447_vm13, %v3915_v50, -inf }
0x1a36   :  { %v3352_v1 = vpop.xlane.xlu0 %3351 }
0x1a37   :  { %v3354_v0 = vsub.f32 %v3346_v10, %v3352_v1  ;;  %v3349_v59 = vpop.xlane.xlu1 %3348 }
0x1a38   :  { %v3353_v61 = vsub.f32 %v3345_v37, %v3349_v59 }
0x1a39   :  { %v3357_v8 = vmul.f32 1.442695, %v3354_v0 }
0x1a3a   :  { %v3355_v9 = vmul.f32 1.442695, %v3353_v61 }
0x1a3b   :  { %7361 = vpow2.f32 %v3357_v8 }
0x1a3c   :  { %7363 = vpow2.f32 %v3355_v9 }
0x1a3e   :  { %v3556_v62 = vpop.xlane.xlu0 %3555 }
0x1a3f   :  { %v3558_v57 = vsub.f32 %v3550_v49, %v3556_v62  ;;  %v3553_v63 = vpop.xlane.xlu1 %3552 }
0x1a40   :  { %v3557_v2 = vsub.f32 %v3549_v52, %v3553_v63  ;;  %v6209_v63 = vld [vmem:[%s7588_s6 + $0x20] sm:$0xff] }
0x1a41   :  { %v3561_v38 = vmul.f32 1.442695, %v3558_v57  ;;  %v6210_v57 = vld [vmem:[%s7588_s6 + $0x28] sm:$0xff] }
0x1a42   :  { %v3559_v3 = vmul.f32 1.442695, %v3557_v2 }
0x1a43   :  { %7365 = vpow2.f32 %v3561_v38 }
0x1a44   :  { %7367 = vpow2.f32 %v3559_v3 }
0x1a45   :  { %v7362_v4 = vpop.eup %7361 }
0x1a46   :  { %v7364_v5 = vpop.eup %7363  ;;  %v3362_v41 = vsel %vm447_vm13, %v7362_v4, 0.0 }
0x1a47   :  { %3363 = vadd.xlane.f32.xlu0 %v3362_v41  ;;  %v3359_v6 = vsel %vm447_vm13, %v7364_v5, 0.0 }
0x1a48   :  { %3360 = vadd.xlane.f32.xlu1 %v3359_v6 }
0x1a4d   :  { %v7366_v7 = vpop.eup %7365 }
0x1a4e   :  { %v7368_v13 = vpop.eup %7367  ;;  %v3566_v19 = vsel %vm447_vm13, %v7366_v7, 0.0 }
0x1a4f   :  { %3567 = vadd.xlane.f32.xlu0 %v3566_v19  ;;  %v3563_v51 = vsel %vm447_vm13, %v7368_v13, 0.0 }
0x1a50   :  { %3564 = vadd.xlane.f32.xlu1 %v3563_v51 }
0x1a61   :  { %7253 = vrot.lane.b32.xlu1 %v8054_v18, %s7505_s17 }
0x1a65   :  { %7258 = vrot.lane.b32.xlu0 %v8054_v18, %s7504_s13  ;;  %7263 = vrot.lane.b32.xlu1 %v8054_v18, %s8379_s14 }
0x1a69   :  { %4109 = vrot.lane.b32.xlu1 %v8046_v16, %s8380_s19 }
0x1a6d   :  { %4111 = vrot.lane.b32.xlu1 %v8044_v12, %s8380_s19 }
0x1a84   :  { %3918 = vmax.xlane.f32.xlu0 %v3917_v21 }
0x1a91   :  { %3921 = vmax.xlane.f32.xlu1 %v3920_v23 }
0x1ad4   :  { %v3364_v25 = vpop.xlane.xlu0 %3363 }
0x1ad5   :  { %v3361_v24 = vpop.xlane.xlu1 %3360 }
0x1ad6   :  { %7369 = vrcp.f32 %v3361_v24 }
0x1ad7   :  { %7371 = vrcp.f32 %v3364_v25 }
0x1adc   :  { %v3568_v16 = vpop.xlane.xlu0 %3567 }
0x1add   :  { %v3565_v26 = vpop.xlane.xlu1 %3564 }
0x1ade   :  { %7373 = vrcp.f32 %v3565_v26 }
0x1adf   :  { %7375 = vrcp.f32 %v3568_v16 }
0x1ae0   :  { %v7370_v12 = vpop.eup %7369  ;;  %v7259_v48 = vpop.permute.xlu0 %7258 }
0x1ae1   :  { %v7254_v27 = vpop.permute.xlu1 %7253  ;;  %v3367_v28 = vmul.f32 %v7370_v12, %v7364_v5  ;;  %v7261_v46 = vunpack.i.h.bf16 %v7259_v48  ;;  %v7260_v31 = vunpack.i.l.bf16 %v7259_v48  ;;  %v7372_v35 = vpop.eup %7371  ;;  %v6211_v48 = vld [vmem:[%s7588_s6 + $0x30] sm:$0xff] }
0x1ae2   :  { %v7256_v32 = vunpack.i.h.bf16 %v7254_v27  ;;  %v7255_v33 = vunpack.i.l.bf16 %v7254_v27  ;;  %v3368_v44 = vmul.f32 %v7372_v35, %v7362_v4 }
0x1ae3   :  { %6773 = vmatprep.mubr.msk.f32.mxu0 %vm447_vm13, %v3367_v28  ;;  %v7060_v37 = vpack.c.bf16 %v7261_v46, %v7260_v31 }
0x1ae4   :  { %v7050_v34 = vpack.c.bf16 %v7256_v32, %v7255_v33 }
0x1ae5   :  { %v7264_v10 = vpop.permute.xlu1 %7263 }
0x1ae6   :  { %v7266_v11 = vunpack.i.h.bf16 %v7264_v10  ;;  %v7265_v40 = vunpack.i.l.bf16 %v7264_v10  ;;  %7051 = vmatprep.subr.bf16.mxu0 %v7050_v34 }
0x1ae7   :  { %7053 = vmatpush3.bf16.msra.mxu0 %v7050_v34 }
0x1ae8   :  { %v7374_v43 = vpop.eup %7373  ;;  %v7074_v45 = vpack.c.bf16 %v7266_v11, %v7265_v40  ;;  %7061 = vmatprep.subr.bf16.mxu0 %v7060_v37 }
0x1ae9   :  { %v7376_v47 = vpop.eup %7375  ;;  %v4110_v49 = vpop.permute.xlu1 %4109  ;;  %v3571_v52 = vmul.f32 %v7374_v43, %v7368_v13 }
0x1aea   :  { %6774 = vmatmul.mubr.msk.f32.vlgmr.msra.gmra.mrb[20].mxu0 %vm447_vm13, %v3368_v44  ;;  %7076 = vmatprep.subr.msk.bf16.mxu1 %vm7735_vm2, %v7074_v45  ;;  %v3572_v54 = vmul.f32 %v7376_v47, %v7366_v7 }
0x1aeb   :  { %6823 = vmatprep.mubr.msk.f32.mxu1 %vm359_vm1, %v4110_v49  ;;  %7063 = vmatpush3.bf16.msra.mxu0 %v7060_v37  ;;  %v6212_v49 = vld [vmem:[%s7588_s6 + $0x38] sm:$0xff] }
0x1aec   :  { %6787 = vmatprep.mubr.msk.f32.mxu0 %vm447_vm13, %v3571_v52  ;;  %7079 = vmatpush3.bf16.xpose.msk.msra.mxu1 %vm7735_vm2, %v7074_v45 }
0x1aed   :  { %v4112_v55 = vpop.permute.xlu1 %4111  ;;  %6790 = vmatprep.subr.mxu0 %v6210_v57 }
0x1aee   :  { %6788 = vmatmul.mubr.msk.f32.vlgmr.msra.gmra.mrb[22].mxu0 %vm447_vm13, %v3572_v54 }
0x1aef   :  { %6791 = vmatpush3.msra.mxu0 %v6210_v57 }
0x1af0   :  { %6795 = vmatprep.subr.mxu0 %v6209_v63 }
0x1af3   :  { %6824 = vmatmul.mubr.msk.f32.vlgmr.msra.gmra.mrb[34].mxu1 %vm359_vm1, %v4112_v55 }
0x1b11   :  { %v3919_v56 = vpop.xlane.xlu0 %3918 }
0x1b12   :  { %v3923_v58 = vsub.f32 %v3915_v50, %v3919_v56 }
0x1b14   :  { %v3925_v59 = vmul.f32 1.442695, %v3923_v58 }
0x1b1e   :  { %v3922_v1 = vpop.xlane.xlu1 %3921 }
0x1b1f   :  { %v3924_v0 = vsub.f32 %v3916_v22, %v3922_v1  ;;  %v6246_v1 = vld [vmem:[%s7593_s12 + $0x1] ss:$0 sm:$0xff] }
0x1b21   :  { %v3927_v61 = vmul.f32 1.442695, %v3924_v0 }
0x1b23   :  { %7377 = vpow2.f32 %v3927_v61 }
0x1b24   :  { %7379 = vpow2.f32 %v3925_v59 }
0x1b2d   :  { %v7378_v8 = vpop.eup %7377 }
0x1b2e   :  { %v3932_v9 = vsel %vm447_vm13, %v7378_v8, 0.0  ;;  %v7380_v53 = vpop.eup %7379 }
0x1b2f   :  { %3933 = vadd.xlane.f32.xlu0 %v3932_v9  ;;  %v3929_v62 = vsel %vm447_vm13, %v7380_v53, 0.0 }
0x1b33   :  { %3930 = vadd.xlane.f32.xlu0 %v3929_v62 }
0x1b49   :  { %7268 = vrot.lane.b32.xlu0 %v8054_v18, %s8381_s24 }
0x1bbc   :  { %v3934_v2 = vpop.xlane.xlu0 %3933 }
0x1bbd   :  { %v6775_v38 = vpop.f32.mrb[20].mxu0  ;;  %7381 = vrcp.f32 %v3934_v2 }
0x1bbe   :  { %v3447_v3 = vpop.f32.mrb[21].mxu0 }
0x1bc0   :  { %v3931_v4 = vpop.xlane.xlu0 %3930 }
0x1bc1   :  { %7383 = vrcp.f32 %v3931_v4  ;;  %v6789_v5 = vpop.f32.mrb[22].mxu0 }
0x1bc2   :  { %v3651_v41 = vpop.f32.mrb[23].mxu0 }
0x1bc3   :  { %6792 = vmatprep.mubr.msk.f32.mxu0 %vm359_vm1, %v3651_v41 }
0x1bc4   :  { %v7269_v6 = vpop.permute.xlu0 %7268  ;;  %6793 = vmatmul.mubr.msk.f32.vlgmr.msra.gmra.mrb[24].mxu0 %vm359_vm1, %v6789_v5 }
0x1bc5   :  { %v7271_v7 = vunpack.i.h.bf16 %v7269_v6  ;;  %v7270_v13 = vunpack.i.l.bf16 %v7269_v6  ;;  %6797 = vmatprep.mubr.msk.f32.mxu0 %vm359_vm1, %v3447_v3  ;;  %6796 = vmatpush3.msra.mxu0 %v6209_v63  ;;  %v6259_v6 = vld [vmem:[%s7618_s8 + $0x20] sm:$0xff] }
0x1bc6   :  { %v6825_v19 = vpop.f32.mrb[34].mxu1 }
0x1bc7   :  { %v7070_v51 = vpack.c.bf16 %v7271_v7, %v7270_v13  ;;  %v4191_v20 = vpop.f32.mrb[35].mxu1  ;;  %v4201_v50 = vmul.f32 0.35355338, %v6825_v19  ;;  %v7382_v42 = vpop.eup %7381  ;;  %v6260_v7 = vld [vmem:[%s7618_s8 + $0x28] sm:$0xff]  ;;  %v6251_v19 = vld [vmem:[%s7608_s4 + $0x20] sm:$0xff] }
0x1bc8   :  { %v4200_v21 = vmul.f32 0.35355338, %v4191_v20  ;;  %v3938_v26 = vmul.f32 %v7382_v42, %v7378_v8  ;;  %v7093_v13 = vpack.c.bf16 %v6260_v7, %v6259_v6 }
0x1bc9   :  { %7071 = vmatprep.subr.bf16.mxu0 %v7070_v51  ;;  %v4203_v24 = vadd.f32 %v4201_v50, %v7773_v15  ;;  %v6261_v50 = vld [vmem:[%s7618_s8 + $0x30] sm:$0xff] }
0x1bca   :  { %v4202_v22 = vadd.f32 %v4200_v21, %v7776_v17  ;;  %v6262_v21 = vld [vmem:[%s7618_s8 + $0x38] sm:$0xff]  ;;  %s7512_s8 = smov [#allocation2]  }
0x1bcb   :  { %v7384_v23 = vpop.eup %7383  ;;  %v4207_v12 = vsel %vm447_vm13, %v4203_v24, -inf  ;;  %v7096_v42 = vpack.c.bf16 %v6262_v21, %v6261_v50  ;;  %s6070_s6 = sshll.u32 %s7512_s8, 4  ;;  %s6071_s6 = int_to_ptr.vmem [resolvable:$true] %s6070_s6 }
0x1bcc   :  { %v4204_v25 = vsel %vm447_vm13, %v4202_v22, -inf  ;;  %6798 = vmatmul.mubr.msk.f32.vlgmr.msra.gmra.mrb[24].mxu0 %vm359_vm1, %v6775_v38  ;;  %v3937_v16 = vmul.f32 %v7384_v23, %v7380_v53  ;;  %v6254_v23 = vld [vmem:[%s7608_s4 + $0x38] sm:$0xff]  ;;  %s7442_s12 = scalar_lea.vmem %s6071_s6, 256  ;;  %p7447_p1 = scmp.lt.s32.totalorder %s6071_s6, %s6071_s6 }
0x1bcd   :  { %4205 = vmax.xlane.f32.xlu1 %v4204_v25  ;;  %7073 = vmatpush3.bf16.msra.mxu0 %v7070_v51  ;;  %v6252_v51 = vld [vmem:[%s7608_s4 + $0x28] sm:$0xff]  ;;  %v7441_v25 = vld [vmem:[%s8365_s1] sm:$0xff]  ;;  %p7443_p0 = scmp.ne.s32.totalorder %s6071_s6, %s7442_s12  ;;  %p7448_p2 = scmp.lt.s32.totalorder %s7442_s12, %s7442_s12 }
0x1bce   :  { %6811 = vmatprep.mubr.msk.f32.mxu0 %vm447_vm13, %v3937_v16  ;;  %6814 = vmatprep.subr.mxu0 %v6211_v48  ;;  %v7084_v20 = vpack.c.bf16 %v6252_v51, %v6251_v19 }
0x1bcf   :  { %p7449_p3 = por %p7448_p2, %p7447_p1 }
0x1bd0   :  { %6812 = vmatmul.mubr.msk.f32.vlgmr.msra.gmra.mrb[26].mxu0 %vm447_vm13, %v3938_v26  ;;  %7085 = vmatprep.subr.bf16.mxu1 %v7084_v20 }
0x1bd1   :  { %4208 = vmax.xlane.f32.xlu1 %v4207_v12  ;;  %6815 = vmatpush3.msra.mxu0 %v6211_v48  ;;  %p7450_p4 = pnand %p7449_p3, %p7443_p0 }
0x1bd2   :  { %7087 = vmatpush3.bf16.msra.mxu1 %v7084_v20 }
0x1c5a   :  { %v4206_v17 = vpop.xlane.xlu1 %4205 }
0x1c5b   :  { %v4210_v15 = vsub.f32 %v4202_v22, %v4206_v17  ;;  %v6253_v22 = vld [vmem:[%s7608_s4 + $0x30] sm:$0xff] }
0x1c5d   :  { %v4212_v46 = vmul.f32 1.442695, %v4210_v15 }
0x1c5e   :  { %v4209_v27 = vpop.xlane.xlu1 %4208 }
0x1c5f   :  { %v4211_v28 = vsub.f32 %v4203_v24, %v4209_v27  ;;  %v7088_v24 = vpack.c.bf16 %v6254_v23, %v6253_v22  ;;  %v6249_v27 = vld [vmem:[%s8366_s2 + $0x1] ss:$0 sm:$0xff] }
0x1c61   :  { %v4214_v31 = vmul.f32 1.442695, %v4211_v28  ;;  %7089 = vmatprep.subr.bf16.mxu1 %v7088_v24 }
0x1c62   :  { %7091 = vmatpush3.bf16.msra.mxu1 %v7088_v24 }
0x1c63   :  { %7385 = vpow2.f32 %v4214_v31 }
0x1c64   :  { %7387 = vpow2.f32 %v4212_v46  ;;  %v6250_v46 = vld [vmem:[%s8367_s7 + $0x1] ss:$0 sm:$0xff] }
0x1c6d   :  { %v7386_v32 = vpop.eup %7385 }
0x1c6e   :  { %v4219_v33 = vsel %vm447_vm13, %v7386_v32, 0.0  ;;  %v7388_v34 = vpop.eup %7387 }
0x1c6f   :  { %4220 = vadd.xlane.f32.xlu1 %v4219_v33  ;;  %v4216_v35 = vsel %vm447_vm13, %v7388_v34, 0.0 }
0x1c73   :  { %4217 = vadd.xlane.f32.xlu1 %v4216_v35 }
0x1c84   :  { %7273 = vrot.lane.b32.xlu1 %v8054_v18, %s8382_s30 }
0x1ca3   :  { %v6813_v10 = vpop.f32.mrb[26].mxu0 }
0x1ca4   :  { %v4017_v37 = vpop.f32.mrb[27].mxu0 }
0x1ca5   :  { %6816 = vmatprep.mubr.msk.f32.mxu0 %vm359_vm1, %v4017_v37  ;;  %v6264_v37 = vld [vmem:[%s8368_s10 + $0x1] ss:$0 sm:$0xff] }
0x1ca6   :  { %6817 = vmatmul.mubr.msk.f32.vlgmr.msra.gmra.mrb[24].mxu0 %vm359_vm1, %v6813_v10 }
0x1cfc   :  { %v4221_v11 = vpop.xlane.xlu1 %4220 }
0x1cfd   :  { %7389 = vrcp.f32 %v4221_v11 }
0x1d00   :  { %v4218_v40 = vpop.xlane.xlu1 %4217 }
0x1d01   :  { %7391 = vrcp.f32 %v4218_v40 }
0x1d04   :  { %v7274_v43 = vpop.permute.xlu1 %7273 }
0x1d05   :  { %v7276_v44 = vunpack.i.h.bf16 %v7274_v43  ;;  %v7275_v45 = vunpack.i.l.bf16 %v7274_v43 }
0x1d07   :  { %v7080_v47 = vpack.c.bf16 %v7276_v44, %v7275_v45  ;;  %v7390_v52 = vpop.eup %7389  ;;  %v6256_v45 = vld [vmem:[%s8369_s11 + $0x1] ss:$0 sm:$0xff] }
0x1d08   :  { %v4225_v55 = vmul.f32 %v7390_v52, %v7386_v32 }
0x1d09   :  { %7081 = vmatprep.subr.bf16.mxu0 %v7080_v47 }
0x1d0a   :  { %7083 = vmatpush3.bf16.msra.mxu0 %v7080_v47 }
0x1d0b   :  { %v7392_v18 = vpop.eup %7391  ;;  %6833 = vmatprep.subr.mxu0 %v6212_v49 }
0x1d0c   :  { %v4224_v54 = vmul.f32 %v7392_v18, %v7388_v34 }
0x1d0e   :  { %6830 = vmatprep.mubr.msk.f32.mxu0 %vm447_vm13, %v4224_v54 }
0x1d0f   :  { %6831 = vmatmul.mubr.msk.f32.vlgmr.msra.gmra.mrb[28].mxu0 %vm447_vm13, %v4225_v55 }
0x1d10   :  { %6834 = vmatpush3.msra.mxu0 %v6212_v49 }
0x1d11   :  { %7092 = vmatprep.subr.bf16.mxu0 %v7510_v39 }
0x1de2   :  { %v6832_v56 = vpop.f32.mrb[28].mxu0 }
0x1de3   :  { %v4304_v58 = vpop.f32.mrb[29].mxu0 }
0x1de4   :  { %6835 = vmatprep.mubr.msk.f32.mxu0 %vm359_vm1, %v4304_v58 }
0x1de5   :  { %6836 = vmatmul.mubr.msk.f32.vlgmr.msra.gmra.mrb[24].mxu0 %vm359_vm1, %v6832_v56 }
0x1de6   :  { %6857 = vmatprep.mubr.msk.f32.mxu0 %vm7511_vm14, %v7503_v14  ;;  %7094 = vmatpush3.bf16.msra.mxu0 %v7093_v13 }
0x1de7   :  { %7095 = vmatprep.subr.bf16.mxu0 %v7510_v39 }
0x1dea   :  { %7097 = vmatpush3.bf16.msra.mxu0 %v7096_v42 }
0x1ded   :  { %6858 = vmatmul.mubr.msk.f32.vlgmr.msra.gmra.mrb[30].mxu0 %vm213_vm0, %v7441_v25 }
0x1eb8   :  { %v6837_v0 = vpop.f32.mrb[24].mxu0 }
0x1eb9   :  { %v4405_v59 = vadd.f32 %v6837_v0, %v6246_v1  ;;  %v4385_v61 = vpop.f32.mrb[25].mxu0 }
0x1eba   :  { %v4404_v8 = vadd.f32 %v6246_v1, %v4385_v61 }
0x1ebb   :  { %v8155_v9 = vadd.f32 %v4405_v59, %v8025_v30 }
0x1ebc   :  { %v8158_v53 = vadd.f32 %v4404_v8, %v8022_v29 }
0x1ebd   :  { %v4415_v62 = vsel %vm213_vm0, %v8155_v9, 0.0 }
0x1ebe   :  { %4416 = vadd.xlane.f32.xlu1 %v4415_v62  ;;  %v4412_v14 = vsel %vm213_vm0, %v8158_v53, 0.0 }
0x1ebf   :  { %4413 = vadd.xlane.f32.xlu0 %v4412_v14 }
0x1ec0   :  { %v4627_v11 = vpop.f32.mrb[30].mxu0 }
0x1ec1   :  { %v8184_v40 = vadd.f32 %v6264_v37, %v4627_v11  ;;  %v6859_v43 = vpop.f32.mrb[31].mxu0 }
0x1ec3   :  { %6860 = vmatprep.subr.msk.mxu1 %vm359_vm1, %v8184_v40 }
0x1f4b   :  { %v4417_v57 = vpop.xlane.xlu1 %4416 }
0x1f4c   :  { %v4419_v63 = vmul.f32 0.03125, %v4417_v57  ;;  %v4414_v2 = vpop.xlane.xlu0 %4413 }
0x1f4d   :  { %v4418_v30 = vmul.f32 0.03125, %v4414_v2 }
0x1f4e   :  { %v4421_v38 = vsub.f32 %v8155_v9, %v4419_v63 }
0x1f4f   :  { %v4420_v29 = vsub.f32 %v8158_v53, %v4418_v30 }
0x1f50   :  { %v4423_v5 = vmul.f32 %v4421_v38, %v4421_v38 }
0x1f51   :  { %v4422_v3 = vmul.f32 %v4420_v29, %v4420_v29 }
0x1f52   :  { %v4427_v41 = vsel %vm213_vm0, %v4423_v5, 0.0 }
0x1f53   :  { %v4424_v4 = vsel %vm213_vm0, %v4422_v3, 0.0 }
0x1f54   :  { %4425 = vadd.xlane.f32.xlu0 %v4424_v4 }
0x1f58   :  { %4428 = vadd.xlane.f32.xlu0 %v4427_v41 }
0x1f6e   :  { %4834 = vrot.lane.b32.xlu0 %v8184_v40, %s7500_s22 }
0x1fe1   :  { %v4426_v16 = vpop.xlane.xlu0 %4425 }
0x1fe2   :  { %v4430_v26 = vmul.f32 0.03125, %v4426_v16 }
0x1fe4   :  { %v4432_v12 = vadd.f32 1e-06, %v4430_v26 }
0x1fe5   :  { %v4429_v39 = vpop.xlane.xlu0 %4428 }
0x1fe6   :  { %7393 = vrsqrt.f32 %v4432_v12  ;;  %v4431_v48 = vmul.f32 0.03125, %v4429_v39 }
0x1fe8   :  { %v4433_v17 = vadd.f32 1e-06, %v4431_v48 }
0x1fe9   :  { %v4835_v44 = vpop.permute.xlu0 %4834 }
0x1fea   :  { %7395 = vrsqrt.f32 %v4433_v17  ;;  %6870 = vmatprep.subr.msk.mxu0 %vm359_vm1, %v4835_v44 }
0x1feb   :  { %6871 = vmatpush3.xpose.msk.msra.mxu0 %vm359_vm1, %v4835_v44 }
0x1ff0   :  { %v7394_v15 = vpop.eup %7393 }
0x1ff1   :  { %v4436_v28 = vmul.f32 %v7394_v15, %v4420_v29 }
0x1ff3   :  { %v4444_v31 = vmul.f32 %v6249_v27, %v4436_v28 }
0x1ff4   :  { %v7396_v32 = vpop.eup %7395 }
0x1ff5   :  { %v4437_v33 = vmul.f32 %v7396_v32, %v4421_v38  ;;  %v4452_v34 = vadd.f32 %v6250_v46, %v4444_v31 }
0x1ff7   :  { %v4445_v35 = vmul.f32 %v6249_v27, %v4437_v33  ;;  %6846 = vmatprep.mubr.msk.f32.mxu1 %vm213_vm0, %v4452_v34 }
0x1ff9   :  { %v4453_v10 = vadd.f32 %v6250_v46, %v4445_v35 }
0x1ffb   :  { %6847 = vmatmul.mubr.msk.f32.vlgmr.msra.gmra.mrb[36].mxu1 %vm213_vm0, %v4453_v10 }
0x1ffc   :  { %6861 = vmatpush3.xpose.msk.msra.mxu1 %vm359_vm1, %v8184_v40 }
0x20ce   :  { %v6848_v47 = vpop.f32.mrb[36].mxu1 }
0x20cf   :  { %v8195_v49 = vadd.f32 %v6848_v47, %v6256_v45  ;;  %v4539_v52 = vpop.f32.mrb[37].mxu1  ;;  %v6267_v47 = vld [vmem:[%s8372_s18 + $0x28] sm:$0xff] }
0x20d0   :  { %v8197_v18 = vadd.f32 %v6256_v45, %v4539_v52  ;;  %6880 = vmatprep.subr.mxu0 %v6267_v47  ;;  %v6266_v52 = vld [vmem:[%s8372_s18 + $0x20] sm:$0xff] }
0x20d1   :  { %4832 = vrot.lane.b32.xlu0 %v8195_v49, %s7500_s22 }
0x20d2   :  { %4830 = vrot.lane.b32.xlu1 %v8197_v18, %s7500_s22  ;;  %6862 = vmatprep.mubr.msk.f32.mxu1 %vm359_vm1, %v8197_v18 }
0x20d3   :  { %6863 = vmatmul.mubr.msk.f32.vlgmr.msra.gmra.mrb[38].mxu1 %vm359_vm1, %v8195_v49 }
0x2143   :  { %v4833_v55 = vpop.permute.xlu0 %4832 }
0x2144   :  { %v4831_v54 = vpop.permute.xlu1 %4830 }
0x2145   :  { %6872 = vmatprep.mubr.msk.f32.mxu0 %vm359_vm1, %v4831_v54 }
0x2146   :  { %6873 = vmatmul.mubr.msk.f32.vlgmr.msra.gmra.mrb[32].mxu0 %vm359_vm1, %v4833_v55 }
0x2147   :  { %6881 = vmatpush3.msra.mxu0 %v6267_v47 }
0x2148   :  { %6885 = vmatprep.subr.mxu0 %v6266_v52 }
0x21a6   :  { %v6864_v56 = vpop.f32.mrb[38].mxu1 }
0x21a7   :  { %v4721_v58 = vmul.f32 0.35355338, %v6864_v56  ;;  %v4711_v1 = vpop.f32.mrb[39].mxu1 }
0x21a8   :  { %v4720_v0 = vmul.f32 0.35355338, %v4711_v1 }
0x21a9   :  { %v4723_v59 = vadd.f32 %v4721_v58, %v7909_v60 }
0x21aa   :  { %v4722_v61 = vadd.f32 %v4720_v0, %v7912_v36 }
0x21ab   :  { %v4727_v8 = vsel %vm359_vm1, %v4723_v59, -inf }
0x21ac   :  { %4728 = vmax.xlane.f32.xlu0 %v4727_v8  ;;  %v4724_v62 = vsel %vm359_vm1, %v4722_v61, -inf }
0x21ad   :  { %4725 = vmax.xlane.f32.xlu1 %v4724_v62 }
0x21be   :  { %4746 = vrot.lane.b32.xlu1 %v8184_v40, %s7499_s5 }
0x2219   :  { %v6874_v14 = vpop.f32.mrb[32].mxu0 }
0x221a   :  { %v4908_v57 = vpop.f32.mrb[33].mxu0  ;;  %v4918_v63 = vmul.f32 0.35355338, %v6874_v14 }
0x221b   :  { %v4917_v2 = vmul.f32 0.35355338, %v4908_v57 }
0x221c   :  { %v4920_v38 = vadd.f32 %v4918_v63, %v7909_v60 }
0x221d   :  { %v4919_v30 = vadd.f32 %v4917_v2, %v7912_v36 }
0x221e   :  { %v4924_v3 = vsel %vm359_vm1, %v4920_v38, -inf }
0x221f   :  { %v4921_v29 = vsel %vm359_vm1, %v4919_v30, -inf }
0x2220   :  { %4922 = vmax.xlane.f32.xlu0 %v4921_v29 }
0x2224   :  { %4925 = vmax.xlane.f32.xlu0 %v4924_v3 }
0x2239   :  { %v4729_v4 = vpop.xlane.xlu0 %4728 }
0x223a   :  { %v4731_v5 = vsub.f32 %v4723_v59, %v4729_v4  ;;  %v4726_v41 = vpop.xlane.xlu1 %4725 }
0x223b   :  { %v4730_v6 = vsub.f32 %v4722_v61, %v4726_v41 }
0x223c   :  { %v4734_v7 = vmul.f32 1.442695, %v4731_v5 }
0x223d   :  { %v4732_v13 = vmul.f32 1.442695, %v4730_v6 }
0x223e   :  { %7397 = vpow2.f32 %v4734_v7  ;;  %v4747_v19 = vpop.permute.xlu1 %4746 }
0x223f   :  { %7399 = vpow2.f32 %v4732_v13  ;;  %6865 = vmatprep.subr.mxu1 %v4747_v19 }
0x2240   :  { %6866 = vmatpush3.msra.mxu1 %v4747_v19 }
0x2248   :  { %v7398_v51 = vpop.eup %7397 }
0x2249   :  { %v7400_v20 = vpop.eup %7399  ;;  %v4739_v50 = vsel %vm359_vm1, %v7398_v51, 0.0 }
0x224a   :  { %4740 = vadd.xlane.f32.xlu0 %v4739_v50  ;;  %v4736_v21 = vsel %vm359_vm1, %v7400_v20, 0.0 }
0x224b   :  { %4737 = vadd.xlane.f32.xlu1 %v4736_v21 }
0x225c   :  { %5193 = vrot.lane.b32.xlu1 %v8184_v40, %s7501_s23 }
0x2260   :  { %5189 = vrot.lane.b32.xlu1 %v8197_v18, %s7501_s23 }
0x22ad   :  { %v4923_v42 = vpop.xlane.xlu0 %4922 }
0x22ae   :  { %v4927_v22 = vsub.f32 %v4919_v30, %v4923_v42 }
0x22b0   :  { %v4929_v23 = vmul.f32 1.442695, %v4927_v22  ;;  %v6268_v22 = vld [vmem:[%s8372_s18 + $0x30] sm:$0xff] }
0x22b1   :  { %v4926_v24 = vpop.xlane.xlu0 %4925 }
0x22b2   :  { %7401 = vpow2.f32 %v4929_v23  ;;  %v4928_v25 = vsub.f32 %v4920_v38, %v4926_v24 }
0x22b4   :  { %v4931_v16 = vmul.f32 1.442695, %v4928_v25 }
0x22b6   :  { %7403 = vpow2.f32 %v4931_v16 }
0x22bc   :  { %v7402_v26 = vpop.eup %7401 }
0x22bd   :  { %v4933_v12 = vsel %vm359_vm1, %v7402_v26, 0.0 }
0x22be   :  { %4934 = vadd.xlane.f32.xlu1 %v4933_v12 }
0x22c0   :  { %v7404_v39 = vpop.eup %7403 }
0x22c1   :  { %v4936_v48 = vsel %vm359_vm1, %v7404_v39, 0.0 }
0x22c2   :  { %4937 = vadd.xlane.f32.xlu0 %v4936_v48 }
0x22cf   :  { %5191 = vrot.lane.b32.xlu1 %v8195_v49, %s7501_s23 }
0x22d7   :  { %v4741_v17 = vpop.xlane.xlu0 %4740 }
0x22d8   :  { %7405 = vrcp.f32 %v4741_v17  ;;  %v4738_v15 = vpop.xlane.xlu1 %4737  ;;  %4943 = vrot.lane.b32.xlu0 %v8184_v40, %s7498_s0 }
0x22d9   :  { %7407 = vrcp.f32 %v4738_v15 }
0x22dc   :  { %v5194_v32 = vpop.permute.xlu1 %5193 }
0x22e0   :  { %v5190_v33 = vpop.permute.xlu1 %5189 }
0x22e2   :  { %v7406_v27 = vpop.eup %7405 }
0x22e3   :  { %v7408_v28 = vpop.eup %7407  ;;  %v4745_v31 = vmul.f32 %v7406_v27, %v7398_v51 }
0x22e4   :  { %v4744_v46 = vmul.f32 %v7408_v28, %v7400_v20 }
0x22e6   :  { %6867 = vmatprep.mubr.msk.f32.mxu1 %vm359_vm1, %v4744_v46 }
0x22e7   :  { %6868 = vmatmul.mubr.msk.f32.vlgmr.msra.gmra.mrb[40].mxu1 %vm359_vm1, %v4745_v31 }
0x234b   :  { %v4935_v34 = vpop.xlane.xlu1 %4934 }
0x234c   :  { %7409 = vrcp.f32 %v4935_v34 }
0x234f   :  { %v4938_v35 = vpop.xlane.xlu0 %4937  ;;  %v5192_v45 = vpop.permute.xlu1 %5191 }
0x2350   :  { %7411 = vrcp.f32 %v4938_v35 }
0x2353   :  { %v4944_v10 = vpop.permute.xlu0 %4943 }
0x2354   :  { %6875 = vmatprep.subr.mxu1 %v4944_v10 }
0x2355   :  { %6876 = vmatpush3.msra.mxu1 %v4944_v10 }
0x2356   :  { %v7410_v37 = vpop.eup %7409  ;;  %6890 = vmatprep.subr.msk.mxu1 %vm359_vm1, %v5194_v32 }
0x2357   :  { %v4941_v11 = vmul.f32 %v7410_v37, %v7402_v26 }
0x2359   :  { %6877 = vmatprep.mubr.msk.f32.mxu1 %vm359_vm1, %v4941_v11 }
0x235a   :  { %v7412_v43 = vpop.eup %7411 }
0x235b   :  { %v4942_v44 = vmul.f32 %v7412_v43, %v7404_v39  ;;  %v6269_v43 = vld [vmem:[%s8372_s18 + $0x38] sm:$0xff] }
0x235d   :  { %6878 = vmatmul.mubr.msk.f32.vlgmr.msra.gmra.mrb[42].mxu1 %vm359_vm1, %v4942_v44 }
0x235e   :  { %6891 = vmatpush3.xpose.msk.msra.mxu1 %vm359_vm1, %v5194_v32  ;;  %6892 = vmatprep.mubr.msk.f32.mxu1 %vm359_vm1, %v5190_v33 }
0x2361   :  { %6893 = vmatmul.mubr.msk.f32.vlgmr.msra.gmra.mrb[44].mxu1 %vm359_vm1, %v5192_v45 }
0x23ba   :  { %v6869_v54 = vpop.f32.mrb[40].mxu1 }
0x23bb   :  { %v4821_v55 = vpop.f32.mrb[41].mxu1 }
0x2430   :  { %v6879_v56 = vpop.f32.mrb[42].mxu1 }
0x2431   :  { %v5018_v58 = vpop.f32.mrb[43].mxu1 }
0x2432   :  { %6882 = vmatprep.mubr.msk.f32.mxu0 %vm359_vm1, %v5018_v58 }
0x2433   :  { %6883 = vmatmul.mubr.msk.f32.vlgmr.msra.gmra.mrb[34].mxu0 %vm359_vm1, %v6879_v56 }
0x2434   :  { %6887 = vmatprep.mubr.msk.f32.mxu0 %vm359_vm1, %v4821_v55  ;;  %v6894_v1 = vpop.f32.mrb[44].mxu1  ;;  %6886 = vmatpush3.msra.mxu0 %v6266_v52  ;;  %v6299_v55 = vld [vmem:[%s8373_s15 + $0x1] ss:$0 sm:$0xff] }
0x2435   :  { %v5277_v0 = vmul.f32 0.35355338, %v6894_v1  ;;  %v5267_v59 = vpop.f32.mrb[45].mxu1  ;;  %6900 = vmatprep.subr.mxu0 %v6268_v22 }
0x2436   :  { %v5276_v61 = vmul.f32 0.35355338, %v5267_v59 }
0x2437   :  { %v5279_v8 = vadd.f32 %v5277_v0, %v7909_v60 }
0x2438   :  { %v5278_v62 = vadd.f32 %v5276_v61, %v7912_v36 }
0x2439   :  { %v5283_v14 = vsel %vm359_vm1, %v5279_v8, -inf }
0x243a   :  { %5284 = vmax.xlane.f32.xlu1 %v5283_v14  ;;  %v5280_v57 = vsel %vm359_vm1, %v5278_v62, -inf }
0x243b   :  { %5281 = vmax.xlane.f32.xlu0 %v5280_v57  ;;  %6888 = vmatmul.mubr.msk.f32.vlgmr.msra.gmra.mrb[34].mxu0 %vm359_vm1, %v6869_v54 }
0x243c   :  { %6901 = vmatpush3.msra.mxu0 %v6268_v22 }
0x244b   :  { %5473 = vrot.lane.b32.xlu1 %v8184_v40, %s8380_s19 }
0x244f   :  { %5469 = vrot.lane.b32.xlu1 %v8197_v18, %s8380_s19 }
0x2453   :  { %5471 = vrot.lane.b32.xlu1 %v8195_v49, %s8380_s19 }
0x24c7   :  { %v5285_v63 = vpop.xlane.xlu1 %5284 }
0x24c8   :  { %v5287_v2 = vsub.f32 %v5279_v8, %v5285_v63  ;;  %v5282_v30 = vpop.xlane.xlu0 %5281 }
0x24c9   :  { %v5286_v38 = vsub.f32 %v5278_v62, %v5282_v30 }
0x24ca   :  { %v5290_v29 = vmul.f32 1.442695, %v5287_v2 }
0x24cb   :  { %v5288_v3 = vmul.f32 1.442695, %v5286_v38  ;;  %v5474_v13 = vpop.permute.xlu1 %5473 }
0x24cc   :  { %7413 = vpow2.f32 %v5290_v29 }
0x24cd   :  { %7415 = vpow2.f32 %v5288_v3 }
0x24cf   :  { %v5470_v20 = vpop.permute.xlu1 %5469 }
0x24d3   :  { %v5472_v42 = vpop.permute.xlu1 %5471 }
0x24d6   :  { %v7414_v4 = vpop.eup %7413 }
0x24d7   :  { %v5295_v5 = vsel %vm359_vm1, %v7414_v4, 0.0  ;;  %v7416_v41 = vpop.eup %7415 }
0x24d8   :  { %5296 = vadd.xlane.f32.xlu0 %v5295_v5  ;;  %v5292_v6 = vsel %vm359_vm1, %v7416_v41, 0.0  ;;  %v6303_v5 = vld [vmem:[%s8374_s16 + $0x28] sm:$0xff] }
0x24dc   :  { %5293 = vadd.xlane.f32.xlu0 %v5292_v6  ;;  %v6304_v6 = vld [vmem:[%s8374_s16 + $0x30] sm:$0xff] }
0x24f2   :  { %5302 = vrot.lane.b32.xlu0 %v8184_v40, %s7502_s26 }
0x2565   :  { %v5297_v49 = vpop.xlane.xlu0 %5296 }
0x2566   :  { %7417 = vrcp.f32 %v5297_v49  ;;  %v6305_v49 = vld [vmem:[%s8374_s16 + $0x38] sm:$0xff] }
0x2569   :  { %v5294_v18 = vpop.xlane.xlu0 %5293 }
0x256a   :  { %7419 = vrcp.f32 %v5294_v18  ;;  %v7102_v18 = vpack.c.bf16 %v6305_v49, %v6304_v6 }
0x256d   :  { %v5303_v7 = vpop.permute.xlu0 %5302 }
0x256e   :  { %6895 = vmatprep.subr.mxu1 %v5303_v7 }
0x256f   :  { %6896 = vmatpush3.msra.mxu1 %v5303_v7 }
0x2570   :  { %6905 = vmatprep.subr.msk.mxu1 %vm359_vm1, %v5474_v13  ;;  %v7418_v19 = vpop.eup %7417 }
0x2571   :  { %v5301_v21 = vmul.f32 %v7418_v19, %v7414_v4  ;;  %v6302_v4 = vld [vmem:[%s8374_s16 + $0x20] sm:$0xff] }
0x2574   :  { %v7420_v51 = vpop.eup %7419 }
0x2575   :  { %v5300_v50 = vmul.f32 %v7420_v51, %v7416_v41  ;;  %v7098_v41 = vpack.c.bf16 %v6303_v5, %v6302_v4 }
0x2577   :  { %6897 = vmatprep.mubr.msk.f32.mxu1 %vm359_vm1, %v5300_v50 }
0x2578   :  { %6898 = vmatmul.mubr.msk.f32.vlgmr.msra.gmra.mrb[46].mxu1 %vm359_vm1, %v5301_v21 }
0x2579   :  { %6906 = vmatpush3.xpose.msk.msra.mxu1 %vm359_vm1, %v5474_v13  ;;  %6907 = vmatprep.mubr.msk.f32.mxu1 %vm359_vm1, %v5470_v20 }
0x257a   :  { %7099 = vmatprep.subr.bf16.mxu1 %v7098_v41 }
0x257c   :  { %6908 = vmatmul.mubr.msk.f32.vlgmr.msra.gmra.mrb[48].mxu1 %vm359_vm1, %v5472_v42  ;;  %v6316_v42 = vld [vmem:[%s8375_s28 + $0x1] ss:$0 sm:$0xff] }
0x257d   :  { %7101 = vmatpush3.bf16.msra.mxu1 %v7098_v41 }
0x257e   :  { %7103 = vmatprep.subr.bf16.mxu1 %v7102_v18 }
0x2581   :  { %7105 = vmatpush3.bf16.msra.mxu1 %v7102_v18 }
0x264b   :  { %v6899_v23 = vpop.f32.mrb[46].mxu1 }
0x264c   :  { %v5377_v24 = vpop.f32.mrb[47].mxu1 }
0x264d   :  { %6902 = vmatprep.mubr.msk.f32.mxu0 %vm359_vm1, %v5377_v24 }
0x264e   :  { %6903 = vmatmul.mubr.msk.f32.vlgmr.msra.gmra.mrb[34].mxu0 %vm359_vm1, %v6899_v23  ;;  %v6317_v23 = vld [vmem:[%s8376_s29 + $0x1] ss:$0 sm:$0xff] }
0x264f   :  { %v6909_v25 = vpop.f32.mrb[48].mxu1 }
0x2650   :  { %v5557_v16 = vmul.f32 0.35355338, %v6909_v25  ;;  %v5547_v26 = vpop.f32.mrb[49].mxu1 }
0x2651   :  { %v5556_v12 = vmul.f32 0.35355338, %v5547_v26 }
0x2652   :  { %v5559_v39 = vadd.f32 %v5557_v16, %v7909_v60 }
0x2653   :  { %v5558_v48 = vadd.f32 %v5556_v12, %v7912_v36 }
0x2654   :  { %v5563_v17 = vsel %vm359_vm1, %v5559_v39, -inf }
0x2655   :  { %5564 = vmax.xlane.f32.xlu1 %v5563_v17  ;;  %v5560_v15 = vsel %vm359_vm1, %v5558_v48, -inf  ;;  %v6308_v17 = vld [vmem:[%s8377_s25 + $0x48] sm:$0xff] }
0x2656   :  { %5561 = vmax.xlane.f32.xlu0 %v5560_v15 }
0x26e2   :  { %v5565_v27 = vpop.xlane.xlu1 %5564 }
0x26e3   :  { %v5567_v28 = vsub.f32 %v5559_v39, %v5565_v27  ;;  %v5562_v46 = vpop.xlane.xlu0 %5561  ;;  %v6309_v27 = vld [vmem:[%s8377_s25 + $0x50] sm:$0xff] }
0x26e4   :  { %v5566_v31 = vsub.f32 %v5558_v48, %v5562_v46  ;;  %v6307_v48 = vld [vmem:[%s8377_s25 + $0x40] sm:$0xff] }
0x26e5   :  { %v5570_v32 = vmul.f32 1.442695, %v5567_v28  ;;  %v7106_v15 = vpack.c.bf16 %v6308_v17, %v6307_v48  ;;  %v6310_v28 = vld [vmem:[%s8377_s25 + $0x58] sm:$0xff] }
0x26e6   :  { %v5568_v33 = vmul.f32 1.442695, %v5566_v31  ;;  %v7110_v46 = vpack.c.bf16 %v6310_v28, %v6309_v27  ;;  %v6311_v31 = vld [vmem:[%s8377_s25 + $0x60] sm:$0xff] }
0x26e7   :  { %7421 = vpow2.f32 %v5570_v32  ;;  %v6312_v32 = vld [vmem:[%s8377_s25 + $0x68] sm:$0xff] }
0x26e8   :  { %7423 = vpow2.f32 %v5568_v33  ;;  %v7114_v33 = vpack.c.bf16 %v6312_v32, %v6311_v31 }
0x26f1   :  { %v7422_v34 = vpop.eup %7421 }
0x26f2   :  { %v5575_v60 = vsel %vm359_vm1, %v7422_v34, 0.0  ;;  %v7424_v35 = vpop.eup %7423 }
0x26f3   :  { %5576 = vadd.xlane.f32.xlu0 %v5575_v60  ;;  %v5572_v36 = vsel %vm359_vm1, %v7424_v35, 0.0  ;;  %v6314_v60 = vld [vmem:[%s8377_s25 + $0x78] sm:$0xff] }
0x26f7   :  { %5573 = vadd.xlane.f32.xlu0 %v5572_v36  ;;  %v6318_v36 = vld [vmem:[%s8378_s21 + $0x1] ss:$0 sm:$0xff] }
0x270d   :  { %5582 = vrot.lane.b32.xlu0 %v8184_v40, %s8379_s14 }
0x2780   :  { %v5577_v10 = vpop.xlane.xlu0 %5576 }
0x2781   :  { %7425 = vrcp.f32 %v5577_v10 }
0x2784   :  { %v5574_v37 = vpop.xlane.xlu0 %5573 }
0x2785   :  { %7427 = vrcp.f32 %v5574_v37 }
0x2788   :  { %v5583_v11 = vpop.permute.xlu0 %5582 }
0x2789   :  { %6910 = vmatprep.subr.mxu0 %v5583_v11 }
0x278a   :  { %6911 = vmatpush3.msra.mxu0 %v5583_v11 }
0x278b   :  { %6915 = vmatprep.subr.mxu0 %v6269_v43  ;;  %v7426_v44 = vpop.eup %7425 }
0x278c   :  { %v5581_v52 = vmul.f32 %v7426_v44, %v7422_v34  ;;  %v6313_v34 = vld [vmem:[%s8377_s25 + $0x70] sm:$0xff] }
0x278f   :  { %v7428_v45 = vpop.eup %7427 }
0x2790   :  { %v5580_v47 = vmul.f32 %v7428_v45, %v7424_v35  ;;  %v7118_v35 = vpack.c.bf16 %v6314_v60, %v6313_v34 }
0x2792   :  { %6912 = vmatprep.mubr.msk.f32.mxu0 %vm359_vm1, %v5580_v47 }
0x2793   :  { %6913 = vmatmul.mubr.msk.f32.vlgmr.msra.gmra.mrb[36].mxu0 %vm359_vm1, %v5581_v52 }
0x2794   :  { %6916 = vmatpush3.msra.mxu0 %v6269_v43 }
0x2795   :  { %7107 = vmatprep.subr.bf16.mxu0 %v7106_v15 }
0x2866   :  { %v6914_v40 = vpop.f32.mrb[36].mxu0 }
0x2867   :  { %v5657_v54 = vpop.f32.mrb[37].mxu0 }
0x2868   :  { %6917 = vmatprep.mubr.msk.f32.mxu0 %vm359_vm1, %v5657_v54 }
0x2869   :  { %6918 = vmatmul.mubr.msk.f32.vlgmr.msra.gmra.mrb[34].mxu0 %vm359_vm1, %v6914_v40 }
0x286a   :  { %7109 = vmatpush3.bf16.msra.mxu0 %v7106_v15 }
0x286b   :  { %7111 = vmatprep.subr.bf16.mxu0 %v7110_v46 }
0x286e   :  { %7113 = vmatpush3.bf16.msra.mxu0 %v7110_v46 }
0x286f   :  { %7115 = vmatprep.subr.bf16.mxu0 %v7114_v33 }
0x2872   :  { %7117 = vmatpush3.bf16.msra.mxu0 %v7114_v33 }
0x2873   :  { %7119 = vmatprep.subr.bf16.mxu0 %v7118_v35 }
0x2876   :  { %7121 = vmatpush3.bf16.msra.mxu0 %v7118_v35 }
0x293c   :  { %v6919_v56 = vpop.f32.mrb[34].mxu0 }
0x293d   :  { %v5738_v58 = vpop.f32.mrb[35].mxu0  ;;  %v5758_v1 = vadd.f32 %v6919_v56, %v6299_v55 }
0x293e   :  { %v5757_v0 = vadd.f32 %v6299_v55, %v5738_v58 }
0x293f   :  { %v8286_v61 = vadd.f32 %v5758_v1, %v8155_v9 }
0x2940   :  { %v8283_v59 = vadd.f32 %v5757_v0, %v8158_v53 }
0x2941   :  { %v5786_v62 = vsel %vm213_vm0, %v8286_v61, 0.0 }
0x2942   :  { %v5783_v8 = vsel %vm213_vm0, %v8283_v59, 0.0 }
0x2943   :  { %5784 = vadd.xlane.f32.xlu1 %v5783_v8 }
0x2947   :  { %5787 = vadd.xlane.f32.xlu1 %v5786_v62 }
0x29d0   :  { %v5785_v14 = vpop.xlane.xlu1 %5784 }
0x29d1   :  { %v5789_v57 = vmul.f32 0.03125, %v5785_v14 }
0x29d3   :  { %v5791_v63 = vsub.f32 %v8283_v59, %v5789_v57 }
0x29d4   :  { %v5788_v53 = vpop.xlane.xlu1 %5787 }
0x29d5   :  { %v5790_v2 = vmul.f32 0.03125, %v5788_v53  ;;  %v5793_v9 = vmul.f32 %v5791_v63, %v5791_v63 }
0x29d7   :  { %v5792_v30 = vsub.f32 %v8286_v61, %v5790_v2  ;;  %v5795_v38 = vsel %vm213_vm0, %v5793_v9, 0.0  ;;  %v6321_v9 = vld [vmem:[%s7663_s27 + $0x1] ss:$0 sm:$0xff] }
0x29d8   :  { %5796 = vadd.xlane.f32.xlu1 %v5795_v38 }
0x29d9   :  { %v5794_v29 = vmul.f32 %v5792_v30, %v5792_v30 }
0x29db   :  { %v5798_v3 = vsel %vm213_vm0, %v5794_v29, 0.0 }
0x29dc   :  { %5799 = vadd.xlane.f32.xlu1 %v5798_v3 }
0x2a65   :  { %v5797_v7 = vpop.xlane.xlu1 %5796 }
0x2a66   :  { %v5801_v13 = vmul.f32 0.03125, %v5797_v7 }
0x2a68   :  { %v5803_v19 = vadd.f32 1e-06, %v5801_v13 }
0x2a69   :  { %v5800_v51 = vpop.xlane.xlu1 %5799 }
0x2a6a   :  { %7429 = vrsqrt.f32 %v5803_v19  ;;  %v5802_v20 = vmul.f32 0.03125, %v5800_v51 }
0x2a6c   :  { %v5804_v50 = vadd.f32 1e-06, %v5802_v20 }
0x2a6e   :  { %7431 = vrsqrt.f32 %v5804_v50 }
0x2a74   :  { %v7430_v21 = vpop.eup %7429 }
0x2a75   :  { %v5807_v22 = vmul.f32 %v7430_v21, %v5791_v63 }
0x2a77   :  { %v5815_v24 = vmul.f32 %v6316_v42, %v5807_v22 }
0x2a78   :  { %v7432_v25 = vpop.eup %7431 }
0x2a79   :  { %v5808_v16 = vmul.f32 %v7432_v25, %v5792_v30  ;;  %v5823_v26 = vadd.f32 %v6317_v23, %v5815_v24 }
0x2a7b   :  { %v5816_v12 = vmul.f32 %v6316_v42, %v5808_v16  ;;  %6928 = vmatprep.mubr.msk.f32.mxu1 %vm213_vm0, %v5823_v26  ;;  %v6324_v26 = vld [vmem:[%s7668_s20] ss:$0 sm:$0xff] }
0x2a7d   :  { %v5824_v39 = vadd.f32 %v6317_v23, %v5816_v12 }
0x2a7f   :  { %6929 = vmatmul.mubr.msk.f32.vlgmr.msra.gmra.mrb[50].mxu1 %vm213_vm0, %v5824_v39  ;;  %v6325_v39 = vld [vmem:[%s7673_s3] ss:$0 sm:$0xff] }
0x2b52   :  { %v6930_v10 = vpop.f32.mrb[50].mxu1 }
0x2b53   :  { %v5909_v37 = vadd.f32 %v6930_v10, %v6318_v36  ;;  %v5903_v11 = vpop.f32.mrb[51].mxu1 }
0x2b54   :  { %v5904_v43 = vadd.f32 %v6318_v36, %v5903_v11 }
0x2b55   :  { %v5915_v44 = vmul.f32 0.044715, %v5909_v37  ;;  %v5913_v63 = vmul.f32 0.5, %v5909_v37 }
0x2b56   :  { %v5914_v45 = vmul.f32 0.044715, %v5904_v43  ;;  %v5912_v14 = vmul.f32 0.5, %v5904_v43 }
0x2b57   :  { %v5917_v47 = vmul.f32 %v5915_v44, %v5909_v37 }
0x2b58   :  { %v5916_v52 = vmul.f32 %v5914_v45, %v5904_v43 }
0x2b59   :  { %v5919_v40 = vmul.f32 %v5917_v47, %v5909_v37 }
0x2b5a   :  { %v5918_v54 = vmul.f32 %v5916_v52, %v5904_v43 }
0x2b5b   :  { %v5921_v55 = vadd.f32 %v5919_v40, %v5909_v37 }
0x2b5c   :  { %v5920_v56 = vadd.f32 %v5918_v54, %v5904_v43 }
0x2b5d   :  { %v5923_v58 = vmul.f32 0.7978846, %v5921_v55 }
0x2b5e   :  { %v5922_v1 = vmul.f32 0.7978846, %v5920_v56 }
0x2b5f   :  { %7433 = vtanh.f32 %v5923_v58 }
0x2b60   :  { %7435 = vtanh.f32 %v5922_v1 }
0x2b69   :  { %v7434_v0 = vpop.eup %7433 }
0x2b6a   :  { %v7436_v8 = vpop.eup %7435  ;;  %v5927_v62 = vadd.f32 1.0, %v7434_v0 }
0x2b6b   :  { %v5926_v57 = vadd.f32 1.0, %v7436_v8 }
0x2b6c   :  { %v5929_v2 = vmul.f32 %v5927_v62, %v5913_v63 }
0x2b6d   :  { %v5928_v53 = vmul.f32 %v5926_v57, %v5912_v14 }
0x2b6f   :  { %6947 = vmatprep.mubr.msk.f32.mxu0 %vm3025_vm8, %v5928_v53 }
0x2b70   :  { %6948 = vmatmul.mubr.msk.f32.vlgmr.msra.gmra.mrb[38].mxu0 %vm3025_vm8, %v5929_v2 }
0x2c43   :  { %v6949_v30 = vpop.f32.mrb[38].mxu0 }
0x2c44   :  { %v6008_v38 = vpop.f32.mrb[39].mxu0  ;;  %v6014_v29 = vadd.f32 %v6949_v30, %v6321_v9 }
0x2c45   :  { %v6009_v3 = vadd.f32 %v6321_v9, %v6008_v38 }
0x2c46   :  { %v6018_v5 = vadd.f32 %v6014_v29, %v8286_v61 }
0x2c47   :  { %v6017_v4 = vadd.f32 %v6009_v3, %v8283_v59 }
0x2c48   :  { %v6024_v6 = vsel %vm213_vm0, %v6018_v5, 0.0 }
0x2c49   :  { %v6021_v41 = vsel %vm213_vm0, %v6017_v4, 0.0 }
0x2c4a   :  { %6022 = vadd.xlane.f32.xlu1 %v6021_v41 }
0x2c4e   :  { %6025 = vadd.xlane.f32.xlu1 %v6024_v6 }
0x2cd7   :  { %v6023_v49 = vpop.xlane.xlu1 %6022 }
0x2cd8   :  { %v6027_v18 = vmul.f32 0.03125, %v6023_v49 }
0x2cda   :  { %v6029_v7 = vsub.f32 %v6017_v4, %v6027_v18 }
0x2cdb   :  { %v6026_v13 = vpop.xlane.xlu1 %6025 }
0x2cdc   :  { %v6028_v19 = vmul.f32 0.03125, %v6026_v13  ;;  %v6031_v51 = vmul.f32 %v6029_v7, %v6029_v7 }
0x2cde   :  { %v6030_v20 = vsub.f32 %v6018_v5, %v6028_v19  ;;  %v6033_v50 = vsel %vm213_vm0, %v6031_v51, 0.0 }
0x2cdf   :  { %6034 = vadd.xlane.f32.xlu0 %v6033_v50 }
0x2ce0   :  { %v6032_v59 = vmul.f32 %v6030_v20, %v6030_v20 }
0x2ce2   :  { %v6036_v61 = vsel %vm213_vm0, %v6032_v59, 0.0 }
0x2ce3   :  { %6037 = vadd.xlane.f32.xlu1 %v6036_v61 }
0x2d6c   :  { %v6035_v21 = vpop.xlane.xlu0 %6034 }
0x2d6d   :  { %v6039_v42 = vmul.f32 0.03125, %v6035_v21 }
0x2d6f   :  { %v6041_v22 = vadd.f32 1e-06, %v6039_v42 }
0x2d70   :  { %v6038_v23 = vpop.xlane.xlu1 %6037 }
0x2d71   :  { %7437 = vrsqrt.f32 %v6041_v22  ;;  %v6040_v24 = vmul.f32 0.03125, %v6038_v23 }
0x2d73   :  { %v6042_v25 = vadd.f32 1e-06, %v6040_v24 }
0x2d75   :  { %7439 = vrsqrt.f32 %v6042_v25 }
0x2d7b   :  { %v7438_v16 = vpop.eup %7437 }
0x2d7c   :  { %v6045_v12 = vmul.f32 %v7438_v16, %v6029_v7 }
0x2d7e   :  { %v6053_v48 = vmul.f32 %v6324_v26, %v6045_v12 }
0x2d7f   :  { %v7440_v17 = vpop.eup %7439 }
0x2d80   :  { %v6046_v15 = vmul.f32 %v7440_v17, %v6030_v20  ;;  %v6061_v27 = vadd.f32 %v6325_v39, %v6053_v48 }
0x2d82   :  { %v6054_v28 = vmul.f32 %v6324_v26, %v6046_v15  ;;  %6063 = vst.msk [vmem:[#allocation2] sm:$0xff] %vm213_vm0, %v6061_v27 }
0x2d84   :  { %v6062_v46 = vadd.f32 %v6325_v39, %v6054_v28 }
0x2d86   :  { %6064 = vst.msk [vmem:[#allocation2 + $0x8] sm:$0xff] %vm213_vm0, %v6062_v46 }
0x2d87   :  { %7453 = shalt.err (!%p7450_p4)
}
0x2d88   :  { %s7454_s3 = scalar_lea.hbm %s7678_s9, 256 }
0x2d89   :  { %p7455_p5 = scmp.ne.s32.totalorder %s7678_s9, %s7454_s3  ;;  %p7458_p6 = scmp.lt.u32.totalorder %s7454_s3, %s7678_s9 }
0x2d8b   :  { %p7460_p7 = pnand %p7458_p6, %p7455_p5 }
0x2d8d   :  { %7463 = shalt.err (!%p7460_p7)
}
0x2d8e   :  { %s7513_s20 = smov 128   ;;  %s7514_s27 = smov 8  }
0x2d8f   :  { %6076 = dma.vmem_to_hbm [thread:$0]  %s6071_s6, 256, %s7678_s9, [#allocation3], %s7513_s20, %s7513_s20, %s7514_s27  }
0x2d90   :  { %7464 = dma.done.wait [#allocation3], 256  }
0x2d91   :  { %7465 = vsyncadd [#allocation3], 4294967040 }
0x2d92   :  { %6080 = vsyncpa [#allocation3], 1 }

</bundles_post_ra>
